<compile_context>
chip_gen: v5e
topology: v5e:2x2
jax: 0.10.0
libtpu: 0.0.40
codegen_flags: <defaults>
</compile_context>

<pallas_src>
import functools

import jax
import jax.numpy as jnp
from jax.experimental import pallas as pl
from jax.experimental.pallas import tpu as pltpu


def _round_up(x, m):
    return ((x + m - 1) // m) * m


# -----------------------------------------------------------------------------
# Fused kernel: one batch element, both layers, everything resident in VMEM.
#   x_ref  : (1, Cin_p, Sp_ext)   input row, extended padded-frame layout
#   w*_ref : (27, Cout_p, Cin_p)  conv taps (kd-major / kw-minor)
#   g*,b*  : (Cout_p, 1)          InstanceNorm affine params (per channel)
#   m_ref  : (1, Sp)              validity mask of the padded frame
#   o_ref  : (1, Cout, Sp)        final activation, lane-dense padded frame
#   h_ref  : (Cout_p, Sp_ext)     VMEM scratch holding layer-1 activation
# -----------------------------------------------------------------------------
def _fused_double_conv_kernel(x_ref, w1_ref, g1_ref, b1_ref,
                              w2_ref, g2_ref, b2_ref, m_ref,
                              o_ref, h_ref,
                              *, tap_offsets, pad, sp, count):
    m = m_ref[...]                                  # (1, Sp)
    inv_cnt = 1.0 / count

    def conv(slice_fn, w_ref):
        # 27 shifted MXU matmuls accumulated in f32.
        acc = None
        for k, off in enumerate(tap_offsets):
            xs = slice_fn(off)                      # (Cin_p, Sp) static lane slice
            t = jnp.dot(w_ref[k], xs, preferred_element_type=jnp.float32)
            acc = t if acc is None else acc + t
        return acc                                  # (Cout_p, Sp)

    def inorm_lrelu(z, g, b):
        # Masked (interior-only) biased mean / variance, eps = 1e-5.
        mean = jnp.sum(z * m, axis=1, keepdims=True) * inv_cnt
        diff = (z - mean) * m
        var = jnp.sum(diff * diff, axis=1, keepdims=True) * inv_cnt
        y = diff * jax.lax.rsqrt(var + 1e-5) * g + b
        # LeakyReLU(0.01); re-zero the pad ring so the next conv sees pad=1 zeros.
        return jnp.where(y > 0, y, 0.01 * y) * m

    # ---------------- layer 1 ----------------
    y1 = inorm_lrelu(
        conv(lambda off: x_ref[0, :, pad + off:pad + off + sp], w1_ref),
        g1_ref[...], b1_ref[...])

    # Park layer-1 activation in the extended layout (zero slack on both ends
    # keeps every layer-2 tap a contiguous finite slice -> no NaN poisoning).
    zeros_slack = jnp.zeros((h_ref.shape[0], pad), jnp.float32)
    h_ref[:, :pad] = zeros_slack
    h_ref[:, pad + sp:] = zeros_slack
    h_ref[:, pad:pad + sp] = y1

    # ---------------- layer 2 ----------------
    y2 = inorm_lrelu(
        conv(lambda off: h_ref[:, pad + off:pad + off + sp], w2_ref),
        g2_ref[...], b2_ref[...])

    o_ref[0, :, :] = y2[:o_ref.shape[1], :]


def _double_conv_pallas(x_ext, w1_taps, g1, b1, w2_taps, g2, b2, mask,
                        *, cout, sp, pad, hp_wp, wp, count):
    n, cin_p, sp_ext = x_ext.shape
    cout_p = w1_taps.shape[1]
    tap_offsets = tuple((kd - 1) * hp_wp + (kh - 1) * wp + (kw - 1)
                        for kd in range(3) for kh in range(3) for kw in range(3))
    kernel = functools.partial(_fused_double_conv_kernel,
                               tap_offsets=tap_offsets, pad=pad, sp=sp,
                               count=float(count))
    flops = 2 * n * sp * 27 * (cin_p * cout_p + cout_p * cout_p) \
        + 20 * n * cout_p * sp
    bytes_accessed = 4 * (n * cin_p * sp_ext + n * cout * sp + sp
                          + 27 * cout_p * (cin_p + cout_p) + 4 * cout_p)
    return pl.pallas_call(
        kernel,
        out_shape=jax.ShapeDtypeStruct((n, cout, sp), jnp.float32),
        grid=(n,),
        in_specs=[
            pl.BlockSpec((1, cin_p, sp_ext), lambda i: (i, 0, 0)),
            pl.BlockSpec((27, cout_p, cin_p), lambda i: (0, 0, 0)),
            pl.BlockSpec((cout_p, 1), lambda i: (0, 0)),
            pl.BlockSpec((cout_p, 1), lambda i: (0, 0)),
            pl.BlockSpec((27, cout_p, cout_p), lambda i: (0, 0, 0)),
            pl.BlockSpec((cout_p, 1), lambda i: (0, 0)),
            pl.BlockSpec((cout_p, 1), lambda i: (0, 0)),
            pl.BlockSpec((1, sp), lambda i: (0, 0)),
        ],
        out_specs=pl.BlockSpec((1, cout, sp), lambda i: (i, 0, 0)),
        scratch_shapes=[pltpu.VMEM((cout_p, sp_ext), jnp.float32)],
        compiler_params=pltpu.CompilerParams(dimension_semantics=("parallel",)),
        cost_estimate=pl.CostEstimate(flops=flops,
                                      transcendentals=2 * n * cout_p,
                                      bytes_accessed=bytes_accessed),
    )(x_ext, w1_taps, g1, b1, w2_taps, g2, b2, mask)


@jax.jit
def double_conv(x_ncdhw, params):
    n, cin, d, h, w = x_ncdhw.shape
    cout = params["w1"].shape[0]
    dp, hp, wp = d + 2, h + 2, w + 2
    sp = dp * hp * wp
    maxoff = hp * wp + wp + 1                        # largest |tap offset|
    pad = _round_up(maxoff, 128)                     # lane-aligned zero slack
    cin_p = _round_up(cin, 8)                        # sublane-align contractions
    cout_p = _round_up(cout, 8)

    # Validity mask of the padded frame (1 at interior voxels, 0 on the ring).
    vd = (jnp.arange(dp) >= 1) & (jnp.arange(dp) <= d)
    vh = (jnp.arange(hp) >= 1) & (jnp.arange(hp) <= h)
    vw = (jnp.arange(wp) >= 1) & (jnp.arange(wp) <= w)
    mask = (vd[:, None, None] & vh[None, :, None] & vw[None, None, :])
    mask = mask.reshape(1, sp).astype(jnp.float32)

    # NCDHW -> persistent flat padded-frame layout with lane slack
    # (pure reshape + cheap pads; no transposes anywhere in the pipeline).
    xp = jnp.pad(x_ncdhw, ((0, 0), (0, 0), (1, 1), (1, 1), (1, 1)))
    x_ext = jnp.pad(xp.reshape(n, cin, sp),
                    ((0, 0), (0, cin_p - cin), (pad, pad)))

    # (Cout, Cin, 3,3,3) -> (27, Cout_p, Cin_p), tap order kd-major / kw-minor.
    def taps(wt, ci_p):
        co, ci = wt.shape[0], wt.shape[1]
        wt = jnp.pad(wt, ((0, cout_p - co), (0, ci_p - ci),
                          (0, 0), (0, 0), (0, 0)))
        return jnp.transpose(wt, (2, 3, 4, 0, 1)).reshape(27, cout_p, ci_p)

    def col(v):
        return jnp.pad(v, (0, cout_p - cout)).reshape(cout_p, 1)

    # Conv biases intentionally omitted: exactly cancelled by the InstanceNorm
    # mean subtraction that follows each conv.
    out_sp = _double_conv_pallas(
        x_ext,
        taps(params["w1"], cin_p), col(params["g1"]), col(params["be1"]),
        taps(params["w2"], cout_p), col(params["g2"]), col(params["be2"]),
        mask,
        cout=cout, sp=sp, pad=pad, hp_wp=hp * wp, wp=wp, count=d * h * w)

    out = out_sp.reshape(n, cout, dp, hp, wp)
    return out[:, :, 1:d + 1, 1:h + 1, 1:w + 1]      # back to NCDHW


# -----------------------------------------------------------------------------
# Pure-JAX reference (includes the conv bias, proving it is cancelled).
# -----------------------------------------------------------------------------
def ref_double_conv(x, params):
    def conv(x, w, b):
        y = jax.lax.conv_general_dilated(
            x, w, (1, 1, 1), [(1, 1), (1, 1), (1, 1)],
            dimension_numbers=("NCDHW", "OIDHW", "NCDHW"))
        return y + b.reshape(1, -1, 1, 1, 1)

    def inorm_lrelu(x, g, be):
        mean = x.mean(axis=(2, 3, 4), keepdims=True)
        var = ((x - mean) ** 2).mean(axis=(2, 3, 4), keepdims=True)
        y = (x - mean) / jnp.sqrt(var + 1e-5)
        y = y * g.reshape(1, -1, 1, 1, 1) + be.reshape(1, -1, 1, 1, 1)
        return jnp.where(y > 0, y, 0.01 * y)

    y = inorm_lrelu(conv(x, params["w1"], params["b1"]), params["g1"], params["be1"])
    y = inorm_lrelu(conv(y, params["w2"], params["b2"]), params["g2"], params["be2"])
    return y


if __name__ == "__main__":
    N, Cin, Cout, D, H, W = 2, 4, 8, 8, 8, 8

    key = jax.random.PRNGKey(0)
    kx, kw1, kb1, kw2, kb2, kg1, kbe1, kg2, kbe2 = jax.random.split(key, 9)

    x = jax.random.normal(kx, (N, Cin, D, H, W), dtype=jnp.float32)
    params = {
        "w1": 0.1 * jax.random.normal(kw1, (Cout, Cin, 3, 3, 3), jnp.float32),
        "b1": 0.1 * jax.random.normal(kb1, (Cout,), jnp.float32),
        "g1": 1.0 + 0.1 * jax.random.normal(kg1, (Cout,), jnp.float32),
        "be1": 0.1 * jax.random.normal(kbe1, (Cout,), jnp.float32),
        "w2": 0.1 * jax.random.normal(kw2, (Cout, Cout, 3, 3, 3), jnp.float32),
        "b2": 0.1 * jax.random.normal(kb2, (Cout,), jnp.float32),
        "g2": 1.0 + 0.1 * jax.random.normal(kg2, (Cout,), jnp.float32),
        "be2": 0.1 * jax.random.normal(kbe2, (Cout,), jnp.float32),
    }

    out = jax.block_until_ready(double_conv(x, params))
    ref = jax.block_until_ready(ref_double_conv(x, params))

    assert out.shape == (N, Cout, D, H, W)
    err = float(jnp.max(jnp.abs(out - ref)))
    assert jnp.allclose(out, ref, atol=1e-3, rtol=1e-3), err

    print("KERNEL_OK")
</pallas_src>

<mosaic_0001>
module attributes {stable_mosaic.version = 11 : i64} {
  func.func @_fused_double_conv_kernel(%arg0: i32, %arg1: memref<1x8x1256xf32, #tpu.memory_space<vmem>>, %arg2: memref<27x8x8xf32, #tpu.memory_space<vmem>>, %arg3: memref<8x1xf32, #tpu.memory_space<vmem>>, %arg4: memref<8x1xf32, #tpu.memory_space<vmem>>, %arg5: memref<27x8x8xf32, #tpu.memory_space<vmem>>, %arg6: memref<8x1xf32, #tpu.memory_space<vmem>>, %arg7: memref<8x1xf32, #tpu.memory_space<vmem>>, %arg8: memref<1x1000xf32, #tpu.memory_space<vmem>>, %arg9: memref<1x8x1000xf32, #tpu.memory_space<vmem>>, %arg10: memref<8x1256xf32, #tpu.memory_space<vmem>>) attributes {dimension_semantics = [#tpu.dimension_semantics<parallel>], iteration_bounds = array<i64: 2>, scalar_prefetch = 0 : i64, scratch_operands = 1 : i64, tpu.core_type = #tpu.core_type<tc>, window_params = [{transform_indices = @transform_0, window_bounds = array<i64: 1, 8, 1256>}, {pipeline_mode = #tpu.pipeline_mode<synchronous>, transform_indices = @transform_1, window_bounds = array<i64: 27, 8, 8>}, {pipeline_mode = #tpu.pipeline_mode<synchronous>, transform_indices = @transform_2, window_bounds = array<i64: 8, 1>}, {pipeline_mode = #tpu.pipeline_mode<synchronous>, transform_indices = @transform_3, window_bounds = array<i64: 8, 1>}, {pipeline_mode = #tpu.pipeline_mode<synchronous>, transform_indices = @transform_4, window_bounds = array<i64: 27, 8, 8>}, {pipeline_mode = #tpu.pipeline_mode<synchronous>, transform_indices = @transform_5, window_bounds = array<i64: 8, 1>}, {pipeline_mode = #tpu.pipeline_mode<synchronous>, transform_indices = @transform_6, window_bounds = array<i64: 8, 1>}, {pipeline_mode = #tpu.pipeline_mode<synchronous>, transform_indices = @transform_7, window_bounds = array<i64: 1, 1000>}, {transform_indices = @transform_8, window_bounds = array<i64: 1, 8, 1000>}]} {
    %c0 = arith.constant 0 : index
    %c0_0 = arith.constant 0 : index
    %0 = vector.load %arg8[%c0, %c0_0] : memref<1x1000xf32, #tpu.memory_space<vmem>>, vector<1x1000xf32>
    %c0_1 = arith.constant 0 : index
    %c0_2 = arith.constant 0 : index
    %c17 = arith.constant 17 : index
    %1 = vector.load %arg1[%c0_1, %c0_2, %c17] : memref<1x8x1256xf32, #tpu.memory_space<vmem>>, vector<1x8x1000xf32>
    %2 = vector.shape_cast %1 : vector<1x8x1000xf32> to vector<8x1000xf32>
    %c0_3 = arith.constant 0 : index
    %c0_4 = arith.constant 0 : index
    %c0_5 = arith.constant 0 : index
    %3 = vector.load %arg2[%c0_3, %c0_4, %c0_5] : memref<27x8x8xf32, #tpu.memory_space<vmem>>, vector<1x8x8xf32>
    %4 = vector.shape_cast %3 : vector<1x8x8xf32> to vector<8x8xf32>
    %cst = arith.constant dense<0.000000e+00> : vector<8x1000xf32>
    %5 = tpu.matmul %4, %2, %cst {dimension_numbers = #tpu.dot_dimension_numbers<[1], [0], [0], [1], [0, 0, 1, 1], [], []>} : vector<8x8xf32>, vector<8x1000xf32>, vector<8x1000xf32> -> vector<8x1000xf32>
    %c0_6 = arith.constant 0 : index
    %c0_7 = arith.constant 0 : index
    %c18 = arith.constant 18 : index
    %6 = vector.load %arg1[%c0_6, %c0_7, %c18] : memref<1x8x1256xf32, #tpu.memory_space<vmem>>, vector<1x8x1000xf32>
    %7 = vector.shape_cast %6 : vector<1x8x1000xf32> to vector<8x1000xf32>
    %c1 = arith.constant 1 : index
    %c0_8 = arith.constant 0 : index
    %c0_9 = arith.constant 0 : index
    %8 = vector.load %arg2[%c1, %c0_8, %c0_9] : memref<27x8x8xf32, #tpu.memory_space<vmem>>, vector<1x8x8xf32>
    %9 = vector.shape_cast %8 : vector<1x8x8xf32> to vector<8x8xf32>
    %cst_10 = arith.constant dense<0.000000e+00> : vector<8x1000xf32>
    %10 = tpu.matmul %9, %7, %cst_10 {dimension_numbers = #tpu.dot_dimension_numbers<[1], [0], [0], [1], [0, 0, 1, 1], [], []>} : vector<8x8xf32>, vector<8x1000xf32>, vector<8x1000xf32> -> vector<8x1000xf32>
    %11 = arith.addf %5, %10 : vector<8x1000xf32>
    %c0_11 = arith.constant 0 : index
    %c0_12 = arith.constant 0 : index
    %c19 = arith.constant 19 : index
    %12 = vector.load %arg1[%c0_11, %c0_12, %c19] : memref<1x8x1256xf32, #tpu.memory_space<vmem>>, vector<1x8x1000xf32>
    %13 = vector.shape_cast %12 : vector<1x8x1000xf32> to vector<8x1000xf32>
    %c2 = arith.constant 2 : index
    %c0_13 = arith.constant 0 : index
    %c0_14 = arith.constant 0 : index
    %14 = vector.load %arg2[%c2, %c0_13, %c0_14] : memref<27x8x8xf32, #tpu.memory_space<vmem>>, vector<1x8x8xf32>
    %15 = vector.shape_cast %14 : vector<1x8x8xf32> to vector<8x8xf32>
    %cst_15 = arith.constant dense<0.000000e+00> : vector<8x1000xf32>
    %16 = tpu.matmul %15, %13, %cst_15 {dimension_numbers = #tpu.dot_dimension_numbers<[1], [0], [0], [1], [0, 0, 1, 1], [], []>} : vector<8x8xf32>, vector<8x1000xf32>, vector<8x1000xf32> -> vector<8x1000xf32>
    %17 = arith.addf %11, %16 : vector<8x1000xf32>
    %c0_16 = arith.constant 0 : index
    %c0_17 = arith.constant 0 : index
    %c27 = arith.constant 27 : index
    %18 = vector.load %arg1[%c0_16, %c0_17, %c27] : memref<1x8x1256xf32, #tpu.memory_space<vmem>>, vector<1x8x1000xf32>
    %19 = vector.shape_cast %18 : vector<1x8x1000xf32> to vector<8x1000xf32>
    %c3 = arith.constant 3 : index
    %c0_18 = arith.constant 0 : index
    %c0_19 = arith.constant 0 : index
    %20 = vector.load %arg2[%c3, %c0_18, %c0_19] : memref<27x8x8xf32, #tpu.memory_space<vmem>>, vector<1x8x8xf32>
    %21 = vector.shape_cast %20 : vector<1x8x8xf32> to vector<8x8xf32>
    %cst_20 = arith.constant dense<0.000000e+00> : vector<8x1000xf32>
    %22 = tpu.matmul %21, %19, %cst_20 {dimension_numbers = #tpu.dot_dimension_numbers<[1], [0], [0], [1], [0, 0, 1, 1], [], []>} : vector<8x8xf32>, vector<8x1000xf32>, vector<8x1000xf32> -> vector<8x1000xf32>
    %23 = arith.addf %17, %22 : vector<8x1000xf32>
    %c0_21 = arith.constant 0 : index
    %c0_22 = arith.constant 0 : index
    %c28 = arith.constant 28 : index
    %24 = vector.load %arg1[%c0_21, %c0_22, %c28] : memref<1x8x1256xf32, #tpu.memory_space<vmem>>, vector<1x8x1000xf32>
    %25 = vector.shape_cast %24 : vector<1x8x1000xf32> to vector<8x1000xf32>
    %c4 = arith.constant 4 : index
    %c0_23 = arith.constant 0 : index
    %c0_24 = arith.constant 0 : index
    %26 = vector.load %arg2[%c4, %c0_23, %c0_24] : memref<27x8x8xf32, #tpu.memory_space<vmem>>, vector<1x8x8xf32>
    %27 = vector.shape_cast %26 : vector<1x8x8xf32> to vector<8x8xf32>
    %cst_25 = arith.constant dense<0.000000e+00> : vector<8x1000xf32>
    %28 = tpu.matmul %27, %25, %cst_25 {dimension_numbers = #tpu.dot_dimension_numbers<[1], [0], [0], [1], [0, 0, 1, 1], [], []>} : vector<8x8xf32>, vector<8x1000xf32>, vector<8x1000xf32> -> vector<8x1000xf32>
    %29 = arith.addf %23, %28 : vector<8x1000xf32>
    %c0_26 = arith.constant 0 : index
    %c0_27 = arith.constant 0 : index
    %c29 = arith.constant 29 : index
    %30 = vector.load %arg1[%c0_26, %c0_27, %c29] : memref<1x8x1256xf32, #tpu.memory_space<vmem>>, vector<1x8x1000xf32>
    %31 = vector.shape_cast %30 : vector<1x8x1000xf32> to vector<8x1000xf32>
    %c5 = arith.constant 5 : index
    %c0_28 = arith.constant 0 : index
    %c0_29 = arith.constant 0 : index
    %32 = vector.load %arg2[%c5, %c0_28, %c0_29] : memref<27x8x8xf32, #tpu.memory_space<vmem>>, vector<1x8x8xf32>
    %33 = vector.shape_cast %32 : vector<1x8x8xf32> to vector<8x8xf32>
    %cst_30 = arith.constant dense<0.000000e+00> : vector<8x1000xf32>
    %34 = tpu.matmul %33, %31, %cst_30 {dimension_numbers = #tpu.dot_dimension_numbers<[1], [0], [0], [1], [0, 0, 1, 1], [], []>} : vector<8x8xf32>, vector<8x1000xf32>, vector<8x1000xf32> -> vector<8x1000xf32>
    %35 = arith.addf %29, %34 : vector<8x1000xf32>
    %c0_31 = arith.constant 0 : index
    %c0_32 = arith.constant 0 : index
    %c37 = arith.constant 37 : index
    %36 = vector.load %arg1[%c0_31, %c0_32, %c37] : memref<1x8x1256xf32, #tpu.memory_space<vmem>>, vector<1x8x1000xf32>
    %37 = vector.shape_cast %36 : vector<1x8x1000xf32> to vector<8x1000xf32>
    %c6 = arith.constant 6 : index
    %c0_33 = arith.constant 0 : index
    %c0_34 = arith.constant 0 : index
    %38 = vector.load %arg2[%c6, %c0_33, %c0_34] : memref<27x8x8xf32, #tpu.memory_space<vmem>>, vector<1x8x8xf32>
    %39 = vector.shape_cast %38 : vector<1x8x8xf32> to vector<8x8xf32>
    %cst_35 = arith.constant dense<0.000000e+00> : vector<8x1000xf32>
    %40 = tpu.matmul %39, %37, %cst_35 {dimension_numbers = #tpu.dot_dimension_numbers<[1], [0], [0], [1], [0, 0, 1, 1], [], []>} : vector<8x8xf32>, vector<8x1000xf32>, vector<8x1000xf32> -> vector<8x1000xf32>
    %41 = arith.addf %35, %40 : vector<8x1000xf32>
    %c0_36 = arith.constant 0 : index
    %c0_37 = arith.constant 0 : index
    %c38 = arith.constant 38 : index
    %42 = vector.load %arg1[%c0_36, %c0_37, %c38] : memref<1x8x1256xf32, #tpu.memory_space<vmem>>, vector<1x8x1000xf32>
    %43 = vector.shape_cast %42 : vector<1x8x1000xf32> to vector<8x1000xf32>
    %c7 = arith.constant 7 : index
    %c0_38 = arith.constant 0 : index
    %c0_39 = arith.constant 0 : index
    %44 = vector.load %arg2[%c7, %c0_38, %c0_39] : memref<27x8x8xf32, #tpu.memory_space<vmem>>, vector<1x8x8xf32>
    %45 = vector.shape_cast %44 : vector<1x8x8xf32> to vector<8x8xf32>
    %cst_40 = arith.constant dense<0.000000e+00> : vector<8x1000xf32>
    %46 = tpu.matmul %45, %43, %cst_40 {dimension_numbers = #tpu.dot_dimension_numbers<[1], [0], [0], [1], [0, 0, 1, 1], [], []>} : vector<8x8xf32>, vector<8x1000xf32>, vector<8x1000xf32> -> vector<8x1000xf32>
    %47 = arith.addf %41, %46 : vector<8x1000xf32>
    %c0_41 = arith.constant 0 : index
    %c0_42 = arith.constant 0 : index
    %c39 = arith.constant 39 : index
    %48 = vector.load %arg1[%c0_41, %c0_42, %c39] : memref<1x8x1256xf32, #tpu.memory_space<vmem>>, vector<1x8x1000xf32>
    %49 = vector.shape_cast %48 : vector<1x8x1000xf32> to vector<8x1000xf32>
    %c8 = arith.constant 8 : index
    %c0_43 = arith.constant 0 : index
    %c0_44 = arith.constant 0 : index
    %50 = vector.load %arg2[%c8, %c0_43, %c0_44] : memref<27x8x8xf32, #tpu.memory_space<vmem>>, vector<1x8x8xf32>
    %51 = vector.shape_cast %50 : vector<1x8x8xf32> to vector<8x8xf32>
    %cst_45 = arith.constant dense<0.000000e+00> : vector<8x1000xf32>
    %52 = tpu.matmul %51, %49, %cst_45 {dimension_numbers = #tpu.dot_dimension_numbers<[1], [0], [0], [1], [0, 0, 1, 1], [], []>} : vector<8x8xf32>, vector<8x1000xf32>, vector<8x1000xf32> -> vector<8x1000xf32>
    %53 = arith.addf %47, %52 : vector<8x1000xf32>
    %c0_46 = arith.constant 0 : index
    %c0_47 = arith.constant 0 : index
    %c117 = arith.constant 117 : index
    %54 = vector.load %arg1[%c0_46, %c0_47, %c117] : memref<1x8x1256xf32, #tpu.memory_space<vmem>>, vector<1x8x1000xf32>
    %55 = vector.shape_cast %54 : vector<1x8x1000xf32> to vector<8x1000xf32>
    %c9 = arith.constant 9 : index
    %c0_48 = arith.constant 0 : index
    %c0_49 = arith.constant 0 : index
    %56 = vector.load %arg2[%c9, %c0_48, %c0_49] : memref<27x8x8xf32, #tpu.memory_space<vmem>>, vector<1x8x8xf32>
    %57 = vector.shape_cast %56 : vector<1x8x8xf32> to vector<8x8xf32>
    %cst_50 = arith.constant dense<0.000000e+00> : vector<8x1000xf32>
    %58 = tpu.matmul %57, %55, %cst_50 {dimension_numbers = #tpu.dot_dimension_numbers<[1], [0], [0], [1], [0, 0, 1, 1], [], []>} : vector<8x8xf32>, vector<8x1000xf32>, vector<8x1000xf32> -> vector<8x1000xf32>
    %59 = arith.addf %53, %58 : vector<8x1000xf32>
    %c0_51 = arith.constant 0 : index
    %c0_52 = arith.constant 0 : index
    %c118 = arith.constant 118 : index
    %60 = vector.load %arg1[%c0_51, %c0_52, %c118] : memref<1x8x1256xf32, #tpu.memory_space<vmem>>, vector<1x8x1000xf32>
    %61 = vector.shape_cast %60 : vector<1x8x1000xf32> to vector<8x1000xf32>
    %c10 = arith.constant 10 : index
    %c0_53 = arith.constant 0 : index
    %c0_54 = arith.constant 0 : index
    %62 = vector.load %arg2[%c10, %c0_53, %c0_54] : memref<27x8x8xf32, #tpu.memory_space<vmem>>, vector<1x8x8xf32>
    %63 = vector.shape_cast %62 : vector<1x8x8xf32> to vector<8x8xf32>
    %cst_55 = arith.constant dense<0.000000e+00> : vector<8x1000xf32>
    %64 = tpu.matmul %63, %61, %cst_55 {dimension_numbers = #tpu.dot_dimension_numbers<[1], [0], [0], [1], [0, 0, 1, 1], [], []>} : vector<8x8xf32>, vector<8x1000xf32>, vector<8x1000xf32> -> vector<8x1000xf32>
    %65 = arith.addf %59, %64 : vector<8x1000xf32>
    %c0_56 = arith.constant 0 : index
    %c0_57 = arith.constant 0 : index
    %c119 = arith.constant 119 : index
    %66 = vector.load %arg1[%c0_56, %c0_57, %c119] : memref<1x8x1256xf32, #tpu.memory_space<vmem>>, vector<1x8x1000xf32>
    %67 = vector.shape_cast %66 : vector<1x8x1000xf32> to vector<8x1000xf32>
    %c11 = arith.constant 11 : index
    %c0_58 = arith.constant 0 : index
    %c0_59 = arith.constant 0 : index
    %68 = vector.load %arg2[%c11, %c0_58, %c0_59] : memref<27x8x8xf32, #tpu.memory_space<vmem>>, vector<1x8x8xf32>
    %69 = vector.shape_cast %68 : vector<1x8x8xf32> to vector<8x8xf32>
    %cst_60 = arith.constant dense<0.000000e+00> : vector<8x1000xf32>
    %70 = tpu.matmul %69, %67, %cst_60 {dimension_numbers = #tpu.dot_dimension_numbers<[1], [0], [0], [1], [0, 0, 1, 1], [], []>} : vector<8x8xf32>, vector<8x1000xf32>, vector<8x1000xf32> -> vector<8x1000xf32>
    %71 = arith.addf %65, %70 : vector<8x1000xf32>
    %c0_61 = arith.constant 0 : index
    %c0_62 = arith.constant 0 : index
    %c127 = arith.constant 127 : index
    %72 = vector.load %arg1[%c0_61, %c0_62, %c127] : memref<1x8x1256xf32, #tpu.memory_space<vmem>>, vector<1x8x1000xf32>
    %73 = vector.shape_cast %72 : vector<1x8x1000xf32> to vector<8x1000xf32>
    %c12 = arith.constant 12 : index
    %c0_63 = arith.constant 0 : index
    %c0_64 = arith.constant 0 : index
    %74 = vector.load %arg2[%c12, %c0_63, %c0_64] : memref<27x8x8xf32, #tpu.memory_space<vmem>>, vector<1x8x8xf32>
    %75 = vector.shape_cast %74 : vector<1x8x8xf32> to vector<8x8xf32>
    %cst_65 = arith.constant dense<0.000000e+00> : vector<8x1000xf32>
    %76 = tpu.matmul %75, %73, %cst_65 {dimension_numbers = #tpu.dot_dimension_numbers<[1], [0], [0], [1], [0, 0, 1, 1], [], []>} : vector<8x8xf32>, vector<8x1000xf32>, vector<8x1000xf32> -> vector<8x1000xf32>
    %77 = arith.addf %71, %76 : vector<8x1000xf32>
    %c0_66 = arith.constant 0 : index
    %c0_67 = arith.constant 0 : index
    %c128 = arith.constant 128 : index
    %78 = vector.load %arg1[%c0_66, %c0_67, %c128] : memref<1x8x1256xf32, #tpu.memory_space<vmem>>, vector<1x8x1000xf32>
    %79 = vector.shape_cast %78 : vector<1x8x1000xf32> to vector<8x1000xf32>
    %c13 = arith.constant 13 : index
    %c0_68 = arith.constant 0 : index
    %c0_69 = arith.constant 0 : index
    %80 = vector.load %arg2[%c13, %c0_68, %c0_69] : memref<27x8x8xf32, #tpu.memory_space<vmem>>, vector<1x8x8xf32>
    %81 = vector.shape_cast %80 : vector<1x8x8xf32> to vector<8x8xf32>
    %cst_70 = arith.constant dense<0.000000e+00> : vector<8x1000xf32>
    %82 = tpu.matmul %81, %79, %cst_70 {dimension_numbers = #tpu.dot_dimension_numbers<[1], [0], [0], [1], [0, 0, 1, 1], [], []>} : vector<8x8xf32>, vector<8x1000xf32>, vector<8x1000xf32> -> vector<8x1000xf32>
    %83 = arith.addf %77, %82 : vector<8x1000xf32>
    %c0_71 = arith.constant 0 : index
    %c0_72 = arith.constant 0 : index
    %c129 = arith.constant 129 : index
    %84 = vector.load %arg1[%c0_71, %c0_72, %c129] : memref<1x8x1256xf32, #tpu.memory_space<vmem>>, vector<1x8x1000xf32>
    %85 = vector.shape_cast %84 : vector<1x8x1000xf32> to vector<8x1000xf32>
    %c14 = arith.constant 14 : index
    %c0_73 = arith.constant 0 : index
    %c0_74 = arith.constant 0 : index
    %86 = vector.load %arg2[%c14, %c0_73, %c0_74] : memref<27x8x8xf32, #tpu.memory_space<vmem>>, vector<1x8x8xf32>
    %87 = vector.shape_cast %86 : vector<1x8x8xf32> to vector<8x8xf32>
    %cst_75 = arith.constant dense<0.000000e+00> : vector<8x1000xf32>
    %88 = tpu.matmul %87, %85, %cst_75 {dimension_numbers = #tpu.dot_dimension_numbers<[1], [0], [0], [1], [0, 0, 1, 1], [], []>} : vector<8x8xf32>, vector<8x1000xf32>, vector<8x1000xf32> -> vector<8x1000xf32>
    %89 = arith.addf %83, %88 : vector<8x1000xf32>
    %c0_76 = arith.constant 0 : index
    %c0_77 = arith.constant 0 : index
    %c137 = arith.constant 137 : index
    %90 = vector.load %arg1[%c0_76, %c0_77, %c137] : memref<1x8x1256xf32, #tpu.memory_space<vmem>>, vector<1x8x1000xf32>
    %91 = vector.shape_cast %90 : vector<1x8x1000xf32> to vector<8x1000xf32>
    %c15 = arith.constant 15 : index
    %c0_78 = arith.constant 0 : index
    %c0_79 = arith.constant 0 : index
    %92 = vector.load %arg2[%c15, %c0_78, %c0_79] : memref<27x8x8xf32, #tpu.memory_space<vmem>>, vector<1x8x8xf32>
    %93 = vector.shape_cast %92 : vector<1x8x8xf32> to vector<8x8xf32>
    %cst_80 = arith.constant dense<0.000000e+00> : vector<8x1000xf32>
    %94 = tpu.matmul %93, %91, %cst_80 {dimension_numbers = #tpu.dot_dimension_numbers<[1], [0], [0], [1], [0, 0, 1, 1], [], []>} : vector<8x8xf32>, vector<8x1000xf32>, vector<8x1000xf32> -> vector<8x1000xf32>
    %95 = arith.addf %89, %94 : vector<8x1000xf32>
    %c0_81 = arith.constant 0 : index
    %c0_82 = arith.constant 0 : index
    %c138 = arith.constant 138 : index
    %96 = vector.load %arg1[%c0_81, %c0_82, %c138] : memref<1x8x1256xf32, #tpu.memory_space<vmem>>, vector<1x8x1000xf32>
    %97 = vector.shape_cast %96 : vector<1x8x1000xf32> to vector<8x1000xf32>
    %c16 = arith.constant 16 : index
    %c0_83 = arith.constant 0 : index
    %c0_84 = arith.constant 0 : index
    %98 = vector.load %arg2[%c16, %c0_83, %c0_84] : memref<27x8x8xf32, #tpu.memory_space<vmem>>, vector<1x8x8xf32>
    %99 = vector.shape_cast %98 : vector<1x8x8xf32> to vector<8x8xf32>
    %cst_85 = arith.constant dense<0.000000e+00> : vector<8x1000xf32>
    %100 = tpu.matmul %99, %97, %cst_85 {dimension_numbers = #tpu.dot_dimension_numbers<[1], [0], [0], [1], [0, 0, 1, 1], [], []>} : vector<8x8xf32>, vector<8x1000xf32>, vector<8x1000xf32> -> vector<8x1000xf32>
    %101 = arith.addf %95, %100 : vector<8x1000xf32>
    %c0_86 = arith.constant 0 : index
    %c0_87 = arith.constant 0 : index
    %c139 = arith.constant 139 : index
    %102 = vector.load %arg1[%c0_86, %c0_87, %c139] : memref<1x8x1256xf32, #tpu.memory_space<vmem>>, vector<1x8x1000xf32>
    %103 = vector.shape_cast %102 : vector<1x8x1000xf32> to vector<8x1000xf32>
    %c17_88 = arith.constant 17 : index
    %c0_89 = arith.constant 0 : index
    %c0_90 = arith.constant 0 : index
    %104 = vector.load %arg2[%c17_88, %c0_89, %c0_90] : memref<27x8x8xf32, #tpu.memory_space<vmem>>, vector<1x8x8xf32>
    %105 = vector.shape_cast %104 : vector<1x8x8xf32> to vector<8x8xf32>
    %cst_91 = arith.constant dense<0.000000e+00> : vector<8x1000xf32>
    %106 = tpu.matmul %105, %103, %cst_91 {dimension_numbers = #tpu.dot_dimension_numbers<[1], [0], [0], [1], [0, 0, 1, 1], [], []>} : vector<8x8xf32>, vector<8x1000xf32>, vector<8x1000xf32> -> vector<8x1000xf32>
    %107 = arith.addf %101, %106 : vector<8x1000xf32>
    %c0_92 = arith.constant 0 : index
    %c0_93 = arith.constant 0 : index
    %c217 = arith.constant 217 : index
    %108 = vector.load %arg1[%c0_92, %c0_93, %c217] : memref<1x8x1256xf32, #tpu.memory_space<vmem>>, vector<1x8x1000xf32>
    %109 = vector.shape_cast %108 : vector<1x8x1000xf32> to vector<8x1000xf32>
    %c18_94 = arith.constant 18 : index
    %c0_95 = arith.constant 0 : index
    %c0_96 = arith.constant 0 : index
    %110 = vector.load %arg2[%c18_94, %c0_95, %c0_96] : memref<27x8x8xf32, #tpu.memory_space<vmem>>, vector<1x8x8xf32>
    %111 = vector.shape_cast %110 : vector<1x8x8xf32> to vector<8x8xf32>
    %cst_97 = arith.constant dense<0.000000e+00> : vector<8x1000xf32>
    %112 = tpu.matmul %111, %109, %cst_97 {dimension_numbers = #tpu.dot_dimension_numbers<[1], [0], [0], [1], [0, 0, 1, 1], [], []>} : vector<8x8xf32>, vector<8x1000xf32>, vector<8x1000xf32> -> vector<8x1000xf32>
    %113 = arith.addf %107, %112 : vector<8x1000xf32>
    %c0_98 = arith.constant 0 : index
    %c0_99 = arith.constant 0 : index
    %c218 = arith.constant 218 : index
    %114 = vector.load %arg1[%c0_98, %c0_99, %c218] : memref<1x8x1256xf32, #tpu.memory_space<vmem>>, vector<1x8x1000xf32>
    %115 = vector.shape_cast %114 : vector<1x8x1000xf32> to vector<8x1000xf32>
    %c19_100 = arith.constant 19 : index
    %c0_101 = arith.constant 0 : index
    %c0_102 = arith.constant 0 : index
    %116 = vector.load %arg2[%c19_100, %c0_101, %c0_102] : memref<27x8x8xf32, #tpu.memory_space<vmem>>, vector<1x8x8xf32>
    %117 = vector.shape_cast %116 : vector<1x8x8xf32> to vector<8x8xf32>
    %cst_103 = arith.constant dense<0.000000e+00> : vector<8x1000xf32>
    %118 = tpu.matmul %117, %115, %cst_103 {dimension_numbers = #tpu.dot_dimension_numbers<[1], [0], [0], [1], [0, 0, 1, 1], [], []>} : vector<8x8xf32>, vector<8x1000xf32>, vector<8x1000xf32> -> vector<8x1000xf32>
    %119 = arith.addf %113, %118 : vector<8x1000xf32>
    %c0_104 = arith.constant 0 : index
    %c0_105 = arith.constant 0 : index
    %c219 = arith.constant 219 : index
    %120 = vector.load %arg1[%c0_104, %c0_105, %c219] : memref<1x8x1256xf32, #tpu.memory_space<vmem>>, vector<1x8x1000xf32>
    %121 = vector.shape_cast %120 : vector<1x8x1000xf32> to vector<8x1000xf32>
    %c20 = arith.constant 20 : index
    %c0_106 = arith.constant 0 : index
    %c0_107 = arith.constant 0 : index
    %122 = vector.load %arg2[%c20, %c0_106, %c0_107] : memref<27x8x8xf32, #tpu.memory_space<vmem>>, vector<1x8x8xf32>
    %123 = vector.shape_cast %122 : vector<1x8x8xf32> to vector<8x8xf32>
    %cst_108 = arith.constant dense<0.000000e+00> : vector<8x1000xf32>
    %124 = tpu.matmul %123, %121, %cst_108 {dimension_numbers = #tpu.dot_dimension_numbers<[1], [0], [0], [1], [0, 0, 1, 1], [], []>} : vector<8x8xf32>, vector<8x1000xf32>, vector<8x1000xf32> -> vector<8x1000xf32>
    %125 = arith.addf %119, %124 : vector<8x1000xf32>
    %c0_109 = arith.constant 0 : index
    %c0_110 = arith.constant 0 : index
    %c227 = arith.constant 227 : index
    %126 = vector.load %arg1[%c0_109, %c0_110, %c227] : memref<1x8x1256xf32, #tpu.memory_space<vmem>>, vector<1x8x1000xf32>
    %127 = vector.shape_cast %126 : vector<1x8x1000xf32> to vector<8x1000xf32>
    %c21 = arith.constant 21 : index
    %c0_111 = arith.constant 0 : index
    %c0_112 = arith.constant 0 : index
    %128 = vector.load %arg2[%c21, %c0_111, %c0_112] : memref<27x8x8xf32, #tpu.memory_space<vmem>>, vector<1x8x8xf32>
    %129 = vector.shape_cast %128 : vector<1x8x8xf32> to vector<8x8xf32>
    %cst_113 = arith.constant dense<0.000000e+00> : vector<8x1000xf32>
    %130 = tpu.matmul %129, %127, %cst_113 {dimension_numbers = #tpu.dot_dimension_numbers<[1], [0], [0], [1], [0, 0, 1, 1], [], []>} : vector<8x8xf32>, vector<8x1000xf32>, vector<8x1000xf32> -> vector<8x1000xf32>
    %131 = arith.addf %125, %130 : vector<8x1000xf32>
    %c0_114 = arith.constant 0 : index
    %c0_115 = arith.constant 0 : index
    %c228 = arith.constant 228 : index
    %132 = vector.load %arg1[%c0_114, %c0_115, %c228] : memref<1x8x1256xf32, #tpu.memory_space<vmem>>, vector<1x8x1000xf32>
    %133 = vector.shape_cast %132 : vector<1x8x1000xf32> to vector<8x1000xf32>
    %c22 = arith.constant 22 : index
    %c0_116 = arith.constant 0 : index
    %c0_117 = arith.constant 0 : index
    %134 = vector.load %arg2[%c22, %c0_116, %c0_117] : memref<27x8x8xf32, #tpu.memory_space<vmem>>, vector<1x8x8xf32>
    %135 = vector.shape_cast %134 : vector<1x8x8xf32> to vector<8x8xf32>
    %cst_118 = arith.constant dense<0.000000e+00> : vector<8x1000xf32>
    %136 = tpu.matmul %135, %133, %cst_118 {dimension_numbers = #tpu.dot_dimension_numbers<[1], [0], [0], [1], [0, 0, 1, 1], [], []>} : vector<8x8xf32>, vector<8x1000xf32>, vector<8x1000xf32> -> vector<8x1000xf32>
    %137 = arith.addf %131, %136 : vector<8x1000xf32>
    %c0_119 = arith.constant 0 : index
    %c0_120 = arith.constant 0 : index
    %c229 = arith.constant 229 : index
    %138 = vector.load %arg1[%c0_119, %c0_120, %c229] : memref<1x8x1256xf32, #tpu.memory_space<vmem>>, vector<1x8x1000xf32>
    %139 = vector.shape_cast %138 : vector<1x8x1000xf32> to vector<8x1000xf32>
    %c23 = arith.constant 23 : index
    %c0_121 = arith.constant 0 : index
    %c0_122 = arith.constant 0 : index
    %140 = vector.load %arg2[%c23, %c0_121, %c0_122] : memref<27x8x8xf32, #tpu.memory_space<vmem>>, vector<1x8x8xf32>
    %141 = vector.shape_cast %140 : vector<1x8x8xf32> to vector<8x8xf32>
    %cst_123 = arith.constant dense<0.000000e+00> : vector<8x1000xf32>
    %142 = tpu.matmul %141, %139, %cst_123 {dimension_numbers = #tpu.dot_dimension_numbers<[1], [0], [0], [1], [0, 0, 1, 1], [], []>} : vector<8x8xf32>, vector<8x1000xf32>, vector<8x1000xf32> -> vector<8x1000xf32>
    %143 = arith.addf %137, %142 : vector<8x1000xf32>
    %c0_124 = arith.constant 0 : index
    %c0_125 = arith.constant 0 : index
    %c237 = arith.constant 237 : index
    %144 = vector.load %arg1[%c0_124, %c0_125, %c237] : memref<1x8x1256xf32, #tpu.memory_space<vmem>>, vector<1x8x1000xf32>
    %145 = vector.shape_cast %144 : vector<1x8x1000xf32> to vector<8x1000xf32>
    %c24 = arith.constant 24 : index
    %c0_126 = arith.constant 0 : index
    %c0_127 = arith.constant 0 : index
    %146 = vector.load %arg2[%c24, %c0_126, %c0_127] : memref<27x8x8xf32, #tpu.memory_space<vmem>>, vector<1x8x8xf32>
    %147 = vector.shape_cast %146 : vector<1x8x8xf32> to vector<8x8xf32>
    %cst_128 = arith.constant dense<0.000000e+00> : vector<8x1000xf32>
    %148 = tpu.matmul %147, %145, %cst_128 {dimension_numbers = #tpu.dot_dimension_numbers<[1], [0], [0], [1], [0, 0, 1, 1], [], []>} : vector<8x8xf32>, vector<8x1000xf32>, vector<8x1000xf32> -> vector<8x1000xf32>
    %149 = arith.addf %143, %148 : vector<8x1000xf32>
    %c0_129 = arith.constant 0 : index
    %c0_130 = arith.constant 0 : index
    %c238 = arith.constant 238 : index
    %150 = vector.load %arg1[%c0_129, %c0_130, %c238] : memref<1x8x1256xf32, #tpu.memory_space<vmem>>, vector<1x8x1000xf32>
    %151 = vector.shape_cast %150 : vector<1x8x1000xf32> to vector<8x1000xf32>
    %c25 = arith.constant 25 : index
    %c0_131 = arith.constant 0 : index
    %c0_132 = arith.constant 0 : index
    %152 = vector.load %arg2[%c25, %c0_131, %c0_132] : memref<27x8x8xf32, #tpu.memory_space<vmem>>, vector<1x8x8xf32>
    %153 = vector.shape_cast %152 : vector<1x8x8xf32> to vector<8x8xf32>
    %cst_133 = arith.constant dense<0.000000e+00> : vector<8x1000xf32>
    %154 = tpu.matmul %153, %151, %cst_133 {dimension_numbers = #tpu.dot_dimension_numbers<[1], [0], [0], [1], [0, 0, 1, 1], [], []>} : vector<8x8xf32>, vector<8x1000xf32>, vector<8x1000xf32> -> vector<8x1000xf32>
    %155 = arith.addf %149, %154 : vector<8x1000xf32>
    %c0_134 = arith.constant 0 : index
    %c0_135 = arith.constant 0 : index
    %c239 = arith.constant 239 : index
    %156 = vector.load %arg1[%c0_134, %c0_135, %c239] : memref<1x8x1256xf32, #tpu.memory_space<vmem>>, vector<1x8x1000xf32>
    %157 = vector.shape_cast %156 : vector<1x8x1000xf32> to vector<8x1000xf32>
    %c26 = arith.constant 26 : index
    %c0_136 = arith.constant 0 : index
    %c0_137 = arith.constant 0 : index
    %158 = vector.load %arg2[%c26, %c0_136, %c0_137] : memref<27x8x8xf32, #tpu.memory_space<vmem>>, vector<1x8x8xf32>
    %159 = vector.shape_cast %158 : vector<1x8x8xf32> to vector<8x8xf32>
    %cst_138 = arith.constant dense<0.000000e+00> : vector<8x1000xf32>
    %160 = tpu.matmul %159, %157, %cst_138 {dimension_numbers = #tpu.dot_dimension_numbers<[1], [0], [0], [1], [0, 0, 1, 1], [], []>} : vector<8x8xf32>, vector<8x1000xf32>, vector<8x1000xf32> -> vector<8x1000xf32>
    %161 = arith.addf %155, %160 : vector<8x1000xf32>
    %c0_139 = arith.constant 0 : index
    %c0_140 = arith.constant 0 : index
    %162 = vector.load %arg3[%c0_139, %c0_140] : memref<8x1xf32, #tpu.memory_space<vmem>>, vector<8x1xf32>
    %c0_141 = arith.constant 0 : index
    %c0_142 = arith.constant 0 : index
    %163 = vector.load %arg4[%c0_141, %c0_142] : memref<8x1xf32, #tpu.memory_space<vmem>>, vector<8x1xf32>
    %164 = vector.broadcast %0 : vector<1x1000xf32> to vector<8x1000xf32>
    %165 = arith.mulf %161, %164 : vector<8x1000xf32>
    %cst_143 = arith.constant dense<0.000000e+00> : vector<8xf32>
    %166 = vector.multi_reduction <add>, %165, %cst_143 [1] : vector<8x1000xf32> to vector<8xf32>
    %167 = vector.shape_cast %166 : vector<8xf32> to vector<8x1xf32>
    %cst_144 = arith.constant 0.001953125 : f32
    %168 = vector.broadcast %cst_144 : f32 to vector<8x1xf32>
    %169 = arith.mulf %167, %168 : vector<8x1xf32>
    %170 = vector.broadcast %169 : vector<8x1xf32> to vector<8x1000xf32>
    %171 = arith.subf %161, %170 : vector<8x1000xf32>
    %172 = vector.broadcast %0 : vector<1x1000xf32> to vector<8x1000xf32>
    %173 = arith.mulf %171, %172 : vector<8x1000xf32>
    %174 = arith.mulf %173, %173 : vector<8x1000xf32>
    %cst_145 = arith.constant dense<0.000000e+00> : vector<8xf32>
    %175 = vector.multi_reduction <add>, %174, %cst_145 [1] : vector<8x1000xf32> to vector<8xf32>
    %176 = vector.shape_cast %175 : vector<8xf32> to vector<8x1xf32>
    %cst_146 = arith.constant 0.001953125 : f32
    %177 = vector.broadcast %cst_146 : f32 to vector<8x1xf32>
    %178 = arith.mulf %176, %177 : vector<8x1xf32>
    %cst_147 = arith.constant 9.99999974E-6 : f32
    %179 = vector.broadcast %cst_147 : f32 to vector<8x1xf32>
    %180 = arith.addf %178, %179 : vector<8x1xf32>
    %181 = math.rsqrt %180 : vector<8x1xf32>
    %182 = vector.broadcast %181 : vector<8x1xf32> to vector<8x1000xf32>
    %183 = arith.mulf %173, %182 : vector<8x1000xf32>
    %184 = vector.broadcast %162 : vector<8x1xf32> to vector<8x1000xf32>
    %185 = arith.mulf %183, %184 : vector<8x1000xf32>
    %186 = vector.broadcast %163 : vector<8x1xf32> to vector<8x1000xf32>
    %187 = arith.addf %185, %186 : vector<8x1000xf32>
    %cst_148 = arith.constant 0.000000e+00 : f32
    %188 = vector.broadcast %cst_148 : f32 to vector<8x1000xf32>
    %189 = arith.cmpf ogt, %187, %188 : vector<8x1000xf32>
    %cst_149 = arith.constant 0.00999999977 : f32
    %190 = vector.broadcast %cst_149 : f32 to vector<8x1000xf32>
    %191 = arith.mulf %190, %187 : vector<8x1000xf32>
    %192 = arith.select %189, %187, %191 : vector<8x1000xi1>, vector<8x1000xf32>
    %193 = vector.broadcast %0 : vector<1x1000xf32> to vector<8x1000xf32>
    %194 = arith.mulf %192, %193 : vector<8x1000xf32>
    %cst_150 = arith.constant 0.000000e+00 : f32
    %195 = vector.broadcast %cst_150 : f32 to vector<8x128xf32>
    %c0_151 = arith.constant 0 : index
    %c0_152 = arith.constant 0 : index
    %196 = vector.load %arg10[%c0_151, %c0_152] : memref<8x1256xf32, #tpu.memory_space<vmem>>, vector<8x128xf32>
    tpu.vector_store %arg10[%c0_151, %c0_152], %195 {strides = array<i32>} : memref<8x1256xf32, #tpu.memory_space<vmem>>, vector<8x128xf32>,
    %c0_153 = arith.constant 0 : index
    %c1128 = arith.constant 1128 : index
    %197 = vector.load %arg10[%c0_153, %c1128] : memref<8x1256xf32, #tpu.memory_space<vmem>>, vector<8x128xf32>
    tpu.vector_store %arg10[%c0_153, %c1128], %195 {strides = array<i32>} : memref<8x1256xf32, #tpu.memory_space<vmem>>, vector<8x128xf32>,
    %c0_154 = arith.constant 0 : index
    %c128_155 = arith.constant 128 : index
    %198 = vector.load %arg10[%c0_154, %c128_155] : memref<8x1256xf32, #tpu.memory_space<vmem>>, vector<8x1000xf32>
    tpu.vector_store %arg10[%c0_154, %c128_155], %194 {strides = array<i32>} : memref<8x1256xf32, #tpu.memory_space<vmem>>, vector<8x1000xf32>,
    %c0_156 = arith.constant 0 : index
    %c17_157 = arith.constant 17 : index
    %199 = vector.load %arg10[%c0_156, %c17_157] : memref<8x1256xf32, #tpu.memory_space<vmem>>, vector<8x1000xf32>
    %c0_158 = arith.constant 0 : index
    %c0_159 = arith.constant 0 : index
    %c0_160 = arith.constant 0 : index
    %200 = vector.load %arg5[%c0_158, %c0_159, %c0_160] : memref<27x8x8xf32, #tpu.memory_space<vmem>>, vector<1x8x8xf32>
    %201 = vector.shape_cast %200 : vector<1x8x8xf32> to vector<8x8xf32>
    %cst_161 = arith.constant dense<0.000000e+00> : vector<8x1000xf32>
    %202 = tpu.matmul %201, %199, %cst_161 {dimension_numbers = #tpu.dot_dimension_numbers<[1], [0], [0], [1], [0, 0, 1, 1], [], []>} : vector<8x8xf32>, vector<8x1000xf32>, vector<8x1000xf32> -> vector<8x1000xf32>
    %c0_162 = arith.constant 0 : index
    %c18_163 = arith.constant 18 : index
    %203 = vector.load %arg10[%c0_162, %c18_163] : memref<8x1256xf32, #tpu.memory_space<vmem>>, vector<8x1000xf32>
    %c1_164 = arith.constant 1 : index
    %c0_165 = arith.constant 0 : index
    %c0_166 = arith.constant 0 : index
    %204 = vector.load %arg5[%c1_164, %c0_165, %c0_166] : memref<27x8x8xf32, #tpu.memory_space<vmem>>, vector<1x8x8xf32>
    %205 = vector.shape_cast %204 : vector<1x8x8xf32> to vector<8x8xf32>
    %cst_167 = arith.constant dense<0.000000e+00> : vector<8x1000xf32>
    %206 = tpu.matmul %205, %203, %cst_167 {dimension_numbers = #tpu.dot_dimension_numbers<[1], [0], [0], [1], [0, 0, 1, 1], [], []>} : vector<8x8xf32>, vector<8x1000xf32>, vector<8x1000xf32> -> vector<8x1000xf32>
    %207 = arith.addf %202, %206 : vector<8x1000xf32>
    %c0_168 = arith.constant 0 : index
    %c19_169 = arith.constant 19 : index
    %208 = vector.load %arg10[%c0_168, %c19_169] : memref<8x1256xf32, #tpu.memory_space<vmem>>, vector<8x1000xf32>
    %c2_170 = arith.constant 2 : index
    %c0_171 = arith.constant 0 : index
    %c0_172 = arith.constant 0 : index
    %209 = vector.load %arg5[%c2_170, %c0_171, %c0_172] : memref<27x8x8xf32, #tpu.memory_space<vmem>>, vector<1x8x8xf32>
    %210 = vector.shape_cast %209 : vector<1x8x8xf32> to vector<8x8xf32>
    %cst_173 = arith.constant dense<0.000000e+00> : vector<8x1000xf32>
    %211 = tpu.matmul %210, %208, %cst_173 {dimension_numbers = #tpu.dot_dimension_numbers<[1], [0], [0], [1], [0, 0, 1, 1], [], []>} : vector<8x8xf32>, vector<8x1000xf32>, vector<8x1000xf32> -> vector<8x1000xf32>
    %212 = arith.addf %207, %211 : vector<8x1000xf32>
    %c0_174 = arith.constant 0 : index
    %c27_175 = arith.constant 27 : index
    %213 = vector.load %arg10[%c0_174, %c27_175] : memref<8x1256xf32, #tpu.memory_space<vmem>>, vector<8x1000xf32>
    %c3_176 = arith.constant 3 : index
    %c0_177 = arith.constant 0 : index
    %c0_178 = arith.constant 0 : index
    %214 = vector.load %arg5[%c3_176, %c0_177, %c0_178] : memref<27x8x8xf32, #tpu.memory_space<vmem>>, vector<1x8x8xf32>
    %215 = vector.shape_cast %214 : vector<1x8x8xf32> to vector<8x8xf32>
    %cst_179 = arith.constant dense<0.000000e+00> : vector<8x1000xf32>
    %216 = tpu.matmul %215, %213, %cst_179 {dimension_numbers = #tpu.dot_dimension_numbers<[1], [0], [0], [1], [0, 0, 1, 1], [], []>} : vector<8x8xf32>, vector<8x1000xf32>, vector<8x1000xf32> -> vector<8x1000xf32>
    %217 = arith.addf %212, %216 : vector<8x1000xf32>
    %c0_180 = arith.constant 0 : index
    %c28_181 = arith.constant 28 : index
    %218 = vector.load %arg10[%c0_180, %c28_181] : memref<8x1256xf32, #tpu.memory_space<vmem>>, vector<8x1000xf32>
    %c4_182 = arith.constant 4 : index
    %c0_183 = arith.constant 0 : index
    %c0_184 = arith.constant 0 : index
    %219 = vector.load %arg5[%c4_182, %c0_183, %c0_184] : memref<27x8x8xf32, #tpu.memory_space<vmem>>, vector<1x8x8xf32>
    %220 = vector.shape_cast %219 : vector<1x8x8xf32> to vector<8x8xf32>
    %cst_185 = arith.constant dense<0.000000e+00> : vector<8x1000xf32>
    %221 = tpu.matmul %220, %218, %cst_185 {dimension_numbers = #tpu.dot_dimension_numbers<[1], [0], [0], [1], [0, 0, 1, 1], [], []>} : vector<8x8xf32>, vector<8x1000xf32>, vector<8x1000xf32> -> vector<8x1000xf32>
    %222 = arith.addf %217, %221 : vector<8x1000xf32>
    %c0_186 = arith.constant 0 : index
    %c29_187 = arith.constant 29 : index
    %223 = vector.load %arg10[%c0_186, %c29_187] : memref<8x1256xf32, #tpu.memory_space<vmem>>, vector<8x1000xf32>
    %c5_188 = arith.constant 5 : index
    %c0_189 = arith.constant 0 : index
    %c0_190 = arith.constant 0 : index
    %224 = vector.load %arg5[%c5_188, %c0_189, %c0_190] : memref<27x8x8xf32, #tpu.memory_space<vmem>>, vector<1x8x8xf32>
    %225 = vector.shape_cast %224 : vector<1x8x8xf32> to vector<8x8xf32>
    %cst_191 = arith.constant dense<0.000000e+00> : vector<8x1000xf32>
    %226 = tpu.matmul %225, %223, %cst_191 {dimension_numbers = #tpu.dot_dimension_numbers<[1], [0], [0], [1], [0, 0, 1, 1], [], []>} : vector<8x8xf32>, vector<8x1000xf32>, vector<8x1000xf32> -> vector<8x1000xf32>
    %227 = arith.addf %222, %226 : vector<8x1000xf32>
    %c0_192 = arith.constant 0 : index
    %c37_193 = arith.constant 37 : index
    %228 = vector.load %arg10[%c0_192, %c37_193] : memref<8x1256xf32, #tpu.memory_space<vmem>>, vector<8x1000xf32>
    %c6_194 = arith.constant 6 : index
    %c0_195 = arith.constant 0 : index
    %c0_196 = arith.constant 0 : index
    %229 = vector.load %arg5[%c6_194, %c0_195, %c0_196] : memref<27x8x8xf32, #tpu.memory_space<vmem>>, vector<1x8x8xf32>
    %230 = vector.shape_cast %229 : vector<1x8x8xf32> to vector<8x8xf32>
    %cst_197 = arith.constant dense<0.000000e+00> : vector<8x1000xf32>
    %231 = tpu.matmul %230, %228, %cst_197 {dimension_numbers = #tpu.dot_dimension_numbers<[1], [0], [0], [1], [0, 0, 1, 1], [], []>} : vector<8x8xf32>, vector<8x1000xf32>, vector<8x1000xf32> -> vector<8x1000xf32>
    %232 = arith.addf %227, %231 : vector<8x1000xf32>
    %c0_198 = arith.constant 0 : index
    %c38_199 = arith.constant 38 : index
    %233 = vector.load %arg10[%c0_198, %c38_199] : memref<8x1256xf32, #tpu.memory_space<vmem>>, vector<8x1000xf32>
    %c7_200 = arith.constant 7 : index
    %c0_201 = arith.constant 0 : index
    %c0_202 = arith.constant 0 : index
    %234 = vector.load %arg5[%c7_200, %c0_201, %c0_202] : memref<27x8x8xf32, #tpu.memory_space<vmem>>, vector<1x8x8xf32>
    %235 = vector.shape_cast %234 : vector<1x8x8xf32> to vector<8x8xf32>
    %cst_203 = arith.constant dense<0.000000e+00> : vector<8x1000xf32>
    %236 = tpu.matmul %235, %233, %cst_203 {dimension_numbers = #tpu.dot_dimension_numbers<[1], [0], [0], [1], [0, 0, 1, 1], [], []>} : vector<8x8xf32>, vector<8x1000xf32>, vector<8x1000xf32> -> vector<8x1000xf32>
    %237 = arith.addf %232, %236 : vector<8x1000xf32>
    %c0_204 = arith.constant 0 : index
    %c39_205 = arith.constant 39 : index
    %238 = vector.load %arg10[%c0_204, %c39_205] : memref<8x1256xf32, #tpu.memory_space<vmem>>, vector<8x1000xf32>
    %c8_206 = arith.constant 8 : index
    %c0_207 = arith.constant 0 : index
    %c0_208 = arith.constant 0 : index
    %239 = vector.load %arg5[%c8_206, %c0_207, %c0_208] : memref<27x8x8xf32, #tpu.memory_space<vmem>>, vector<1x8x8xf32>
    %240 = vector.shape_cast %239 : vector<1x8x8xf32> to vector<8x8xf32>
    %cst_209 = arith.constant dense<0.000000e+00> : vector<8x1000xf32>
    %241 = tpu.matmul %240, %238, %cst_209 {dimension_numbers = #tpu.dot_dimension_numbers<[1], [0], [0], [1], [0, 0, 1, 1], [], []>} : vector<8x8xf32>, vector<8x1000xf32>, vector<8x1000xf32> -> vector<8x1000xf32>
    %242 = arith.addf %237, %241 : vector<8x1000xf32>
    %c0_210 = arith.constant 0 : index
    %c117_211 = arith.constant 117 : index
    %243 = vector.load %arg10[%c0_210, %c117_211] : memref<8x1256xf32, #tpu.memory_space<vmem>>, vector<8x1000xf32>
    %c9_212 = arith.constant 9 : index
    %c0_213 = arith.constant 0 : index
    %c0_214 = arith.constant 0 : index
    %244 = vector.load %arg5[%c9_212, %c0_213, %c0_214] : memref<27x8x8xf32, #tpu.memory_space<vmem>>, vector<1x8x8xf32>
    %245 = vector.shape_cast %244 : vector<1x8x8xf32> to vector<8x8xf32>
    %cst_215 = arith.constant dense<0.000000e+00> : vector<8x1000xf32>
    %246 = tpu.matmul %245, %243, %cst_215 {dimension_numbers = #tpu.dot_dimension_numbers<[1], [0], [0], [1], [0, 0, 1, 1], [], []>} : vector<8x8xf32>, vector<8x1000xf32>, vector<8x1000xf32> -> vector<8x1000xf32>
    %247 = arith.addf %242, %246 : vector<8x1000xf32>
    %c0_216 = arith.constant 0 : index
    %c118_217 = arith.constant 118 : index
    %248 = vector.load %arg10[%c0_216, %c118_217] : memref<8x1256xf32, #tpu.memory_space<vmem>>, vector<8x1000xf32>
    %c10_218 = arith.constant 10 : index
    %c0_219 = arith.constant 0 : index
    %c0_220 = arith.constant 0 : index
    %249 = vector.load %arg5[%c10_218, %c0_219, %c0_220] : memref<27x8x8xf32, #tpu.memory_space<vmem>>, vector<1x8x8xf32>
    %250 = vector.shape_cast %249 : vector<1x8x8xf32> to vector<8x8xf32>
    %cst_221 = arith.constant dense<0.000000e+00> : vector<8x1000xf32>
    %251 = tpu.matmul %250, %248, %cst_221 {dimension_numbers = #tpu.dot_dimension_numbers<[1], [0], [0], [1], [0, 0, 1, 1], [], []>} : vector<8x8xf32>, vector<8x1000xf32>, vector<8x1000xf32> -> vector<8x1000xf32>
    %252 = arith.addf %247, %251 : vector<8x1000xf32>
    %c0_222 = arith.constant 0 : index
    %c119_223 = arith.constant 119 : index
    %253 = vector.load %arg10[%c0_222, %c119_223] : memref<8x1256xf32, #tpu.memory_space<vmem>>, vector<8x1000xf32>
    %c11_224 = arith.constant 11 : index
    %c0_225 = arith.constant 0 : index
    %c0_226 = arith.constant 0 : index
    %254 = vector.load %arg5[%c11_224, %c0_225, %c0_226] : memref<27x8x8xf32, #tpu.memory_space<vmem>>, vector<1x8x8xf32>
    %255 = vector.shape_cast %254 : vector<1x8x8xf32> to vector<8x8xf32>
    %cst_227 = arith.constant dense<0.000000e+00> : vector<8x1000xf32>
    %256 = tpu.matmul %255, %253, %cst_227 {dimension_numbers = #tpu.dot_dimension_numbers<[1], [0], [0], [1], [0, 0, 1, 1], [], []>} : vector<8x8xf32>, vector<8x1000xf32>, vector<8x1000xf32> -> vector<8x1000xf32>
    %257 = arith.addf %252, %256 : vector<8x1000xf32>
    %c0_228 = arith.constant 0 : index
    %c127_229 = arith.constant 127 : index
    %258 = vector.load %arg10[%c0_228, %c127_229] : memref<8x1256xf32, #tpu.memory_space<vmem>>, vector<8x1000xf32>
    %c12_230 = arith.constant 12 : index
    %c0_231 = arith.constant 0 : index
    %c0_232 = arith.constant 0 : index
    %259 = vector.load %arg5[%c12_230, %c0_231, %c0_232] : memref<27x8x8xf32, #tpu.memory_space<vmem>>, vector<1x8x8xf32>
    %260 = vector.shape_cast %259 : vector<1x8x8xf32> to vector<8x8xf32>
    %cst_233 = arith.constant dense<0.000000e+00> : vector<8x1000xf32>
    %261 = tpu.matmul %260, %258, %cst_233 {dimension_numbers = #tpu.dot_dimension_numbers<[1], [0], [0], [1], [0, 0, 1, 1], [], []>} : vector<8x8xf32>, vector<8x1000xf32>, vector<8x1000xf32> -> vector<8x1000xf32>
    %262 = arith.addf %257, %261 : vector<8x1000xf32>
    %c0_234 = arith.constant 0 : index
    %c128_235 = arith.constant 128 : index
    %263 = vector.load %arg10[%c0_234, %c128_235] : memref<8x1256xf32, #tpu.memory_space<vmem>>, vector<8x1000xf32>
    %c13_236 = arith.constant 13 : index
    %c0_237 = arith.constant 0 : index
    %c0_238 = arith.constant 0 : index
    %264 = vector.load %arg5[%c13_236, %c0_237, %c0_238] : memref<27x8x8xf32, #tpu.memory_space<vmem>>, vector<1x8x8xf32>
    %265 = vector.shape_cast %264 : vector<1x8x8xf32> to vector<8x8xf32>
    %cst_239 = arith.constant dense<0.000000e+00> : vector<8x1000xf32>
    %266 = tpu.matmul %265, %263, %cst_239 {dimension_numbers = #tpu.dot_dimension_numbers<[1], [0], [0], [1], [0, 0, 1, 1], [], []>} : vector<8x8xf32>, vector<8x1000xf32>, vector<8x1000xf32> -> vector<8x1000xf32>
    %267 = arith.addf %262, %266 : vector<8x1000xf32>
    %c0_240 = arith.constant 0 : index
    %c129_241 = arith.constant 129 : index
    %268 = vector.load %arg10[%c0_240, %c129_241] : memref<8x1256xf32, #tpu.memory_space<vmem>>, vector<8x1000xf32>
    %c14_242 = arith.constant 14 : index
    %c0_243 = arith.constant 0 : index
    %c0_244 = arith.constant 0 : index
    %269 = vector.load %arg5[%c14_242, %c0_243, %c0_244] : memref<27x8x8xf32, #tpu.memory_space<vmem>>, vector<1x8x8xf32>
    %270 = vector.shape_cast %269 : vector<1x8x8xf32> to vector<8x8xf32>
    %cst_245 = arith.constant dense<0.000000e+00> : vector<8x1000xf32>
    %271 = tpu.matmul %270, %268, %cst_245 {dimension_numbers = #tpu.dot_dimension_numbers<[1], [0], [0], [1], [0, 0, 1, 1], [], []>} : vector<8x8xf32>, vector<8x1000xf32>, vector<8x1000xf32> -> vector<8x1000xf32>
    %272 = arith.addf %267, %271 : vector<8x1000xf32>
    %c0_246 = arith.constant 0 : index
    %c137_247 = arith.constant 137 : index
    %273 = vector.load %arg10[%c0_246, %c137_247] : memref<8x1256xf32, #tpu.memory_space<vmem>>, vector<8x1000xf32>
    %c15_248 = arith.constant 15 : index
    %c0_249 = arith.constant 0 : index
    %c0_250 = arith.constant 0 : index
    %274 = vector.load %arg5[%c15_248, %c0_249, %c0_250] : memref<27x8x8xf32, #tpu.memory_space<vmem>>, vector<1x8x8xf32>
    %275 = vector.shape_cast %274 : vector<1x8x8xf32> to vector<8x8xf32>
    %cst_251 = arith.constant dense<0.000000e+00> : vector<8x1000xf32>
    %276 = tpu.matmul %275, %273, %cst_251 {dimension_numbers = #tpu.dot_dimension_numbers<[1], [0], [0], [1], [0, 0, 1, 1], [], []>} : vector<8x8xf32>, vector<8x1000xf32>, vector<8x1000xf32> -> vector<8x1000xf32>
    %277 = arith.addf %272, %276 : vector<8x1000xf32>
    %c0_252 = arith.constant 0 : index
    %c138_253 = arith.constant 138 : index
    %278 = vector.load %arg10[%c0_252, %c138_253] : memref<8x1256xf32, #tpu.memory_space<vmem>>, vector<8x1000xf32>
    %c16_254 = arith.constant 16 : index
    %c0_255 = arith.constant 0 : index
    %c0_256 = arith.constant 0 : index
    %279 = vector.load %arg5[%c16_254, %c0_255, %c0_256] : memref<27x8x8xf32, #tpu.memory_space<vmem>>, vector<1x8x8xf32>
    %280 = vector.shape_cast %279 : vector<1x8x8xf32> to vector<8x8xf32>
    %cst_257 = arith.constant dense<0.000000e+00> : vector<8x1000xf32>
    %281 = tpu.matmul %280, %278, %cst_257 {dimension_numbers = #tpu.dot_dimension_numbers<[1], [0], [0], [1], [0, 0, 1, 1], [], []>} : vector<8x8xf32>, vector<8x1000xf32>, vector<8x1000xf32> -> vector<8x1000xf32>
    %282 = arith.addf %277, %281 : vector<8x1000xf32>
    %c0_258 = arith.constant 0 : index
    %c139_259 = arith.constant 139 : index
    %283 = vector.load %arg10[%c0_258, %c139_259] : memref<8x1256xf32, #tpu.memory_space<vmem>>, vector<8x1000xf32>
    %c17_260 = arith.constant 17 : index
    %c0_261 = arith.constant 0 : index
    %c0_262 = arith.constant 0 : index
    %284 = vector.load %arg5[%c17_260, %c0_261, %c0_262] : memref<27x8x8xf32, #tpu.memory_space<vmem>>, vector<1x8x8xf32>
    %285 = vector.shape_cast %284 : vector<1x8x8xf32> to vector<8x8xf32>
    %cst_263 = arith.constant dense<0.000000e+00> : vector<8x1000xf32>
    %286 = tpu.matmul %285, %283, %cst_263 {dimension_numbers = #tpu.dot_dimension_numbers<[1], [0], [0], [1], [0, 0, 1, 1], [], []>} : vector<8x8xf32>, vector<8x1000xf32>, vector<8x1000xf32> -> vector<8x1000xf32>
    %287 = arith.addf %282, %286 : vector<8x1000xf32>
    %c0_264 = arith.constant 0 : index
    %c217_265 = arith.constant 217 : index
    %288 = vector.load %arg10[%c0_264, %c217_265] : memref<8x1256xf32, #tpu.memory_space<vmem>>, vector<8x1000xf32>
    %c18_266 = arith.constant 18 : index
    %c0_267 = arith.constant 0 : index
    %c0_268 = arith.constant 0 : index
    %289 = vector.load %arg5[%c18_266, %c0_267, %c0_268] : memref<27x8x8xf32, #tpu.memory_space<vmem>>, vector<1x8x8xf32>
    %290 = vector.shape_cast %289 : vector<1x8x8xf32> to vector<8x8xf32>
    %cst_269 = arith.constant dense<0.000000e+00> : vector<8x1000xf32>
    %291 = tpu.matmul %290, %288, %cst_269 {dimension_numbers = #tpu.dot_dimension_numbers<[1], [0], [0], [1], [0, 0, 1, 1], [], []>} : vector<8x8xf32>, vector<8x1000xf32>, vector<8x1000xf32> -> vector<8x1000xf32>
    %292 = arith.addf %287, %291 : vector<8x1000xf32>
    %c0_270 = arith.constant 0 : index
    %c218_271 = arith.constant 218 : index
    %293 = vector.load %arg10[%c0_270, %c218_271] : memref<8x1256xf32, #tpu.memory_space<vmem>>, vector<8x1000xf32>
    %c19_272 = arith.constant 19 : index
    %c0_273 = arith.constant 0 : index
    %c0_274 = arith.constant 0 : index
    %294 = vector.load %arg5[%c19_272, %c0_273, %c0_274] : memref<27x8x8xf32, #tpu.memory_space<vmem>>, vector<1x8x8xf32>
    %295 = vector.shape_cast %294 : vector<1x8x8xf32> to vector<8x8xf32>
    %cst_275 = arith.constant dense<0.000000e+00> : vector<8x1000xf32>
    %296 = tpu.matmul %295, %293, %cst_275 {dimension_numbers = #tpu.dot_dimension_numbers<[1], [0], [0], [1], [0, 0, 1, 1], [], []>} : vector<8x8xf32>, vector<8x1000xf32>, vector<8x1000xf32> -> vector<8x1000xf32>
    %297 = arith.addf %292, %296 : vector<8x1000xf32>
    %c0_276 = arith.constant 0 : index
    %c219_277 = arith.constant 219 : index
    %298 = vector.load %arg10[%c0_276, %c219_277] : memref<8x1256xf32, #tpu.memory_space<vmem>>, vector<8x1000xf32>
    %c20_278 = arith.constant 20 : index
    %c0_279 = arith.constant 0 : index
    %c0_280 = arith.constant 0 : index
    %299 = vector.load %arg5[%c20_278, %c0_279, %c0_280] : memref<27x8x8xf32, #tpu.memory_space<vmem>>, vector<1x8x8xf32>
    %300 = vector.shape_cast %299 : vector<1x8x8xf32> to vector<8x8xf32>
    %cst_281 = arith.constant dense<0.000000e+00> : vector<8x1000xf32>
    %301 = tpu.matmul %300, %298, %cst_281 {dimension_numbers = #tpu.dot_dimension_numbers<[1], [0], [0], [1], [0, 0, 1, 1], [], []>} : vector<8x8xf32>, vector<8x1000xf32>, vector<8x1000xf32> -> vector<8x1000xf32>
    %302 = arith.addf %297, %301 : vector<8x1000xf32>
    %c0_282 = arith.constant 0 : index
    %c227_283 = arith.constant 227 : index
    %303 = vector.load %arg10[%c0_282, %c227_283] : memref<8x1256xf32, #tpu.memory_space<vmem>>, vector<8x1000xf32>
    %c21_284 = arith.constant 21 : index
    %c0_285 = arith.constant 0 : index
    %c0_286 = arith.constant 0 : index
    %304 = vector.load %arg5[%c21_284, %c0_285, %c0_286] : memref<27x8x8xf32, #tpu.memory_space<vmem>>, vector<1x8x8xf32>
    %305 = vector.shape_cast %304 : vector<1x8x8xf32> to vector<8x8xf32>
    %cst_287 = arith.constant dense<0.000000e+00> : vector<8x1000xf32>
    %306 = tpu.matmul %305, %303, %cst_287 {dimension_numbers = #tpu.dot_dimension_numbers<[1], [0], [0], [1], [0, 0, 1, 1], [], []>} : vector<8x8xf32>, vector<8x1000xf32>, vector<8x1000xf32> -> vector<8x1000xf32>
    %307 = arith.addf %302, %306 : vector<8x1000xf32>
    %c0_288 = arith.constant 0 : index
    %c228_289 = arith.constant 228 : index
    %308 = vector.load %arg10[%c0_288, %c228_289] : memref<8x1256xf32, #tpu.memory_space<vmem>>, vector<8x1000xf32>
    %c22_290 = arith.constant 22 : index
    %c0_291 = arith.constant 0 : index
    %c0_292 = arith.constant 0 : index
    %309 = vector.load %arg5[%c22_290, %c0_291, %c0_292] : memref<27x8x8xf32, #tpu.memory_space<vmem>>, vector<1x8x8xf32>
    %310 = vector.shape_cast %309 : vector<1x8x8xf32> to vector<8x8xf32>
    %cst_293 = arith.constant dense<0.000000e+00> : vector<8x1000xf32>
    %311 = tpu.matmul %310, %308, %cst_293 {dimension_numbers = #tpu.dot_dimension_numbers<[1], [0], [0], [1], [0, 0, 1, 1], [], []>} : vector<8x8xf32>, vector<8x1000xf32>, vector<8x1000xf32> -> vector<8x1000xf32>
    %312 = arith.addf %307, %311 : vector<8x1000xf32>
    %c0_294 = arith.constant 0 : index
    %c229_295 = arith.constant 229 : index
    %313 = vector.load %arg10[%c0_294, %c229_295] : memref<8x1256xf32, #tpu.memory_space<vmem>>, vector<8x1000xf32>
    %c23_296 = arith.constant 23 : index
    %c0_297 = arith.constant 0 : index
    %c0_298 = arith.constant 0 : index
    %314 = vector.load %arg5[%c23_296, %c0_297, %c0_298] : memref<27x8x8xf32, #tpu.memory_space<vmem>>, vector<1x8x8xf32>
    %315 = vector.shape_cast %314 : vector<1x8x8xf32> to vector<8x8xf32>
    %cst_299 = arith.constant dense<0.000000e+00> : vector<8x1000xf32>
    %316 = tpu.matmul %315, %313, %cst_299 {dimension_numbers = #tpu.dot_dimension_numbers<[1], [0], [0], [1], [0, 0, 1, 1], [], []>} : vector<8x8xf32>, vector<8x1000xf32>, vector<8x1000xf32> -> vector<8x1000xf32>
    %317 = arith.addf %312, %316 : vector<8x1000xf32>
    %c0_300 = arith.constant 0 : index
    %c237_301 = arith.constant 237 : index
    %318 = vector.load %arg10[%c0_300, %c237_301] : memref<8x1256xf32, #tpu.memory_space<vmem>>, vector<8x1000xf32>
    %c24_302 = arith.constant 24 : index
    %c0_303 = arith.constant 0 : index
    %c0_304 = arith.constant 0 : index
    %319 = vector.load %arg5[%c24_302, %c0_303, %c0_304] : memref<27x8x8xf32, #tpu.memory_space<vmem>>, vector<1x8x8xf32>
    %320 = vector.shape_cast %319 : vector<1x8x8xf32> to vector<8x8xf32>
    %cst_305 = arith.constant dense<0.000000e+00> : vector<8x1000xf32>
    %321 = tpu.matmul %320, %318, %cst_305 {dimension_numbers = #tpu.dot_dimension_numbers<[1], [0], [0], [1], [0, 0, 1, 1], [], []>} : vector<8x8xf32>, vector<8x1000xf32>, vector<8x1000xf32> -> vector<8x1000xf32>
    %322 = arith.addf %317, %321 : vector<8x1000xf32>
    %c0_306 = arith.constant 0 : index
    %c238_307 = arith.constant 238 : index
    %323 = vector.load %arg10[%c0_306, %c238_307] : memref<8x1256xf32, #tpu.memory_space<vmem>>, vector<8x1000xf32>
    %c25_308 = arith.constant 25 : index
    %c0_309 = arith.constant 0 : index
    %c0_310 = arith.constant 0 : index
    %324 = vector.load %arg5[%c25_308, %c0_309, %c0_310] : memref<27x8x8xf32, #tpu.memory_space<vmem>>, vector<1x8x8xf32>
    %325 = vector.shape_cast %324 : vector<1x8x8xf32> to vector<8x8xf32>
    %cst_311 = arith.constant dense<0.000000e+00> : vector<8x1000xf32>
    %326 = tpu.matmul %325, %323, %cst_311 {dimension_numbers = #tpu.dot_dimension_numbers<[1], [0], [0], [1], [0, 0, 1, 1], [], []>} : vector<8x8xf32>, vector<8x1000xf32>, vector<8x1000xf32> -> vector<8x1000xf32>
    %327 = arith.addf %322, %326 : vector<8x1000xf32>
    %c0_312 = arith.constant 0 : index
    %c239_313 = arith.constant 239 : index
    %328 = vector.load %arg10[%c0_312, %c239_313] : memref<8x1256xf32, #tpu.memory_space<vmem>>, vector<8x1000xf32>
    %c26_314 = arith.constant 26 : index
    %c0_315 = arith.constant 0 : index
    %c0_316 = arith.constant 0 : index
    %329 = vector.load %arg5[%c26_314, %c0_315, %c0_316] : memref<27x8x8xf32, #tpu.memory_space<vmem>>, vector<1x8x8xf32>
    %330 = vector.shape_cast %329 : vector<1x8x8xf32> to vector<8x8xf32>
    %cst_317 = arith.constant dense<0.000000e+00> : vector<8x1000xf32>
    %331 = tpu.matmul %330, %328, %cst_317 {dimension_numbers = #tpu.dot_dimension_numbers<[1], [0], [0], [1], [0, 0, 1, 1], [], []>} : vector<8x8xf32>, vector<8x1000xf32>, vector<8x1000xf32> -> vector<8x1000xf32>
    %332 = arith.addf %327, %331 : vector<8x1000xf32>
    %c0_318 = arith.constant 0 : index
    %c0_319 = arith.constant 0 : index
    %333 = vector.load %arg6[%c0_318, %c0_319] : memref<8x1xf32, #tpu.memory_space<vmem>>, vector<8x1xf32>
    %c0_320 = arith.constant 0 : index
    %c0_321 = arith.constant 0 : index
    %334 = vector.load %arg7[%c0_320, %c0_321] : memref<8x1xf32, #tpu.memory_space<vmem>>, vector<8x1xf32>
    %335 = vector.broadcast %0 : vector<1x1000xf32> to vector<8x1000xf32>
    %336 = arith.mulf %332, %335 : vector<8x1000xf32>
    %cst_322 = arith.constant dense<0.000000e+00> : vector<8xf32>
    %337 = vector.multi_reduction <add>, %336, %cst_322 [1] : vector<8x1000xf32> to vector<8xf32>
    %338 = vector.shape_cast %337 : vector<8xf32> to vector<8x1xf32>
    %cst_323 = arith.constant 0.001953125 : f32
    %339 = vector.broadcast %cst_323 : f32 to vector<8x1xf32>
    %340 = arith.mulf %338, %339 : vector<8x1xf32>
    %341 = vector.broadcast %340 : vector<8x1xf32> to vector<8x1000xf32>
    %342 = arith.subf %332, %341 : vector<8x1000xf32>
    %343 = vector.broadcast %0 : vector<1x1000xf32> to vector<8x1000xf32>
    %344 = arith.mulf %342, %343 : vector<8x1000xf32>
    %345 = arith.mulf %344, %344 : vector<8x1000xf32>
    %cst_324 = arith.constant dense<0.000000e+00> : vector<8xf32>
    %346 = vector.multi_reduction <add>, %345, %cst_324 [1] : vector<8x1000xf32> to vector<8xf32>
    %347 = vector.shape_cast %346 : vector<8xf32> to vector<8x1xf32>
    %cst_325 = arith.constant 0.001953125 : f32
    %348 = vector.broadcast %cst_325 : f32 to vector<8x1xf32>
    %349 = arith.mulf %347, %348 : vector<8x1xf32>
    %cst_326 = arith.constant 9.99999974E-6 : f32
    %350 = vector.broadcast %cst_326 : f32 to vector<8x1xf32>
    %351 = arith.addf %349, %350 : vector<8x1xf32>
    %352 = math.rsqrt %351 : vector<8x1xf32>
    %353 = vector.broadcast %352 : vector<8x1xf32> to vector<8x1000xf32>
    %354 = arith.mulf %344, %353 : vector<8x1000xf32>
    %355 = vector.broadcast %333 : vector<8x1xf32> to vector<8x1000xf32>
    %356 = arith.mulf %354, %355 : vector<8x1000xf32>
    %357 = vector.broadcast %334 : vector<8x1xf32> to vector<8x1000xf32>
    %358 = arith.addf %356, %357 : vector<8x1000xf32>
    %cst_327 = arith.constant 0.000000e+00 : f32
    %359 = vector.broadcast %cst_327 : f32 to vector<8x1000xf32>
    %360 = arith.cmpf ogt, %358, %359 : vector<8x1000xf32>
    %cst_328 = arith.constant 0.00999999977 : f32
    %361 = vector.broadcast %cst_328 : f32 to vector<8x1000xf32>
    %362 = arith.mulf %361, %358 : vector<8x1000xf32>
    %363 = arith.select %360, %358, %362 : vector<8x1000xi1>, vector<8x1000xf32>
    %364 = vector.broadcast %0 : vector<1x1000xf32> to vector<8x1000xf32>
    %365 = arith.mulf %363, %364 : vector<8x1000xf32>
    %c0_329 = arith.constant 0 : index
    %c0_330 = arith.constant 0 : index
    %c0_331 = arith.constant 0 : index
    %366 = vector.load %arg9[%c0_329, %c0_330, %c0_331] : memref<1x8x1000xf32, #tpu.memory_space<vmem>>, vector<1x8x1000xf32>
    %367 = vector.shape_cast %366 : vector<1x8x1000xf32> to vector<8x1000xf32>
    %368 = vector.shape_cast %365 : vector<8x1000xf32> to vector<1x8x1000xf32>
    tpu.vector_store %arg9[%c0_329, %c0_330, %c0_331], %368 {strides = array<i32>} : memref<1x8x1000xf32, #tpu.memory_space<vmem>>, vector<1x8x1000xf32>,
    return
  }
  func.func @transform_0(%arg0: i32) -> (i32, i32, i32) {
    %c0_i32 = arith.constant 0 : i32
    %c0_i32_0 = arith.constant 0 : i32
    %c0_i32_1 = arith.constant 0 : i32
    return %arg0, %c0_i32, %c0_i32_0 : i32, i32, i32
  }
  func.func @transform_1(%arg0: i32) -> (i32, i32, i32) {
    %c0_i32 = arith.constant 0 : i32
    %c0_i32_0 = arith.constant 0 : i32
    %c0_i32_1 = arith.constant 0 : i32
    %c0_i32_2 = arith.constant 0 : i32
    return %c0_i32, %c0_i32_0, %c0_i32_1 : i32, i32, i32
  }
  func.func @transform_2(%arg0: i32) -> (i32, i32) {
    %c0_i32 = arith.constant 0 : i32
    %c0_i32_0 = arith.constant 0 : i32
    %c0_i32_1 = arith.constant 0 : i32
    return %c0_i32, %c0_i32_0 : i32, i32
  }
  func.func @transform_3(%arg0: i32) -> (i32, i32) {
    %c0_i32 = arith.constant 0 : i32
    %c0_i32_0 = arith.constant 0 : i32
    %c0_i32_1 = arith.constant 0 : i32
    return %c0_i32, %c0_i32_0 : i32, i32
  }
  func.func @transform_4(%arg0: i32) -> (i32, i32, i32) {
    %c0_i32 = arith.constant 0 : i32
    %c0_i32_0 = arith.constant 0 : i32
    %c0_i32_1 = arith.constant 0 : i32
    %c0_i32_2 = arith.constant 0 : i32
    return %c0_i32, %c0_i32_0, %c0_i32_1 : i32, i32, i32
  }
  func.func @transform_5(%arg0: i32) -> (i32, i32) {
    %c0_i32 = arith.constant 0 : i32
    %c0_i32_0 = arith.constant 0 : i32
    %c0_i32_1 = arith.constant 0 : i32
    return %c0_i32, %c0_i32_0 : i32, i32
  }
  func.func @transform_6(%arg0: i32) -> (i32, i32) {
    %c0_i32 = arith.constant 0 : i32
    %c0_i32_0 = arith.constant 0 : i32
    %c0_i32_1 = arith.constant 0 : i32
    return %c0_i32, %c0_i32_0 : i32, i32
  }
  func.func @transform_7(%arg0: i32) -> (i32, i32) {
    %c0_i32 = arith.constant 0 : i32
    %c0_i32_0 = arith.constant 0 : i32
    %c0_i32_1 = arith.constant 0 : i32
    return %c0_i32, %c0_i32_0 : i32, i32
  }
  func.func @transform_8(%arg0: i32) -> (i32, i32, i32) {
    %c0_i32 = arith.constant 0 : i32
    %c0_i32_0 = arith.constant 0 : i32
    %c0_i32_1 = arith.constant 0 : i32
    return %arg0, %c0_i32, %c0_i32_0 : i32, i32, i32
  }
}

</mosaic_0001>

<bundles_post_ra>
// kernel: double_conv.1
= control target key start
LH: loop header
LB: loop body
LE: loop exit
PB: predicated region body
PF: predicated region fallthrough
CT: control target
= control target key end

     0   :  { %s13509_s27 = smov 0   ;;  %s16127_s0 = inlined_call_operand.vmem [shape: f32[2,8,1256], index: 0, kind: input, shape index: {}]   ;;  %s16128_s1 = inlined_call_operand.vmem [shape: f32[27,8,8], index: 1, kind: input, shape index: {}]   ;;  %s16129_s2 = inlined_call_operand.vmem [shape: f32[8,1], index: 2, kind: input, shape index: {}]   ;;  %s16130_s3 = inlined_call_operand.vmem [shape: f32[8,1], index: 3, kind: input, shape index: {}]   ;;  %s16131_s4 = inlined_call_operand.vmem [shape: f32[27,8,8], index: 4, kind: input, shape index: {}]   ;;  %s16132_s5 = inlined_call_operand.vmem [shape: f32[8,1], index: 5, kind: input, shape index: {}]   ;;  %s16133_s6 = inlined_call_operand.vmem [shape: f32[8,1], index: 6, kind: input, shape index: {}]   ;;  %s16134_s7 = inlined_call_operand.vmem [shape: f32[1,1000], index: 7, kind: input, shape index: {}]   ;;  %s16135_s8 = inlined_call_operand.vmem [shape: f32[2,8,1000], index: 8, kind: output, shape index: {}]  }
   0x1 LB: > { %s11831_s28 = sadd.s32 4294967295, %s13434_s27   ;;  %p11835_p0 = scmp.ge.s32.totalorder %s13434_s27, 1  ;;  %s13434_s27 = sphi %s13509_s27, %s18_s27  }
   0x2   : > { %p262_p1 = scmp.lt.s32.totalorder %s13434_s27, 3 }
   0x4   : > { %p263_p2 = pnand %p11835_p0, %p262_p1 }
   0x6   : > { %266 = sbr.rel (%p263_p2) target bundleno = 1980 (0x7bc), region = 52 }
   0xb   : > { %p296_p3 = scmp.lt.s32.totalorder %s11831_s28, 1  ;;  %s13436_s11 = smov 110   ;;  %vm342_vm0 = vcmask 900096   ;;  %v13659_v20 = vld [vmem:[%s16128_s1 + $0x8] sm:$0xff]  ;;  %vm358_vm1 = vcmask 64512   ;;  %vm538_vm2 = vcmask 908288  }
   0xc   : > { %s13437_s12 = smov 111   ;;  %s13438_s13 = smov 109   ;;  %vm735_vm3 = vcmask 891904   ;;  %v315_v53 = vld [vmem:[%s16128_s1] sm:$0xff]  ;;  %vm960_vm4 = vcmask 826368   ;;  %vm1168_vm5 = vcmask 818176  }
   0xd   : > { %s16495_s28 = smov (!%p296_p3, %s11831_s28), 1  ;;  %s13439_s14 = smov 101   ;;  %vm1376_vm6 = vcmask 809984   ;;  %vm16175_vm7 = vcmask 744448   ;;  %vm16174_vm8 = vcmask 736256   ;;  %vm16173_vm9 = vcmask 728064  }
   0xe   : > { %s12326_s29 = smul.u32 80, %s16495_s28  ;;  %s13440_s15 = smov 100   ;;  %vm16172_vm10 = vcmask 89088   ;;  %vm16171_vm11 = vcmask 80896   ;;  %vm16170_vm12 = vcmask 72704   ;;  %vm16169_vm13 = vcmask 7168  }
   0xf   : > { %s13441_s16 = smov 99   ;;  %s13442_s17 = smov 91   ;;  %vm16148_vm14 = vcmask 1039360   ;;  %vm16151_vm15 = vcmask 973824  }
  0x10   : > { %s13523_s10 = scalar_lea.vmem %s16127_s0, %s12326_s29  ;;  %s13443_s18 = smov 90  }
  0x11   : > { %v13526_v0 = vld [vmem:[%s13523_s10 + $0x10] sm:$0xff]  ;;  %v13529_v1 = vld [vmem:[%s13523_s10 + $0x18] sm:$0xff]  ;;  %v13532_v2 = vld [vmem:[%s13523_s10 + $0x8] sm:$0xff]  ;;  %s13444_s19 = smov 89   ;;  %s13445_s20 = smov 11  }
  0x12   : > { %v13536_v3 = vpack.i.bf16 %v13529_v1, %v13526_v0  ;;  %v13539_v4 = vld [vmem:[%s13523_s10 + $0x30] sm:$0xff]  ;;  %v307_v6 = vld [vmem:[%s13523_s10] sm:$0xff]  ;;  %v13556_v8 = vld [vmem:[%s13523_s10 + $0x28] sm:$0xff]  ;;  %s13446_s23 = smov 10   ;;  %s13447_s26 = smov 9  }
  0x13   : > { %v13543_v5 = vpack.i.bf16 %v13539_v4, %v13532_v2  ;;  %v13553_v7 = vld [vmem:[%s13523_s10 + $0x20] sm:$0xff]  ;;  %v13559_v9 = vld [vmem:[%s13523_s10 + $0x38] sm:$0xff]  ;;  %s13448_s9 = smov 1   ;;  %s13449_s29 = smov 127  }
  0x14   : > { %12364 = vrot.lane.b32.xlu0 %v13536_v3, %s13436_s11  ;;  %12384 = vrot.lane.b32.xlu2 %v13536_v3, %s13437_s12  ;;  %v13562_v10 = vpack.i.bf16 %v307_v6, %v13553_v7  ;;  %v12378_v11 = vpack.i.bf16 %v13556_v8, %v13559_v9  ;;  %v13588_v12 = vld [vmem:[%s13523_s10 + $0x40] sm:$0xff]  ;;  %s16142_s22 = smov 119   ;;  %s16138_s24 = smov 118  }
  0x15   : > { %12374 = vrot.lane.b32.xlu1 %v13543_v5, %s13436_s11  ;;  %v13592_v13 = vpack.i.bf16 %v13588_v12, %v13559_v9  ;;  %s16136_s21 = smov 117   ;;  %s16140_s25 = smov 39  }
  0x1c   : > { %12369 = vrot.lane.b32.xlu0 %v13562_v10, %s13436_s11  ;;  %12389 = vrot.lane.b32.xlu2 %v13562_v10, %s13437_s12 }
  0x1d   : > { %12379 = vrot.lane.b32.xlu1 %v12378_v11, %s13436_s11 }
  0x24   : > { %12394 = vrot.lane.b32.xlu0 %v13543_v5, %s13437_s12  ;;  %12404 = vrot.lane.b32.xlu2 %v13536_v3, %s13438_s13 }
  0x25   : > { %12399 = vrot.lane.b32.xlu1 %v12378_v11, %s13437_s12 }
  0x2c   : > { %12409 = vrot.lane.b32.xlu0 %v13562_v10, %s13438_s13  ;;  %12419 = vrot.lane.b32.xlu2 %v12378_v11, %s13438_s13 }
  0x2d   : > { %12414 = vrot.lane.b32.xlu1 %v13543_v5, %s13438_s13 }
  0x34   : > { %12424 = vrot.lane.b32.xlu0 %v13536_v3, %s13439_s14  ;;  %12434 = vrot.lane.b32.xlu2 %v13543_v5, %s13439_s14 }
  0x35   : > { %12429 = vrot.lane.b32.xlu1 %v13562_v10, %s13439_s14 }
  0x3c   : > { %12439 = vrot.lane.b32.xlu0 %v13592_v13, %s13439_s14  ;;  %12444 = vrot.lane.b32.xlu2 %v13536_v3, %s13440_s15 }
  0x3d   : > { %952 = vrot.lane.b32.xlu1 %v13556_v8, %s13439_s14 }
  0x44   : > { %12449 = vrot.lane.b32.xlu0 %v13562_v10, %s13440_s15  ;;  %12459 = vrot.lane.b32.xlu2 %v13592_v13, %s13440_s15 }
  0x45   : > { %12454 = vrot.lane.b32.xlu1 %v13543_v5, %s13440_s15 }
  0x4c   : > { %1160 = vrot.lane.b32.xlu0 %v13556_v8, %s13440_s15  ;;  %12469 = vrot.lane.b32.xlu2 %v13562_v10, %s13441_s16 }
  0x4d   : > { %12464 = vrot.lane.b32.xlu1 %v13536_v3, %s13441_s16 }
  0x54   : > { %12474 = vrot.lane.b32.xlu0 %v13543_v5, %s13441_s16  ;;  %1368 = vrot.lane.b32.xlu2 %v13556_v8, %s13441_s16 }
  0x55   : > { %12479 = vrot.lane.b32.xlu1 %v13592_v13, %s13441_s16 }
  0x5c   : > { %12484 = vrot.lane.b32.xlu0 %v13536_v3, %s13442_s17  ;;  %12494 = vrot.lane.b32.xlu2 %v13543_v5, %s13442_s17 }
  0x5d   : > { %12489 = vrot.lane.b32.xlu1 %v13562_v10, %s13442_s17 }
  0x64   : > { %12499 = vrot.lane.b32.xlu0 %v13592_v13, %s13442_s17  ;;  %12504 = vrot.lane.b32.xlu2 %v13536_v3, %s13443_s18 }
  0x65   : > { %1576 = vrot.lane.b32.xlu1 %v13556_v8, %s13442_s17 }
  0x6c   : > { %12509 = vrot.lane.b32.xlu0 %v13562_v10, %s13443_s18  ;;  %12519 = vrot.lane.b32.xlu2 %v13592_v13, %s13443_s18 }
  0x6d   : > { %12514 = vrot.lane.b32.xlu1 %v13543_v5, %s13443_s18 }
  0x6e   : > { %v13648_v14 = vpop.permute.xlu2 %12384 }
  0x6f   : > { %v12387_v26 = vunpack.i.h.bf16 %v13648_v14  ;;  %v12386_v30 = vunpack.i.l.bf16 %v13648_v14 }
  0x71   : > { %v541_v40 = vsel %vm538_vm2, %v12386_v30, %v12387_v26 }
  0x74   : > { %1784 = vrot.lane.b32.xlu0 %v13556_v8, %s13443_s18  ;;  %12529 = vrot.lane.b32.xlu2 %v13562_v10, %s13444_s19 }
  0x75   : > { %12524 = vrot.lane.b32.xlu1 %v13536_v3, %s13444_s19 }
  0x76   : > { %v12390_v21 = vpop.permute.xlu2 %12389 }
  0x77   : > { %v12391_v33 = vunpack.i.l.bf16 %v12390_v21  ;;  %v12392_v42 = vunpack.i.h.bf16 %v12390_v21 }
  0x79   : > { %v542_v41 = vsel %vm538_vm2, %v12387_v26, %v12391_v33  ;;  %v11856_v26 = vld [vmem:[%s16128_s1 + $0x10] sm:$0xff] }
  0x7c   : > { %12534 = vrot.lane.b32.xlu0 %v13543_v5, %s13444_s19  ;;  %1992 = vrot.lane.b32.xlu2 %v13556_v8, %s13444_s19 }
  0x7d   : > { %12539 = vrot.lane.b32.xlu1 %v13592_v13, %s13444_s19 }
  0x7e   : > { %v13675_v34 = vpop.permute.xlu2 %12404 }
  0x7f   : > { %v12407_v49 = vunpack.i.h.bf16 %v13675_v34  ;;  %v12406_v50 = vunpack.i.l.bf16 %v13675_v34 }
  0x81   : > { %v738_v58 = vsel %vm735_vm3, %v12406_v50, %v12407_v49 }
  0x84   : > { %12544 = vrot.lane.b32.xlu0 %v13536_v3, %s13445_s20  ;;  %12554 = vrot.lane.b32.xlu2 %v13543_v5, %s13445_s20 }
  0x85   : > { %12549 = vrot.lane.b32.xlu1 %v13562_v10, %s13445_s20 }
  0x86   : > { %v12365_v15 = vpop.permute.xlu0 %12364  ;;  %v12420_v57 = vpop.permute.xlu2 %12419 }
  0x87   : > { %v12367_v16 = vunpack.i.h.bf16 %v12365_v15  ;;  %v12366_v17 = vunpack.i.l.bf16 %v12365_v15  ;;  %v12375_v18 = vpop.permute.xlu1 %12374  ;;  %v12422_v11 = vunpack.i.h.bf16 %v12420_v57  ;;  %v12421_v14 = vunpack.i.l.bf16 %v12420_v57 }
  0x88   : > { %v12376_v19 = vunpack.i.l.bf16 %v12375_v18  ;;  %v12377_v24 = vunpack.i.h.bf16 %v12375_v18 }
  0x89   : > { %v345_v22 = vsel %vm342_vm0, %v12366_v17, %v12367_v16 }
  0x8a   : > { %v344_v23 = vsel %vm342_vm0, %v12376_v19, %v12366_v17  ;;  %417 = vmatpush.msra.mxu2 %v345_v22 }
  0x8b   : > { %397 = vmatpush.msra.mxu1 %v344_v23  ;;  %11842 = vmatmul.msk.f32.vlgmr.msra.gmra.mxu2 %vm358_vm1, %v13659_v20 }
  0x8c   : > { %11841 = vmatmul.msk.f32.vlgmr.msra.gmra.mxu1 %vm358_vm1, %v13659_v20  ;;  %12559 = vrot.lane.b32.xlu0 %v13592_v13, %s13445_s20 }
  0x8d   : > { %2200 = vrot.lane.b32.xlu1 %v13556_v8, %s13445_s20  ;;  %12564 = vrot.lane.b32.xlu2 %v13536_v3, %s13446_s23 }
  0x8e   : > { %v12370_v25 = vpop.permute.xlu0 %12369 }
  0x8f   : > { %v12380_v27 = vpop.permute.xlu1 %12379  ;;  %v12372_v28 = vunpack.i.h.bf16 %v12370_v25  ;;  %v12371_v29 = vunpack.i.l.bf16 %v12370_v25 }
  0x90   : > { %v12382_v31 = vunpack.i.h.bf16 %v12380_v27  ;;  %v12381_v32 = vunpack.i.l.bf16 %v12380_v27 }
  0x91   : > { %v343_v35 = vsel %vm342_vm0, %v12372_v28, %v12376_v19  ;;  %v346_v36 = vsel %vm342_vm0, %v12367_v16, %v12371_v29 }
  0x92   : > { %377 = vmatpush.msra.mxu0 %v343_v35  ;;  %437 = vmatpush.msra.mxu3 %v346_v36  ;;  %v348_v37 = vsel %vm342_vm0, %v12382_v31, %v12377_v24  ;;  %v349_v38 = vsel %vm342_vm0, %v12377_v24, %v12381_v32  ;;  %v347_v39 = vsel %vm342_vm0, %v12371_v29, %v12382_v31 }
  0x93   : > { %477 = vmatpush.msrb.mxu1 %v348_v37  ;;  %497 = vmatpush.msrb.mxu2 %v349_v38 }
  0x94   : > { %11840 = vmatmul.msk.f32.vlgmr.msra.gmra.mxu0 %vm358_vm1, %v13659_v20  ;;  %11843 = vmatmul.msk.f32.vlgmr.msra.gmra.mxu3 %vm358_vm1, %v13659_v20 }
  0x95   : > { %457 = vmatpush.msrb.mxu0 %v347_v39  ;;  %11845 = vmatmul.msk.f32.vlgmr.msrb.gmra.mxu1 %vm358_vm1, %v13659_v20 }
  0x96   : > { %11846 = vmatmul.msk.f32.vlgmr.msrb.gmra.mxu2 %vm358_vm1, %v13659_v20  ;;  %v12395_v43 = vpop.permute.xlu0 %12394  ;;  %517 = vmatpush.msrb.mxu3 %v12381_v32 }
  0x97   : > { %v12397_v44 = vunpack.i.h.bf16 %v12395_v43  ;;  %v12396_v45 = vunpack.i.l.bf16 %v12395_v43  ;;  %612 = vmatpush.msra.mxu2 %v541_v40  ;;  %v12400_v46 = vpop.permute.xlu1 %12399  ;;  %12574 = vrot.lane.b32.xlu1 %v13543_v5, %s13446_s23 }
  0x98   : > { %632 = vmatpush.msra.mxu3 %v542_v41  ;;  %v12402_v47 = vunpack.i.h.bf16 %v12400_v46  ;;  %v12401_v48 = vunpack.i.l.bf16 %v12400_v46  ;;  %12569 = vrot.lane.b32.xlu0 %v13562_v10, %s13446_s23 }
  0x99   : > { %v540_v51 = vsel %vm538_vm2, %v12396_v45, %v12386_v30  ;;  %v539_v52 = vsel %vm538_vm2, %v12392_v42, %v12396_v45  ;;  %12579 = vrot.lane.b32.xlu2 %v13592_v13, %s13446_s23  ;;  %v11865_v45 = vld [vmem:[%s16128_s1 + $0x18] sm:$0xff] }
  0x9a   : > { %592 = vmatpush.msra.mxu1 %v540_v51  ;;  %572 = vmatpush.msra.mxu0 %v539_v52  ;;  %v543_v54 = vsel %vm538_vm2, %v12391_v33, %v12402_v47  ;;  %v544_v55 = vsel %vm538_vm2, %v12402_v47, %v12397_v44  ;;  %v545_v56 = vsel %vm538_vm2, %v12397_v44, %v12401_v48 }
  0x9b   : > { %692 = vmatpush.msrb.mxu2 %v545_v56 }
  0x9c   : > { %672 = vmatpush.msrb.mxu1 %v544_v55  ;;  %11844 = vmatmul.msk.f32.vlgmr.msrb.gmra.mxu0 %vm358_vm1, %v13659_v20 }
  0x9d   : > { %11847 = vmatmul.msk.f32.vlgmr.msrb.gmra.mxu3 %vm358_vm1, %v13659_v20  ;;  %11849 = vmatmul.msk.f32.vlgmr.msra.gmra.mxu1 %vm358_vm1, %v315_v53  ;;  %v12435_v20 = vpop.permute.xlu2 %12434 }
  0x9e   : > { %652 = vmatpush.msrb.mxu0 %v543_v54  ;;  %11850 = vmatmul.msk.f32.vlgmr.msra.gmra.mxu2 %vm358_vm1, %v315_v53  ;;  %v12410_v59 = vpop.permute.xlu0 %12409  ;;  %v12436_v23 = vunpack.i.l.bf16 %v12435_v20  ;;  %v12437_v35 = vunpack.i.h.bf16 %v12435_v20 }
  0x9f   : > { %712 = vmatpush.msrb.mxu3 %v12401_v48  ;;  %v12415_v60 = vpop.permute.xlu1 %12414  ;;  %809 = vmatpush.msra.mxu2 %v738_v58  ;;  %v12412_v61 = vunpack.i.h.bf16 %v12410_v59  ;;  %v12411_v62 = vunpack.i.l.bf16 %v12410_v59 }
  0xa0   : > { %v12417_v63 = vunpack.i.h.bf16 %v12415_v60  ;;  %v12416_v6 = vunpack.i.l.bf16 %v12415_v60  ;;  %2408 = vrot.lane.b32.xlu0 %v13556_v8, %s13446_s23  ;;  %12584 = vrot.lane.b32.xlu1 %v13536_v3, %s13447_s26 }
  0xa1   : > { %12589 = vrot.lane.b32.xlu2 %v13562_v10, %s13447_s26  ;;  %v739_v17 = vsel %vm735_vm3, %v12407_v49, %v12411_v62  ;;  %v740_v27 = vsel %vm735_vm3, %v12411_v62, %v12422_v11 }
  0xa2   : > { %v737_v15 = vsel %vm735_vm3, %v12416_v6, %v12406_v50  ;;  %v736_v16 = vsel %vm735_vm3, %v12412_v61, %v12416_v6  ;;  %v741_v18 = vsel %vm735_vm3, %v12422_v11, %v12417_v63  ;;  %v742_v19 = vsel %vm735_vm3, %v12417_v63, %v12421_v14 }
  0xa3   : > { %789 = vmatpush.msra.mxu1 %v737_v15 }
  0xa4   : > { %11848 = vmatmul.msk.f32.vlgmr.msra.gmra.mxu0 %vm358_vm1, %v315_v53 }
  0xa5   : > { %11851 = vmatmul.msk.f32.vlgmr.msra.gmra.mxu3 %vm358_vm1, %v315_v53  ;;  %11853 = vmatmul.msk.f32.vlgmr.msrb.gmra.mxu1 %vm358_vm1, %v315_v53  ;;  %v12445_v30 = vpop.permute.xlu2 %12444 }
  0xa6   : > { %769 = vmatpush.msra.mxu0 %v736_v16  ;;  %11854 = vmatmul.msk.f32.vlgmr.msrb.gmra.mxu2 %vm358_vm1, %v315_v53  ;;  %v12425_v21 = vpop.permute.xlu0 %12424  ;;  %v12447_v43 = vunpack.i.h.bf16 %v12445_v30  ;;  %v12446_v44 = vunpack.i.l.bf16 %v12445_v30 }
  0xa7   : > { %829 = vmatpush.msra.mxu3 %v739_v17  ;;  %869 = vmatpush.msrb.mxu1 %v741_v18  ;;  %v12430_v22 = vpop.permute.xlu1 %12429  ;;  %v12427_v24 = vunpack.i.h.bf16 %v12425_v21  ;;  %v12426_v25 = vunpack.i.l.bf16 %v12425_v21 }
  0xa8   : > { %889 = vmatpush.msrb.mxu2 %v742_v19  ;;  %12594 = vrot.lane.b32.xlu0 %v13543_v5, %s13447_s26  ;;  %v12432_v31 = vunpack.i.h.bf16 %v12430_v22  ;;  %v12431_v33 = vunpack.i.l.bf16 %v12430_v22 }
  0xa9   : > { %12599 = vrot.lane.b32.xlu1 %v13592_v13, %s13447_s26  ;;  %2616 = vrot.lane.b32.xlu2 %v13556_v8, %s13447_s26  ;;  %v962_v28 = vsel %vm960_vm4, %v12436_v23, %v12426_v25  ;;  %v963_v29 = vsel %vm960_vm4, %v12426_v25, %v12427_v24 }
  0xaa   : > { %v961_v37 = vsel %vm960_vm4, %v12432_v31, %v12436_v23  ;;  %v964_v38 = vsel %vm960_vm4, %v12427_v24, %v12431_v33  ;;  %v13809_v31 = vpack.i.bf16 %v13559_v9, %v13526_v0  ;;  %v11883_v0 = vld [vmem:[%s16128_s1 + $0x28] sm:$0xff] }
  0xac   : > { %11852 = vmatmul.msk.f32.vlgmr.msrb.gmra.mxu0 %vm358_vm1, %v315_v53 }
  0xad   : > { %11855 = vmatmul.msk.f32.vlgmr.msrb.gmra.mxu3 %vm358_vm1, %v315_v53  ;;  %11858 = vmatmul.msk.f32.vlgmr.msra.gmra.mxu1 %vm358_vm1, %v11856_v26 }
  0xae   : > { %849 = vmatpush.msrb.mxu0 %v740_v27  ;;  %11859 = vmatmul.msk.f32.vlgmr.msra.gmra.mxu2 %vm358_vm1, %v11856_v26  ;;  %v12440_v32 = vpop.permute.xlu0 %12439 }
  0xaf   : > { %909 = vmatpush.msrb.mxu3 %v12421_v14  ;;  %1015 = vmatpush.msra.mxu1 %v962_v28  ;;  %v953_v34 = vpop.permute.xlu1 %952  ;;  %v12441_v36 = vunpack.i.l.bf16 %v12440_v32  ;;  %v11874_v14 = vld [vmem:[%s16128_s1 + $0x20] sm:$0xff] }
  0xb0   : > { %1035 = vmatpush.msra.mxu2 %v963_v29  ;;  %12604 = vrot.lane.b32.xlu0 %v13536_v3, %s13448_s9  ;;  %v966_v39 = vsel %vm960_vm4, %v953_v34, %v12437_v35  ;;  %v965_v46 = vsel %vm960_vm4, %v12431_v33, %v953_v34 }
  0xb1   : > { %12609 = vrot.lane.b32.xlu1 %v13562_v10, %s13448_s9  ;;  %12614 = vrot.lane.b32.xlu2 %v13543_v5, %s13448_s9  ;;  %v967_v40 = vsel %vm960_vm4, %v12437_v35, %v12441_v36  ;;  %v12460_v5 = vpop.permute.xlu2 %12459  ;;  %v12442_v10 = vunpack.i.h.bf16 %v12440_v32  ;;  %v13814_v32 = vpack.i.bf16 %v13532_v2, %v13556_v8 }
  0xb2   : > { %v12461_v54 = vunpack.i.l.bf16 %v12460_v5  ;;  %v12462_v61 = vunpack.i.h.bf16 %v12460_v5 }
  0xb3   : > { %v968_v47 = vsel %vm960_vm4, %v12441_v36, %v12442_v10 }
  0xb4   : > { %11857 = vmatmul.msk.f32.vlgmr.msra.gmra.mxu0 %vm358_vm1, %v11856_v26  ;;  %v1176_v17 = vsel %vm1168_vm5, %v12461_v54, %v12462_v61 }
  0xb5   : > { %11860 = vmatmul.msk.f32.vlgmr.msra.gmra.mxu3 %vm358_vm1, %v11856_v26  ;;  %11862 = vmatmul.msk.f32.vlgmr.msrb.gmra.mxu1 %vm358_vm1, %v11856_v26 }
  0xb6   : > { %995 = vmatpush.msra.mxu0 %v961_v37  ;;  %11863 = vmatmul.msk.f32.vlgmr.msrb.gmra.mxu2 %vm358_vm1, %v11856_v26  ;;  %v12450_v3 = vpop.permute.xlu0 %12449 }
  0xb7   : > { %1055 = vmatpush.msra.mxu3 %v964_v38  ;;  %1095 = vmatpush.msrb.mxu1 %v966_v39  ;;  %v12455_v41 = vpop.permute.xlu1 %12454  ;;  %v12452_v49 = vunpack.i.h.bf16 %v12450_v3  ;;  %v12451_v51 = vunpack.i.l.bf16 %v12450_v3 }
  0xb8   : > { %1115 = vmatpush.msrb.mxu2 %v967_v40  ;;  %v12456_v42 = vunpack.i.l.bf16 %v12455_v41  ;;  %12619 = vrot.lane.b32.xlu0 %v13592_v13, %s13448_s9  ;;  %v1171_v13 = vsel %vm1168_vm5, %v12446_v44, %v12447_v43  ;;  %v12457_v53 = vunpack.i.h.bf16 %v12455_v41 }
  0xb9   : > { %2824 = vrot.lane.b32.xlu1 %v13556_v8, %s13448_s9  ;;  %v13775_v55 = vpop.permute.xlu2 %12469  ;;  %v1172_v57 = vsel %vm1168_vm5, %v12447_v43, %v12451_v51 }
  0xba   : > { %v1170_v48 = vsel %vm1168_vm5, %v12456_v42, %v12446_v44  ;;  %v1169_v56 = vsel %vm1168_vm5, %v12452_v49, %v12456_v42  ;;  %v1175_v59 = vsel %vm1168_vm5, %v12457_v53, %v12461_v54  ;;  %v12472_v20 = vunpack.i.h.bf16 %v13775_v55 }
  0xbb   : > { %v12471_v22 = vunpack.i.l.bf16 %v13775_v55 }
  0xbc   : > { %11861 = vmatmul.msk.f32.vlgmr.msrb.gmra.mxu0 %vm358_vm1, %v11856_v26 }
  0xbd   : > { %11864 = vmatmul.msk.f32.vlgmr.msrb.gmra.mxu3 %vm358_vm1, %v11856_v26  ;;  %11867 = vmatmul.msk.f32.vlgmr.msra.gmra.mxu1 %vm358_vm1, %v11865_v45 }
  0xbe   : > { %1075 = vmatpush.msrb.mxu0 %v965_v46  ;;  %11868 = vmatmul.msk.f32.vlgmr.msra.gmra.mxu2 %vm358_vm1, %v11865_v45  ;;  %v1161_v50 = vpop.permute.xlu0 %1160 }
  0xbf   : > { %1135 = vmatpush.msrb.mxu3 %v968_v47  ;;  %1223 = vmatpush.msra.mxu1 %v1170_v48  ;;  %v12465_v52 = vpop.permute.xlu1 %12464  ;;  %v1174_v58 = vsel %vm1168_vm5, %v1161_v50, %v12457_v53  ;;  %v1173_v15 = vsel %vm1168_vm5, %v12451_v51, %v1161_v50  ;;  %v13848_v48 = vpack.i.bf16 %v13553_v7, %v13529_v1  ;;  %v11892_v1 = vld [vmem:[%s16128_s1 + $0x30] sm:$0xff] }
  0xc0   : > { %1243 = vmatpush.msra.mxu2 %v1171_v13  ;;  %v12467_v63 = vunpack.i.h.bf16 %v12465_v52  ;;  %v12466_v6 = vunpack.i.l.bf16 %v12465_v52  ;;  %12629 = vrot.lane.b32.xlu0 %v13814_v32, %s13449_s29 }
  0xc1   : > { %v1369_v16 = vpop.permute.xlu2 %1368  ;;  %12634 = vrot.lane.b32.xlu1 %v13809_v31, %s13449_s29  ;;  %12624 = vrot.lane.b32.xlu2 %v13848_v48, %s13449_s29 }
  0xc2   : > { %v1379_v19 = vsel %vm1376_vm6, %v12466_v6, %v12467_v63  ;;  %v1380_v27 = vsel %vm1376_vm6, %v12467_v63, %v12471_v22  ;;  %v1381_v2 = vsel %vm1376_vm6, %v12471_v22, %v1369_v16 }
  0xc4   : > { %11866 = vmatmul.msk.f32.vlgmr.msra.gmra.mxu0 %vm358_vm1, %v11865_v45 }
  0xc5   : > { %11869 = vmatmul.msk.f32.vlgmr.msra.gmra.mxu3 %vm358_vm1, %v11865_v45  ;;  %11871 = vmatmul.msk.f32.vlgmr.msrb.gmra.mxu1 %vm358_vm1, %v11865_v45 }
  0xc6   : > { %1203 = vmatpush.msra.mxu0 %v1169_v56  ;;  %11872 = vmatmul.msk.f32.vlgmr.msrb.gmra.mxu2 %vm358_vm1, %v11865_v45  ;;  %v12475_v60 = vpop.permute.xlu0 %12474 }
  0xc7   : > { %1263 = vmatpush.msra.mxu3 %v1172_v57  ;;  %1303 = vmatpush.msrb.mxu1 %v1174_v58  ;;  %v12480_v62 = vpop.permute.xlu1 %12479  ;;  %v12476_v11 = vunpack.i.l.bf16 %v12475_v60  ;;  %v12477_v23 = vunpack.i.h.bf16 %v12475_v60  ;;  %v13873_v58 = vpack.i.bf16 %v13539_v4, %v13588_v12 }
  0xc8   : > { %1323 = vmatpush.msrb.mxu2 %v1175_v59  ;;  %v12481_v24 = vunpack.i.l.bf16 %v12480_v62  ;;  %v12482_v33 = vunpack.i.h.bf16 %v12480_v62  ;;  %12644 = vrot.lane.b32.xlu0 %v13848_v48, %s16142_s22 }
  0xc9   : > { %v1378_v18 = vsel %vm1376_vm6, %v12476_v11, %v12466_v6  ;;  %v1377_v26 = vsel %vm1376_vm6, %v12472_v20, %v12476_v11  ;;  %v1382_v28 = vsel %vm1376_vm6, %v1369_v16, %v12477_v23  ;;  %v12495_v30 = vpop.permute.xlu2 %12494  ;;  %12649 = vrot.lane.b32.xlu1 %v13814_v32, %s16142_s22  ;;  %12639 = vrot.lane.b32.xlu2 %v13873_v58, %s13449_s29  ;;  %v11901_v20 = vld [vmem:[%s16128_s1 + $0x38] sm:$0xff] }
  0xca   : > { %v1383_v29 = vsel %vm1376_vm6, %v12477_v23, %v12481_v24  ;;  %v12496_v35 = vunpack.i.l.bf16 %v12495_v30  ;;  %v1384_v8 = vsel %vm1376_vm6, %v12481_v24, %v12482_v33  ;;  %v12497_v10 = vunpack.i.h.bf16 %v12495_v30 }
  0xcc   : > { %11870 = vmatmul.msk.f32.vlgmr.msrb.gmra.mxu0 %vm358_vm1, %v11865_v45 }
  0xcd   : > { %11873 = vmatmul.msk.f32.vlgmr.msrb.gmra.mxu3 %vm358_vm1, %v11865_v45  ;;  %11876 = vmatmul.msk.f32.vlgmr.msra.gmra.mxu1 %vm358_vm1, %v11874_v14 }
  0xce   : > { %1283 = vmatpush.msrb.mxu0 %v1173_v15  ;;  %11877 = vmatmul.msk.f32.vlgmr.msra.gmra.mxu2 %vm358_vm1, %v11874_v14  ;;  %v12485_v21 = vpop.permute.xlu0 %12484 }
  0xcf   : > { %1343 = vmatpush.msrb.mxu3 %v1176_v17  ;;  %1431 = vmatpush.msra.mxu1 %v1378_v18  ;;  %v13798_v25 = vpop.permute.xlu1 %12489  ;;  %v12487_v36 = vunpack.i.h.bf16 %v12485_v21  ;;  %v12486_v37 = vunpack.i.l.bf16 %v12485_v21 }
  0xd0   : > { %1451 = vmatpush.msra.mxu2 %v1379_v19  ;;  %v12492_v3 = vunpack.i.h.bf16 %v13798_v25  ;;  %v12491_v5 = vunpack.i.l.bf16 %v13798_v25  ;;  %12659 = vrot.lane.b32.xlu0 %v13873_v58, %s16142_s22 }
  0xd1   : > { %v1586_v38 = vsel %vm16175_vm7, %v12496_v35, %v12486_v37  ;;  %v1587_v39 = vsel %vm16175_vm7, %v12486_v37, %v12487_v36  ;;  %v13829_v40 = vpop.permute.xlu2 %12504  ;;  %12664 = vrot.lane.b32.xlu1 %v13848_v48, %s16138_s24  ;;  %12654 = vrot.lane.b32.xlu2 %v13809_v31, %s16142_s22  ;;  %s16152_s22 = smov 28  }
  0xd2   : > { %v1585_v43 = vsel %vm16175_vm7, %v12492_v3, %v12496_v35  ;;  %v1588_v44 = vsel %vm16175_vm7, %v12487_v36, %v12491_v5  ;;  %v12507_v51 = vunpack.i.h.bf16 %v13829_v40  ;;  %v12506_v52 = vunpack.i.l.bf16 %v13829_v40 }
  0xd4   : > { %11875 = vmatmul.msk.f32.vlgmr.msra.gmra.mxu0 %vm358_vm1, %v11874_v14  ;;  %v1795_v56 = vsel %vm16174_vm8, %v12506_v52, %v12507_v51 }
  0xd5   : > { %11878 = vmatmul.msk.f32.vlgmr.msra.gmra.mxu3 %vm358_vm1, %v11874_v14  ;;  %11880 = vmatmul.msk.f32.vlgmr.msrb.gmra.mxu1 %vm358_vm1, %v11874_v14 }
  0xd6   : > { %1411 = vmatpush.msra.mxu0 %v1377_v26  ;;  %11881 = vmatmul.msk.f32.vlgmr.msrb.gmra.mxu2 %vm358_vm1, %v11874_v14  ;;  %v12500_v34 = vpop.permute.xlu0 %12499 }
  0xd7   : > { %1471 = vmatpush.msra.mxu3 %v1380_v27  ;;  %1511 = vmatpush.msrb.mxu1 %v1382_v28  ;;  %v1577_v9 = vpop.permute.xlu1 %1576  ;;  %v12501_v41 = vunpack.i.l.bf16 %v12500_v34  ;;  %v12502_v49 = vunpack.i.h.bf16 %v12500_v34 }
  0xd8   : > { %1531 = vmatpush.msrb.mxu2 %v1383_v29  ;;  %v1590_v45 = vsel %vm16175_vm7, %v1577_v9, %v12497_v10  ;;  %v1589_v7 = vsel %vm16175_vm7, %v12491_v5, %v1577_v9  ;;  %12674 = vrot.lane.b32.xlu0 %v13809_v31, %s16138_s24 }
  0xd9   : > { %v1591_v46 = vsel %vm16175_vm7, %v12497_v10, %v12501_v41  ;;  %v13851_v13 = vpop.permute.xlu2 %12519  ;;  %v1592_v53 = vsel %vm16175_vm7, %v12501_v41, %v12502_v49  ;;  %12679 = vrot.lane.b32.xlu1 %v13873_v58, %s16138_s24  ;;  %12669 = vrot.lane.b32.xlu2 %v13814_v32, %s16138_s24  ;;  %s16149_s24 = smov 37  }
  0xda   : > { %v12521_v62 = vunpack.i.l.bf16 %v13851_v13  ;;  %v12522_v15 = vunpack.i.h.bf16 %v13851_v13 }
  0xdc   : > { %11879 = vmatmul.msk.f32.vlgmr.msrb.gmra.mxu0 %vm358_vm1, %v11874_v14  ;;  %v1800_v23 = vsel %vm16174_vm8, %v12521_v62, %v12522_v15 }
  0xdd   : > { %11882 = vmatmul.msk.f32.vlgmr.msrb.gmra.mxu3 %vm358_vm1, %v11874_v14  ;;  %11885 = vmatmul.msk.f32.vlgmr.msra.gmra.mxu1 %vm358_vm1, %v11883_v0 }
  0xde   : > { %1491 = vmatpush.msrb.mxu0 %v1381_v2  ;;  %11886 = vmatmul.msk.f32.vlgmr.msra.gmra.mxu2 %vm358_vm1, %v11883_v0  ;;  %v13837_v42 = vpop.permute.xlu0 %12509 }
  0xdf   : > { %1551 = vmatpush.msrb.mxu3 %v1384_v8  ;;  %1639 = vmatpush.msra.mxu1 %v1586_v38  ;;  %v12515_v47 = vpop.permute.xlu1 %12514  ;;  %v12512_v59 = vunpack.i.h.bf16 %v13837_v42  ;;  %v12511_v60 = vunpack.i.l.bf16 %v13837_v42 }
  0xe0   : > { %1659 = vmatpush.msra.mxu2 %v1587_v39  ;;  %v12516_v50 = vunpack.i.l.bf16 %v12515_v47  ;;  %v12517_v61 = vunpack.i.h.bf16 %v12515_v47  ;;  %12689 = vrot.lane.b32.xlu0 %v13814_v32, %s16136_s21  ;;  %v11910_v39 = vld [vmem:[%s16128_s1 + $0x40] sm:$0xff] }
  0xe1   : > { %v13879_v63 = vpop.permute.xlu2 %12529  ;;  %v1796_v12 = vsel %vm16174_vm8, %v12507_v51, %v12511_v60  ;;  %12694 = vrot.lane.b32.xlu1 %v13809_v31, %s16136_s21  ;;  %12684 = vrot.lane.b32.xlu2 %v13848_v48, %s16136_s21 }
  0xe2   : > { %v1794_v55 = vsel %vm16174_vm8, %v12516_v50, %v12506_v52  ;;  %v1793_v4 = vsel %vm16174_vm8, %v12512_v59, %v12516_v50  ;;  %v1799_v11 = vsel %vm16174_vm8, %v12517_v61, %v12521_v62  ;;  %v12532_v27 = vunpack.i.h.bf16 %v13879_v63 }
  0xe3   : > { %v12531_v28 = vunpack.i.l.bf16 %v13879_v63 }
  0xe4   : > { %11884 = vmatmul.msk.f32.vlgmr.msra.gmra.mxu0 %vm358_vm1, %v11883_v0 }
  0xe5   : > { %11887 = vmatmul.msk.f32.vlgmr.msra.gmra.mxu3 %vm358_vm1, %v11883_v0  ;;  %11889 = vmatmul.msk.f32.vlgmr.msrb.gmra.mxu1 %vm358_vm1, %v11883_v0 }
  0xe6   : > { %1619 = vmatpush.msra.mxu0 %v1585_v43  ;;  %11890 = vmatmul.msk.f32.vlgmr.msrb.gmra.mxu2 %vm358_vm1, %v11883_v0  ;;  %v1785_v54 = vpop.permute.xlu0 %1784 }
  0xe7   : > { %1679 = vmatpush.msra.mxu3 %v1588_v44  ;;  %1719 = vmatpush.msrb.mxu1 %v1590_v45  ;;  %v12525_v57 = vpop.permute.xlu1 %12524  ;;  %v1798_v6 = vsel %vm16174_vm8, %v1785_v54, %v12517_v61  ;;  %v1797_v21 = vsel %vm16174_vm8, %v12511_v60, %v1785_v54  ;;  %v4015_v54 = vld [vmem:[%s13523_s10 + $0x18] sm:$0xff] }
  0xe8   : > { %1739 = vmatpush.msrb.mxu2 %v1591_v46  ;;  %v12527_v17 = vunpack.i.h.bf16 %v12525_v57  ;;  %v12526_v18 = vunpack.i.l.bf16 %v12525_v57  ;;  %v4016_v57 = vld [vmem:[%s13523_s10 + $0x20] sm:$0xff] }
  0xe9   : > { %v1993_v22 = vpop.permute.xlu2 %1992  ;;  %12699 = vrot.lane.b32.xlu2 %v13873_v58, %s16136_s21  ;;  %v13977_v59 = vpack.i.bf16 %v4016_v57, %v4015_v54  ;;  %s16144_s21 = smov 38  }
  0xea   : > { %v2003_v25 = vsel %vm16173_vm9, %v12526_v18, %v12527_v17  ;;  %v2004_v34 = vsel %vm16173_vm9, %v12527_v17, %v12531_v28  ;;  %v2005_v40 = vsel %vm16173_vm9, %v12531_v28, %v1993_v22 }
  0xeb   : > { %12704 = vrot.lane.b32.xlu0 %v13977_v59, %s16140_s25 }
  0xec   : > { %11888 = vmatmul.msk.f32.vlgmr.msrb.gmra.mxu0 %vm358_vm1, %v11883_v0 }
  0xed   : > { %11891 = vmatmul.msk.f32.vlgmr.msrb.gmra.mxu3 %vm358_vm1, %v11883_v0  ;;  %11894 = vmatmul.msk.f32.vlgmr.msra.gmra.mxu1 %vm358_vm1, %v11892_v1 }
  0xee   : > { %1699 = vmatpush.msrb.mxu0 %v1589_v7  ;;  %11895 = vmatmul.msk.f32.vlgmr.msra.gmra.mxu2 %vm358_vm1, %v11892_v1  ;;  %v12535_v14 = vpop.permute.xlu0 %12534  ;;  %v4013_v7 = vld [vmem:[%s13523_s10 + $0x8] sm:$0xff] }
  0xef   : > { %1759 = vmatpush.msrb.mxu3 %v1592_v53  ;;  %1847 = vmatpush.msra.mxu1 %v1794_v55  ;;  %v12540_v16 = vpop.permute.xlu1 %12539  ;;  %v12536_v19 = vunpack.i.l.bf16 %v12535_v14  ;;  %v12537_v29 = vunpack.i.h.bf16 %v12535_v14  ;;  %v4017_v53 = vld [vmem:[%s13523_s10 + $0x28] sm:$0xff] }
  0xf0   : > { %1867 = vmatpush.msra.mxu2 %v1795_v56  ;;  %v12541_v30 = vunpack.i.l.bf16 %v12540_v16  ;;  %v12542_v32 = vunpack.i.h.bf16 %v12540_v16  ;;  %v13971_v56 = vpack.i.bf16 %v4013_v7, %v4017_v53  ;;  %v13997_v14 = vld [vmem:[%s16128_s1 + $0x48] sm:$0xff] }
  0xf1   : > { %v2002_v24 = vsel %vm16173_vm9, %v12536_v19, %v12526_v18  ;;  %v2001_v33 = vsel %vm16173_vm9, %v12532_v27, %v12536_v19  ;;  %v2006_v35 = vsel %vm16173_vm9, %v1993_v22, %v12537_v29  ;;  %v12555_v37 = vpop.permute.xlu2 %12554 }
  0xf2   : > { %v2007_v36 = vsel %vm16173_vm9, %v12537_v29, %v12541_v30  ;;  %v12556_v2 = vunpack.i.l.bf16 %v12555_v37  ;;  %v2008_v3 = vsel %vm16173_vm9, %v12541_v30, %v12542_v32  ;;  %v12557_v46 = vunpack.i.h.bf16 %v12555_v37  ;;  %12709 = vrot.lane.b32.xlu1 %v13971_v56, %s16140_s25 }
  0xf4   : > { %11893 = vmatmul.msk.f32.vlgmr.msra.gmra.mxu0 %vm358_vm1, %v11892_v1 }
  0xf5   : > { %11896 = vmatmul.msk.f32.vlgmr.msra.gmra.mxu3 %vm358_vm1, %v11892_v1  ;;  %11898 = vmatmul.msk.f32.vlgmr.msrb.gmra.mxu1 %vm358_vm1, %v11892_v1 }
  0xf6   : > { %1827 = vmatpush.msra.mxu0 %v1793_v4  ;;  %11899 = vmatmul.msk.f32.vlgmr.msrb.gmra.mxu2 %vm358_vm1, %v11892_v1  ;;  %v12545_v26 = vpop.permute.xlu0 %12544 }
  0xf7   : > { %1887 = vmatpush.msra.mxu3 %v1796_v12  ;;  %1927 = vmatpush.msrb.mxu1 %v1798_v6  ;;  %v13919_v31 = vpop.permute.xlu1 %12549  ;;  %v12547_v8 = vunpack.i.h.bf16 %v12545_v26  ;;  %v12546_v9 = vunpack.i.l.bf16 %v12545_v26 }
  0xf8   : > { %1947 = vmatpush.msrb.mxu2 %v1799_v11  ;;  %v12552_v43 = vunpack.i.h.bf16 %v13919_v31  ;;  %v12551_v45 = vunpack.i.l.bf16 %v13919_v31 }
  0xf9   : > { %v2210_v10 = vsel %vm16172_vm10, %v12556_v2, %v12546_v9  ;;  %v2211_v41 = vsel %vm16172_vm10, %v12546_v9, %v12547_v8  ;;  %v13944_v42 = vpop.permute.xlu2 %12564 }
  0xfa   : > { %v2209_v50 = vsel %vm16172_vm10, %v12552_v43, %v12556_v2  ;;  %v2212_v51 = vsel %vm16172_vm10, %v12547_v8, %v12551_v45  ;;  %v12567_v63 = vunpack.i.h.bf16 %v13944_v42  ;;  %v12566_v4 = vunpack.i.l.bf16 %v13944_v42  ;;  %v4014_v2 = vld [vmem:[%s13523_s10 + $0x10] sm:$0xff]  ;;  %v4019_v8 = vld [vmem:[%s13523_s10 + $0x38] sm:$0xff] }
  0xfc   : > { %11897 = vmatmul.msk.f32.vlgmr.msrb.gmra.mxu0 %vm358_vm1, %v11892_v1  ;;  %v2419_v19 = vsel %vm16171_vm11, %v12566_v4, %v12567_v63 }
  0xfd   : > { %11900 = vmatmul.msk.f32.vlgmr.msrb.gmra.mxu3 %vm358_vm1, %v11892_v1  ;;  %11903 = vmatmul.msk.f32.vlgmr.msra.gmra.mxu1 %vm358_vm1, %v11901_v20 }
  0xfe   : > { %1907 = vmatpush.msrb.mxu0 %v1797_v21  ;;  %11904 = vmatmul.msk.f32.vlgmr.msra.gmra.mxu2 %vm358_vm1, %v11901_v20  ;;  %v13929_v0 = vpop.permute.xlu0 %12559  ;;  %v4021_v21 = vld [vmem:[%s13523_s10 + $0x48] sm:$0xff] }
  0xff   : > { %1967 = vmatpush.msrb.mxu3 %v1800_v23  ;;  %2055 = vmatpush.msra.mxu1 %v2002_v24  ;;  %v2201_v5 = vpop.permute.xlu1 %2200  ;;  %v12561_v47 = vunpack.i.l.bf16 %v13929_v0  ;;  %v12562_v61 = vunpack.i.h.bf16 %v13929_v0  ;;  %v14015_v24 = vld [vmem:[%s13523_s10 + $0x30] sm:$0xff] }
 0x100   : > { %2075 = vmatpush.msra.mxu2 %v2003_v25  ;;  %v2214_v52 = vsel %vm16172_vm10, %v2201_v5, %v12557_v46  ;;  %v2213_v15 = vsel %vm16172_vm10, %v12551_v45, %v2201_v5  ;;  %4043 = vrot.lane.b32.xlu1 %v14015_v24, %s16140_s25 }
 0x101   : > { %v2215_v1 = vsel %vm16172_vm10, %v12557_v46, %v12561_v47  ;;  %v13975_v58 = vpop.permute.xlu2 %12579  ;;  %v2216_v16 = vsel %vm16172_vm10, %v12561_v47, %v12562_v61  ;;  %v11928_v47 = vld [vmem:[%s16128_s1 + $0x50] sm:$0xff] }
 0x102   : > { %v12581_v28 = vunpack.i.l.bf16 %v13975_v58 }
 0x104   : > { %11902 = vmatmul.msk.f32.vlgmr.msra.gmra.mxu0 %vm358_vm1, %v11901_v20 }
 0x105   : > { %11905 = vmatmul.msk.f32.vlgmr.msra.gmra.mxu3 %vm358_vm1, %v11901_v20  ;;  %11907 = vmatmul.msk.f32.vlgmr.msrb.gmra.mxu1 %vm358_vm1, %v11901_v20 }
 0x106   : > { %2035 = vmatpush.msra.mxu0 %v2001_v33  ;;  %11908 = vmatmul.msk.f32.vlgmr.msrb.gmra.mxu2 %vm358_vm1, %v11901_v20 }
 0x107   : > { %2095 = vmatpush.msra.mxu3 %v2004_v34  ;;  %2135 = vmatpush.msrb.mxu1 %v2006_v35 }
 0x108   : > { %2155 = vmatpush.msrb.mxu2 %v2007_v36 }
 0x109   : > { %v13933_v38 = vpop.f32.mrf.mxu1  ;;  %v12575_v55 = vpop.permute.xlu1 %12574 }
 0x10a   : > { %v13957_v13 = vpop.permute.xlu0 %12569  ;;  %v12576_v62 = vunpack.i.l.bf16 %v12575_v55  ;;  %v12577_v27 = vunpack.i.h.bf16 %v12575_v55  ;;  %v14019_v29 = vpop.permute.xlu2 %12589 }
 0x10b   : > { %v12572_v23 = vunpack.i.h.bf16 %v13957_v13  ;;  %v12571_v26 = vunpack.i.l.bf16 %v13957_v13  ;;  %v12592_v53 = vunpack.i.h.bf16 %v14019_v29  ;;  %v12591_v55 = vunpack.i.l.bf16 %v14019_v29 }
 0x10c   : > { %11906 = vmatmul.msk.f32.vlgmr.msrb.gmra.mxu0 %vm358_vm1, %v11901_v20  ;;  %v2418_v18 = vsel %vm16171_vm11, %v12576_v62, %v12566_v4  ;;  %v2423_v0 = vsel %vm16171_vm11, %v12577_v27, %v12581_v28 }
 0x10d   : > { %11909 = vmatmul.msk.f32.vlgmr.msrb.gmra.mxu3 %vm358_vm1, %v11901_v20  ;;  %11912 = vmatmul.msk.f32.vlgmr.msra.gmra.mxu1 %vm358_vm1, %v11910_v39  ;;  %v4020_v20 = vld [vmem:[%s13523_s10 + $0x40] sm:$0xff]  ;;  %v2417_v35 = vsel %vm16171_vm11, %v12572_v23, %v12576_v62  ;;  %v2420_v36 = vsel %vm16171_vm11, %v12567_v63, %v12571_v26 }
 0x10e   : > { %2115 = vmatpush.msrb.mxu0 %v2005_v40  ;;  %11913 = vmatmul.msk.f32.vlgmr.msra.gmra.mxu2 %vm358_vm1, %v11910_v39  ;;  %v13949_v44 = vpop.f32.mrf.mxu2  ;;  %v14009_v22 = vpack.i.bf16 %v4021_v21, %v4020_v20 }
 0x10f   : > { %2175 = vmatpush.msrb.mxu3 %v2008_v3  ;;  %2263 = vmatpush.msra.mxu1 %v2210_v10  ;;  %v12582_v3 = vunpack.i.h.bf16 %v13975_v58 }
 0x110   : > { %2283 = vmatpush.msra.mxu2 %v2211_v41  ;;  %12719 = vrot.lane.b32.xlu0 %v14009_v22, %s16140_s25 }
 0x111   : > { %v13955_v48 = vpop.f32.mrf.mxu0 }
 0x112   : > { %v13959_v49 = vpop.f32.mrf.mxu1  ;;  %v2409_v17 = vpop.permute.xlu0 %2408 }
 0x113   : > { %v12585_v37 = vpop.permute.xlu1 %12584  ;;  %v2422_v32 = vsel %vm16171_vm11, %v2409_v17, %v12577_v27  ;;  %v2421_v13 = vsel %vm16171_vm11, %v12571_v26, %v2409_v17 }
 0x114   : > { %11911 = vmatmul.msk.f32.vlgmr.msra.gmra.mxu0 %vm358_vm1, %v11910_v39  ;;  %v12587_v10 = vunpack.i.h.bf16 %v12585_v37  ;;  %v12586_v41 = vunpack.i.l.bf16 %v12585_v37 }
 0x115   : > { %11914 = vmatmul.msk.f32.vlgmr.msra.gmra.mxu3 %vm358_vm1, %v11910_v39  ;;  %11916 = vmatmul.msk.f32.vlgmr.msrb.gmra.mxu1 %vm358_vm1, %v11910_v39 }
 0x116   : > { %2243 = vmatpush.msra.mxu0 %v2209_v50  ;;  %11917 = vmatmul.msk.f32.vlgmr.msrb.gmra.mxu2 %vm358_vm1, %v11910_v39  ;;  %v2424_v50 = vsel %vm16171_vm11, %v12581_v28, %v12582_v3 }
 0x117   : > { %2303 = vmatpush.msra.mxu3 %v2212_v51  ;;  %v13979_v60 = vpop.f32.mrf.mxu3  ;;  %2343 = vmatpush.msrb.mxu1 %v2214_v52  ;;  %v2617_v51 = vpop.permute.xlu2 %2616 }
 0x118   : > { %2363 = vmatpush.msrb.mxu2 %v2215_v1  ;;  %12729 = vrot.lane.b32.xlu0 %v13971_v56, %s16144_s21  ;;  %v2627_v1 = vsel %vm16170_vm12, %v12586_v41, %v12587_v10 }
 0x119   : > { %v13988_v12 = vpop.f32.mrf.mxu2  ;;  %v13990_v6 = vpop.f32.mrf.mxu0 }
 0x11a   : > { %v13992_v11 = vpop.f32.mrf.mxu1  ;;  %v12595_v9 = vpop.permute.xlu0 %12594 }
 0x11b   : > { %v12596_v42 = vunpack.i.l.bf16 %v12595_v9  ;;  %v12600_v7 = vpop.permute.xlu1 %12599  ;;  %v12597_v58 = vunpack.i.h.bf16 %v12595_v9 }
 0x11c   : > { %11915 = vmatmul.msk.f32.vlgmr.msrb.gmra.mxu0 %vm358_vm1, %v11910_v39  ;;  %v12602_v21 = vunpack.i.h.bf16 %v12600_v7 }
 0x11d   : > { %11918 = vmatmul.msk.f32.vlgmr.msrb.gmra.mxu3 %vm358_vm1, %v11910_v39  ;;  %11921 = vmatmul.msk.f32.vlgmr.msra.gmra.mxu1 %vm358_vm1, %v13997_v14  ;;  %v14042_v39 = vpack.i.bf16 %v4019_v8, %v4014_v2  ;;  %v2626_v52 = vsel %vm16170_vm12, %v12596_v42, %v12586_v41 }
 0x11e   : > { %2323 = vmatpush.msrb.mxu0 %v2213_v15  ;;  %11922 = vmatmul.msk.f32.vlgmr.msra.gmra.mxu2 %vm358_vm1, %v13997_v14 }
 0x11f   : > { %2383 = vmatpush.msrb.mxu3 %v2216_v16  ;;  %2471 = vmatpush.msra.mxu1 %v2418_v18  ;;  %v2630_v16 = vsel %vm16170_vm12, %v2617_v51, %v12597_v58  ;;  %v12615_v18 = vpop.permute.xlu2 %12614 }
 0x120   : > { %v519_v25 = vpop.f32.mrf.mxu3  ;;  %2491 = vmatpush.msra.mxu2 %v2419_v19  ;;  %12734 = vrot.lane.b32.xlu1 %v14042_v39, %s16144_s21 }
 0x121   : > { %v614_v30 = vpop.f32.mrf.mxu2  ;;  %v14025_v31 = vpop.f32.mrf.mxu0  ;;  %12714 = vrot.lane.b32.xlu2 %v14042_v39, %s16140_s25  ;;  %4251 = vrot.lane.b32.xlu0 %v14015_v24, %s16144_s21  ;;  %s16146_s25 = smov 29  }
 0x122   : > { %v615_v33 = vadd.f32 %v614_v30, %v13949_v44  ;;  %v14028_v34 = vpop.f32.mrf.mxu1  ;;  %v12605_v15 = vpop.permute.xlu0 %12604 }
 0x123   : > { %v14088_v19 = vpop.permute.xlu1 %12609  ;;  %v12607_v26 = vunpack.i.h.bf16 %v12605_v15  ;;  %v12606_v27 = vunpack.i.l.bf16 %v12605_v15  ;;  %v13410_v15 = vld [vmem:[%s13523_s10 + $0x18] sm:$0xff] }
 0x124   : > { %11920 = vmatmul.msk.f32.vlgmr.msra.gmra.mxu0 %vm358_vm1, %v13997_v14  ;;  %v12612_v8 = vunpack.i.h.bf16 %v14088_v19 }
 0x125   : > { %11923 = vmatmul.msk.f32.vlgmr.msra.gmra.mxu3 %vm358_vm1, %v13997_v14  ;;  %11925 = vmatmul.msk.f32.vlgmr.msrb.gmra.mxu1 %vm358_vm1, %v13997_v14 }
 0x126   : > { %2451 = vmatpush.msra.mxu0 %v2417_v35  ;;  %11926 = vmatmul.msk.f32.vlgmr.msrb.gmra.mxu2 %vm358_vm1, %v13997_v14  ;;  %v11937_v35 = vld [vmem:[%s16128_s1 + $0x58] sm:$0xff] }
 0x127   : > { %2511 = vmatpush.msra.mxu3 %v2420_v36  ;;  %2551 = vmatpush.msrb.mxu1 %v2422_v32  ;;  %v2629_v36 = vsel %vm16170_vm12, %v12591_v55, %v2617_v51 }
 0x128   : > { %v634_v40 = vpop.f32.mrf.mxu3  ;;  %2571 = vmatpush.msrb.mxu2 %v2423_v0  ;;  %12744 = vrot.lane.b32.xlu1 %v13977_v59, %s16149_s24  ;;  %v2835_v0 = vsel %vm16169_vm13, %v12606_v27, %v12607_v26 }
 0x129   : > { %v635_v5 = vadd.f32 %v634_v40, %v13979_v60  ;;  %v694_v43 = vpop.f32.mrf.mxu2  ;;  %v14052_v44 = vpop.f32.mrf.mxu0  ;;  %v12601_v60 = vunpack.i.l.bf16 %v12600_v7  ;;  %12754 = vrot.lane.b32.xlu0 %v14042_v39, %s16149_s24  ;;  %v12611_v40 = vunpack.i.l.bf16 %v14088_v19  ;;  %12724 = vrot.lane.b32.xlu2 %v13977_v59, %s16144_s21 }
 0x12a   : > { %v695_v45 = vadd.f32 %v694_v43, %v13988_v12  ;;  %v14055_v46 = vpop.f32.mrf.mxu1  ;;  %v2625_v12 = vsel %vm16170_vm12, %v12592_v53, %v12596_v42  ;;  %v12620_v2 = vpop.permute.xlu0 %12619 }
 0x12b   : > { %v2631_v17 = vsel %vm16170_vm12, %v12597_v58, %v12601_v60  ;;  %v2632_v37 = vsel %vm16170_vm12, %v12601_v60, %v12602_v21  ;;  %v2825_v41 = vpop.permute.xlu1 %2824  ;;  %v12622_v7 = vunpack.i.h.bf16 %v12620_v2  ;;  %v11946_v60 = vld [vmem:[%s16128_s1 + $0x60] sm:$0xff] }
 0x12c   : > { %11924 = vmatmul.msk.f32.vlgmr.msrb.gmra.mxu0 %vm358_vm1, %v13997_v14 }
 0x12d   : > { %11927 = vmatmul.msk.f32.vlgmr.msrb.gmra.mxu3 %vm358_vm1, %v13997_v14  ;;  %11930 = vmatmul.msk.f32.vlgmr.msra.gmra.mxu1 %vm358_vm1, %v11928_v47  ;;  %v2628_v14 = vsel %vm16170_vm12, %v12587_v10, %v12591_v55  ;;  %v12621_v10 = vunpack.i.l.bf16 %v12620_v2 }
 0x12e   : > { %2531 = vmatpush.msrb.mxu0 %v2421_v13  ;;  %11931 = vmatmul.msk.f32.vlgmr.msra.gmra.mxu2 %vm358_vm1, %v11928_v47 }
 0x12f   : > { %2591 = vmatpush.msrb.mxu3 %v2424_v50  ;;  %2679 = vmatpush.msra.mxu1 %v2626_v52  ;;  %v2836_v50 = vsel %vm16169_vm13, %v12607_v26, %v12611_v40  ;;  %v13412_v26 = vld [vmem:[%s13523_s10 + $0x20] sm:$0xff] }
 0x130   : > { %v714_v54 = vpop.f32.mrf.mxu3  ;;  %2699 = vmatpush.msra.mxu2 %v2627_v1  ;;  %12759 = vrot.lane.b32.xlu1 %v14009_v22, %s16149_s24 }
 0x131   : > { %v715_v57 = vadd.f32 %v714_v54, %v519_v25  ;;  %v811_v61 = vpop.f32.mrf.mxu2  ;;  %v14076_v62 = vpop.f32.mrf.mxu0  ;;  %v12616_v25 = vunpack.i.l.bf16 %v12615_v18  ;;  %12739 = vrot.lane.b32.xlu2 %v14009_v22, %s16144_s21  ;;  %12764 = vrot.lane.b32.xlu0 %v13977_v59, %s16146_s25  ;;  %s13458_s21 = smov 27  }
 0x132   : > { %v916_v63 = vadd.f32 %v811_v61, %v615_v33  ;;  %v14078_v4 = vpop.f32.mrf.mxu1  ;;  %v2837_v61 = vsel %vm16169_vm13, %v12611_v40, %v2825_v41 }
 0x133   : > { %v2834_v32 = vsel %vm16169_vm13, %v12616_v25, %v12606_v27  ;;  %v2833_v13 = vsel %vm16169_vm13, %v12612_v8, %v12616_v25  ;;  %v12635_v25 = vpop.permute.xlu1 %12634  ;;  %v14166_v27 = vpop.permute.xlu0 %12629 }
 0x134   : > { %11929 = vmatmul.msk.f32.vlgmr.msra.gmra.mxu0 %vm358_vm1, %v11928_v47 }
 0x135   : > { %11932 = vmatmul.msk.f32.vlgmr.msra.gmra.mxu3 %vm358_vm1, %v11928_v47  ;;  %11934 = vmatmul.msk.f32.vlgmr.msrb.gmra.mxu1 %vm358_vm1, %v11928_v47 }
 0x136   : > { %2659 = vmatpush.msra.mxu0 %v2625_v12  ;;  %11935 = vmatmul.msk.f32.vlgmr.msrb.gmra.mxu2 %vm358_vm1, %v11928_v47 }
 0x137   : > { %2719 = vmatpush.msra.mxu3 %v2628_v14  ;;  %2759 = vmatpush.msrb.mxu1 %v2630_v16  ;;  %v13409_v14 = vld [vmem:[%s13523_s10 + $0x10] sm:$0xff] }
 0x138   : > { %v831_v20 = vpop.f32.mrf.mxu3  ;;  %2779 = vmatpush.msrb.mxu2 %v2631_v17  ;;  %12769 = vrot.lane.b32.xlu1 %v13971_v56, %s16146_s25  ;;  %v14148_v17 = vpop.permute.xlu2 %12624 }
 0x139   : > { %v917_v23 = vadd.f32 %v831_v20, %v635_v5  ;;  %v891_v28 = vpop.f32.mrf.mxu2  ;;  %v14094_v29 = vpop.f32.mrf.mxu0  ;;  %v12617_v5 = vunpack.i.h.bf16 %v12615_v18  ;;  %12749 = vrot.lane.b32.xlu2 %v13971_v56, %s16149_s24  ;;  %12779 = vrot.lane.b32.xlu0 %v14009_v22, %s16146_s25 }
 0x13a   : > { %v920_v30 = vadd.f32 %v891_v28, %v695_v45  ;;  %v14096_v33 = vpop.f32.mrf.mxu1 }
 0x13b   : > { %v2838_v51 = vsel %vm16169_vm13, %v2825_v41, %v12617_v5  ;;  %v2839_v52 = vsel %vm16169_vm13, %v12617_v5, %v12621_v10 }
 0x13c   : > { %11933 = vmatmul.msk.f32.vlgmr.msrb.gmra.mxu0 %vm358_vm1, %v11928_v47 }
 0x13d   : > { %11936 = vmatmul.msk.f32.vlgmr.msrb.gmra.mxu3 %vm358_vm1, %v11928_v47  ;;  %11939 = vmatmul.msk.f32.vlgmr.msra.gmra.mxu1 %vm358_vm1, %v11937_v35 }
 0x13e   : > { %2739 = vmatpush.msrb.mxu0 %v2629_v36  ;;  %11940 = vmatmul.msk.f32.vlgmr.msra.gmra.mxu2 %vm358_vm1, %v11937_v35 }
 0x13f   : > { %2799 = vmatpush.msrb.mxu3 %v2632_v37  ;;  %2887 = vmatpush.msra.mxu1 %v2834_v32  ;;  %v12636_v37 = vunpack.i.l.bf16 %v12635_v25  ;;  %v12627_v32 = vunpack.i.h.bf16 %v14148_v17 }
 0x140   : > { %v911_v9 = vpop.f32.mrf.mxu3  ;;  %2907 = vmatpush.msra.mxu2 %v2835_v0  ;;  %4667 = vrot.lane.b32.xlu1 %v14015_v24, %s16146_s25  ;;  %v12626_v0 = vunpack.i.l.bf16 %v14148_v17  ;;  %v14185_v5 = vpop.permute.xlu2 %12639 }
 0x141   : > { %v921_v3 = vadd.f32 %v911_v9, %v715_v57  ;;  %v1037_v42 = vpop.f32.mrf.mxu2  ;;  %v14115_v43 = vpop.f32.mrf.mxu0  ;;  %4459 = vrot.lane.b32.xlu2 %v14015_v24, %s16149_s24  ;;  %12789 = vrot.lane.b32.xlu0 %v13971_v56, %s16152_s22  ;;  %s13460_s24 = smov 18  }
 0x142   : > { %v1142_v45 = vadd.f32 %v1037_v42, %v916_v63  ;;  %v14117_v47 = vpop.f32.mrf.mxu1  ;;  %v2840_v63 = vsel %vm16169_vm13, %v12621_v10, %v12622_v7  ;;  %v3213_v10 = vsel %vm16148_vm14, %v12636_v37, %v12626_v0  ;;  %v3214_v41 = vsel %vm16148_vm14, %v12626_v0, %v12627_v32  ;;  %v13415_v42 = vld [vmem:[%s13523_s10 + $0x28] sm:$0xff] }
 0x143   : > { %v12642_v7 = vunpack.i.h.bf16 %v14185_v5 }
 0x144   : > { %11938 = vmatmul.msk.f32.vlgmr.msra.gmra.mxu0 %vm358_vm1, %v11937_v35 }
 0x145   : > { %11941 = vmatmul.msk.f32.vlgmr.msra.gmra.mxu3 %vm358_vm1, %v11937_v35  ;;  %11943 = vmatmul.msk.f32.vlgmr.msrb.gmra.mxu1 %vm358_vm1, %v11937_v35 }
 0x146   : > { %2867 = vmatpush.msra.mxu0 %v2833_v13  ;;  %11944 = vmatmul.msk.f32.vlgmr.msrb.gmra.mxu2 %vm358_vm1, %v11937_v35  ;;  %v12632_v13 = vunpack.i.h.bf16 %v14166_v27 }
 0x147   : > { %2927 = vmatpush.msra.mxu3 %v2836_v50  ;;  %2967 = vmatpush.msrb.mxu1 %v2838_v51  ;;  %v12631_v51 = vunpack.i.l.bf16 %v14166_v27 }
 0x148   : > { %v1057_v1 = vpop.f32.mrf.mxu3  ;;  %2987 = vmatpush.msrb.mxu2 %v2839_v52  ;;  %12794 = vrot.lane.b32.xlu1 %v14042_v39, %s16152_s22  ;;  %v12655_v17 = vpop.permute.xlu2 %12654 }
 0x149   : > { %v1143_v53 = vadd.f32 %v1057_v1, %v917_v23  ;;  %v1117_v54 = vpop.f32.mrf.mxu2  ;;  %v14131_v55 = vpop.f32.mrf.mxu0  ;;  %v13411_v23 = vld [vmem:[%s13523_s10 + $0x8] sm:$0xff]  ;;  %v12637_v1 = vunpack.i.h.bf16 %v12635_v25  ;;  %12774 = vrot.lane.b32.xlu2 %v14042_v39, %s16146_s25  ;;  %4875 = vrot.lane.b32.xlu0 %v14015_v24, %s16152_s22  ;;  %v12656_v25 = vunpack.i.l.bf16 %v12655_v17  ;;  %s16155_s25 = smov 19  }
 0x14a   : > { %v1146_v57 = vadd.f32 %v1117_v54, %v920_v30  ;;  %v14135_v58 = vpop.f32.mrf.mxu1  ;;  %v13413_v30 = vld [vmem:[%s13523_s10 + $0x30] sm:$0xff]  ;;  %v14199_v54 = vpop.permute.xlu0 %12644 }
 0x14b   : > { %v12646_v27 = vunpack.i.l.bf16 %v14199_v54 }
 0x14c   : > { %11942 = vmatmul.msk.f32.vlgmr.msrb.gmra.mxu0 %vm358_vm1, %v11937_v35 }
 0x14d   : > { %11945 = vmatmul.msk.f32.vlgmr.msrb.gmra.mxu3 %vm358_vm1, %v11937_v35  ;;  %11948 = vmatmul.msk.f32.vlgmr.msra.gmra.mxu1 %vm358_vm1, %v11946_v60  ;;  %v13414_v35 = vld [vmem:[%s13523_s10 + $0x38] sm:$0xff] }
 0x14e   : > { %2947 = vmatpush.msrb.mxu0 %v2837_v61  ;;  %11949 = vmatmul.msk.f32.vlgmr.msra.gmra.mxu2 %vm358_vm1, %v11946_v60 }
 0x14f   : > { %3007 = vmatpush.msrb.mxu3 %v2840_v63  ;;  %3060 = vmatpush.msra.mxu1 %v13409_v14  ;;  %v3215_v14 = vsel %vm16148_vm14, %v12627_v32, %v12631_v51  ;;  %v3216_v32 = vsel %vm16148_vm14, %v12631_v51, %v12642_v7 }
 0x150   : > { %v1137_v12 = vpop.f32.mrf.mxu3  ;;  %3080 = vmatpush.msra.mxu2 %v13410_v15  ;;  %v3217_v15 = vsel %vm16148_vm14, %v12642_v7, %v12637_v1  ;;  %12804 = vrot.lane.b32.xlu1 %v13977_v59, %s13458_s21 }
 0x151   : > { %v1147_v16 = vadd.f32 %v1137_v12, %v921_v3  ;;  %v1245_v18 = vpop.f32.mrf.mxu2  ;;  %v14154_v19 = vpop.f32.mrf.mxu0  ;;  %v11955_v3 = vld [vmem:[%s16128_s1 + $0x68] sm:$0xff]  ;;  %v3212_v12 = vsel %vm16148_vm14, %v12632_v13, %v12636_v37  ;;  %12814 = vrot.lane.b32.xlu0 %v14042_v39, %s13458_s21  ;;  %12784 = vrot.lane.b32.xlu2 %v13977_v59, %s16152_s22 }
 0x152   : > { %v1350_v20 = vadd.f32 %v1245_v18, %v1142_v45  ;;  %v14158_v21 = vpop.f32.mrf.mxu1  ;;  %v13416_v45 = vld [vmem:[%s13523_s10 + $0x40] sm:$0xff]  ;;  %v14217_v18 = vpop.permute.xlu1 %12649 }
 0x153   : > { %v14233_v0 = vpop.permute.xlu0 %12659 }
 0x154   : > { %11947 = vmatmul.msk.f32.vlgmr.msra.gmra.mxu0 %vm358_vm1, %v11946_v60  ;;  %v12661_v13 = vunpack.i.l.bf16 %v14233_v0 }
 0x155   : > { %11950 = vmatmul.msk.f32.vlgmr.msra.gmra.mxu3 %vm358_vm1, %v11946_v60  ;;  %11952 = vmatmul.msk.f32.vlgmr.msrb.gmra.mxu1 %vm358_vm1, %v11946_v60 }
 0x156   : > { %3040 = vmatpush.msra.mxu0 %v13411_v23  ;;  %11953 = vmatmul.msk.f32.vlgmr.msrb.gmra.mxu2 %vm358_vm1, %v11946_v60 }
 0x157   : > { %3100 = vmatpush.msra.mxu3 %v13412_v26  ;;  %3140 = vmatpush.msrb.mxu1 %v13413_v30  ;;  %v12647_v26 = vunpack.i.h.bf16 %v14199_v54 }
 0x158   : > { %v1265_v28 = vpop.f32.mrf.mxu3  ;;  %3160 = vmatpush.msrb.mxu2 %v13414_v35  ;;  %12819 = vrot.lane.b32.xlu1 %v14009_v22, %s13458_s21 }
 0x159   : > { %v1351_v36 = vadd.f32 %v1265_v28, %v1143_v53  ;;  %v1325_v2 = vpop.f32.mrf.mxu2  ;;  %v14176_v8 = vpop.f32.mrf.mxu0  ;;  %v12641_v53 = vunpack.i.l.bf16 %v14185_v5  ;;  %v3419_v5 = vsel %vm16151_vm15, %v12646_v27, %v12647_v26  ;;  %12799 = vrot.lane.b32.xlu2 %v14009_v22, %s16152_s22  ;;  %12824 = vrot.lane.b32.xlu0 %v13977_v59, %s16155_s25  ;;  %s16167_s22 = smov 17  }
 0x15a   : > { %v1354_v9 = vadd.f32 %v1325_v2, %v1146_v57  ;;  %v14180_v40 = vpop.f32.mrf.mxu1  ;;  %v3418_v2 = vsel %vm16151_vm15, %v12656_v25, %v12646_v27 }
 0x15c   : > { %11951 = vmatmul.msk.f32.vlgmr.msrb.gmra.mxu0 %vm358_vm1, %v11946_v60 }
 0x15d   : > { %11954 = vmatmul.msk.f32.vlgmr.msrb.gmra.mxu3 %vm358_vm1, %v11946_v60  ;;  %11957 = vmatmul.msk.f32.vlgmr.msra.gmra.mxu1 %vm358_vm1, %v11955_v3 }
 0x15e   : > { %3120 = vmatpush.msrb.mxu0 %v13415_v42  ;;  %11958 = vmatmul.msk.f32.vlgmr.msra.gmra.mxu2 %vm358_vm1, %v11955_v3 }
 0x15f   : > { %3180 = vmatpush.msrb.mxu3 %v13416_v45  ;;  %3265 = vmatpush.msra.mxu1 %v3213_v10  ;;  %v12657_v45 = vunpack.i.h.bf16 %v12655_v17 }
 0x160   : > { %v1345_v50 = vpop.f32.mrf.mxu3  ;;  %3285 = vmatpush.msra.mxu2 %v3214_v41  ;;  %v12651_v41 = vunpack.i.l.bf16 %v14217_v18  ;;  %12829 = vrot.lane.b32.xlu1 %v13971_v56, %s16155_s25 }
 0x161   : > { %v1355_v52 = vadd.f32 %v1345_v50, %v1147_v16  ;;  %v1453_v57 = vpop.f32.mrf.mxu2  ;;  %v14203_v60 = vpop.f32.mrf.mxu0  ;;  %v3218_v16 = vsel %vm16148_vm14, %v12637_v1, %v12641_v53  ;;  %vm16154_vm14 = vcmask 965632   ;;  %12809 = vrot.lane.b32.xlu2 %v13971_v56, %s13458_s21  ;;  %12839 = vrot.lane.b32.xlu0 %v14009_v22, %s16155_s25 }
 0x162   : > { %v1558_v61 = vadd.f32 %v1453_v57, %v1350_v20  ;;  %v14207_v63 = vpop.f32.mrf.mxu1  ;;  %v14245_v50 = vpop.permute.xlu1 %12664  ;;  %v3420_v54 = vsel %vm16151_vm15, %v12647_v26, %v12651_v41 }
 0x163   : > { %v12667_v17 = vunpack.i.h.bf16 %v14245_v50 }
 0x164   : > { %11956 = vmatmul.msk.f32.vlgmr.msra.gmra.mxu0 %vm358_vm1, %v11955_v3 }
 0x165   : > { %11959 = vmatmul.msk.f32.vlgmr.msra.gmra.mxu3 %vm358_vm1, %v11955_v3  ;;  %11961 = vmatmul.msk.f32.vlgmr.msrb.gmra.mxu1 %vm358_vm1, %v11955_v3 }
 0x166   : > { %3245 = vmatpush.msra.mxu0 %v3212_v12  ;;  %11962 = vmatmul.msk.f32.vlgmr.msrb.gmra.mxu2 %vm358_vm1, %v11955_v3  ;;  %v3423_v12 = vsel %vm16151_vm15, %v12657_v45, %v12661_v13 }
 0x167   : > { %3305 = vmatpush.msra.mxu3 %v3215_v14  ;;  %3345 = vmatpush.msrb.mxu1 %v3217_v15  ;;  %v12675_v14 = vpop.permute.xlu0 %12674 }
 0x168   : > { %v1473_v20 = vpop.f32.mrf.mxu3  ;;  %3365 = vmatpush.msrb.mxu2 %v3218_v16  ;;  %5291 = vrot.lane.b32.xlu1 %v14015_v24, %s16155_s25 }
 0x169   : > { %v1559_v23 = vadd.f32 %v1473_v20, %v1351_v36  ;;  %v1533_v28 = vpop.f32.mrf.mxu2  ;;  %v14223_v30 = vpop.f32.mrf.mxu0  ;;  %v11964_v36 = vld [vmem:[%s16128_s1 + $0x70] sm:$0xff]  ;;  %v12676_v20 = vunpack.i.l.bf16 %v12675_v14  ;;  %5083 = vrot.lane.b32.xlu2 %v14015_v24, %s13458_s21  ;;  %12849 = vrot.lane.b32.xlu0 %v13971_v56, %s13460_s24 }
 0x16a   : > { %v1562_v35 = vadd.f32 %v1533_v28, %v1354_v9  ;;  %v14227_v37 = vpop.f32.mrf.mxu1  ;;  %v12652_v9 = vunpack.i.h.bf16 %v14217_v18  ;;  %v12666_v18 = vunpack.i.l.bf16 %v14245_v50  ;;  %v11973_v28 = vld [vmem:[%s16128_s1 + $0x78] sm:$0xff] }
 0x16c   : > { %11960 = vmatmul.msk.f32.vlgmr.msrb.gmra.mxu0 %vm358_vm1, %v11955_v3 }
 0x16d   : > { %11963 = vmatmul.msk.f32.vlgmr.msrb.gmra.mxu3 %vm358_vm1, %v11955_v3  ;;  %11966 = vmatmul.msk.f32.vlgmr.msra.gmra.mxu1 %vm358_vm1, %v11964_v36  ;;  %v12662_v3 = vunpack.i.h.bf16 %v14233_v0  ;;  %v14281_v0 = vpop.permute.xlu1 %12679 }
 0x16e   : > { %3325 = vmatpush.msrb.mxu0 %v3216_v32  ;;  %11967 = vmatmul.msk.f32.vlgmr.msra.gmra.mxu2 %vm358_vm1, %v11964_v36 }
 0x16f   : > { %3385 = vmatpush.msrb.mxu3 %v12641_v53  ;;  %3470 = vmatpush.msra.mxu1 %v3418_v2  ;;  %v3422_v57 = vsel %vm16151_vm15, %v12662_v3, %v12657_v45  ;;  %v3421_v32 = vsel %vm16151_vm15, %v12651_v41, %v12662_v3  ;;  %v3623_v2 = vsel %vm16154_vm14, %v12676_v20, %v12666_v18  ;;  %v12677_v45 = vunpack.i.h.bf16 %v12675_v14 }
 0x170   : > { %v1553_v10 = vpop.f32.mrf.mxu3  ;;  %3490 = vmatpush.msra.mxu2 %v3419_v5  ;;  %v3624_v5 = vsel %vm16154_vm14, %v12666_v18, %v12667_v17  ;;  %v12681_v3 = vunpack.i.l.bf16 %v14281_v0  ;;  %12854 = vrot.lane.b32.xlu1 %v14042_v39, %s13460_s24 }
 0x171   : > { %v1563_v42 = vadd.f32 %v1553_v10, %v1355_v52  ;;  %v1661_v51 = vpop.f32.mrf.mxu2  ;;  %v14251_v1 = vpop.f32.mrf.mxu0  ;;  %v3417_v52 = vsel %vm16151_vm15, %v12652_v9, %v12656_v25  ;;  %vm16157_vm15 = vcmask 957440   ;;  %12834 = vrot.lane.b32.xlu2 %v14042_v39, %s16155_s25  ;;  %5499 = vrot.lane.b32.xlu0 %v14015_v24, %s13460_s24 }
 0x172   : > { %v1766_v7 = vadd.f32 %v1661_v51, %v1558_v61  ;;  %v14253_v53 = vpop.f32.mrf.mxu1  ;;  %v14263_v61 = vpop.permute.xlu2 %12669 }
 0x173   : > { %v12671_v10 = vunpack.i.l.bf16 %v14263_v61 }
 0x174   : > { %11965 = vmatmul.msk.f32.vlgmr.msra.gmra.mxu0 %vm358_vm1, %v11964_v36 }
 0x175   : > { %11968 = vmatmul.msk.f32.vlgmr.msra.gmra.mxu3 %vm358_vm1, %v11964_v36  ;;  %11970 = vmatmul.msk.f32.vlgmr.msrb.gmra.mxu1 %vm358_vm1, %v11964_v36 }
 0x176   : > { %3450 = vmatpush.msra.mxu0 %v3417_v52  ;;  %11971 = vmatmul.msk.f32.vlgmr.msrb.gmra.mxu2 %vm358_vm1, %v11964_v36 }
 0x177   : > { %3510 = vmatpush.msra.mxu3 %v3420_v54  ;;  %3550 = vmatpush.msrb.mxu1 %v3422_v57  ;;  %v14306_v57 = vpop.permute.xlu0 %12689 }
 0x178   : > { %v1681_v15 = vpop.f32.mrf.mxu3  ;;  %3570 = vmatpush.msrb.mxu2 %v3423_v12  ;;  %v3625_v12 = vsel %vm16154_vm14, %v12667_v17, %v12671_v10  ;;  %12864 = vrot.lane.b32.xlu1 %v13977_v59, %s16167_s22 }
 0x179   : > { %v1767_v16 = vadd.f32 %v1681_v15, %v1559_v23  ;;  %v1741_v25 = vpop.f32.mrf.mxu2  ;;  %v14271_v26 = vpop.f32.mrf.mxu0  ;;  %12874 = vrot.lane.b32.xlu0 %v14042_v39, %s16167_s22  ;;  %12844 = vrot.lane.b32.xlu2 %v13977_v59, %s13460_s24 }
 0x17a   : > { %v1770_v23 = vadd.f32 %v1741_v25, %v1562_v35  ;;  %v14275_v27 = vpop.f32.mrf.mxu1  ;;  %v12672_v35 = vunpack.i.h.bf16 %v14263_v61  ;;  %v14293_v50 = vpop.permute.xlu2 %12684  ;;  %v3628_v61 = vsel %vm16154_vm14, %v12677_v45, %v12681_v3 }
 0x17b   : > { %v12686_v25 = vunpack.i.l.bf16 %v14293_v50 }
 0x17c   : > { %11969 = vmatmul.msk.f32.vlgmr.msrb.gmra.mxu0 %vm358_vm1, %v11964_v36  ;;  %v3622_v54 = vsel %vm16154_vm14, %v12672_v35, %v12676_v20  ;;  %v12687_v20 = vunpack.i.h.bf16 %v14293_v50 }
 0x17d   : > { %11972 = vmatmul.msk.f32.vlgmr.msrb.gmra.mxu3 %vm358_vm1, %v11964_v36  ;;  %11975 = vmatmul.msk.f32.vlgmr.msra.gmra.mxu1 %vm358_vm1, %v11973_v28  ;;  %v12682_v36 = vunpack.i.h.bf16 %v14281_v0 }
 0x17e   : > { %3530 = vmatpush.msrb.mxu0 %v3421_v32  ;;  %11976 = vmatmul.msk.f32.vlgmr.msra.gmra.mxu2 %vm358_vm1, %v11973_v28  ;;  %v3829_v50 = vsel %vm16157_vm15, %v12686_v25, %v12687_v20 }
 0x17f   : > { %3590 = vmatpush.msrb.mxu3 %v12661_v13  ;;  %3675 = vmatpush.msra.mxu1 %v3623_v2  ;;  %v3627_v14 = vsel %vm16154_vm14, %v12682_v36, %v12677_v45  ;;  %v3626_v35 = vsel %vm16154_vm14, %v12671_v10, %v12682_v36  ;;  %v14337_v56 = vpop.permute.xlu0 %12704  ;;  %v12691_v36 = vunpack.i.l.bf16 %v14306_v57  ;;  %vm16158_vm14 = vcmask 318464  }
 0x180   : > { %v1761_v9 = vpop.f32.mrf.mxu3  ;;  %3695 = vmatpush.msra.mxu2 %v3624_v5  ;;  %v11982_v5 = vld [vmem:[%s16128_s1 + $0x80] sm:$0xff]  ;;  %12879 = vrot.lane.b32.xlu1 %v14009_v22, %s16167_s22 }
 0x181   : > { %v1771_v41 = vadd.f32 %v1761_v9, %v1563_v42  ;;  %v1869_v13 = vpop.f32.mrf.mxu2  ;;  %v14299_v51 = vpop.f32.mrf.mxu0  ;;  %12859 = vrot.lane.b32.xlu2 %v14009_v22, %s13460_s24 }
 0x182   : > { %v1974_v42 = vadd.f32 %v1869_v13, %v1766_v7  ;;  %v14303_v52 = vpop.f32.mrf.mxu1  ;;  %v12695_v7 = vpop.permute.xlu1 %12694 }
 0x183   : > { %v12696_v17 = vunpack.i.l.bf16 %v12695_v7  ;;  %v14331_v9 = vpop.permute.xlu2 %12699  ;;  %v12697_v13 = vunpack.i.h.bf16 %v12695_v7 }
 0x184   : > { %11974 = vmatmul.msk.f32.vlgmr.msra.gmra.mxu0 %vm358_vm1, %v11973_v28 }
 0x185   : > { %11977 = vmatmul.msk.f32.vlgmr.msra.gmra.mxu3 %vm358_vm1, %v11973_v28  ;;  %11979 = vmatmul.msk.f32.vlgmr.msrb.gmra.mxu1 %vm358_vm1, %v11973_v28  ;;  %v3828_v45 = vsel %vm16157_vm15, %v12696_v17, %v12686_v25 }
 0x186   : > { %3655 = vmatpush.msra.mxu0 %v3622_v54  ;;  %11980 = vmatmul.msk.f32.vlgmr.msrb.gmra.mxu2 %vm358_vm1, %v11973_v28  ;;  %v12702_v54 = vunpack.i.h.bf16 %v14331_v9 }
 0x187   : > { %3715 = vmatpush.msra.mxu3 %v3625_v12  ;;  %3755 = vmatpush.msrb.mxu1 %v3627_v14  ;;  %v12701_v12 = vunpack.i.l.bf16 %v14331_v9  ;;  %v14363_v24 = vpop.permute.xlu0 %12719  ;;  %v12707_v9 = vunpack.i.h.bf16 %v14337_v56 }
 0x188   : > { %v1889_v15 = vpop.f32.mrf.mxu3  ;;  %3775 = vmatpush.msrb.mxu2 %v3628_v61  ;;  %v3832_v7 = vsel %vm16157_vm15, %v12702_v54, %v12697_v13 }
 0x189   : > { %v1975_v18 = vadd.f32 %v1889_v15, %v1767_v16  ;;  %v1949_v32 = vpop.f32.mrf.mxu2  ;;  %v14321_v0 = vpop.f32.mrf.mxu0 }
 0x18a   : > { %16178 = vst [vmem:[#allocation3_spill] sm:$0xff] %v14321_v0  ;;  %v1978_v16 = vadd.f32 %v1949_v32, %v1770_v23  ;;  %v14325_v2 = vpop.f32.mrf.mxu1  ;;  %v12692_v23 = vunpack.i.h.bf16 %v14306_v57  ;;  %v14345_v14 = vpop.permute.xlu1 %12709  ;;  %v3830_v57 = vsel %vm16157_vm15, %v12687_v20, %v12691_v36  ;;  %v3833_v32 = vsel %vm16157_vm15, %v12697_v13, %v12701_v12 }
 0x18b   : > { %v12712_v39 = vunpack.i.h.bf16 %v14345_v14 }
 0x18c   : > { %11978 = vmatmul.msk.f32.vlgmr.msrb.gmra.mxu0 %vm358_vm1, %v11973_v28 }
 0x18d   : > { %11981 = vmatmul.msk.f32.vlgmr.msrb.gmra.mxu3 %vm358_vm1, %v11973_v28  ;;  %11984 = vmatmul.msk.f32.vlgmr.msra.gmra.mxu1 %vm358_vm1, %v11982_v5 }
 0x18e   : > { %3735 = vmatpush.msrb.mxu0 %v3626_v35  ;;  %11985 = vmatmul.msk.f32.vlgmr.msra.gmra.mxu2 %vm358_vm1, %v11982_v5  ;;  %v12715_v35 = vpop.permute.xlu2 %12714 }
 0x18f   : > { %3795 = vmatpush.msrb.mxu3 %v12681_v3  ;;  %3880 = vmatpush.msra.mxu1 %v3828_v45  ;;  %v12716_v20 = vunpack.i.l.bf16 %v12715_v35  ;;  %v12706_v45 = vunpack.i.l.bf16 %v14337_v56  ;;  %v3831_v56 = vsel %vm16157_vm15, %v12691_v36, %v12702_v54  ;;  %v12711_v36 = vunpack.i.l.bf16 %v14345_v14 }
 0x190   : > { %v1969_v10 = vpop.f32.mrf.mxu3  ;;  %3900 = vmatpush.msra.mxu2 %v3829_v50  ;;  %v12717_v54 = vunpack.i.h.bf16 %v12715_v35 }
 0x191   : > { %v1979_v28 = vadd.f32 %v1969_v10, %v1771_v41  ;;  %v2077_v61 = vpop.f32.mrf.mxu2  ;;  %v14349_v3 = vpop.f32.mrf.mxu0  ;;  %v3827_v41 = vsel %vm16157_vm15, %v12692_v23, %v12696_v17  ;;  %v4052_v14 = vsel %vm16158_vm14, %v12712_v39, %v12716_v20  ;;  %vm16159_vm15 = vcmask 310272  }
 0x192   : > { %v2182_v15 = vadd.f32 %v2077_v61, %v1974_v42  ;;  %v14353_v25 = vpop.f32.mrf.mxu1  ;;  %v4044_v61 = vpop.permute.xlu1 %4043 }
 0x193   : > { %16179 = vst [vmem:[#allocation4_spill] sm:$0xff] %v14353_v25  ;;  %v4057_v35 = vsel %vm16158_vm14, %v4044_v61, %v12717_v54 }
 0x194   : > { %11983 = vmatmul.msk.f32.vlgmr.msra.gmra.mxu0 %vm358_vm1, %v11982_v5 }
 0x195   : > { %11986 = vmatmul.msk.f32.vlgmr.msra.gmra.mxu3 %vm358_vm1, %v11982_v5  ;;  %11988 = vmatmul.msk.f32.vlgmr.msrb.gmra.mxu1 %vm358_vm1, %v11982_v5 }
 0x196   : > { %3860 = vmatpush.msra.mxu0 %v3827_v41  ;;  %11989 = vmatmul.msk.f32.vlgmr.msrb.gmra.mxu2 %vm358_vm1, %v11982_v5  ;;  %v4053_v41 = vsel %vm16158_vm14, %v12716_v20, %v12706_v45  ;;  %v12722_v20 = vunpack.i.h.bf16 %v14363_v24 }
 0x197   : > { %3920 = vmatpush.msra.mxu3 %v3830_v57  ;;  %3960 = vmatpush.msrb.mxu1 %v3832_v7  ;;  %v4054_v57 = vsel %vm16158_vm14, %v12706_v45, %v12707_v9  ;;  %v14383_v7 = vpop.permute.xlu2 %12724 }
 0x198   : > { %v2097_v42 = vpop.f32.mrf.mxu3  ;;  %3980 = vmatpush.msrb.mxu2 %v3833_v32  ;;  %v12721_v32 = vunpack.i.l.bf16 %v14363_v24  ;;  %v12000_v24 = vld [vmem:[%s16128_s1 + $0x90] sm:$0xff] }
 0x199   : > { %v2183_v17 = vadd.f32 %v2097_v42, %v1975_v18  ;;  %v2157_v50 = vpop.f32.mrf.mxu2  ;;  %v14369_v23 = vpop.f32.mrf.mxu0  ;;  %v11991_v18 = vld [vmem:[%s16128_s1 + $0x88] sm:$0xff] }
 0x19a   : > { %16180 = vst [vmem:[#allocation5_spill] sm:$0xff] %v14369_v23  ;;  %v2186_v10 = vadd.f32 %v2157_v50, %v1978_v16  ;;  %v14373_v13 = vpop.f32.mrf.mxu1  ;;  %v14390_v42 = vpop.permute.xlu0 %12729 }
 0x19c   : > { %11987 = vmatmul.msk.f32.vlgmr.msrb.gmra.mxu0 %vm358_vm1, %v11982_v5 }
 0x19d   : > { %11990 = vmatmul.msk.f32.vlgmr.msrb.gmra.mxu3 %vm358_vm1, %v11982_v5  ;;  %11993 = vmatmul.msk.f32.vlgmr.msra.gmra.mxu1 %vm358_vm1, %v11991_v18 }
 0x19e   : > { %3940 = vmatpush.msrb.mxu0 %v3831_v56  ;;  %11994 = vmatmul.msk.f32.vlgmr.msra.gmra.mxu2 %vm358_vm1, %v11991_v18 }
 0x19f   : > { %4000 = vmatpush.msrb.mxu3 %v12701_v12  ;;  %4106 = vmatpush.msra.mxu1 %v4053_v41  ;;  %v4058_v41 = vsel %vm16158_vm14, %v12717_v54, %v12721_v32  ;;  %v14408_v59 = vpop.permute.xlu2 %12739  ;;  %v12726_v54 = vunpack.i.l.bf16 %v14383_v7 }
 0x1a0   : > { %v2177_v16 = vpop.f32.mrf.mxu3  ;;  %4126 = vmatpush.msra.mxu2 %v4054_v57  ;;  %v12735_v57 = vpop.permute.xlu1 %12734 }
 0x1a1   : > { %v2187_v5 = vadd.f32 %v2177_v16, %v1979_v28  ;;  %v2285_v45 = vpop.f32.mrf.mxu2  ;;  %v14396_v50 = vpop.f32.mrf.mxu0  ;;  %v4055_v28 = vsel %vm16158_vm14, %v12707_v9, %v12711_v36  ;;  %v12736_v39 = vunpack.i.l.bf16 %v12735_v57  ;;  %v12727_v16 = vunpack.i.h.bf16 %v14383_v7 }
 0x1a2   : > { %v2390_v12 = vadd.f32 %v2285_v45, %v2182_v15  ;;  %v14398_v56 = vpop.f32.mrf.mxu1  ;;  %v4059_v7 = vsel %vm16158_vm14, %v12721_v32, %v12722_v20  ;;  %v13418_v32 = vld [vmem:[%s13523_s10 + $0x28] sm:$0xff] }
 0x1a3   : > { %16181 = vst [vmem:[#allocation6_spill] sm:$0xff] %v14398_v56  ;;  %v4261_v22 = vsel %vm16159_vm15, %v12736_v39, %v12726_v54 }
 0x1a4   : > { %11992 = vmatmul.msk.f32.vlgmr.msra.gmra.mxu0 %vm358_vm1, %v11991_v18 }
 0x1a5   : > { %11995 = vmatmul.msk.f32.vlgmr.msra.gmra.mxu3 %vm358_vm1, %v11991_v18  ;;  %11997 = vmatmul.msk.f32.vlgmr.msrb.gmra.mxu1 %vm358_vm1, %v11991_v18 }
 0x1a6   : > { %4086 = vmatpush.msra.mxu0 %v4052_v14  ;;  %11998 = vmatmul.msk.f32.vlgmr.msrb.gmra.mxu2 %vm358_vm1, %v11991_v18 }
 0x1a7   : > { %4146 = vmatpush.msra.mxu3 %v4055_v28  ;;  %4186 = vmatpush.msrb.mxu1 %v4057_v35  ;;  %v4252_v35 = vpop.permute.xlu0 %4251  ;;  %v14437_v23 = vpop.permute.xlu2 %12749 }
 0x1a8   : > { %v2305_v15 = vpop.f32.mrf.mxu3  ;;  %4206 = vmatpush.msrb.mxu2 %v4058_v41  ;;  %v14428_v41 = vpop.permute.xlu1 %12744 }
 0x1a9   : > { %v2391_v9 = vadd.f32 %v2305_v15, %v2183_v17  ;;  %v2365_v45 = vpop.f32.mrf.mxu2  ;;  %v14415_v14 = vpop.f32.mrf.mxu0  ;;  %v4056_v17 = vsel %vm16158_vm14, %v12711_v36, %v4044_v61  ;;  %v12732_v61 = vunpack.i.h.bf16 %v14390_v42  ;;  %v13417_v36 = vld [vmem:[%s13523_s10 + $0x8] sm:$0xff]  ;;  %vm16160_vm14 = vcmask 302080  }
 0x1aa   : > { %16182 = vst [vmem:[#allocation7_spill] sm:$0xff] %v14415_v14  ;;  %v2394_v28 = vadd.f32 %v2365_v45, %v2186_v10  ;;  %v14417_v56 = vpop.f32.mrf.mxu1  ;;  %v4262_v10 = vsel %vm16159_vm15, %v12726_v54, %v12727_v16  ;;  %v12868_v15 = vpack.i.bf16 %v13417_v36, %v13418_v32  ;;  %v12737_v54 = vunpack.i.h.bf16 %v12735_v57 }
 0x1ab   : > { %v12741_v14 = vunpack.i.l.bf16 %v14408_v59  ;;  %v4260_v36 = vsel %vm16159_vm15, %v12732_v61, %v12736_v39  ;;  %v12747_v61 = vunpack.i.h.bf16 %v14428_v41  ;;  %v12746_v32 = vunpack.i.l.bf16 %v14428_v41 }
 0x1ac   : > { %11996 = vmatmul.msk.f32.vlgmr.msrb.gmra.mxu0 %vm358_vm1, %v11991_v18  ;;  %12869 = vrot.lane.b32.xlu2 %v12868_v15, %s16167_s22 }
 0x1ad   : > { %11999 = vmatmul.msk.f32.vlgmr.msrb.gmra.mxu3 %vm358_vm1, %v11991_v18  ;;  %12002 = vmatmul.msk.f32.vlgmr.msra.gmra.mxu1 %vm358_vm1, %v12000_v24  ;;  %v12731_v18 = vunpack.i.l.bf16 %v14390_v42  ;;  %v4266_v57 = vsel %vm16159_vm15, %v12737_v54, %v12741_v14 }
 0x1ae   : > { %4166 = vmatpush.msrb.mxu0 %v4056_v17  ;;  %12003 = vmatmul.msk.f32.vlgmr.msra.gmra.mxu2 %vm358_vm1, %v12000_v24 }
 0x1af   : > { %4226 = vmatpush.msrb.mxu3 %v4059_v7  ;;  %4314 = vmatpush.msra.mxu1 %v4261_v22  ;;  %v4263_v42 = vsel %vm16159_vm15, %v12727_v16, %v12731_v18  ;;  %v12755_v22 = vpop.permute.xlu0 %12754  ;;  %v12742_v16 = vunpack.i.h.bf16 %v14408_v59  ;;  %v12009_v59 = vld [vmem:[%s16128_s1 + $0x98] sm:$0xff] }
 0x1b0   : > { %v2385_v20 = vpop.f32.mrf.mxu3  ;;  %4334 = vmatpush.msra.mxu2 %v4262_v10  ;;  %v12756_v15 = vunpack.i.l.bf16 %v12755_v22 }
 0x1b1   : > { %v2395_v45 = vadd.f32 %v2385_v20, %v2187_v5  ;;  %v2493_v17 = vpop.f32.mrf.mxu2  ;;  %v14440_v25 = vpop.f32.mrf.mxu0  ;;  %v4265_v5 = vsel %vm16159_vm15, %v4252_v35, %v12737_v54  ;;  %v13419_v20 = vld [vmem:[%s13523_s10 + $0x30] sm:$0xff]  ;;  %v4267_v41 = vsel %vm16159_vm15, %v12741_v14, %v12742_v16  ;;  %v12751_v14 = vunpack.i.l.bf16 %v14437_v23 }
 0x1b2   : > { %v2598_v7 = vadd.f32 %v2493_v17, %v2390_v12  ;;  %v14442_v0 = vpop.f32.mrf.mxu1  ;;  %v14452_v12 = vpop.permute.xlu1 %12759  ;;  %v12757_v16 = vunpack.i.h.bf16 %v12755_v22 }
 0x1b3   : > { %16183 = vst [vmem:[#allocation8_spill] sm:$0xff] %v14442_v0 }
 0x1b4   : > { %12001 = vmatmul.msk.f32.vlgmr.msra.gmra.mxu0 %vm358_vm1, %v12000_v24  ;;  %5707 = vrot.lane.b32.xlu2 %v13419_v20, %s16167_s22  ;;  %v12761_v20 = vunpack.i.l.bf16 %v14452_v12 }
 0x1b5   : > { %12004 = vmatmul.msk.f32.vlgmr.msra.gmra.mxu3 %vm358_vm1, %v12000_v24  ;;  %12006 = vmatmul.msk.f32.vlgmr.msrb.gmra.mxu1 %vm358_vm1, %v12000_v24 }
 0x1b6   : > { %4294 = vmatpush.msra.mxu0 %v4260_v36  ;;  %12007 = vmatmul.msk.f32.vlgmr.msrb.gmra.mxu2 %vm358_vm1, %v12000_v24 }
 0x1b7   : > { %4354 = vmatpush.msra.mxu3 %v4263_v42  ;;  %4394 = vmatpush.msrb.mxu1 %v4265_v5  ;;  %v4460_v5 = vpop.permute.xlu2 %4459 }
 0x1b8   : > { %v2513_v39 = vpop.f32.mrf.mxu3  ;;  %4414 = vmatpush.msrb.mxu2 %v4266_v57  ;;  %v4469_v57 = vsel %vm16160_vm14, %v12756_v15, %v12746_v32 }
 0x1b9   : > { %v2599_v10 = vadd.f32 %v2513_v39, %v2391_v9  ;;  %v2573_v54 = vpop.f32.mrf.mxu2  ;;  %v14459_v17 = vpop.f32.mrf.mxu0  ;;  %v4264_v9 = vsel %vm16159_vm15, %v12731_v18, %v4252_v35  ;;  %v4470_v39 = vsel %vm16160_vm14, %v12746_v32, %v12747_v61  ;;  %v12752_v35 = vunpack.i.h.bf16 %v14437_v23 }
 0x1ba   : > { %16184 = vst [vmem:[#allocation9_spill] sm:$0xff] %v14459_v17  ;;  %v2602_v36 = vadd.f32 %v2573_v54, %v2394_v28  ;;  %v14461_v42 = vpop.f32.mrf.mxu1  ;;  %v14472_v28 = vpop.permute.xlu0 %12764  ;;  %v4473_v23 = vsel %vm16160_vm14, %v4460_v5, %v12757_v16  ;;  %vm16161_vm15 = vcmask 236544  }
 0x1bb   : > { %16185 = vst [vmem:[#allocation10_spill] sm:$0xff] %v14461_v42  ;;  %v14479_v32 = vpop.permute.xlu1 %12769  ;;  %v4468_v42 = vsel %vm16160_vm14, %v12752_v35, %v12756_v15  ;;  %v12767_v35 = vunpack.i.h.bf16 %v14472_v28 }
 0x1bc   : > { %12005 = vmatmul.msk.f32.vlgmr.msrb.gmra.mxu0 %vm358_vm1, %v12000_v24 }
 0x1bd   : > { %12008 = vmatmul.msk.f32.vlgmr.msrb.gmra.mxu3 %vm358_vm1, %v12000_v24  ;;  %12011 = vmatmul.msk.f32.vlgmr.msra.gmra.mxu1 %vm358_vm1, %v12009_v59 }
 0x1be   : > { %4374 = vmatpush.msrb.mxu0 %v4264_v9  ;;  %12012 = vmatmul.msk.f32.vlgmr.msra.gmra.mxu2 %vm358_vm1, %v12009_v59 }
 0x1bf   : > { %4434 = vmatpush.msrb.mxu3 %v4267_v41  ;;  %4522 = vmatpush.msra.mxu1 %v4469_v57  ;;  %v4471_v41 = vsel %vm16160_vm14, %v12747_v61, %v12751_v14  ;;  %v12775_v22 = vpop.permute.xlu2 %12774  ;;  %v12762_v61 = vunpack.i.h.bf16 %v14452_v12  ;;  %v4472_v12 = vsel %vm16160_vm14, %v12751_v14, %v4460_v5  ;;  %v12772_v5 = vunpack.i.h.bf16 %v14479_v32 }
 0x1c0   : > { %v2593_v18 = vpop.f32.mrf.mxu3  ;;  %4542 = vmatpush.msra.mxu2 %v4470_v39  ;;  %v12776_v39 = vunpack.i.l.bf16 %v12775_v22 }
 0x1c1   : > { %v2603_v24 = vadd.f32 %v2593_v18, %v2395_v45  ;;  %v2701_v54 = vpop.f32.mrf.mxu2  ;;  %v14481_v17 = vpop.f32.mrf.mxu0  ;;  %v4474_v45 = vsel %vm16160_vm14, %v12757_v16, %v12761_v20  ;;  %v12766_v18 = vunpack.i.l.bf16 %v14472_v28 }
 0x1c2   : > { %16186 = vst [vmem:[#allocation11_spill] sm:$0xff] %v14481_v17  ;;  %v2806_v9 = vadd.f32 %v2701_v54, %v2598_v7  ;;  %v14483_v0 = vpop.f32.mrf.mxu1  ;;  %v14493_v7 = vpop.permute.xlu0 %12779  ;;  %v4676_v17 = vsel %vm16161_vm15, %v12772_v5, %v12776_v39 }
 0x1c3   : > { %16187 = vst [vmem:[#allocation12_spill] sm:$0xff] %v14483_v0  ;;  %v4677_v28 = vsel %vm16161_vm15, %v12776_v39, %v12766_v18 }
 0x1c4   : > { %12010 = vmatmul.msk.f32.vlgmr.msra.gmra.mxu0 %vm358_vm1, %v12009_v59 }
 0x1c5   : > { %12013 = vmatmul.msk.f32.vlgmr.msra.gmra.mxu3 %vm358_vm1, %v12009_v59  ;;  %12015 = vmatmul.msk.f32.vlgmr.msrb.gmra.mxu1 %vm358_vm1, %v12009_v59 }
 0x1c6   : > { %4502 = vmatpush.msra.mxu0 %v4468_v42  ;;  %12016 = vmatmul.msk.f32.vlgmr.msrb.gmra.mxu2 %vm358_vm1, %v12009_v59 }
 0x1c7   : > { %4562 = vmatpush.msra.mxu3 %v4471_v41  ;;  %4602 = vmatpush.msrb.mxu1 %v4473_v23  ;;  %v12018_v41 = vld [vmem:[%s16128_s1 + $0xa0] sm:$0xff]  ;;  %v4668_v23 = vpop.permute.xlu1 %4667 }
 0x1c8   : > { %v2721_v15 = vpop.f32.mrf.mxu3  ;;  %4622 = vmatpush.msrb.mxu2 %v4474_v45  ;;  %v4678_v45 = vsel %vm16161_vm15, %v12766_v18, %v12767_v35 }
 0x1c9   : > { %v2807_v57 = vadd.f32 %v2721_v15, %v2599_v10  ;;  %v2781_v16 = vpop.f32.mrf.mxu2  ;;  %v14498_v54 = vpop.f32.mrf.mxu0  ;;  %v4475_v10 = vsel %vm16160_vm14, %v12761_v20, %v12762_v61  ;;  %v12771_v20 = vunpack.i.l.bf16 %v14479_v32  ;;  %v12777_v15 = vunpack.i.h.bf16 %v12775_v22 }
 0x1ca   : > { %16188 = vst [vmem:[#allocation13_spill] sm:$0xff] %v14498_v54  ;;  %v2810_v42 = vadd.f32 %v2781_v16, %v2602_v36  ;;  %v14500_v0 = vpop.f32.mrf.mxu1  ;;  %v14511_v36 = vpop.permute.xlu2 %12784  ;;  %v12781_v61 = vunpack.i.l.bf16 %v14493_v7  ;;  %vm16162_vm14 = vcmask 228352  }
 0x1cb   : > { %16189 = vst [vmem:[#allocation14_spill] sm:$0xff] %v14500_v0  ;;  %v14518_v18 = vpop.permute.xlu0 %12789  ;;  %v12787_v5 = vunpack.i.h.bf16 %v14511_v36 }
 0x1cc   : > { %12014 = vmatmul.msk.f32.vlgmr.msrb.gmra.mxu0 %vm358_vm1, %v12009_v59  ;;  %v4682_v32 = vsel %vm16161_vm15, %v12777_v15, %v12781_v61 }
 0x1cd   : > { %12017 = vmatmul.msk.f32.vlgmr.msrb.gmra.mxu3 %vm358_vm1, %v12009_v59  ;;  %12020 = vmatmul.msk.f32.vlgmr.msra.gmra.mxu1 %vm358_vm1, %v12018_v41 }
 0x1ce   : > { %4582 = vmatpush.msrb.mxu0 %v4472_v12  ;;  %12021 = vmatmul.msk.f32.vlgmr.msra.gmra.mxu2 %vm358_vm1, %v12018_v41 }
 0x1cf   : > { %4642 = vmatpush.msrb.mxu3 %v4475_v10  ;;  %4730 = vmatpush.msra.mxu1 %v4677_v28  ;;  %v4679_v10 = vsel %vm16161_vm15, %v12767_v35, %v12771_v20  ;;  %v12795_v22 = vpop.permute.xlu1 %12794  ;;  %v12782_v35 = vunpack.i.h.bf16 %v14493_v7  ;;  %v4680_v7 = vsel %vm16161_vm15, %v12771_v20, %v4668_v23 }
 0x1d0   : > { %v2801_v14 = vpop.f32.mrf.mxu3  ;;  %4750 = vmatpush.msra.mxu2 %v4678_v45  ;;  %v12796_v45 = vunpack.i.l.bf16 %v12795_v22 }
 0x1d1   : > { %v2811_v59 = vadd.f32 %v2801_v14, %v2603_v24  ;;  %v2909_v16 = vpop.f32.mrf.mxu2  ;;  %v14520_v54 = vpop.f32.mrf.mxu0  ;;  %v4681_v24 = vsel %vm16161_vm15, %v4668_v23, %v12777_v15  ;;  %v12786_v14 = vunpack.i.l.bf16 %v14511_v36  ;;  %v12792_v23 = vunpack.i.h.bf16 %v14518_v18 }
 0x1d2   : > { %16190 = vst [vmem:[#allocation15_spill] sm:$0xff] %v14520_v54  ;;  %v3014_v12 = vadd.f32 %v2909_v16, %v2806_v9  ;;  %v14522_v0 = vpop.f32.mrf.mxu1  ;;  %v14532_v9 = vpop.permute.xlu2 %12799 }
 0x1d3   : > { %16191 = vst [vmem:[#allocation16_spill] sm:$0xff] %v14522_v0  ;;  %v4885_v36 = vsel %vm16162_vm14, %v12796_v45, %v12786_v14  ;;  %v4884_v54 = vsel %vm16162_vm14, %v12792_v23, %v12796_v45 }
 0x1d4   : > { %12019 = vmatmul.msk.f32.vlgmr.msra.gmra.mxu0 %vm358_vm1, %v12018_v41 }
 0x1d5   : > { %12022 = vmatmul.msk.f32.vlgmr.msra.gmra.mxu3 %vm358_vm1, %v12018_v41  ;;  %12024 = vmatmul.msk.f32.vlgmr.msrb.gmra.mxu1 %vm358_vm1, %v12018_v41 }
 0x1d6   : > { %4710 = vmatpush.msra.mxu0 %v4676_v17  ;;  %12025 = vmatmul.msk.f32.vlgmr.msrb.gmra.mxu2 %vm358_vm1, %v12018_v41 }
 0x1d7   : > { %4770 = vmatpush.msra.mxu3 %v4679_v10  ;;  %4810 = vmatpush.msrb.mxu1 %v4681_v24  ;;  %v12027_v10 = vld [vmem:[%s16128_s1 + $0xa8] sm:$0xff]  ;;  %v4876_v24 = vpop.permute.xlu0 %4875 }
 0x1d8   : > { %v2929_v39 = vpop.f32.mrf.mxu3  ;;  %4830 = vmatpush.msrb.mxu2 %v4682_v32  ;;  %v4886_v32 = vsel %vm16162_vm14, %v12786_v14, %v12787_v5 }
 0x1d9   : > { %v3015_v28 = vadd.f32 %v2929_v39, %v2807_v57  ;;  %v2989_v15 = vpop.f32.mrf.mxu2  ;;  %v14537_v16 = vpop.f32.mrf.mxu0  ;;  %v4683_v57 = vsel %vm16161_vm15, %v12781_v61, %v12782_v35  ;;  %v12791_v61 = vunpack.i.l.bf16 %v14518_v18  ;;  %v12797_v39 = vunpack.i.h.bf16 %v12795_v22 }
 0x1da   : > { %16192 = vst [vmem:[#allocation17_spill] sm:$0xff] %v14537_v16  ;;  %v3018_v17 = vadd.f32 %v2989_v15, %v2810_v42  ;;  %v14539_v0 = vpop.f32.mrf.mxu1  ;;  %v14550_v42 = vpop.permute.xlu1 %12804  ;;  %v12801_v35 = vunpack.i.l.bf16 %v14532_v9  ;;  %vm16163_vm15 = vcmask 220160  }
 0x1db   : > { %16193 = vst [vmem:[#allocation18_spill] sm:$0xff] %v14539_v0  ;;  %v14557_v14 = vpop.permute.xlu2 %12809  ;;  %v12806_v23 = vunpack.i.l.bf16 %v14550_v42 }
 0x1dc   : > { %12023 = vmatmul.msk.f32.vlgmr.msrb.gmra.mxu0 %vm358_vm1, %v12018_v41  ;;  %v4890_v18 = vsel %vm16162_vm14, %v12797_v39, %v12801_v35 }
 0x1dd   : > { %12026 = vmatmul.msk.f32.vlgmr.msrb.gmra.mxu3 %vm358_vm1, %v12018_v41  ;;  %12029 = vmatmul.msk.f32.vlgmr.msra.gmra.mxu1 %vm358_vm1, %v12027_v10 }
 0x1de   : > { %4790 = vmatpush.msrb.mxu0 %v4680_v7  ;;  %12030 = vmatmul.msk.f32.vlgmr.msra.gmra.mxu2 %vm358_vm1, %v12027_v10 }
 0x1df   : > { %4850 = vmatpush.msrb.mxu3 %v4683_v57  ;;  %4938 = vmatpush.msra.mxu1 %v4885_v36  ;;  %v4887_v57 = vsel %vm16162_vm14, %v12787_v5, %v12791_v61  ;;  %v12815_v22 = vpop.permute.xlu0 %12814  ;;  %v12802_v5 = vunpack.i.h.bf16 %v14532_v9  ;;  %v4888_v9 = vsel %vm16162_vm14, %v12791_v61, %v4876_v24 }
 0x1e0   : > { %v3009_v20 = vpop.f32.mrf.mxu3  ;;  %4958 = vmatpush.msra.mxu2 %v4886_v32  ;;  %v12807_v32 = vunpack.i.h.bf16 %v14550_v42 }
 0x1e1   : > { %v3019_v41 = vadd.f32 %v3009_v20, %v2811_v59  ;;  %v3082_v15 = vpop.f32.mrf.mxu2  ;;  %v14559_v16 = vpop.f32.mrf.mxu0  ;;  %v4889_v59 = vsel %vm16162_vm14, %v4876_v24, %v12797_v39  ;;  %v12816_v20 = vunpack.i.l.bf16 %v12815_v22  ;;  %v12812_v24 = vunpack.i.h.bf16 %v14557_v14 }
 0x1e2   : > { %16194 = vst [vmem:[#allocation19_spill] sm:$0xff] %v14559_v16  ;;  %v3187_v7 = vadd.f32 %v3082_v15, %v3014_v12  ;;  %v14561_v0 = vpop.f32.mrf.mxu1  ;;  %v14571_v12 = vpop.permute.xlu1 %12819 }
 0x1e3   : > { %16195 = vst [vmem:[#allocation20_spill] sm:$0xff] %v14561_v0  ;;  %v5093_v42 = vsel %vm16163_vm15, %v12816_v20, %v12806_v23 }
 0x1e4   : > { %12028 = vmatmul.msk.f32.vlgmr.msra.gmra.mxu0 %vm358_vm1, %v12027_v10 }
 0x1e5   : > { %12031 = vmatmul.msk.f32.vlgmr.msra.gmra.mxu3 %vm358_vm1, %v12027_v10  ;;  %12033 = vmatmul.msk.f32.vlgmr.msrb.gmra.mxu1 %vm358_vm1, %v12027_v10 }
 0x1e6   : > { %4918 = vmatpush.msra.mxu0 %v4884_v54  ;;  %12034 = vmatmul.msk.f32.vlgmr.msrb.gmra.mxu2 %vm358_vm1, %v12027_v10 }
 0x1e7   : > { %4978 = vmatpush.msra.mxu3 %v4887_v57  ;;  %5018 = vmatpush.msrb.mxu1 %v4889_v59  ;;  %v12036_v57 = vld [vmem:[%s16128_s1 + $0xb0] sm:$0xff]  ;;  %v5084_v59 = vpop.permute.xlu2 %5083 }
 0x1e8   : > { %v3102_v45 = vpop.f32.mrf.mxu3  ;;  %5038 = vmatpush.msrb.mxu2 %v4890_v18  ;;  %v5094_v18 = vsel %vm16163_vm15, %v12806_v23, %v12807_v32 }
 0x1e9   : > { %v3188_v36 = vadd.f32 %v3102_v45, %v3015_v28  ;;  %v3162_v39 = vpop.f32.mrf.mxu2  ;;  %v14576_v15 = vpop.f32.mrf.mxu0  ;;  %v4891_v28 = vsel %vm16162_vm14, %v12801_v35, %v12802_v5  ;;  %v12811_v35 = vunpack.i.l.bf16 %v14557_v14  ;;  %v12817_v45 = vunpack.i.h.bf16 %v12815_v22 }
 0x1ea   : > { %16196 = vst [vmem:[#allocation21_spill] sm:$0xff] %v14576_v15  ;;  %v3191_v54 = vadd.f32 %v3162_v39, %v3018_v17  ;;  %v14578_v0 = vpop.f32.mrf.mxu1  ;;  %v14589_v17 = vpop.permute.xlu0 %12824  ;;  %v12821_v5 = vunpack.i.l.bf16 %v14571_v12  ;;  %vm16164_vm14 = vcmask 154624  }
 0x1eb   : > { %16197 = vst [vmem:[#allocation22_spill] sm:$0xff] %v14578_v0  ;;  %v14596_v23 = vpop.permute.xlu1 %12829  ;;  %v5095_v16 = vsel %vm16163_vm15, %v12807_v32, %v12811_v35  ;;  %v12822_v32 = vunpack.i.h.bf16 %v14571_v12  ;;  %v12045_v12 = vld [vmem:[%s16128_s1 + $0xb8] sm:$0xff] }
 0x1ec   : > { %12032 = vmatmul.msk.f32.vlgmr.msrb.gmra.mxu0 %vm358_vm1, %v12027_v10  ;;  %v5098_v14 = vsel %vm16163_vm15, %v12817_v45, %v12821_v5 }
 0x1ed   : > { %12035 = vmatmul.msk.f32.vlgmr.msrb.gmra.mxu3 %vm358_vm1, %v12027_v10  ;;  %12038 = vmatmul.msk.f32.vlgmr.msra.gmra.mxu1 %vm358_vm1, %v12036_v57 }
 0x1ee   : > { %4998 = vmatpush.msrb.mxu0 %v4888_v9  ;;  %12039 = vmatmul.msk.f32.vlgmr.msra.gmra.mxu2 %vm358_vm1, %v12036_v57 }
 0x1ef   : > { %5058 = vmatpush.msrb.mxu3 %v4891_v28  ;;  %5146 = vmatpush.msra.mxu1 %v5093_v42  ;;  %v5092_v28 = vsel %vm16163_vm15, %v12812_v24, %v12816_v20  ;;  %v12835_v22 = vpop.permute.xlu2 %12834  ;;  %v12827_v24 = vunpack.i.h.bf16 %v14589_v17 }
 0x1f0   : > { %v3182_v61 = vpop.f32.mrf.mxu3  ;;  %5166 = vmatpush.msra.mxu2 %v5094_v18  ;;  %v12836_v18 = vunpack.i.l.bf16 %v12835_v22 }
 0x1f1   : > { %v3192_v10 = vadd.f32 %v3182_v61, %v3019_v41  ;;  %v3287_v39 = vpop.f32.mrf.mxu2  ;;  %v14598_v15 = vpop.f32.mrf.mxu0  ;;  %v5097_v41 = vsel %vm16163_vm15, %v5084_v59, %v12817_v45  ;;  %v12826_v61 = vunpack.i.l.bf16 %v14589_v17 }
 0x1f2   : > { %v14600_v9 = vadd.f32 %v3287_v39, %v3187_v7  ;;  %v14602_v0 = vpop.f32.mrf.mxu1  ;;  %v14612_v7 = vpop.permute.xlu0 %12839 }
 0x1f3   : > { %16198 = vst [vmem:[#allocation23_spill] sm:$0xff] %v14602_v0  ;;  %v5301_v17 = vsel %vm16164_vm14, %v12836_v18, %v12826_v61 }
 0x1f4   : > { %12037 = vmatmul.msk.f32.vlgmr.msra.gmra.mxu0 %vm358_vm1, %v12036_v57 }
 0x1f5   : > { %12040 = vmatmul.msk.f32.vlgmr.msra.gmra.mxu3 %vm358_vm1, %v12036_v57  ;;  %12042 = vmatmul.msk.f32.vlgmr.msrb.gmra.mxu1 %vm358_vm1, %v12036_v57 }
 0x1f6   : > { %5126 = vmatpush.msra.mxu0 %v5092_v28  ;;  %12043 = vmatmul.msk.f32.vlgmr.msrb.gmra.mxu2 %vm358_vm1, %v12036_v57 }
 0x1f7   : > { %5186 = vmatpush.msra.mxu3 %v5095_v16  ;;  %5226 = vmatpush.msrb.mxu1 %v5097_v41  ;;  %v5099_v41 = vsel %vm16163_vm15, %v12821_v5, %v12822_v32  ;;  %v12841_v32 = vunpack.i.l.bf16 %v14612_v7 }
 0x1f8   : > { %v3307_v20 = vpop.f32.mrf.mxu3  ;;  %5246 = vmatpush.msrb.mxu2 %v5098_v14  ;;  %v5292_v14 = vpop.permute.xlu1 %5291 }
 0x1f9   : > { %v14615_v42 = vadd.f32 %v3307_v20, %v3188_v36  ;;  %v3367_v45 = vpop.f32.mrf.mxu2  ;;  %v14619_v39 = vpop.f32.mrf.mxu0  ;;  %v5096_v36 = vsel %vm16163_vm15, %v12811_v35, %v5084_v59  ;;  %v12832_v20 = vunpack.i.h.bf16 %v14596_v23  ;;  %v12831_v35 = vunpack.i.l.bf16 %v14596_v23 }
 0x1fa   : > { %16200 = vst [vmem:[#allocation25_spill] sm:$0xff] %v14619_v39  ;;  %v14621_v28 = vadd.f32 %v3367_v45, %v3191_v54  ;;  %v14623_v16 = vpop.f32.mrf.mxu1  ;;  %v5302_v54 = vsel %vm16164_vm14, %v12826_v61, %v12827_v24  ;;  %v14641_v45 = vpop.permute.xlu0 %12849  ;;  %vm16166_vm15 = vcmask 146432  }
 0x1fb   : > { %16199 = vst [vmem:[#allocation24_spill] sm:$0xff] %v14615_v42  ;;  %v5303_v42 = vsel %vm16164_vm14, %v12827_v24, %v12831_v35  ;;  %v12845_v23 = vpop.permute.xlu2 %12844 }
 0x1fc   : > { %16201 = vst [vmem:[#allocation26_spill] sm:$0xff] %v14621_v28  ;;  %12041 = vmatmul.msk.f32.vlgmr.msrb.gmra.mxu0 %vm358_vm1, %v12036_v57 }
 0x1fd   : > { %12044 = vmatmul.msk.f32.vlgmr.msrb.gmra.mxu3 %vm358_vm1, %v12036_v57  ;;  %12047 = vmatmul.msk.f32.vlgmr.msra.gmra.mxu1 %vm358_vm1, %v12045_v12  ;;  %v12837_v57 = vunpack.i.h.bf16 %v12835_v22 }
 0x1fe   : > { %5206 = vmatpush.msrb.mxu0 %v5096_v36  ;;  %12048 = vmatmul.msk.f32.vlgmr.msra.gmra.mxu2 %vm358_vm1, %v12045_v12 }
 0x1ff   : > { %5266 = vmatpush.msrb.mxu3 %v5099_v41  ;;  %5354 = vmatpush.msra.mxu1 %v5301_v17  ;;  %v5300_v41 = vsel %vm16164_vm14, %v12832_v20, %v12836_v18  ;;  %v5306_v22 = vsel %vm16164_vm14, %v12837_v57, %v12841_v32  ;;  %v12842_v18 = vunpack.i.h.bf16 %v14612_v7  ;;  %v12847_v20 = vunpack.i.h.bf16 %v12845_v23 }
 0x200   : > { %v3387_v59 = vpop.f32.mrf.mxu3  ;;  %5374 = vmatpush.msra.mxu2 %v5302_v54  ;;  %v12855_v17 = vpop.permute.xlu1 %12854 }
 0x201   : > { %v14638_v5 = vadd.f32 %v3387_v59, %v3192_v10  ;;  %v14643_v61 = vpop.f32.mrf.mxu2  ;;  %v14645_v36 = vpop.f32.mrf.mxu0  ;;  %v5305_v10 = vsel %vm16164_vm14, %v5292_v14, %v12837_v57  ;;  %v12856_v24 = vunpack.i.l.bf16 %v12855_v17  ;;  %v12846_v59 = vunpack.i.l.bf16 %v12845_v23 }
 0x202   : > { %v14647_v28 = vpop.f32.mrf.mxu1  ;;  %v5307_v7 = vsel %vm16164_vm14, %v12841_v32, %v12842_v18 }
 0x203   : > { %16202 = vst [vmem:[#allocation27_spill] sm:$0xff] %v14638_v5  ;;  %v5509_v23 = vsel %vm16166_vm15, %v12856_v24, %v12846_v59 }
 0x204   : > { %16203 = vst [vmem:[#allocation28_spill] sm:$0xff] %v14647_v28  ;;  %12046 = vmatmul.msk.f32.vlgmr.msra.gmra.mxu0 %vm358_vm1, %v12045_v12 }
 0x205   : > { %12049 = vmatmul.msk.f32.vlgmr.msra.gmra.mxu3 %vm358_vm1, %v12045_v12  ;;  %12051 = vmatmul.msk.f32.vlgmr.msrb.gmra.mxu1 %vm358_vm1, %v12045_v12 }
 0x206   : > { %5334 = vmatpush.msra.mxu0 %v5300_v41  ;;  %12052 = vmatmul.msk.f32.vlgmr.msrb.gmra.mxu2 %vm358_vm1, %v12045_v12  ;;  %v5304_v41 = vsel %vm16164_vm14, %v12831_v35, %v5292_v14  ;;  %v12851_v35 = vunpack.i.l.bf16 %v14641_v45  ;;  %vm16165_vm14 = vcmask 138240  }
 0x207   : > { %5394 = vmatpush.msra.mxu3 %v5303_v42  ;;  %5434 = vmatpush.msrb.mxu1 %v5305_v10  ;;  %v12054_v42 = vld [vmem:[%s16128_s1 + $0xc0] sm:$0xff]  ;;  %v5500_v10 = vpop.permute.xlu0 %5499 }
 0x208   : > { %v14657_v54 = vpop.f32.mrf.mxu3  ;;  %5454 = vmatpush.msrb.mxu2 %v5306_v22  ;;  %v5510_v22 = vsel %vm16166_vm15, %v12846_v59, %v12847_v20  ;;  %v5511_v39 = vsel %vm16166_vm15, %v12847_v20, %v12851_v35  ;;  %v12865_v0 = vpop.permute.xlu1 %12864 }
 0x209   : > { %16204 = vst [vmem:[#allocation29_spill] sm:$0xff] %v14657_v54  ;;  %v14660_v5 = vpop.f32.mrf.mxu2  ;;  %v14662_v28 = vpop.f32.mrf.mxu0  ;;  %v12867_v20 = vunpack.i.h.bf16 %v12865_v0 }
 0x20a   : > { %16205 = vst [vmem:[#allocation30_spill] sm:$0xff] %v14660_v5  ;;  %v14664_v57 = vpop.f32.mrf.mxu1  ;;  %v12852_v5 = vunpack.i.h.bf16 %v14641_v45 }
 0x20b   : > { %16206 = vst [vmem:[#allocation31_spill] sm:$0xff] %v14662_v28  ;;  %v12860_v28 = vpop.permute.xlu2 %12859 }
 0x20c   : > { %12050 = vmatmul.msk.f32.vlgmr.msrb.gmra.mxu0 %vm358_vm1, %v12045_v12  ;;  %v12861_v32 = vunpack.i.l.bf16 %v12860_v28 }
 0x20d   : > { %12053 = vmatmul.msk.f32.vlgmr.msrb.gmra.mxu3 %vm358_vm1, %v12045_v12  ;;  %12056 = vmatmul.msk.f32.vlgmr.msra.gmra.mxu1 %vm358_vm1, %v12054_v42  ;;  %v12857_v12 = vunpack.i.h.bf16 %v12855_v17 }
 0x20e   : > { %5414 = vmatpush.msrb.mxu0 %v5304_v41  ;;  %12057 = vmatmul.msk.f32.vlgmr.msra.gmra.mxu2 %vm358_vm1, %v12054_v42  ;;  %v5508_v41 = vsel %vm16166_vm15, %v12852_v5, %v12856_v24  ;;  %v12862_v24 = vunpack.i.h.bf16 %v12860_v28 }
 0x20f   : > { %5474 = vmatpush.msrb.mxu3 %v5307_v7  ;;  %5562 = vmatpush.msra.mxu1 %v5509_v23  ;;  %v5513_v45 = vsel %vm16166_vm15, %v5500_v10, %v12857_v12  ;;  %v5514_v17 = vsel %vm16166_vm15, %v12857_v12, %v12861_v32  ;;  %v12875_v7 = vpop.permute.xlu0 %12874 }
 0x210   : > { %v14678_v14 = vpop.f32.mrf.mxu3  ;;  %5582 = vmatpush.msra.mxu2 %v5510_v22  ;;  %v12866_v22 = vunpack.i.l.bf16 %v12865_v0  ;;  %v5515_v28 = vsel %vm16166_vm15, %v12861_v32, %v12862_v24 }
 0x211   : > { %16207 = vst [vmem:[#allocation32_spill] sm:$0xff] %v14678_v14  ;;  %v14681_v18 = vpop.f32.mrf.mxu2  ;;  %v14683_v59 = vpop.f32.mrf.mxu0 }
 0x212   : > { %16208 = vst [vmem:[#allocation33_spill] sm:$0xff] %v14681_v18  ;;  %v14685_v54 = vpop.f32.mrf.mxu1 }
 0x213   : > { %16209 = vst [vmem:[#allocation34_spill] sm:$0xff] %v14685_v54  ;;  %v12870_v23 = vpop.permute.xlu2 %12869  ;;  %v12876_v54 = vunpack.i.l.bf16 %v12875_v7 }
 0x214   : > { %12055 = vmatmul.msk.f32.vlgmr.msra.gmra.mxu0 %vm358_vm1, %v12054_v42 }
 0x215   : > { %12058 = vmatmul.msk.f32.vlgmr.msra.gmra.mxu3 %vm358_vm1, %v12054_v42  ;;  %12060 = vmatmul.msk.f32.vlgmr.msrb.gmra.mxu1 %vm358_vm1, %v12054_v42  ;;  %v5717_v0 = vsel %vm16165_vm14, %v12876_v54, %v12866_v22 }
 0x216   : > { %5542 = vmatpush.msra.mxu0 %v5508_v41  ;;  %12061 = vmatmul.msk.f32.vlgmr.msrb.gmra.mxu2 %vm358_vm1, %v12054_v42  ;;  %v5512_v41 = vsel %vm16166_vm15, %v12851_v35, %v5500_v10  ;;  %v12871_v10 = vunpack.i.l.bf16 %v12870_v23  ;;  %v12877_v35 = vunpack.i.h.bf16 %v12875_v7  ;;  %vm5936_vm15 = vcmask 850944  }
 0x217   : > { %5602 = vmatpush.msra.mxu3 %v5511_v39  ;;  %5642 = vmatpush.msrb.mxu1 %v5513_v45  ;;  %v12063_v39 = vld [vmem:[%s16128_s1 + $0xc8] sm:$0xff]  ;;  %v5718_v45 = vsel %vm16165_vm14, %v12866_v22, %v12867_v20 }
 0x218   : > { %v14695_v5 = vpop.f32.mrf.mxu3  ;;  %5662 = vmatpush.msrb.mxu2 %v5514_v17  ;;  %v12880_v17 = vpop.permute.xlu1 %12879 }
 0x219   : > { %16210 = vst [vmem:[#allocation35_spill] sm:$0xff] %v14695_v5  ;;  %v14697_v14 = vpop.f32.mrf.mxu2  ;;  %v14699_v18 = vpop.f32.mrf.mxu0  ;;  %v12881_v32 = vunpack.i.l.bf16 %v12880_v17 }
 0x21a   : > { %16211 = vst [vmem:[#allocation36_spill] sm:$0xff] %v14697_v14  ;;  %v14701_v12 = vpop.f32.mrf.mxu1 }
 0x21b   : > { %16212 = vst [vmem:[#allocation37_spill] sm:$0xff] %v14699_v18  ;;  %v12872_v18 = vunpack.i.h.bf16 %v12870_v23  ;;  %v5722_v7 = vsel %vm16165_vm14, %v12877_v35, %v12881_v32 }
 0x21c   : > { %16213 = vst [vmem:[#allocation38_spill] sm:$0xff] %v14701_v12  ;;  %12059 = vmatmul.msk.f32.vlgmr.msrb.gmra.mxu0 %vm358_vm1, %v12054_v42  ;;  %v5719_v12 = vsel %vm16165_vm14, %v12867_v20, %v12871_v10 }
 0x21d   : > { %12062 = vmatmul.msk.f32.vlgmr.msrb.gmra.mxu3 %vm358_vm1, %v12054_v42  ;;  %12065 = vmatmul.msk.f32.vlgmr.msra.gmra.mxu1 %vm358_vm1, %v12063_v39  ;;  %v5708_v42 = vpop.permute.xlu2 %5707 }
 0x21e   : > { %5622 = vmatpush.msrb.mxu0 %v5512_v41  ;;  %12066 = vmatmul.msk.f32.vlgmr.msra.gmra.mxu2 %vm358_vm1, %v12063_v39  ;;  %v5716_v41 = vsel %vm16165_vm14, %v12872_v18, %v12876_v54  ;;  %v5721_v23 = vsel %vm16165_vm14, %v5708_v42, %v12877_v35  ;;  %v5720_v35 = vsel %vm16165_vm14, %v12871_v10, %v5708_v42 }
 0x21f   : > { %5682 = vmatpush.msrb.mxu3 %v5515_v28  ;;  %5770 = vmatpush.msra.mxu1 %v5717_v0  ;;  %v12882_v0 = vunpack.i.h.bf16 %v12880_v17 }
 0x220   : > { %v14714_v14 = vpop.f32.mrf.mxu3  ;;  %5790 = vmatpush.msra.mxu2 %v5718_v45  ;;  %v12072_v45 = vld [vmem:[%s16128_s1 + $0xd0] sm:$0xff] }
 0x221   : > { %16214 = vst [vmem:[#allocation39_spill] sm:$0xff] %v14714_v14  ;;  %v14716_v24 = vpop.f32.mrf.mxu2  ;;  %v14718_v5 = vpop.f32.mrf.mxu0 }
 0x222   : > { %v14720_v22 = vpop.f32.mrf.mxu1 }
 0x223   : > { %16215 = vst [vmem:[#allocation40_spill] sm:$0xff] %v14720_v22 }
 0x224   : > { %12064 = vmatmul.msk.f32.vlgmr.msra.gmra.mxu0 %vm358_vm1, %v12063_v39 }
 0x225   : > { %12067 = vmatmul.msk.f32.vlgmr.msra.gmra.mxu3 %vm358_vm1, %v12063_v39  ;;  %12069 = vmatmul.msk.f32.vlgmr.msrb.gmra.mxu1 %vm358_vm1, %v12063_v39 }
 0x226   : > { %5750 = vmatpush.msra.mxu0 %v5716_v41  ;;  %12070 = vmatmul.msk.f32.vlgmr.msrb.gmra.mxu2 %vm358_vm1, %v12063_v39  ;;  %v5723_v41 = vsel %vm16165_vm14, %v12881_v32, %v12882_v0  ;;  %vm6055_vm14 = vcmask 1048384  }
 0x227   : > { %5810 = vmatpush.msra.mxu3 %v5719_v12  ;;  %5850 = vmatpush.msrb.mxu1 %v5721_v23 }
 0x228   : > { %v14730_v28 = vpop.f32.mrf.mxu3  ;;  %5870 = vmatpush.msrb.mxu2 %v5722_v7 }
 0x229   : > { %v14732_v54 = vpop.f32.mrf.mxu2  ;;  %v14734_v18 = vpop.f32.mrf.mxu0 }
 0x22a   : > { %16216 = vst [vmem:[#allocation41_spill] sm:$0xff] %v14732_v54  ;;  %v14736_v20 = vpop.f32.mrf.mxu1 }
 0x22b   : > { %16217 = vst [vmem:[#allocation42_spill] sm:$0xff] %v14734_v18 }
 0x22c   : > { %12068 = vmatmul.msk.f32.vlgmr.msrb.gmra.mxu0 %vm358_vm1, %v12063_v39 }
 0x22d   : > { %12071 = vmatmul.msk.f32.vlgmr.msrb.gmra.mxu3 %vm358_vm1, %v12063_v39  ;;  %12074 = vmatmul.msk.f32.vlgmr.msra.gmra.mxu1 %vm358_vm1, %v12072_v45 }
 0x22e   : > { %5830 = vmatpush.msrb.mxu0 %v5720_v35  ;;  %12075 = vmatmul.msk.f32.vlgmr.msra.gmra.mxu2 %vm358_vm1, %v12072_v45 }
 0x22f   : > { %5890 = vmatpush.msrb.mxu3 %v5723_v41 }
 0x230   : > { %v14747_v12 = vpop.f32.mrf.mxu3 }
 0x231   : > { %16218 = vst [vmem:[#allocation43_spill] sm:$0xff] %v14747_v12  ;;  %v14749_v17 = vpop.f32.mrf.mxu2  ;;  %v14751_v23 = vpop.f32.mrf.mxu0 }
 0x232   : > { %v14753_v7 = vpop.f32.mrf.mxu1 }
 0x233   : > { %16219 = vst [vmem:[#allocation44_spill] sm:$0xff] %v14753_v7 }
 0x234   : > { %12073 = vmatmul.msk.f32.vlgmr.msra.gmra.mxu0 %vm358_vm1, %v12072_v45 }
 0x235   : > { %12076 = vmatmul.msk.f32.vlgmr.msra.gmra.mxu3 %vm358_vm1, %v12072_v45  ;;  %12078 = vmatmul.msk.f32.vlgmr.msrb.gmra.mxu1 %vm358_vm1, %v12072_v45 }
 0x236   : > { %12079 = vmatmul.msk.f32.vlgmr.msrb.gmra.mxu2 %vm358_vm1, %v12072_v45 }
 0x238   : > { %v14759_v39 = vpop.f32.mrf.mxu3 }
 0x239   : > { %16220 = vst [vmem:[#allocation45_spill] sm:$0xff] %v14759_v39  ;;  %v14761_v10 = vpop.f32.mrf.mxu2  ;;  %v14763_v32 = vpop.f32.mrf.mxu0 }
 0x23a   : > { %16221 = vst [vmem:[#allocation46_spill] sm:$0xff] %v14761_v10  ;;  %v14765_v42 = vpop.f32.mrf.mxu1 }
 0x23b   : > { %16222 = vst [vmem:[#allocation47_spill] sm:$0xff] %v14763_v32 }
 0x23c   : > { %12077 = vmatmul.msk.f32.vlgmr.msrb.gmra.mxu0 %vm358_vm1, %v12072_v45 }
 0x23d   : > { %12080 = vmatmul.msk.f32.vlgmr.msrb.gmra.mxu3 %vm358_vm1, %v12072_v45 }
 0x240   : > { %v14769_v0 = vpop.f32.mrf.mxu3 }
 0x241   : > { %16223 = vst [vmem:[#allocation48_spill] sm:$0xff] %v14769_v0  ;;  %v14771_v35 = vpop.f32.mrf.mxu2  ;;  %v14773_v41 = vpop.f32.mrf.mxu0 }
 0x242   : > { %16224 = vst [vmem:[#allocation49_spill] sm:$0xff] %v14771_v35  ;;  %v14775_v7 = vpop.f32.mrf.mxu1 }
 0x243   : > { %16225 = vst [vmem:[#allocation50_spill] sm:$0xff] %v14775_v7 }
 0x248   : > { %v14777_v12 = vpop.f32.mrf.mxu3 }
 0x249   : > { %16226 = vst [vmem:[#allocation51_spill] sm:$0xff] %v14777_v12  ;;  %v14779_v54 = vpop.f32.mrf.mxu2  ;;  %v14781_v10 = vpop.f32.mrf.mxu0 }
 0x24a   : > { %16227 = vst [vmem:[#allocation52_spill] sm:$0xff] %v14779_v54  ;;  %v14783_v32 = vpop.f32.mrf.mxu1 }
 0x24b   : > { %16228 = vst [vmem:[#allocation53_spill] sm:$0xff] %v14781_v10 }
 0x250   : > { %v14785_v39 = vpop.f32.mrf.mxu3 }
 0x251   : > { %16229 = vst [vmem:[#allocation54_spill] sm:$0xff] %v14785_v39  ;;  %v14787_v18 = vpop.f32.mrf.mxu2  ;;  %v14789_v45 = vpop.f32.mrf.mxu0 }
 0x252   : > { %16230 = vst [vmem:[#allocation55_spill] sm:$0xff] %v14787_v18  ;;  %v14791_v0 = vpop.f32.mrf.mxu1 }
 0x253   : > { %16231 = vst [vmem:[#allocation56_spill] sm:$0xff] %v14789_v45 }
 0x254   : > { %16232 = vst [vmem:[#allocation57_spill] sm:$0xff] %v14791_v0 }
 0x258   : > { %v14793_v22 = vpop.f32.mrf.mxu3 }
 0x259   : > { %16233 = vst [vmem:[#allocation58_spill] sm:$0xff] %v14793_v22  ;;  %v14795_v35 = vpop.f32.mrf.mxu2  ;;  %v14797_v7 = vpop.f32.mrf.mxu0 }
 0x25a   : > { %16234 = vst [vmem:[#allocation59_spill] sm:$0xff] %v14795_v35  ;;  %v14799_v12 = vpop.f32.mrf.mxu1 }
 0x25b   : > { %16235 = vst [vmem:[#allocation60_spill] sm:$0xff] %v14797_v7 }
 0x25c   : > { %16236 = vst [vmem:[#allocation61_spill] sm:$0xff] %v14799_v12 }
 0x260   : > { %v14801_v54 = vpop.f32.mrf.mxu3 }
 0x261   : > { %16237 = vst [vmem:[#allocation62_spill] sm:$0xff] %v14801_v54  ;;  %v14803_v10 = vpop.f32.mrf.mxu2  ;;  %v14805_v14 = vpop.f32.mrf.mxu0 }
 0x262   : > { %16238 = vst [vmem:[#allocation63_spill] sm:$0xff] %v14803_v10  ;;  %v14807_v39 = vpop.f32.mrf.mxu1 }
 0x263   : > { %16239 = vst [vmem:[#allocation64_spill] sm:$0xff] %v14805_v14 }
 0x264   : > { %16240 = vst [vmem:[#allocation65_spill] sm:$0xff] %v14807_v39 }
 0x268   : > { %v14809_v18 = vpop.f32.mrf.mxu3 }
 0x269   : > { %16241 = vst [vmem:[#allocation66_spill] sm:$0xff] %v14809_v18  ;;  %v14811_v45 = vpop.f32.mrf.mxu2  ;;  %v14813_v0 = vpop.f32.mrf.mxu0 }
 0x26a   : > { %16242 = vst [vmem:[#allocation67_spill] sm:$0xff] %v14811_v45  ;;  %v14815_v22 = vpop.f32.mrf.mxu1  ;;  %v595_v45 = vadd.f32 %v13992_v11, %v13933_v38  ;;  %v675_v11 = vadd.f32 %v14028_v34, %v13959_v49 }
 0x26b   : > { %16243 = vst [vmem:[#allocation68_spill] sm:$0xff] %v14813_v0 }
 0x270   : > { %v14817_v35 = vpop.f32.mrf.mxu3 }
 0x271   : > { %16244 = vst [vmem:[#allocation69_spill] sm:$0xff] %v14817_v35  ;;  %v14819_v7 = vpop.f32.mrf.mxu2  ;;  %v14821_v12 = vpop.f32.mrf.mxu0  ;;  %v575_v35 = vadd.f32 %v14025_v31, %v13955_v48 }
 0x272   : > { %16245 = vst [vmem:[#allocation70_spill] sm:$0xff] %v14819_v7  ;;  %v14823_v54 = vpop.f32.mrf.mxu1  ;;  %v915_v7 = vadd.f32 %v14055_v46, %v595_v45  ;;  %v655_v46 = vadd.f32 %v14052_v44, %v13990_v6 }
 0x273   : > { %16246 = vst [vmem:[#allocation71_spill] sm:$0xff] %v14821_v12 }
 0x274   : > { %16247 = vst [vmem:[#allocation72_spill] sm:$0xff] %v14823_v54 }
 0x278   : > { %v14825_v10 = vpop.f32.mrf.mxu3 }
 0x279   : > { %16248 = vst [vmem:[#allocation73_spill] sm:$0xff] %v14825_v10  ;;  %v14827_v14 = vpop.f32.mrf.mxu2  ;;  %v14829_v39 = vpop.f32.mrf.mxu0 }
 0x27a   : > { %16249 = vst [vmem:[#allocation74_spill] sm:$0xff] %v14827_v14  ;;  %v14831_v18 = vpop.f32.mrf.mxu1  ;;  %v914_v14 = vadd.f32 %v14076_v62, %v575_v35  ;;  %v919_v62 = vadd.f32 %v14078_v4, %v675_v11  ;;  %v16254_v11 = vld [vmem:[#allocation4_spill] sm:$0xff] }
 0x27b   : > { %16250 = vst [vmem:[#allocation75_spill] sm:$0xff] %v14829_v39  ;;  %v1141_v39 = vadd.f32 %v14096_v33, %v915_v7 }
 0x27c   : > { %16251 = vst [vmem:[#allocation76_spill] sm:$0xff] %v14831_v18  ;;  %v1140_v18 = vadd.f32 %v14115_v43, %v914_v14  ;;  %v1145_v14 = vadd.f32 %v14117_v47, %v919_v62  ;;  %v16258_v62 = vld [vmem:[#allocation6_spill] sm:$0xff] }
 0x27d   : > { %v1349_v38 = vadd.f32 %v14135_v58, %v1141_v39  ;;  %v918_v58 = vadd.f32 %v14094_v29, %v655_v46  ;;  %v16257_v46 = vld [vmem:[#allocation5_spill] sm:$0xff] }
 0x27e   : > { %v1348_v48 = vadd.f32 %v14154_v19, %v1140_v18 }
 0x27f   : > { %v1557_v31 = vadd.f32 %v14180_v40, %v1349_v38  ;;  %v1144_v4 = vadd.f32 %v14131_v55, %v918_v58  ;;  %v1353_v40 = vadd.f32 %v14158_v21, %v1145_v14  ;;  %v16260_v14 = vld [vmem:[#allocation18_spill] sm:$0xff] }
 0x280   : > { %v14835_v0 = vpop.f32.mrf.mxu3  ;;  %v1556_v33 = vadd.f32 %v14203_v60, %v1348_v48  ;;  %v16255_v48 = vld [vmem:[#allocation11_spill] sm:$0xff] }
 0x281   : > { %v14840_v12 = vpop.f32.mrf.mxu2  ;;  %v14842_v54 = vpop.f32.mrf.mxu0  ;;  %v1765_v43 = vadd.f32 %v14227_v37, %v1557_v31  ;;  %v1352_v47 = vadd.f32 %v14176_v8, %v1144_v4  ;;  %v1561_v37 = vadd.f32 %v14207_v63, %v1353_v40  ;;  %v16256_v31 = vld [vmem:[#allocation14_spill] sm:$0xff]  ;;  %v16262_v4 = vld [vmem:[#allocation8_spill] sm:$0xff] }
 0x282   : > { %v14846_v10 = vpop.f32.mrf.mxu1  ;;  %v1764_v19 = vadd.f32 %v14251_v1, %v1556_v33 }
 0x283   : > { %v1973_v6 = vadd.f32 %v14275_v27, %v1765_v43  ;;  %v1560_v27 = vadd.f32 %v14223_v30, %v1352_v47  ;;  %v1769_v7 = vadd.f32 %v14253_v53, %v1561_v37  ;;  %v16253_v53 = vld [vmem:[#allocation3_spill] sm:$0xff]  ;;  %v16264_v37 = vld [vmem:[#allocation22_spill] sm:$0xff] }
 0x284   : > { %v1972_v60 = vadd.f32 %v14299_v51, %v1764_v19  ;;  %v16259_v43 = vld [vmem:[#allocation15_spill] sm:$0xff] }
 0x285   : > { %v2181_v29 = vadd.f32 %v14325_v2, %v1973_v6  ;;  %v1768_v51 = vadd.f32 %v14271_v26, %v1560_v27  ;;  %v1977_v8 = vadd.f32 %v14303_v52, %v1769_v7  ;;  %v16261_v19 = vld [vmem:[#allocation7_spill] sm:$0xff]  ;;  %v16266_v7 = vld [vmem:[#allocation12_spill] sm:$0xff] }
 0x286   : > { %v2180_v18 = vadd.f32 %v14349_v3, %v1972_v60 }
 0x287   : > { %v2389_v1 = vadd.f32 %v14373_v13, %v2181_v29  ;;  %v16252_v13 = vld [vmem:[#allocation10_spill] sm:$0xff]  ;;  %v1976_v38 = vadd.f32 %v16253_v53, %v1768_v51  ;;  %v16263_v29 = vld [vmem:[#allocation19_spill] sm:$0xff] }
 0x288   : > { %v14857_v35 = vpop.f32.mrf.mxu3  ;;  %v2388_v55 = vadd.f32 %v14396_v50, %v2180_v18  ;;  %v2185_v50 = vadd.f32 %v16254_v11, %v1977_v8 }
 0x289   : > { %v14863_v49 = vpop.f32.mrf.mxu2  ;;  %v14865_v34 = vpop.f32.mrf.mxu0  ;;  %v2597_v21 = vadd.f32 %v14417_v56, %v2389_v1  ;;  %v2184_v52 = vadd.f32 %v16257_v46, %v1976_v38  ;;  %v16265_v1 = vld [vmem:[#allocation9_spill] sm:$0xff]  ;;  %v16268_v38 = vld [vmem:[#allocation16_spill] sm:$0xff] }
 0x28a   : > { %v14869_v44 = vpop.f32.mrf.mxu1  ;;  %v2596_v3 = vadd.f32 %v14440_v25, %v2388_v55  ;;  %v2393_v33 = vadd.f32 %v16258_v62, %v2185_v50 }
 0x28b   : > { %v2805_v30 = vadd.f32 %v16252_v13, %v2597_v21  ;;  %v2392_v6 = vadd.f32 %v16261_v19, %v2184_v52  ;;  %v3597_v52 = vadd.f32 %v14643_v61, %v14600_v9  ;;  %v16277_v61 = vld [vmem:[#allocation24_spill] sm:$0xff] }
 0x28c   : > { %v2804_v56 = vadd.f32 %v16255_v48, %v2596_v3  ;;  %v2601_v40 = vadd.f32 %v16262_v4, %v2393_v33  ;;  %v16272_v33 = vld [vmem:[#allocation21_spill] sm:$0xff] }
 0x28d   : > { %v3013_v26 = vadd.f32 %v16256_v31, %v2805_v30  ;;  %v2600_v27 = vadd.f32 %v16265_v1, %v2392_v6  ;;  %v16267_v30 = vld [vmem:[#allocation13_spill] sm:$0xff]  ;;  %v16279_v1 = vld [vmem:[#allocation26_spill] sm:$0xff] }
 0x28e   : > { %v3012_v58 = vadd.f32 %v16259_v43, %v2804_v56  ;;  %v2809_v55 = vadd.f32 %v16266_v7, %v2601_v40  ;;  %v16269_v56 = vld [vmem:[#allocation17_spill] sm:$0xff] }
 0x28f   : > { %v3186_v25 = vadd.f32 %v16260_v14, %v3013_v26  ;;  %v2808_v53 = vadd.f32 %v16267_v30, %v2600_v27  ;;  %v16270_v26 = vld [vmem:[#allocation20_spill] sm:$0xff]  ;;  %v16275_v4 = vld [vmem:[#allocation25_spill] sm:$0xff]  ;;  %v16280_v27 = vld [vmem:[#allocation30_spill] sm:$0xff] }
 0x290   : > { %v14881_v39 = vpop.f32.mrf.mxu3  ;;  %v3185_v47 = vadd.f32 %v16263_v29, %v3012_v58  ;;  %v3017_v11 = vadd.f32 %v16268_v38, %v2809_v55  ;;  %v16273_v58 = vld [vmem:[#allocation23_spill] sm:$0xff]  ;;  %v16276_v29 = vld [vmem:[#allocation28_spill] sm:$0xff]  ;;  %v3601_v7 = vadd.f32 %v16280_v27, %v16279_v1 }
 0x291   : > { %v14887_v2 = vpop.f32.mrf.mxu2  ;;  %v14889_v63 = vpop.f32.mrf.mxu0  ;;  %v3391_v18 = vadd.f32 %v16264_v37, %v3186_v25  ;;  %v3016_v31 = vadd.f32 %v16269_v56, %v2808_v53  ;;  %v16282_v30 = vld [vmem:[#allocation27_spill] sm:$0xff]  ;;  %v16283_v53 = vld [vmem:[#allocation32_spill] sm:$0xff] }
 0x292   : > { %v14893_v45 = vpop.f32.mrf.mxu1  ;;  %v3390_v8 = vadd.f32 %v14598_v15, %v3185_v47  ;;  %v3190_v46 = vadd.f32 %v16270_v26, %v3017_v11  ;;  %v3602_v38 = vadd.f32 %v16283_v53, %v16282_v30  ;;  %v16284_v11 = vld [vmem:[#allocation34_spill] sm:$0xff]  ;;  %v16286_v26 = vld [vmem:[#allocation36_spill] sm:$0xff]  ;;  %v16301_v53 = vld [vmem:[#allocation51_spill] sm:$0xff] }
 0x293   : > { %v3596_v3 = vadd.f32 %v14623_v16, %v3391_v18  ;;  %v16271_v16 = vld [vmem:[#allocation38_spill] sm:$0xff]  ;;  %v3189_v43 = vadd.f32 %v16272_v33, %v3016_v31  ;;  %v16297_v1 = vld [vmem:[#allocation64_spill] sm:$0xff] }
 0x294   : > { %v3595_v50 = vadd.f32 %v14645_v36, %v3390_v8  ;;  %v3395_v14 = vadd.f32 %v16273_v58, %v3190_v46  ;;  %v16274_v36 = vld [vmem:[#allocation33_spill] sm:$0xff]  ;;  %v16281_v8 = vld [vmem:[#allocation31_spill] sm:$0xff]  ;;  %v3806_v46 = vadd.f32 %v16286_v26, %v3601_v7 }
 0x295   : > { %v3801_v48 = vadd.f32 %v14664_v57, %v3596_v3  ;;  %v3802_v19 = vadd.f32 %v16274_v36, %v3597_v52  ;;  %v3394_v40 = vadd.f32 %v16275_v4, %v3189_v43  ;;  %v16289_v43 = vld [vmem:[#allocation49_spill] sm:$0xff]  ;;  %v16303_v26 = vld [vmem:[#allocation63_spill] sm:$0xff] }
 0x296   : > { %v3800_v15 = vadd.f32 %v14683_v59, %v3595_v50  ;;  %v3600_v9 = vadd.f32 %v16276_v29, %v3395_v14  ;;  %v16278_v59 = vld [vmem:[#allocation29_spill] sm:$0xff]  ;;  %v16290_v14 = vld [vmem:[#allocation56_spill] sm:$0xff] }
 0x297   : > { %v4006_v62 = vadd.f32 %v16271_v16, %v3801_v48  ;;  %v3598_v47 = vadd.f32 %v16278_v59, %v16277_v61  ;;  %v4007_v55 = vadd.f32 %v14716_v24, %v3802_v19  ;;  %v3599_v3 = vadd.f32 %v16281_v8, %v3394_v40  ;;  %v16285_v48 = vld [vmem:[#allocation35_spill] sm:$0xff]  ;;  %v16291_v19 = vld [vmem:[#allocation61_spill] sm:$0xff] }
 0x298   : > { %v14905_v60 = vpop.f32.mrf.mxu3  ;;  %v4005_v57 = vadd.f32 %v14718_v5, %v3800_v15  ;;  %v3805_v50 = vadd.f32 %v16284_v11, %v3600_v9  ;;  %v13462_v9 = vmov 0.0   ;;  %v16296_v59 = vld [vmem:[#allocation55_spill] sm:$0xff] }
 0x299   : > { %v14911_v21 = vpop.f32.mrf.mxu2  ;;  %v14913_v51 = vpop.f32.mrf.mxu0  ;;  %v4232_v6 = vadd.f32 %v14736_v20, %v4006_v62  ;;  %v3803_v56 = vadd.f32 %v16285_v48, %v3598_v47  ;;  %v4233_v52 = vadd.f32 %v14749_v17, %v4007_v55  ;;  %v16288_v62 = vld [vmem:[#allocation39_spill] sm:$0xff]  ;;  %v16293_v17 = vld [vmem:[#allocation42_spill] sm:$0xff]  ;;  %6056 = vst.msk [vmem:[#allocation2 + $0x40] sm:$0xff] %vm6055_vm14, %v13462_v9 }
 0x29a   : > { %v14917_v13 = vpop.f32.mrf.mxu1  ;;  %v4231_v5 = vadd.f32 %v14751_v23, %v4005_v57  ;;  %v3807_v33 = vadd.f32 %v16288_v62, %v3602_v38  ;;  %6057 = vst.msk [vmem:[#allocation2 + $0x48] sm:$0xff] %vm5936_vm15, %v13462_v9  ;;  %v16298_v55 = vld [vmem:[#allocation43_spill] sm:$0xff]  ;;  %v16302_v48 = vld [vmem:[#allocation46_spill] sm:$0xff]  ;;  %v16313_v9 = vld [vmem:[#allocation57_spill] sm:$0xff] }
 0x29b   : > { %v4440_v20 = vadd.f32 %v14765_v42, %v4232_v6  ;;  %v16287_v42 = vld [vmem:[#allocation37_spill] sm:$0xff]  ;;  %v4008_v16 = vadd.f32 %v14730_v28, %v3803_v56  ;;  %v4441_v58 = vadd.f32 %v16289_v43, %v4233_v52  ;;  %v16292_v6 = vld [vmem:[#allocation40_spill] sm:$0xff]  ;;  %v16304_v52 = vld [vmem:[#allocation71_spill] sm:$0xff] }
 0x29c   : > { %v4439_v24 = vadd.f32 %v14773_v41, %v4231_v5  ;;  %v3804_v15 = vadd.f32 %v16287_v42, %v3599_v3  ;;  %v4010_v4 = vadd.f32 %v16292_v6, %v3805_v50  ;;  %v16294_v41 = vld [vmem:[#allocation45_spill] sm:$0xff]  ;;  %v4012_v5 = vadd.f32 %v16298_v55, %v3807_v33  ;;  %v16300_v3 = vld [vmem:[#allocation47_spill] sm:$0xff]  ;;  %v16306_v42 = vld [vmem:[#allocation48_spill] sm:$0xff] }
 0x29d   : > { %v4648_v23 = vadd.f32 %v14783_v32, %v4440_v20  ;;  %v4234_v29 = vadd.f32 %v16294_v41, %v4008_v16  ;;  %v16295_v28 = vld [vmem:[#allocation41_spill] sm:$0xff]  ;;  %v4649_v47 = vadd.f32 %v16296_v59, %v4441_v58  ;;  %v16299_v20 = vld [vmem:[#allocation44_spill] sm:$0xff]  ;;  %v16307_v16 = vld [vmem:[#allocation50_spill] sm:$0xff] }
 0x29e   : > { %v4647_v36 = vadd.f32 %v16290_v14, %v4439_v24  ;;  %v4009_v40 = vadd.f32 %v16293_v17, %v3804_v15  ;;  %v4011_v61 = vadd.f32 %v16295_v28, %v3806_v46  ;;  %v4236_v8 = vadd.f32 %v16299_v20, %v4010_v4  ;;  %v16308_v33 = vld [vmem:[#allocation53_spill] sm:$0xff]  ;;  %v16309_v58 = vld [vmem:[#allocation58_spill] sm:$0xff] }
 0x29f   : > { %v4856_v57 = vadd.f32 %v16291_v19, %v4648_v23  ;;  %v4442_v38 = vadd.f32 %v16301_v53, %v4234_v29  ;;  %v4857_v46 = vadd.f32 %v16303_v26, %v4649_v47  ;;  %v4238_v15 = vadd.f32 %v16306_v42, %v4012_v5  ;;  %v16312_v41 = vld [vmem:[#allocation54_spill] sm:$0xff]  ;;  %v16317_v20 = vld [vmem:[#allocation65_spill] sm:$0xff] }
 0x2a0   : > { %v14931_v25 = vpop.f32.mrf.mxu3  ;;  %v4855_v27 = vadd.f32 %v16297_v1, %v4647_v36  ;;  %v4235_v30 = vadd.f32 %v16300_v3, %v4009_v40  ;;  %v4237_v56 = vadd.f32 %v16302_v48, %v4011_v61  ;;  %v4444_v62 = vadd.f32 %v16307_v16, %v4236_v8  ;;  %v16310_v36 = vld [vmem:[#allocation52_spill] sm:$0xff]  ;;  %v14997_v40 = vld [vmem:[%s16134_s7] sm:$0xff]  ;;  %v16315_v47 = vld [vmem:[#allocation66_spill] sm:$0xff] }
 0x2a1   : > { %v14940_v37 = vpop.f32.mrf.mxu2  ;;  %v14942_v18 = vpop.f32.mrf.mxu0  ;;  %v5064_v7 = vadd.f32 %v14815_v22, %v4856_v57  ;;  %v16305_v22 = vld [vmem:[#allocation76_spill] sm:$0xff]  ;;  %v4650_v14 = vadd.f32 %v16309_v58, %v4442_v38  ;;  %v16311_v57 = vld [vmem:[#allocation70_spill] sm:$0xff]  ;;  %v4446_v29 = vadd.f32 %v16312_v41, %v4238_v15  ;;  %v16319_v53 = vld [vmem:[#allocation73_spill] sm:$0xff]  ;;  %v15011_v48 = vperm.slane %v14997_v40, 1 }
 0x2a2   : > { %v14954_v31 = vpop.f32.mrf.mxu1  ;;  %v5063_v24 = vadd.f32 %v16304_v52, %v4855_v27  ;;  %v4443_v43 = vadd.f32 %v16308_v33, %v4235_v30  ;;  %v4445_v19 = vadd.f32 %v16310_v36, %v4237_v56  ;;  %v5065_v6 = vadd.f32 %v16311_v57, %v4857_v46  ;;  %v16314_v61 = vld [vmem:[#allocation60_spill] sm:$0xff]  ;;  %v16324_v58 = vld [vmem:[#allocation74_spill] sm:$0xff] }
 0x2a3   : > { %v5272_v23 = vadd.f32 %v16305_v22, %v5064_v7  ;;  %v4652_v28 = vadd.f32 %v16313_v9, %v4444_v62  ;;  %v4858_v1 = vadd.f32 %v16315_v47, %v4650_v14  ;;  %v16316_v7 = vld [vmem:[#allocation59_spill] sm:$0xff]  ;;  %v16318_v3 = vld [vmem:[#allocation68_spill] sm:$0xff]  ;;  %v16323_v62 = vld [vmem:[#allocation62_spill] sm:$0xff]  ;;  %v15032_v57 = vperm.slane %v14997_v40, 2 }
 0x2a4   : > { %v5271_v4 = vadd.f32 %v14842_v54, %v5063_v24  ;;  %v4651_v59 = vadd.f32 %v16314_v61, %v4443_v43  ;;  %v4653_v55 = vadd.f32 %v16316_v7, %v4445_v19  ;;  %v5273_v54 = vadd.f32 %v14840_v12, %v5065_v6  ;;  %v16321_v24 = vld [vmem:[#allocation72_spill] sm:$0xff] }
 0x2a5   : > { %v5480_v17 = vadd.f32 %v14869_v44, %v5272_v23  ;;  %v4860_v8 = vadd.f32 %v16317_v20, %v4652_v28  ;;  %v5066_v38 = vadd.f32 %v16319_v53, %v4858_v1  ;;  %v15018_v12 = vperm.slane %v14997_v40, 0  ;;  %v16322_v23 = vld [vmem:[#allocation75_spill] sm:$0xff] }
 0x2a6   : > { %v5479_v44 = vadd.f32 %v14889_v63, %v5271_v4  ;;  %v4859_v30 = vadd.f32 %v16318_v3, %v4651_v59  ;;  %v5481_v26 = vadd.f32 %v14887_v2, %v5273_v54  ;;  %v16320_v63 = vld [vmem:[#allocation67_spill] sm:$0xff]  ;;  %v4654_v33 = vadd.f32 %v16323_v62, %v4446_v29 }
 0x2a7   : > { %v5688_v5 = vadd.f32 %v14917_v13, %v5480_v17  ;;  %v4861_v13 = vadd.f32 %v16320_v63, %v4653_v55  ;;  %v5068_v22 = vadd.f32 %v16321_v24, %v4860_v8  ;;  %v5274_v43 = vadd.f32 %v14857_v35, %v5066_v38 }
 0x2a8   : > { %v14969_v32 = vpop.f32.mrf.mxu3  ;;  %v5687_v46 = vadd.f32 %v14942_v18, %v5479_v44  ;;  %v5067_v42 = vadd.f32 %v16322_v23, %v4859_v30  ;;  %v5689_v2 = vadd.f32 %v14940_v37, %v5481_v26  ;;  %v16325_v37 = vld [vmem:[#allocation69_spill] sm:$0xff]  ;;  %v15057_v54 = vperm.slane %v14997_v40, 5 }
 0x2a9   : > { %v14980_v11 = vpop.f32.mrf.mxu2  ;;  %v5624_v50 = vpop.f32.mrf.mxu0  ;;  %v5069_v14 = vadd.f32 %v16324_v58, %v4861_v13  ;;  %v5276_v36 = vadd.f32 %v14846_v10, %v5068_v22  ;;  %v5482_v6 = vadd.f32 %v14905_v60, %v5274_v43  ;;  %v4862_v41 = vadd.f32 %v16325_v37, %v4654_v33 }
 0x2aa   : > { %v5772_v27 = vpop.f32.mrf.mxu1  ;;  %v5275_v19 = vadd.f32 %v14865_v34, %v5067_v42  ;;  %v15045_v60 = vperm.slane %v14997_v40, 3  ;;  %v15067_v26 = vperm.slane %v14997_v40, 7 }
 0x2ab   : > { %v15015_v52 = vadd.f32 %v5772_v27, %v5688_v5  ;;  %v5277_v29 = vadd.f32 %v14863_v49, %v5069_v14  ;;  %v5484_v10 = vadd.f32 %v14893_v45, %v5276_v36  ;;  %v5690_v9 = vadd.f32 %v14969_v32, %v5482_v6 }
 0x2ac   : > { %v5483_v34 = vadd.f32 %v14913_v51, %v5275_v19  ;;  %v5070_v61 = vadd.f32 %v14835_v0, %v4862_v41  ;;  %v15050_v27 = vperm.slane %v14997_v40, 4 }
 0x2ad   : > { %v5923_v4 = vmul.f32 %v15011_v48, %v15015_v52  ;;  %v5485_v59 = vadd.f32 %v14911_v21, %v5277_v29  ;;  %v5692_v49 = vadd.f32 %v14954_v31, %v5484_v10  ;;  %v15061_v31 = vperm.slane %v14997_v40, 6  ;;  %v5904_v40 = vld [vmem:[%s16130_s3] sm:$0xff] }
 0x2ae   : > { %v5691_v45 = vadd.f32 %v5624_v50, %v5483_v34  ;;  %v5278_v32 = vadd.f32 %v14881_v39, %v5070_v61 }
 0x2af   : > { %v5693_v55 = vadd.f32 %v14980_v11, %v5485_v59  ;;  %16326 = vst [vmem:[#allocation10_spill] sm:$0xff] %v15061_v31 }
 0x2b0   : > { %v5684_v56 = vpop.f32.mrf.mxu3  ;;  %v5486_v50 = vadd.f32 %v14931_v25, %v5278_v32 }
 0x2b1   : > { %v5792_v15 = vpop.f32.mrf.mxu2  ;;  %v5752_v16 = vpop.f32.mrf.mxu0 }
 0x2b2   : > { %v15026_v18 = vadd.f32 %v5752_v16, %v5687_v46  ;;  %v5897_v17 = vadd.f32 %v5792_v15, %v5689_v2  ;;  %v5852_v47 = vpop.f32.mrf.mxu1  ;;  %v5694_v11 = vadd.f32 %v5684_v56, %v5486_v50  ;;  %v5903_v56 = vld [vmem:[%s16129_s2] sm:$0xff]  ;;  %v13463_v15 = vmov 0  }
 0x2b3   : > { %v5900_v44 = vadd.f32 %v5852_v47, %v5692_v49  ;;  %12883 = vset.pattern.permute.xlu2 %v13463_v15  ;;  %13404 = vset.pattern.permute.xlu0 %v13463_v15 }
 0x2b4   : > { %v5922_v35 = vmul.f32 %v15018_v12, %v15026_v18  ;;  %v5924_v51 = vmul.f32 %v15032_v57, %v5897_v17  ;;  %5998 = vperm.xlu2 %12883, %v5903_v56  }
 0x2b5   : > { %v5927_v53 = vmul.f32 %v15057_v54, %v5900_v44 }
 0x2b6   : > { %v5930_v28 = vadd.f32 %v5923_v4, %v5922_v35 }
 0x2b8   : > { %v5812_v1 = vpop.f32.mrf.mxu3  ;;  %v5931_v20 = vadd.f32 %v5930_v28, %v5924_v51 }
 0x2b9   : > { %v5898_v7 = vadd.f32 %v5812_v1, %v5690_v9  ;;  %v5872_v0 = vpop.f32.mrf.mxu2  ;;  %v5832_v21 = vpop.f32.mrf.mxu0 }
 0x2ba   : > { %v5899_v8 = vadd.f32 %v5832_v21, %v5691_v45  ;;  %v5901_v30 = vadd.f32 %v5872_v0, %v5693_v55 }
 0x2bb   : > { %v5925_v5 = vmul.f32 %v15045_v60, %v5898_v7 }
 0x2bc   : > { %v5926_v39 = vmul.f32 %v15050_v27, %v5899_v8  ;;  %v5928_v63 = vmul.f32 %v15061_v31, %v5901_v30  ;;  %6011 = vperm.xlu2 %12883, %v5904_v40  }
 0x2bd   : > { %v5932_v3 = vadd.f32 %v5931_v20, %v5925_v5 }
 0x2bf   : > { %v5933_v38 = vadd.f32 %v5932_v3, %v5926_v39 }
 0x2c0   : > { %v5892_v46 = vpop.f32.mrf.mxu3 }
 0x2c1   : > { %v5902_v13 = vadd.f32 %v5892_v46, %v5694_v11  ;;  %v5934_v24 = vadd.f32 %v5933_v38, %v5927_v53 }
 0x2c3   : > { %v5929_v22 = vmul.f32 %v15067_v26, %v5902_v13  ;;  %v5935_v23 = vadd.f32 %v5934_v24, %v5928_v63 }
 0x2c5   : > { %v5937_v25 = vsel %vm5936_vm15, %v5929_v22, 0.0 }
 0x2c6   : > { %v5938_v42 = vadd.f32 %v5937_v25, %v5935_v23 }
 0x2c8   : > { %5939 = vadd.xlane.f32.xlu0 %v5938_v42 }
 0x30e   : > { %v5999_v39 = vpop.permute.xlu2 %5998 }
 0x33b   : > { %v5940_v16 = vpop.xlane.xlu0 %5939 }
 0x33c   : > { %v5941_v62 = vmul.f32 0.001953125, %v5940_v16 }
 0x33e   : > { %v5942_v33 = vsub.f32 %v15026_v18, %v5941_v62  ;;  %v5943_v43 = vsub.f32 %v15015_v52, %v5941_v62  ;;  %v5944_v2 = vsub.f32 %v5897_v17, %v5941_v62  ;;  %v5945_v58 = vsub.f32 %v5898_v7, %v5941_v62 }
 0x33f   : > { %v5946_v14 = vsub.f32 %v5899_v8, %v5941_v62  ;;  %v5947_v4 = vsub.f32 %v5900_v44, %v5941_v62  ;;  %v5949_v29 = vsub.f32 %v5902_v13, %v5941_v62  ;;  %v5948_v10 = vsub.f32 %v5901_v30, %v5941_v62 }
 0x340   : > { %v5950_v36 = vmul.f32 %v5942_v33, %v15018_v12  ;;  %v5951_v19 = vmul.f32 %v5943_v43, %v15011_v48  ;;  %v5952_v6 = vmul.f32 %v5944_v2, %v15032_v57  ;;  %v5953_v35 = vmul.f32 %v5945_v58, %v15045_v60  ;;  %v6012_v58 = vpop.permute.xlu2 %6011 }
 0x341   : > { %v5954_v18 = vmul.f32 %v5946_v14, %v15050_v27  ;;  %v5955_v17 = vmul.f32 %v5947_v4, %v15057_v54  ;;  %v5957_v61 = vmul.f32 %v5949_v29, %v15067_v26  ;;  %v5956_v59 = vmul.f32 %v5948_v10, %v15061_v31 }
 0x342   : > { %v5958_v37 = vmul.f32 %v5950_v36, %v5950_v36  ;;  %v5959_v41 = vmul.f32 %v5951_v19, %v5951_v19  ;;  %v5960_v34 = vmul.f32 %v5952_v6, %v5952_v6  ;;  %v5961_v9 = vmul.f32 %v5953_v35, %v5953_v35 }
 0x343   : > { %v5962_v47 = vmul.f32 %v5954_v18, %v5954_v18  ;;  %v5963_v49 = vmul.f32 %v5955_v17, %v5955_v17  ;;  %v5965_v51 = vmul.f32 %v5957_v61, %v5957_v61  ;;  %v5964_v7 = vmul.f32 %v5956_v59, %v5956_v59 }
 0x344   : > { %v5966_v52 = vadd.f32 %v5959_v41, %v5958_v37 }
 0x345   : > { %v5972_v0 = vsel %vm5936_vm15, %v5965_v51, 0.0 }
 0x346   : > { %v5967_v28 = vadd.f32 %v5966_v52, %v5960_v34 }
 0x348   : > { %v5968_v1 = vadd.f32 %v5967_v28, %v5961_v9 }
 0x34a   : > { %v5969_v45 = vadd.f32 %v5968_v1, %v5962_v47 }
 0x34c   : > { %v5970_v32 = vadd.f32 %v5969_v45, %v5963_v49 }
 0x34e   : > { %v5971_v55 = vadd.f32 %v5970_v32, %v5964_v7 }
 0x350   : > { %v5973_v21 = vadd.f32 %v5972_v0, %v5971_v55 }
 0x352   : > { %5974 = vadd.xlane.f32.xlu1 %v5973_v21 }
 0x3c5   : > { %v5975_v44 = vpop.xlane.xlu1 %5974 }
 0x3c6   : > { %v5976_v5 = vmul.f32 0.001953125, %v5975_v44 }
 0x3c8   : > { %v5977_v20 = vadd.f32 1e-05, %v5976_v5 }
 0x3ca   : > { %13405 = vrsqrt.f32 %v5977_v20  ;;  %vm5984_vm13 = vweird.f32 %v5977_v20 }
 0x3d0   : > { %v13406_v8 = vpop.eup %13405 }
 0x3d1   : > { %v5979_v50 = vmul.f32 %v13406_v8, %v5977_v20  ;;  %vm5985_vm14 = vweird.f32 %v13406_v8 }
 0x3d2   : > { %vm5986_vm12 = vmor %vm5984_vm13, %vm5985_vm14 }
 0x3d3   : > { %v5980_v3 = vmul.f32 %v13406_v8, %v5979_v50 }
 0x3d5   : > { %v5981_v30 = vmul.f32 0.5, %v5980_v3 }
 0x3d7   : > { %v5982_v11 = vsub.f32 1.5, %v5981_v30 }
 0x3d9   : > { %v5983_v53 = vmul.f32 %v13406_v8, %v5982_v11 }
 0x3db   : > { %v5987_v38 = vsel %vm5986_vm12, %v13406_v8, %v5983_v53 }
 0x3dc   : > { %v5988_v46 = vmul.f32 %v5987_v38, %v5950_v36  ;;  %v5989_v63 = vmul.f32 %v5987_v38, %v5951_v19  ;;  %v5990_v13 = vmul.f32 %v5987_v38, %v5952_v6  ;;  %v5991_v24 = vmul.f32 %v5987_v38, %v5953_v35 }
 0x3dd   : > { %v5992_v22 = vmul.f32 %v5987_v38, %v5954_v18  ;;  %v5993_v23 = vmul.f32 %v5987_v38, %v5955_v17  ;;  %v5994_v25 = vmul.f32 %v5987_v38, %v5956_v59  ;;  %v5995_v42 = vmul.f32 %v5987_v38, %v5957_v61 }
 0x3de   : > { %v6001_v56 = vmul.f32 %v5999_v39, %v5988_v46  ;;  %v6002_v15 = vmul.f32 %v5999_v39, %v5989_v63  ;;  %v6003_v40 = vmul.f32 %v5999_v39, %v5990_v13  ;;  %v6004_v16 = vmul.f32 %v5999_v39, %v5991_v24  ;;  %v12081_v24 = vld [vmem:[%s16131_s4 + $0x8] sm:$0xff] }
 0x3df   : > { %v6005_v62 = vmul.f32 %v5999_v39, %v5992_v22  ;;  %v6006_v33 = vmul.f32 %v5999_v39, %v5993_v23  ;;  %v6007_v43 = vmul.f32 %v5999_v39, %v5994_v25  ;;  %v6008_v2 = vmul.f32 %v5999_v39, %v5995_v42 }
 0x3e0   : > { %v6014_v14 = vadd.f32 %v6012_v58, %v6001_v56  ;;  %v6015_v4 = vadd.f32 %v6012_v58, %v6002_v15  ;;  %v6016_v37 = vadd.f32 %v6012_v58, %v6003_v40  ;;  %v6017_v36 = vadd.f32 %v6012_v58, %v6004_v16 }
 0x3e1   : > { %v6018_v19 = vadd.f32 %v6012_v58, %v6005_v62  ;;  %v6019_v6 = vadd.f32 %v6012_v58, %v6006_v33  ;;  %v6020_v35 = vadd.f32 %v6012_v58, %v6007_v43  ;;  %v6021_v41 = vadd.f32 %v6012_v58, %v6008_v2 }
 0x3e2   : > { %vm6022_vm12 = vcmp.gt.f32.partialorder %v6014_v14, 0.0  ;;  %vm6023_vm13 = vcmp.gt.f32.partialorder %v6015_v4, 0.0  ;;  %vm6024_vm14 = vcmp.gt.f32.partialorder %v6016_v37, 0.0  ;;  %vm6025_vm11 = vcmp.gt.f32.partialorder %v6017_v36, 0.0 }
 0x3e3   : > { %vm6026_vm10 = vcmp.gt.f32.partialorder %v6018_v19, 0.0  ;;  %vm6027_vm9 = vcmp.gt.f32.partialorder %v6019_v6, 0.0  ;;  %vm6028_vm8 = vcmp.gt.f32.partialorder %v6020_v35, 0.0  ;;  %v6030_v29 = vmul.f32 0.01, %v6014_v14 }
 0x3e4   : > { %v6031_v10 = vmul.f32 0.01, %v6015_v4  ;;  %v6032_v18 = vmul.f32 0.01, %v6016_v37  ;;  %v6033_v34 = vmul.f32 0.01, %v6017_v36 }
 0x3e5   : > { %v6034_v52 = vmul.f32 0.01, %v6018_v19  ;;  %v6035_v17 = vmul.f32 0.01, %v6019_v6  ;;  %v6036_v9 = vmul.f32 0.01, %v6020_v35  ;;  %v6038_v61 = vsel %vm6022_vm12, %v6014_v14, %v6030_v29 }
 0x3e6   : > { %v6037_v28 = vmul.f32 0.01, %v6021_v41  ;;  %v6039_v59 = vsel %vm6023_vm13, %v6015_v4, %v6031_v10  ;;  %vm6029_vm7 = vcmp.gt.f32.partialorder %v6021_v41, 0.0  ;;  %v6040_v47 = vsel %vm6024_vm14, %v6016_v37, %v6032_v18 }
 0x3e7   : > { %v6041_v1 = vsel %vm6025_vm11, %v6017_v36, %v6033_v34  ;;  %v6042_v49 = vsel %vm6026_vm10, %v6018_v19, %v6034_v52  ;;  %v6043_v45 = vsel %vm6027_vm9, %v6019_v6, %v6035_v17  ;;  %v15094_v51 = vmul.f32 %v6038_v61, %v15018_v12 }
 0x3e8   : > { %v15097_v7 = vmul.f32 %v6039_v59, %v15011_v48  ;;  %v6044_v32 = vsel %vm6028_vm8, %v6020_v35, %v6036_v9  ;;  %v15101_v55 = vmul.f32 %v6040_v47, %v15032_v57  ;;  %v15104_v0 = vmul.f32 %v6041_v1, %v15045_v60  ;;  %v6074_v9 = vld [vmem:[%s16131_s4] sm:$0xff] }
 0x3e9   : > { %v6045_v21 = vsel %vm6029_vm7, %v6021_v41, %v6037_v28  ;;  %v15107_v44 = vmul.f32 %v6042_v49, %v15050_v27  ;;  %6058 = vst [vmem:[#allocation2 + $0x8] sm:$0xff] %v15094_v51  ;;  %v15111_v5 = vmul.f32 %v6043_v45, %v15057_v54  ;;  %v15122_v50 = vmul.f32 %v6044_v32, %v15061_v31 }
 0x3ea   : > { %6059 = vst [vmem:[#allocation2 + $0x10] sm:$0xff] %v15097_v7  ;;  %v15115_v20 = vpack.i.bf16 0.0, %v15104_v0  ;;  %v15119_v8 = vpack.i.bf16 %v15101_v55, %v15097_v7  ;;  %v6053_v3 = vmul.f32 %v6045_v21, %v15067_v26  ;;  %vm16339_vm9 = vcmask 736256  }
 0x3eb   : > { %6060 = vst [vmem:[#allocation2 + $0x18] sm:$0xff] %v15101_v55  ;;  %v15139_v30 = vpack.i.bf16 %v15111_v5, %v15094_v51  ;;  %v12939_v39 = vpack.i.bf16 %v15107_v44, %v15122_v50  ;;  %vm16340_vm10 = vmmov %vm16339_vm9 }
 0x3ec   : > { %6061 = vst [vmem:[#allocation2 + $0x20] sm:$0xff] %v15104_v0  ;;  %12910 = vrot.lane.b32.xlu1 %v15115_v20, %s13437_s12  ;;  %12905 = vrot.lane.b32.xlu0 %v15119_v8, %s13437_s12  ;;  %vm16341_vm11 = vmmov %vm16339_vm9 }
 0x3ed   : > { %6062 = vst [vmem:[#allocation2 + $0x28] sm:$0xff] %v15107_v44  ;;  %12885 = vrot.lane.b32.xlu2 %v15119_v8, %s13436_s11  ;;  %vm16342_vm12 = vmmov %vm16339_vm9 }
 0x3ee   : > { %6063 = vst [vmem:[#allocation2 + $0x30] sm:$0xff] %v15111_v5  ;;  %vm16344_vm13 = vmmov %vm16339_vm9 }
 0x3ef   : > { %6064 = vst [vmem:[#allocation2 + $0x38] sm:$0xff] %v15122_v50  ;;  %vm16345_vm14 = vmmov %vm16339_vm9 }
 0x3f0   : > { %6065 = vst.msk [vmem:[#allocation2 + $0x40] sm:$0xff] %vm5936_vm15, %v6053_v3 }
 0x3f4   : > { %12925 = vrot.lane.b32.xlu0 %v15119_v8, %s13438_s13  ;;  %12935 = vrot.lane.b32.xlu1 %v15139_v30, %s13438_s13 }
 0x3f5   : > { %12890 = vrot.lane.b32.xlu2 %v15115_v20, %s13436_s11 }
 0x3f7   : > { %v15165_v11 = vld [vmem:[#allocation2 + $0x40] sm:$0xff] }
 0x3f8   : > { %v15169_v53 = vpack.i.bf16 %v15165_v11, %v15122_v50 }
 0x3fc   : > { %12940 = vrot.lane.b32.xlu0 %v12939_v39, %s13438_s13  ;;  %12950 = vrot.lane.b32.xlu1 %v15115_v20, %s13439_s14 }
 0x3fd   : > { %12895 = vrot.lane.b32.xlu2 %v15139_v30, %s13436_s11 }
 0x404   : > { %12955 = vrot.lane.b32.xlu0 %v15139_v30, %s13439_s14  ;;  %6707 = vrot.lane.b32.xlu1 %v15107_v44, %s13439_s14 }
 0x405   : > { %12900 = vrot.lane.b32.xlu2 %v12939_v39, %s13436_s11  ;;  %s16343_s11 = smov 38  }
 0x40c   : > { %12965 = vrot.lane.b32.xlu0 %v15119_v8, %s13440_s15  ;;  %12975 = vrot.lane.b32.xlu1 %v15139_v30, %s13440_s15 }
 0x40d   : > { %12915 = vrot.lane.b32.xlu2 %v15139_v30, %s13437_s12 }
 0x414   : > { %12980 = vrot.lane.b32.xlu0 %v15169_v53, %s13440_s15  ;;  %12985 = vrot.lane.b32.xlu1 %v15119_v8, %s13441_s16 }
 0x415   : > { %12920 = vrot.lane.b32.xlu2 %v12939_v39, %s13437_s12  ;;  %s16348_s12 = smov 37  }
 0x41c   : > { %12990 = vrot.lane.b32.xlu0 %v15115_v20, %s13441_s16  ;;  %13000 = vrot.lane.b32.xlu1 %v15169_v53, %s13441_s16 }
 0x41d   : > { %12930 = vrot.lane.b32.xlu2 %v15115_v20, %s13438_s13 }
 0x424   : > { %7121 = vrot.lane.b32.xlu0 %v15107_v44, %s13441_s16  ;;  %13010 = vrot.lane.b32.xlu1 %v15115_v20, %s13442_s17 }
 0x425   : > { %12945 = vrot.lane.b32.xlu2 %v15119_v8, %s13439_s14 }
 0x42c   : > { %13015 = vrot.lane.b32.xlu0 %v15139_v30, %s13442_s17  ;;  %7328 = vrot.lane.b32.xlu1 %v15107_v44, %s13442_s17 }
 0x42d   : > { %12960 = vrot.lane.b32.xlu2 %v15169_v53, %s13439_s14 }
 0x434   : > { %13025 = vrot.lane.b32.xlu0 %v15119_v8, %s13443_s18  ;;  %13035 = vrot.lane.b32.xlu1 %v15139_v30, %s13443_s18 }
 0x435   : > { %12970 = vrot.lane.b32.xlu2 %v15115_v20, %s13440_s15 }
 0x43c   : > { %13040 = vrot.lane.b32.xlu0 %v15169_v53, %s13443_s18  ;;  %13045 = vrot.lane.b32.xlu1 %v15119_v8, %s13444_s19 }
 0x43d   : > { %6914 = vrot.lane.b32.xlu2 %v15107_v44, %s13440_s15  ;;  %s16357_s15 = smov 29  }
 0x444   : > { %13050 = vrot.lane.b32.xlu0 %v15115_v20, %s13444_s19  ;;  %13060 = vrot.lane.b32.xlu1 %v15169_v53, %s13444_s19 }
 0x445   : > { %12995 = vrot.lane.b32.xlu2 %v15139_v30, %s13441_s16 }
 0x447   : > { %v12886_v38 = vpop.permute.xlu2 %12885 }
 0x448   : > { %v12888_v46 = vunpack.i.h.bf16 %v12886_v38  ;;  %v12887_v63 = vunpack.i.l.bf16 %v12886_v38 }
 0x44a   : > { %v6103_v13 = vsel %vm342_vm0, %v12887_v63, %v12888_v46 }
 0x44b   : > { %6174 = vmatpush.msra.mxu2 %v6103_v13 }
 0x44c   : > { %7742 = vrot.lane.b32.xlu0 %v15107_v44, %s13444_s19  ;;  %13070 = vrot.lane.b32.xlu1 %v15115_v20, %s13445_s20 }
 0x44d   : > { %13005 = vrot.lane.b32.xlu2 %v15119_v8, %s13442_s17  ;;  %12084 = vmatmul.msk.f32.vlgmr.msra.gmra.mxu2 %vm358_vm1, %v12081_v24 }
 0x44f   : > { %v12891_v22 = vpop.permute.xlu2 %12890 }
 0x450   : > { %v12892_v23 = vunpack.i.l.bf16 %v12891_v22  ;;  %v12893_v56 = vunpack.i.h.bf16 %v12891_v22 }
 0x452   : > { %v6104_v25 = vsel %vm342_vm0, %v12888_v46, %v12892_v23 }
 0x453   : > { %6194 = vmatpush.msra.mxu3 %v6104_v25 }
 0x454   : > { %13075 = vrot.lane.b32.xlu0 %v15139_v30, %s13445_s20  ;;  %7949 = vrot.lane.b32.xlu1 %v15107_v44, %s13445_s20 }
 0x455   : > { %13020 = vrot.lane.b32.xlu2 %v15169_v53, %s13442_s17  ;;  %12085 = vmatmul.msk.f32.vlgmr.msra.gmra.mxu3 %vm358_vm1, %v12081_v24 }
 0x457   : > { %v12896_v42 = vpop.permute.xlu2 %12895 }
 0x458   : > { %v12897_v15 = vunpack.i.l.bf16 %v12896_v42  ;;  %v12898_v14 = vunpack.i.h.bf16 %v12896_v42 }
 0x45a   : > { %v6101_v40 = vsel %vm342_vm0, %v12893_v56, %v12897_v15  ;;  %v6102_v16 = vsel %vm342_vm0, %v12897_v15, %v12887_v63 }
 0x45b   : > { %6134 = vmatpush.msra.mxu0 %v6101_v40  ;;  %6154 = vmatpush.msra.mxu1 %v6102_v16 }
 0x45c   : > { %12082 = vmatmul.msk.f32.vlgmr.msra.gmra.mxu0 %vm358_vm1, %v12081_v24  ;;  %12083 = vmatmul.msk.f32.vlgmr.msra.gmra.mxu1 %vm358_vm1, %v12081_v24 }
 0x45d   : > { %13085 = vrot.lane.b32.xlu0 %v15119_v8, %s13446_s23  ;;  %13095 = vrot.lane.b32.xlu1 %v15139_v30, %s13446_s23 }
 0x45e   : > { %13030 = vrot.lane.b32.xlu2 %v15115_v20, %s13443_s18  ;;  %v12911_v62 = vpop.permute.xlu1 %12910  ;;  %v12906_v33 = vpop.permute.xlu0 %12905 }
 0x45f   : > { %v12912_v43 = vunpack.i.l.bf16 %v12911_v62  ;;  %v12908_v2 = vunpack.i.h.bf16 %v12906_v33  ;;  %v12901_v58 = vpop.permute.xlu2 %12900  ;;  %v12907_v4 = vunpack.i.l.bf16 %v12906_v33  ;;  %v12913_v52 = vunpack.i.h.bf16 %v12911_v62 }
 0x460   : > { %v12903_v37 = vunpack.i.h.bf16 %v12901_v58  ;;  %v12902_v36 = vunpack.i.l.bf16 %v12901_v58 }
 0x461   : > { %v6298_v41 = vsel %vm538_vm2, %v12908_v2, %v12912_v43  ;;  %v6297_v29 = vsel %vm538_vm2, %v12907_v4, %v12908_v2 }
 0x462   : > { %6274 = vmatpush.msrb.mxu3 %v12902_v36  ;;  %v6105_v19 = vsel %vm342_vm0, %v12892_v23, %v12903_v37  ;;  %v6106_v6 = vsel %vm342_vm0, %v12903_v37, %v12898_v14  ;;  %v6107_v35 = vsel %vm342_vm0, %v12898_v14, %v12902_v36  ;;  %vm16330_vm0 = vcmask 744448  }
 0x463   : > { %6214 = vmatpush.msrb.mxu0 %v6105_v19  ;;  %6234 = vmatpush.msrb.mxu1 %v6106_v6  ;;  %vm16337_vm7 = vmmov %vm16330_vm0 }
 0x464   : > { %6254 = vmatpush.msrb.mxu2 %v6107_v35  ;;  %12089 = vmatmul.msk.f32.vlgmr.msrb.gmra.mxu3 %vm358_vm1, %v12081_v24  ;;  %vm16338_vm8 = vmmov %vm16330_vm0 }
 0x465   : > { %6388 = vmatpush.msra.mxu3 %v6298_v41  ;;  %12086 = vmatmul.msk.f32.vlgmr.msrb.gmra.mxu0 %vm358_vm1, %v12081_v24 }
 0x466   : > { %12087 = vmatmul.msk.f32.vlgmr.msrb.gmra.mxu1 %vm358_vm1, %v12081_v24  ;;  %12088 = vmatmul.msk.f32.vlgmr.msrb.gmra.mxu2 %vm358_vm1, %v12081_v24  ;;  %v15250_v10 = vpop.permute.xlu0 %12925  ;;  %v15252_v18 = vpop.permute.xlu1 %12935 }
 0x467   : > { %6368 = vmatpush.msra.mxu2 %v6297_v29  ;;  %13100 = vrot.lane.b32.xlu0 %v15169_v53, %s13446_s23  ;;  %v12916_v34 = vpop.permute.xlu2 %12915  ;;  %v12927_v47 = vunpack.i.l.bf16 %v15250_v10  ;;  %v12937_v45 = vunpack.i.l.bf16 %v15252_v18  ;;  %v12928_v39 = vunpack.i.h.bf16 %v15250_v10  ;;  %v12938_v23 = vunpack.i.h.bf16 %v15252_v18 }
 0x468   : > { %13105 = vrot.lane.b32.xlu1 %v15119_v8, %s13447_s26  ;;  %7535 = vrot.lane.b32.xlu2 %v15107_v44, %s13443_s18  ;;  %v12917_v17 = vunpack.i.l.bf16 %v12916_v34  ;;  %v12918_v32 = vunpack.i.h.bf16 %v12916_v34  ;;  %s16366_s18 = smov 28  }
 0x469   : > { %v6492_v22 = vsel %vm735_vm3, %v12937_v45, %v12927_v47  ;;  %v6493_v25 = vsel %vm735_vm3, %v12927_v47, %v12928_v39 }
 0x46a   : > { %v6295_v28 = vsel %vm538_vm2, %v12913_v52, %v12917_v17  ;;  %v6296_v61 = vsel %vm538_vm2, %v12917_v17, %v12907_v4 }
 0x46b   : > { %6328 = vmatpush.msra.mxu0 %v6295_v28  ;;  %6348 = vmatpush.msra.mxu1 %v6296_v61 }
 0x46c   : > { %12093 = vmatmul.msk.f32.vlgmr.msra.gmra.mxu3 %vm358_vm1, %v6074_v9 }
 0x46d   : > { %12090 = vmatmul.msk.f32.vlgmr.msra.gmra.mxu0 %vm358_vm1, %v6074_v9 }
 0x46e   : > { %12091 = vmatmul.msk.f32.vlgmr.msra.gmra.mxu1 %vm358_vm1, %v6074_v9  ;;  %12092 = vmatmul.msk.f32.vlgmr.msra.gmra.mxu2 %vm358_vm1, %v6074_v9  ;;  %v12941_v59 = vpop.permute.xlu0 %12940  ;;  %v15272_v1 = vpop.permute.xlu1 %12950 }
 0x46f   : > { %13110 = vrot.lane.b32.xlu0 %v15115_v20, %s13447_s26  ;;  %v12921_v49 = vpop.permute.xlu2 %12920  ;;  %v12943_v13 = vunpack.i.h.bf16 %v12941_v59  ;;  %v12942_v24 = vunpack.i.l.bf16 %v12941_v59  ;;  %v12953_v37 = vunpack.i.h.bf16 %v15272_v1  ;;  %v12952_v35 = vunpack.i.l.bf16 %v15272_v1 }
 0x470   : > { %13120 = vrot.lane.b32.xlu1 %v15169_v53, %s13447_s26  ;;  %13055 = vrot.lane.b32.xlu2 %v15139_v30, %s13444_s19  ;;  %v12923_v21 = vunpack.i.h.bf16 %v12921_v49  ;;  %v12922_v3 = vunpack.i.l.bf16 %v12921_v49  ;;  %v15340_v59 = vpack.i.bf16 %v15122_v50, %v15097_v7  ;;  %s16327_s19 = smov 119  }
 0x471   : > { %v6496_v15 = vsel %vm735_vm3, %v12943_v13, %v12938_v23  ;;  %v6497_v40 = vsel %vm735_vm3, %v12938_v23, %v12942_v24 }
 0x472   : > { %6468 = vmatpush.msrb.mxu3 %v12922_v3  ;;  %v6299_v38 = vsel %vm538_vm2, %v12912_v43, %v12923_v21  ;;  %v6300_v46 = vsel %vm538_vm2, %v12923_v21, %v12918_v32  ;;  %v6301_v63 = vsel %vm538_vm2, %v12918_v32, %v12922_v3  ;;  %v12098_v43 = vld [vmem:[%s16131_s4 + $0x10] sm:$0xff]  ;;  %v12107_v21 = vld [vmem:[%s16131_s4 + $0x18] sm:$0xff]  ;;  %vm16331_vm2 = vmmov %vm16330_vm0 }
 0x473   : > { %6408 = vmatpush.msrb.mxu0 %v6299_v38  ;;  %6428 = vmatpush.msrb.mxu1 %v6300_v46  ;;  %v15370_v46 = vpack.i.bf16 %v15111_v5, %v15165_v11 }
 0x474   : > { %6448 = vmatpush.msrb.mxu2 %v6301_v63  ;;  %12097 = vmatmul.msk.f32.vlgmr.msrb.gmra.mxu3 %vm358_vm1, %v6074_v9 }
 0x475   : > { %12094 = vmatmul.msk.f32.vlgmr.msrb.gmra.mxu0 %vm358_vm1, %v6074_v9  ;;  %6544 = vmatpush.msra.mxu1 %v6492_v22 }
 0x476   : > { %12095 = vmatmul.msk.f32.vlgmr.msrb.gmra.mxu1 %vm358_vm1, %v6074_v9  ;;  %12096 = vmatmul.msk.f32.vlgmr.msrb.gmra.mxu2 %vm358_vm1, %v6074_v9  ;;  %v15290_v42 = vpop.permute.xlu0 %12955  ;;  %v6708_v33 = vpop.permute.xlu1 %6707  ;;  %v15332_v9 = vpack.i.bf16 %v15104_v0, %v15101_v55 }
 0x477   : > { %6564 = vmatpush.msra.mxu2 %v6493_v25  ;;  %8363 = vrot.lane.b32.xlu0 %v15107_v44, %s13447_s26  ;;  %v12931_v56 = vpop.permute.xlu2 %12930  ;;  %v12957_v2 = vunpack.i.l.bf16 %v15290_v42  ;;  %v12958_v10 = vunpack.i.h.bf16 %v15290_v42  ;;  %v6719_v28 = vsel %vm960_vm4, %v12952_v35, %v6708_v33 }
 0x478   : > { %13130 = vrot.lane.b32.xlu1 %v15115_v20, %s13448_s9  ;;  %13065 = vrot.lane.b32.xlu2 %v15119_v8, %s13445_s20  ;;  %v12933_v16 = vunpack.i.h.bf16 %v12931_v56  ;;  %v12932_v62 = vunpack.i.l.bf16 %v12931_v56 }
 0x479   : > { %6624 = vmatpush.msrb.mxu1 %v6496_v15  ;;  %6644 = vmatpush.msrb.mxu2 %v6497_v40  ;;  %v6715_v36 = vsel %vm960_vm4, %v12953_v37, %v12957_v2  ;;  %v6720_v61 = vsel %vm960_vm4, %v6708_v33, %v12958_v10 }
 0x47a   : > { %v6491_v58 = vsel %vm735_vm3, %v12933_v16, %v12937_v45  ;;  %v6494_v14 = vsel %vm735_vm3, %v12928_v39, %v12932_v62  ;;  %v6495_v4 = vsel %vm735_vm3, %v12932_v62, %v12943_v13  ;;  %vm16332_vm3 = vmmov %vm16330_vm0 }
 0x47b   : > { %6524 = vmatpush.msra.mxu0 %v6491_v58  ;;  %6584 = vmatpush.msra.mxu3 %v6494_v14 }
 0x47c   : > { %12102 = vmatmul.msk.f32.vlgmr.msra.gmra.mxu3 %vm358_vm1, %v12098_v43 }
 0x47d   : > { %6604 = vmatpush.msrb.mxu0 %v6495_v4  ;;  %6664 = vmatpush.msrb.mxu3 %v12942_v24  ;;  %v12116_v4 = vld [vmem:[%s16131_s4 + $0x20] sm:$0xff] }
 0x47e   : > { %12099 = vmatmul.msk.f32.vlgmr.msra.gmra.mxu0 %vm358_vm1, %v12098_v43  ;;  %12100 = vmatmul.msk.f32.vlgmr.msra.gmra.mxu1 %vm358_vm1, %v12098_v43  ;;  %v15313_v19 = vpop.permute.xlu0 %12965  ;;  %v15326_v17 = vpop.permute.xlu1 %12975 }
 0x47f   : > { %12101 = vmatmul.msk.f32.vlgmr.msra.gmra.mxu2 %vm358_vm1, %v12098_v43  ;;  %13135 = vrot.lane.b32.xlu0 %v15139_v30, %s13448_s9  ;;  %v12946_v6 = vpop.permute.xlu2 %12945  ;;  %v12968_v49 = vunpack.i.h.bf16 %v15313_v19  ;;  %v12967_v7 = vunpack.i.l.bf16 %v15313_v19  ;;  %v12977_v50 = vunpack.i.l.bf16 %v15326_v17  ;;  %v12978_v56 = vunpack.i.h.bf16 %v15326_v17 }
 0x480   : > { %6749 = vmatpush.msra.mxu0 %v6715_v36  ;;  %8570 = vrot.lane.b32.xlu1 %v15107_v44, %s13448_s9  ;;  %v12948_v41 = vunpack.i.h.bf16 %v12946_v6  ;;  %v12947_v29 = vunpack.i.l.bf16 %v12946_v6 }
 0x481   : > { %13080 = vrot.lane.b32.xlu2 %v15169_v53, %s13445_s20  ;;  %v6923_v39 = vsel %vm1168_vm5, %v12977_v50, %v12967_v7  ;;  %v6924_v38 = vsel %vm1168_vm5, %v12967_v7, %v12968_v49  ;;  %s16328_s20 = smov 118  }
 0x482   : > { %v6716_v18 = vsel %vm960_vm4, %v12957_v2, %v12947_v29  ;;  %v6717_v34 = vsel %vm960_vm4, %v12947_v29, %v12948_v41  ;;  %v6718_v52 = vsel %vm960_vm4, %v12948_v41, %v12952_v35 }
 0x483   : > { %6769 = vmatpush.msra.mxu1 %v6716_v18  ;;  %6789 = vmatpush.msra.mxu2 %v6717_v34 }
 0x484   : > { %6809 = vmatpush.msra.mxu3 %v6718_v52 }
 0x485   : > { %12106 = vmatmul.msk.f32.vlgmr.msrb.gmra.mxu3 %vm358_vm1, %v12098_v43 }
 0x486   : > { %12103 = vmatmul.msk.f32.vlgmr.msrb.gmra.mxu0 %vm358_vm1, %v12098_v43  ;;  %12104 = vmatmul.msk.f32.vlgmr.msrb.gmra.mxu1 %vm358_vm1, %v12098_v43  ;;  %v12981_v47 = vpop.permute.xlu0 %12980  ;;  %v15356_v3 = vpop.permute.xlu1 %12985 }
 0x487   : > { %12105 = vmatmul.msk.f32.vlgmr.msrb.gmra.mxu2 %vm358_vm1, %v12098_v43  ;;  %6829 = vmatpush.msrb.mxu0 %v6719_v28  ;;  %v12961_v1 = vpop.permute.xlu2 %12960  ;;  %v12983_v22 = vunpack.i.h.bf16 %v12981_v47  ;;  %v12982_v23 = vunpack.i.l.bf16 %v12981_v47  ;;  %v12988_v2 = vunpack.i.h.bf16 %v15356_v3  ;;  %v12987_v58 = vunpack.i.l.bf16 %v15356_v3 }
 0x488   : > { %6849 = vmatpush.msrb.mxu1 %v6720_v61  ;;  %13145 = vrot.lane.b32.xlu0 %v15332_v9, %s13449_s29  ;;  %v12963_v55 = vunpack.i.h.bf16 %v12961_v1  ;;  %v12962_v0 = vunpack.i.l.bf16 %v12961_v1 }
 0x489   : > { %13155 = vrot.lane.b32.xlu1 %v15340_v59, %s13449_s29  ;;  %13090 = vrot.lane.b32.xlu2 %v15115_v20, %s13446_s23  ;;  %v15362_v20 = vpack.i.bf16 %v15094_v51, %v15107_v44  ;;  %v6929_v15 = vsel %vm1168_vm5, %v12982_v23, %v12983_v22 }
 0x48a   : > { %v6721_v45 = vsel %vm960_vm4, %v12958_v10, %v12962_v0  ;;  %v6722_v32 = vsel %vm960_vm4, %v12962_v0, %v12963_v55  ;;  %vm16333_vm4 = vmmov %vm16330_vm0 }
 0x48b   : > { %6869 = vmatpush.msrb.mxu2 %v6721_v45  ;;  %6889 = vmatpush.msrb.mxu3 %v6722_v32 }
 0x48d   : > { %12111 = vmatmul.msk.f32.vlgmr.msra.gmra.mxu3 %vm358_vm1, %v12107_v21 }
 0x48e   : > { %12108 = vmatmul.msk.f32.vlgmr.msra.gmra.mxu0 %vm358_vm1, %v12107_v21  ;;  %12109 = vmatmul.msk.f32.vlgmr.msra.gmra.mxu1 %vm358_vm1, %v12107_v21  ;;  %v15372_v63 = vpop.permute.xlu0 %12990  ;;  %v13001_v40 = vpop.permute.xlu1 %13000 }
 0x48f   : > { %12110 = vmatmul.msk.f32.vlgmr.msra.gmra.mxu2 %vm358_vm1, %v12107_v21  ;;  %6976 = vmatpush.msra.mxu1 %v6923_v39  ;;  %v12971_v13 = vpop.permute.xlu2 %12970  ;;  %v12992_v14 = vunpack.i.l.bf16 %v15372_v63  ;;  %v12993_v19 = vunpack.i.h.bf16 %v15372_v63  ;;  %v13003_v18 = vunpack.i.h.bf16 %v13001_v40  ;;  %v13002_v34 = vunpack.i.l.bf16 %v13001_v40 }
 0x490   : > { %6996 = vmatpush.msra.mxu2 %v6924_v38  ;;  %13160 = vrot.lane.b32.xlu0 %v15370_v46, %s13449_s29  ;;  %v12973_v51 = vunpack.i.h.bf16 %v12971_v13  ;;  %v12972_v24 = vunpack.i.l.bf16 %v12971_v13 }
 0x491   : > { %13170 = vrot.lane.b32.xlu1 %v15362_v20, %s16327_s19  ;;  %8156 = vrot.lane.b32.xlu2 %v15107_v44, %s13446_s23  ;;  %v6928_v44 = vsel %vm1168_vm5, %v12978_v56, %v12982_v23  ;;  %v7132_v37 = vsel %vm1376_vm6, %v12988_v2, %v12992_v14  ;;  %s12325_s23 = sshll.u32 %s16495_s28, 6 }
 0x492   : > { %v6922_v25 = vsel %vm1168_vm5, %v12973_v51, %v12977_v50  ;;  %v6925_v42 = vsel %vm1168_vm5, %v12968_v49, %v12972_v24  ;;  %v12125_v49 = vld [vmem:[%s16131_s4 + $0x28] sm:$0xff]  ;;  %s305_s28 = scalar_lea.vmem %s16135_s8, %s12325_s23 }
 0x493   : > { %6956 = vmatpush.msra.mxu0 %v6922_v25  ;;  %7016 = vmatpush.msra.mxu3 %v6925_v42 }
 0x495   : > { %12115 = vmatmul.msk.f32.vlgmr.msrb.gmra.mxu3 %vm358_vm1, %v12107_v21 }
 0x496   : > { %12112 = vmatmul.msk.f32.vlgmr.msrb.gmra.mxu0 %vm358_vm1, %v12107_v21  ;;  %12113 = vmatmul.msk.f32.vlgmr.msrb.gmra.mxu1 %vm358_vm1, %v12107_v21  ;;  %v7122_v43 = vpop.permute.xlu0 %7121  ;;  %v13011_v41 = vpop.permute.xlu1 %13010 }
 0x497   : > { %12114 = vmatmul.msk.f32.vlgmr.msrb.gmra.mxu2 %vm358_vm1, %v12107_v21  ;;  %7096 = vmatpush.msrb.mxu3 %v6929_v15  ;;  %v6915_v16 = vpop.permute.xlu2 %6914  ;;  %v7133_v61 = vsel %vm1376_vm6, %v12992_v14, %v7122_v43  ;;  %v13012_v7 = vunpack.i.l.bf16 %v13011_v41  ;;  %v13013_v45 = vunpack.i.h.bf16 %v13011_v41  ;;  %v9762_v41 = vld [vmem:[#allocation2 + $0x48] sm:$0xff] }
 0x498   : > { %7076 = vmatpush.msrb.mxu2 %v6928_v44  ;;  %13175 = vrot.lane.b32.xlu0 %v15340_v59, %s16327_s19  ;;  %v6926_v62 = vsel %vm1168_vm5, %v12972_v24, %v6915_v16  ;;  %v6927_v33 = vsel %vm1168_vm5, %v6915_v16, %v12978_v56  ;;  %vm16335_vm5 = vmmov %vm16330_vm0 }
 0x499   : > { %13185 = vrot.lane.b32.xlu1 %v15332_v9, %s16328_s20  ;;  %13115 = vrot.lane.b32.xlu2 %v15139_v30, %s13447_s26  ;;  %v7131_v30 = vsel %vm1376_vm6, %v12987_v58, %v12988_v2  ;;  %s16329_s26 = smov 117  }
 0x49a   : > { %7036 = vmatpush.msrb.mxu0 %v6926_v62  ;;  %7056 = vmatpush.msrb.mxu1 %v6927_v33  ;;  %v12134_v33 = vld [vmem:[%s16131_s4 + $0x30] sm:$0xff] }
 0x49d   : > { %12120 = vmatmul.msk.f32.vlgmr.msra.gmra.mxu3 %vm358_vm1, %v12116_v4 }
 0x49e   : > { %12117 = vmatmul.msk.f32.vlgmr.msra.gmra.mxu0 %vm358_vm1, %v12116_v4  ;;  %12118 = vmatmul.msk.f32.vlgmr.msra.gmra.mxu1 %vm358_vm1, %v12116_v4  ;;  %v13016_v52 = vpop.permute.xlu0 %13015  ;;  %v7329_v50 = vpop.permute.xlu1 %7328 }
 0x49f   : > { %12119 = vmatmul.msk.f32.vlgmr.msra.gmra.mxu2 %vm358_vm1, %v12116_v4  ;;  %7223 = vmatpush.msra.mxu3 %v7132_v37  ;;  %v12996_v36 = vpop.permute.xlu2 %12995  ;;  %v13017_v0 = vunpack.i.l.bf16 %v13016_v52  ;;  %v13018_v51 = vunpack.i.h.bf16 %v13016_v52  ;;  %v7340_v25 = vsel %vm16337_vm7, %v13012_v7, %v7329_v50 }
 0x4a0   : > { %7203 = vmatpush.msra.mxu2 %v7131_v30  ;;  %13190 = vrot.lane.b32.xlu0 %v15362_v20, %s16328_s20  ;;  %v12998_v6 = vunpack.i.h.bf16 %v12996_v36  ;;  %v12997_v35 = vunpack.i.l.bf16 %v12996_v36 }
 0x4a1   : > { %13200 = vrot.lane.b32.xlu1 %v15370_v46, %s16328_s20  ;;  %13125 = vrot.lane.b32.xlu2 %v15119_v8, %s13448_s9  ;;  %v7136_v8 = vsel %vm1376_vm6, %v13002_v34, %v13003_v18  ;;  %v7341_v42 = vsel %vm16338_vm8, %v7329_v50, %v13018_v51 }
 0x4a2   : > { %v7129_v29 = vsel %vm1376_vm6, %v12993_v19, %v12997_v35  ;;  %v7130_v10 = vsel %vm1376_vm6, %v12997_v35, %v12987_v58  ;;  %v7134_v17 = vsel %vm1376_vm6, %v7122_v43, %v12998_v6  ;;  %v7135_v28 = vsel %vm1376_vm6, %v12998_v6, %v13002_v34  ;;  %vm16336_vm6 = vmmov %vm16330_vm0 }
 0x4a3   : > { %7163 = vmatpush.msra.mxu0 %v7129_v29  ;;  %7183 = vmatpush.msra.mxu1 %v7130_v10  ;;  %v15489_v34 = vpack.i.bf16 %v9762_v41, %v15165_v11 }
 0x4a5   : > { %12124 = vmatmul.msk.f32.vlgmr.msrb.gmra.mxu3 %vm358_vm1, %v12116_v4 }
 0x4a6   : > { %12121 = vmatmul.msk.f32.vlgmr.msrb.gmra.mxu0 %vm358_vm1, %v12116_v4  ;;  %12122 = vmatmul.msk.f32.vlgmr.msrb.gmra.mxu1 %vm358_vm1, %v12116_v4  ;;  %v13026_v21 = vpop.permute.xlu0 %13025  ;;  %v13036_v24 = vpop.permute.xlu1 %13035 }
 0x4a7   : > { %12123 = vmatmul.msk.f32.vlgmr.msrb.gmra.mxu2 %vm358_vm1, %v12116_v4  ;;  %7243 = vmatpush.msrb.mxu0 %v7133_v61  ;;  %v13006_v47 = vpop.permute.xlu2 %13005  ;;  %v13027_v16 = vunpack.i.l.bf16 %v13026_v21  ;;  %v13037_v62 = vunpack.i.l.bf16 %v13036_v24  ;;  %v13028_v43 = vunpack.i.h.bf16 %v13026_v21  ;;  %v13038_v35 = vunpack.i.h.bf16 %v13036_v24  ;;  %v12143_v61 = vld [vmem:[%s16131_s4 + $0x38] sm:$0xff] }
 0x4a8   : > { %7263 = vmatpush.msrb.mxu1 %v7134_v17  ;;  %7283 = vmatpush.msrb.mxu2 %v7135_v28  ;;  %v13007_v1 = vunpack.i.l.bf16 %v13006_v47  ;;  %v13008_v55 = vunpack.i.h.bf16 %v13006_v47 }
 0x4a9   : > { %7303 = vmatpush.msrb.mxu3 %v7136_v8  ;;  %13205 = vrot.lane.b32.xlu0 %v15332_v9, %s16329_s26  ;;  %v7544_v14 = vsel %vm16341_vm11, %v13037_v62, %v13027_v16  ;;  %v7545_v30 = vsel %vm16342_vm12, %v13027_v16, %v13028_v43  ;;  %vm16358_vm11 = vcmask 89088  }
 0x4aa   : > { %13215 = vrot.lane.b32.xlu1 %v15340_v59, %s16329_s26  ;;  %13140 = vrot.lane.b32.xlu2 %v15169_v53, %s13448_s9  ;;  %v7337_v32 = vsel %vm16330_vm0, %v13017_v0, %v13007_v1  ;;  %v7338_v3 = vsel %vm16331_vm2, %v13007_v1, %v13008_v55  ;;  %v7339_v39 = vsel %vm16332_vm3, %v13008_v55, %v13012_v7  ;;  %s16334_s9 = smov 39   ;;  %vm16346_vm0 = vmmov %vm16339_vm9  ;;  %vm16349_vm3 = vcmask 728064  }
 0x4ab   : > { %v7336_v53 = vsel %vm16333_vm4, %v13013_v45, %v13017_v0  ;;  %vm16347_vm2 = vmmov %vm16346_vm0 }
 0x4ac   : > { %vm16350_vm4 = vmmov %vm16349_vm3 }
 0x4ad   : > { %12129 = vmatmul.msk.f32.vlgmr.msra.gmra.mxu3 %vm358_vm1, %v12125_v49  ;;  %vm16353_vm7 = vmmov %vm16349_vm3 }
 0x4ae   : > { %12126 = vmatmul.msk.f32.vlgmr.msra.gmra.mxu0 %vm358_vm1, %v12125_v49  ;;  %12127 = vmatmul.msk.f32.vlgmr.msra.gmra.mxu1 %vm358_vm1, %v12125_v49  ;;  %v13041_v56 = vpop.permute.xlu0 %13040  ;;  %v13046_v4 = vpop.permute.xlu1 %13045  ;;  %vm16354_vm8 = vmmov %vm16349_vm3 }
 0x4af   : > { %12128 = vmatmul.msk.f32.vlgmr.msra.gmra.mxu2 %vm358_vm1, %v12125_v49  ;;  %7370 = vmatpush.msra.mxu0 %v7336_v53  ;;  %v13021_v38 = vpop.permute.xlu2 %13020  ;;  %v13043_v19 = vunpack.i.h.bf16 %v13041_v56  ;;  %v13042_v6 = vunpack.i.l.bf16 %v13041_v56  ;;  %v13048_v17 = vunpack.i.h.bf16 %v13046_v4  ;;  %v13047_v11 = vunpack.i.l.bf16 %v13046_v4  ;;  %vm16359_vm12 = vmmov %vm16358_vm11 }
 0x4b0   : > { %7390 = vmatpush.msra.mxu1 %v7337_v32  ;;  %7410 = vmatpush.msra.mxu2 %v7338_v3  ;;  %v13023_v63 = vunpack.i.h.bf16 %v13021_v38  ;;  %v13022_v13 = vunpack.i.l.bf16 %v13021_v38 }
 0x4b1   : > { %7430 = vmatpush.msra.mxu3 %v7339_v39  ;;  %13220 = vrot.lane.b32.xlu0 %v15370_v46, %s16329_s26  ;;  %v7550_v18 = vsel %vm16347_vm2, %v13042_v6, %v13043_v19 }
 0x4b2   : > { %13230 = vrot.lane.b32.xlu1 %v15362_v20, %s16334_s9  ;;  %13150 = vrot.lane.b32.xlu2 %v15362_v20, %s13449_s29  ;;  %v7342_v22 = vsel %vm16335_vm5, %v13018_v51, %v13022_v13  ;;  %v7343_v23 = vsel %vm16336_vm6, %v13022_v13, %v13023_v63  ;;  %vm16351_vm5 = vmmov %vm16349_vm3 }
 0x4b3   : > { %v7752_v7 = vsel %vm16351_vm5, %v13047_v11, %v13048_v17  ;;  %vm16352_vm6 = vmmov %vm16349_vm3  ;;  %vm16367_vm5 = vcmask 80896  }
 0x4b5   : > { %12133 = vmatmul.msk.f32.vlgmr.msrb.gmra.mxu3 %vm358_vm1, %v12125_v49 }
 0x4b6   : > { %12130 = vmatmul.msk.f32.vlgmr.msrb.gmra.mxu0 %vm358_vm1, %v12125_v49  ;;  %12131 = vmatmul.msk.f32.vlgmr.msrb.gmra.mxu1 %vm358_vm1, %v12125_v49  ;;  %v13051_v37 = vpop.permute.xlu0 %13050  ;;  %v13061_v52 = vpop.permute.xlu1 %13060 }
 0x4b7   : > { %12132 = vmatmul.msk.f32.vlgmr.msrb.gmra.mxu2 %vm358_vm1, %v12125_v49  ;;  %7450 = vmatpush.msrb.mxu0 %v7340_v25  ;;  %v13053_v8 = vunpack.i.h.bf16 %v13051_v37  ;;  %v13052_v47 = vunpack.i.l.bf16 %v13051_v37  ;;  %v13063_v21 = vunpack.i.h.bf16 %v13061_v52  ;;  %v13062_v3 = vunpack.i.l.bf16 %v13061_v52 }
 0x4b8   : > { %7470 = vmatpush.msrb.mxu1 %v7341_v42  ;;  %7490 = vmatpush.msrb.mxu2 %v7342_v22  ;;  %v13031_v44 = vpop.permute.xlu2 %13030  ;;  %v12152_v42 = vld [vmem:[%s16131_s4 + $0x40] sm:$0xff] }
 0x4b9   : > { %7510 = vmatpush.msrb.mxu3 %v7343_v23  ;;  %13235 = vrot.lane.b32.xlu0 %v15340_v59, %s16334_s9  ;;  %v13033_v15 = vunpack.i.h.bf16 %v13031_v44  ;;  %v13032_v40 = vunpack.i.l.bf16 %v13031_v44  ;;  %v7753_v50 = vsel %vm16352_vm6, %v13048_v17, %v13052_v47  ;;  %vm16368_vm6 = vmmov %vm16367_vm5 }
 0x4ba   : > { %9784 = vrot.lane.b32.xlu1 %v15111_v5, %s16334_s9  ;;  %13165 = vrot.lane.b32.xlu2 %v15332_v9, %s16327_s19 }
 0x4bb   : > { %v7543_v2 = vsel %vm16339_vm9, %v13033_v15, %v13037_v62  ;;  %v7546_v58 = vsel %vm16340_vm10, %v13028_v43, %v13032_v40  ;;  %vm16355_vm9 = vmmov %vm16349_vm3 }
 0x4bc   : > { %vm16356_vm10 = vmmov %vm16349_vm3 }
 0x4bd   : > { %12138 = vmatmul.msk.f32.vlgmr.msra.gmra.mxu3 %vm358_vm1, %v12134_v33  ;;  %v7757_v51 = vsel %vm16356_vm10, %v13062_v3, %v13063_v21  ;;  %vm16372_vm10 = vmmov %vm16367_vm5 }
 0x4be   : > { %12135 = vmatmul.msk.f32.vlgmr.msra.gmra.mxu0 %vm358_vm1, %v12134_v33  ;;  %12136 = vmatmul.msk.f32.vlgmr.msra.gmra.mxu1 %vm358_vm1, %v12134_v33  ;;  %v7743_v1 = vpop.permute.xlu0 %7742  ;;  %v13071_v39 = vpop.permute.xlu1 %13070 }
 0x4bf   : > { %12137 = vmatmul.msk.f32.vlgmr.msra.gmra.mxu2 %vm358_vm1, %v12134_v33  ;;  %7577 = vmatpush.msra.mxu0 %v7543_v2  ;;  %v7754_v38 = vsel %vm16353_vm7, %v13052_v47, %v7743_v1  ;;  %v13073_v15 = vunpack.i.h.bf16 %v13071_v39  ;;  %vm16369_vm7 = vmmov %vm16367_vm5 }
 0x4c0   : > { %7597 = vmatpush.msra.mxu1 %v7544_v14  ;;  %7617 = vmatpush.msra.mxu2 %v7545_v30 }
 0x4c1   : > { %7637 = vmatpush.msra.mxu3 %v7546_v58  ;;  %13245 = vrot.lane.b32.xlu0 %v15332_v9, %s16343_s11 }
 0x4c2   : > { %13255 = vrot.lane.b32.xlu1 %v15340_v59, %s16343_s11  ;;  %13180 = vrot.lane.b32.xlu2 %v15370_v46, %s16327_s19  ;;  %v7536_v36 = vpop.permute.xlu2 %7535  ;;  %v7549_v46 = vsel %vm16346_vm0, %v13038_v35, %v13042_v6  ;;  %vm16362_vm0 = vmmov %vm16358_vm11 }
 0x4c3   : > { %v7547_v29 = vsel %vm16344_vm13, %v13032_v40, %v7536_v36  ;;  %v7548_v10 = vsel %vm16345_vm14, %v7536_v36, %v13038_v35  ;;  %v13072_v40 = vunpack.i.l.bf16 %v13071_v39  ;;  %vm16360_vm13 = vmmov %vm16358_vm11 }
 0x4c4   : > { %vm16361_vm14 = vmmov %vm16358_vm11 }
 0x4c5   : > { %12142 = vmatmul.msk.f32.vlgmr.msrb.gmra.mxu3 %vm358_vm1, %v12134_v33  ;;  %vm16363_vm2 = vmmov %vm16362_vm0 }
 0x4c6   : > { %12139 = vmatmul.msk.f32.vlgmr.msrb.gmra.mxu0 %vm358_vm1, %v12134_v33  ;;  %12140 = vmatmul.msk.f32.vlgmr.msrb.gmra.mxu1 %vm358_vm1, %v12134_v33  ;;  %v13076_v53 = vpop.permute.xlu0 %13075  ;;  %v7950_v16 = vpop.permute.xlu1 %7949 }
 0x4c7   : > { %12141 = vmatmul.msk.f32.vlgmr.msrb.gmra.mxu2 %vm358_vm1, %v12134_v33  ;;  %7657 = vmatpush.msrb.mxu0 %v7547_v29  ;;  %v13077_v22 = vunpack.i.l.bf16 %v13076_v53  ;;  %v13078_v30 = vunpack.i.h.bf16 %v13076_v53  ;;  %v7961_v41 = vsel %vm16362_vm0, %v13072_v40, %v7950_v16 }
 0x4c8   : > { %7677 = vmatpush.msrb.mxu1 %v7548_v10  ;;  %7697 = vmatpush.msrb.mxu2 %v7549_v46 }
 0x4c9   : > { %7717 = vmatpush.msrb.mxu3 %v7550_v18  ;;  %13260 = vrot.lane.b32.xlu0 %v15489_v34, %s16343_s11  ;;  %v7957_v33 = vsel %vm16358_vm11, %v13073_v15, %v13077_v22  ;;  %v7962_v29 = vsel %vm16363_vm2, %v7950_v16, %v13078_v30  ;;  %vm16373_vm11 = vmmov %vm16367_vm5 }
 0x4ca   : > { %13265 = vrot.lane.b32.xlu1 %v15332_v9, %s16348_s12  ;;  %13195 = vrot.lane.b32.xlu2 %v15340_v59, %s16328_s20  ;;  %v13056_v28 = vpop.permute.xlu2 %13055 }
 0x4cb   : > { %v13057_v55 = vunpack.i.l.bf16 %v13056_v28  ;;  %v13058_v45 = vunpack.i.h.bf16 %v13056_v28 }
 0x4cd   : > { %12147 = vmatmul.msk.f32.vlgmr.msra.gmra.mxu3 %vm358_vm1, %v12143_v61  ;;  %v7750_v0 = vsel %vm16349_vm3, %v13053_v8, %v13057_v55  ;;  %v7751_v49 = vsel %vm16350_vm4, %v13057_v55, %v13047_v11  ;;  %v7755_v63 = vsel %vm16354_vm8, %v7743_v1, %v13058_v45  ;;  %v7756_v13 = vsel %vm16355_vm9, %v13058_v45, %v13062_v3  ;;  %vm16364_vm3 = vmmov %vm16362_vm0  ;;  %v12161_v1 = vld [vmem:[%s16131_s4 + $0x48] sm:$0xff] }
 0x4ce   : > { %12144 = vmatmul.msk.f32.vlgmr.msra.gmra.mxu0 %vm358_vm1, %v12143_v61  ;;  %12145 = vmatmul.msk.f32.vlgmr.msra.gmra.mxu1 %vm358_vm1, %v12143_v61  ;;  %vm16365_vm4 = vmmov %vm16362_vm0 }
 0x4cf   : > { %12146 = vmatmul.msk.f32.vlgmr.msra.gmra.mxu2 %vm358_vm1, %v12143_v61  ;;  %7784 = vmatpush.msra.mxu0 %v7750_v0  ;;  %v13086_v2 = vpop.permute.xlu0 %13085  ;;  %v13096_v10 = vpop.permute.xlu1 %13095  ;;  %vm16370_vm8 = vmmov %vm16367_vm5 }
 0x4d0   : > { %7804 = vmatpush.msra.mxu1 %v7751_v49  ;;  %7824 = vmatpush.msra.mxu2 %v7752_v7  ;;  %v6176_v4 = vpop.f32.mrf.mxu2  ;;  %v13097_v11 = vunpack.i.l.bf16 %v13096_v10  ;;  %v13088_v55 = vunpack.i.h.bf16 %v13086_v2  ;;  %vm16371_vm9 = vmmov %vm16367_vm5 }
 0x4d1   : > { %7844 = vmatpush.msra.mxu3 %v7753_v50  ;;  %13270 = vrot.lane.b32.xlu0 %v15362_v20, %s16348_s12 }
 0x4d2   : > { %13280 = vrot.lane.b32.xlu1 %v15489_v34, %s16348_s12  ;;  %13210 = vrot.lane.b32.xlu2 %v15362_v20, %s16329_s26  ;;  %v13066_v32 = vpop.permute.xlu2 %13065  ;;  %s16379_s26 = smov 19  }
 0x4d3   : > { %v13067_v23 = vunpack.i.l.bf16 %v13066_v32  ;;  %v13068_v56 = vunpack.i.h.bf16 %v13066_v32 }
 0x4d5   : > { %12151 = vmatmul.msk.f32.vlgmr.msrb.gmra.mxu3 %vm358_vm1, %v12143_v61  ;;  %v7958_v43 = vsel %vm16359_vm12, %v13077_v22, %v13067_v23  ;;  %v7959_v58 = vsel %vm16360_vm13, %v13067_v23, %v13068_v56  ;;  %v7960_v14 = vsel %vm16361_vm14, %v13068_v56, %v13072_v40  ;;  %vm16374_vm12 = vmmov %vm16367_vm5  ;;  %vm16375_vm13 = vcmask 72704  }
 0x4d6   : > { %12148 = vmatmul.msk.f32.vlgmr.msrb.gmra.mxu0 %vm358_vm1, %v12143_v61  ;;  %12149 = vmatmul.msk.f32.vlgmr.msrb.gmra.mxu1 %vm358_vm1, %v12143_v61  ;;  %vm16376_vm14 = vmmov %vm16375_vm13 }
 0x4d7   : > { %12150 = vmatmul.msk.f32.vlgmr.msrb.gmra.mxu2 %vm358_vm1, %v12143_v61  ;;  %7864 = vmatpush.msrb.mxu0 %v7754_v38  ;;  %v13087_v61 = vunpack.i.l.bf16 %v13086_v2  ;;  %vm16377_vm0 = vmmov %vm16375_vm13 }
 0x4d8   : > { %7884 = vmatpush.msrb.mxu1 %v7755_v63  ;;  %7904 = vmatpush.msrb.mxu2 %v7756_v13  ;;  %v15537_v62 = vpop.f32.mrf.mxu3  ;;  %vm16378_vm2 = vmmov %vm16377_vm0 }
 0x4d9   : > { %7924 = vmatpush.msrb.mxu3 %v7757_v51  ;;  %10198 = vrot.lane.b32.xlu0 %v15111_v5, %s16348_s12  ;;  %v15526_v24 = vpop.f32.mrf.mxu0  ;;  %v15533_v44 = vpop.f32.mrf.mxu1  ;;  %v8165_v45 = vsel %vm16368_vm6, %v13097_v11, %v13087_v61  ;;  %v8166_v32 = vsel %vm16369_vm7, %v13087_v61, %v13088_v55  ;;  %vm16383_vm6 = vmmov %vm16377_vm0  ;;  %vm16384_vm7 = vcmask 7168  }
 0x4da   : > { %13290 = vrot.lane.b32.xlu1 %v15362_v20, %s16357_s15  ;;  %13225 = vrot.lane.b32.xlu2 %v15332_v9, %s16334_s9  ;;  %v13101_v17 = vpop.permute.xlu0 %13100 }
 0x4db   : > { %v13081_v25 = vpop.permute.xlu2 %13080  ;;  %v13103_v13 = vunpack.i.h.bf16 %v13101_v17  ;;  %v13102_v51 = vunpack.i.l.bf16 %v13101_v17 }
 0x4dc   : > { %v13083_v36 = vunpack.i.h.bf16 %v13081_v25  ;;  %v13082_v19 = vunpack.i.l.bf16 %v13081_v25  ;;  %v13098_v25 = vunpack.i.h.bf16 %v13096_v10 }
 0x4dd   : > { %12156 = vmatmul.msk.f32.vlgmr.msra.gmra.mxu3 %vm358_vm1, %v12152_v42  ;;  %v8171_v16 = vsel %vm16374_vm12, %v13102_v51, %v13103_v13  ;;  %vm16389_vm12 = vmmov %vm16384_vm7 }
 0x4de   : > { %12153 = vmatmul.msk.f32.vlgmr.msra.gmra.mxu0 %vm358_vm1, %v12152_v42  ;;  %12154 = vmatmul.msk.f32.vlgmr.msra.gmra.mxu1 %vm358_vm1, %v12152_v42  ;;  %v7963_v46 = vsel %vm16364_vm3, %v13078_v30, %v13082_v19  ;;  %v7964_v18 = vsel %vm16365_vm4, %v13082_v19, %v13083_v36  ;;  %v8170_v40 = vsel %vm16373_vm11, %v13098_v25, %v13102_v51  ;;  %vm16380_vm3 = vmmov %vm16377_vm0 }
 0x4df   : > { %12155 = vmatmul.msk.f32.vlgmr.msra.gmra.mxu2 %vm358_vm1, %v12152_v42  ;;  %7991 = vmatpush.msra.mxu0 %v7957_v33  ;;  %vm16381_vm4 = vmmov %vm16377_vm0 }
 0x4e0   : > { %8011 = vmatpush.msra.mxu1 %v7958_v43  ;;  %8031 = vmatpush.msra.mxu2 %v7959_v58  ;;  %vm16388_vm11 = vmmov %vm16384_vm7 }
 0x4e1   : > { %8051 = vmatpush.msra.mxu3 %v7960_v14  ;;  %13295 = vrot.lane.b32.xlu0 %v15340_v59, %s16357_s15  ;;  %v12170_v14 = vld [vmem:[%s16131_s4 + $0x50] sm:$0xff] }
 0x4e2   : > { %10405 = vrot.lane.b32.xlu1 %v15111_v5, %s16357_s15  ;;  %13240 = vrot.lane.b32.xlu2 %v15489_v34, %s16334_s9  ;;  %v15551_v37 = vpop.f32.mrf.mxu0  ;;  %v15593_v22 = vpop.permute.xlu0 %13110  ;;  %s16392_s9 = smov 17  }
 0x4e3   : > { %v13091_v6 = vpop.permute.xlu2 %13090  ;;  %v15553_v35 = vpop.f32.mrf.mxu1  ;;  %v13112_v36 = vunpack.i.l.bf16 %v15593_v22 }
 0x4e4   : > { %v13093_v8 = vunpack.i.h.bf16 %v13091_v6  ;;  %v13092_v0 = vunpack.i.l.bf16 %v13091_v6  ;;  %v13113_v6 = vunpack.i.h.bf16 %v15593_v22 }
 0x4e5   : > { %12160 = vmatmul.msk.f32.vlgmr.msrb.gmra.mxu3 %vm358_vm1, %v12152_v42 }
 0x4e6   : > { %12157 = vmatmul.msk.f32.vlgmr.msrb.gmra.mxu0 %vm358_vm1, %v12152_v42  ;;  %12158 = vmatmul.msk.f32.vlgmr.msrb.gmra.mxu1 %vm358_vm1, %v12152_v42  ;;  %v8164_v50 = vsel %vm16367_vm5, %v13093_v8, %v13097_v11  ;;  %v8167_v21 = vsel %vm16370_vm8, %v13088_v55, %v13092_v0  ;;  %v15628_v11 = vld [vmem:[#allocation2 + $0x30] sm:$0xff]  ;;  %vm16382_vm5 = vmmov %vm16377_vm0 }
 0x4e7   : > { %12159 = vmatmul.msk.f32.vlgmr.msrb.gmra.mxu2 %vm358_vm1, %v12152_v42  ;;  %8071 = vmatpush.msrb.mxu0 %v7961_v41  ;;  %v6276_v52 = vpop.f32.mrf.mxu3  ;;  %v13106_v42 = vpop.permute.xlu1 %13105  ;;  %vm16385_vm8 = vmmov %vm16384_vm7 }
 0x4e8   : > { %8091 = vmatpush.msrb.mxu1 %v7962_v29  ;;  %8111 = vmatpush.msrb.mxu2 %v7963_v46  ;;  %v13107_v30 = vunpack.i.l.bf16 %v13106_v42 }
 0x4e9   : > { %8131 = vmatpush.msrb.mxu3 %v7964_v18  ;;  %13305 = vrot.lane.b32.xlu0 %v15332_v9, %s16366_s18  ;;  %v6256_v28 = vpop.f32.mrf.mxu2 }
 0x4ea   : > { %13315 = vrot.lane.b32.xlu1 %v15340_v59, %s16366_s18  ;;  %13250 = vrot.lane.b32.xlu2 %v15362_v20, %s16343_s11  ;;  %v15569_v47 = vpop.f32.mrf.mxu0  ;;  %v8364_v29 = vpop.permute.xlu0 %8363 }
 0x4eb   : > { %v15574_v49 = vpop.f32.mrf.mxu1  ;;  %v8157_v7 = vpop.permute.xlu2 %8156 }
 0x4ec   : > { %v8168_v56 = vsel %vm16371_vm9, %v13092_v0, %v8157_v7  ;;  %v8169_v15 = vsel %vm16372_vm10, %v8157_v7, %v13098_v25  ;;  %vm16386_vm9 = vmmov %vm16384_vm7 }
 0x4ed   : > { %12165 = vmatmul.msk.f32.vlgmr.msra.gmra.mxu3 %vm358_vm1, %v12161_v1  ;;  %vm16387_vm10 = vmmov %vm16384_vm7 }
 0x4ee   : > { %12162 = vmatmul.msk.f32.vlgmr.msra.gmra.mxu0 %vm358_vm1, %v12161_v1  ;;  %12163 = vmatmul.msk.f32.vlgmr.msra.gmra.mxu1 %vm358_vm1, %v12161_v1 }
 0x4ef   : > { %12164 = vmatmul.msk.f32.vlgmr.msra.gmra.mxu2 %vm358_vm1, %v12161_v1  ;;  %8198 = vmatpush.msra.mxu0 %v8164_v50  ;;  %v6390_v3 = vpop.f32.mrf.mxu3  ;;  %v13121_v18 = vpop.permute.xlu1 %13120 }
 0x4f0   : > { %8218 = vmatpush.msra.mxu1 %v8165_v45  ;;  %8238 = vmatpush.msra.mxu2 %v8166_v32  ;;  %v6391_v39 = vadd.f32 %v6390_v3, %v15537_v62  ;;  %v13123_v0 = vunpack.i.h.bf16 %v13121_v18  ;;  %v13122_v7 = vunpack.i.l.bf16 %v13121_v18  ;;  %v8375_v32 = vsel %vm16380_vm3, %v13112_v36, %v8364_v29 }
 0x4f1   : > { %8258 = vmatpush.msra.mxu3 %v8167_v21  ;;  %13320 = vrot.lane.b32.xlu0 %v15489_v34, %s16366_s18  ;;  %v6370_v53 = vpop.f32.mrf.mxu2 }
 0x4f2   : > { %13325 = vrot.lane.b32.xlu1 %v15332_v9, %s13458_s21  ;;  %9991 = vrot.lane.b32.xlu2 %v15111_v5, %s16343_s11  ;;  %v6371_v38 = vadd.f32 %v6370_v53, %v6176_v4  ;;  %v15591_v63 = vpop.f32.mrf.mxu0  ;;  %v13108_v4 = vunpack.i.h.bf16 %v13106_v42 }
 0x4f3   : > { %v15595_v23 = vpop.f32.mrf.mxu1  ;;  %v13116_v5 = vpop.permute.xlu2 %13115 }
 0x4f4   : > { %v13117_v2 = vunpack.i.l.bf16 %v13116_v5  ;;  %v8374_v17 = vsel %vm16378_vm2, %v13108_v4, %v13112_v36 }
 0x4f5   : > { %12169 = vmatmul.msk.f32.vlgmr.msrb.gmra.mxu3 %vm358_vm1, %v12161_v1 }
 0x4f6   : > { %12166 = vmatmul.msk.f32.vlgmr.msrb.gmra.mxu0 %vm358_vm1, %v12161_v1  ;;  %12167 = vmatmul.msk.f32.vlgmr.msrb.gmra.mxu1 %vm358_vm1, %v12161_v1  ;;  %v8371_v10 = vsel %vm16375_vm13, %v13113_v6, %v13117_v2  ;;  %v8372_v46 = vsel %vm16376_vm14, %v13117_v2, %v13107_v30  ;;  %vm16390_vm13 = vmmov %vm16384_vm7 }
 0x4f7   : > { %12168 = vmatmul.msk.f32.vlgmr.msrb.gmra.mxu2 %vm358_vm1, %v12161_v1  ;;  %8278 = vmatpush.msrb.mxu0 %v8168_v56  ;;  %v6470_v62 = vpop.f32.mrf.mxu3  ;;  %v13118_v1 = vunpack.i.h.bf16 %v13116_v5  ;;  %v13131_v51 = vpop.permute.xlu1 %13130  ;;  %v12179_v5 = vld [vmem:[%s16131_s4 + $0x58] sm:$0xff]  ;;  %vm16391_vm14 = vmmov %vm16384_vm7 }
 0x4f8   : > { %8298 = vmatpush.msrb.mxu1 %v8169_v15  ;;  %8318 = vmatpush.msrb.mxu2 %v8170_v40  ;;  %v6471_v33 = vadd.f32 %v6470_v62, %v6276_v52  ;;  %v8373_v52 = vsel %vm16377_vm0, %v13107_v30, %v13108_v4  ;;  %v13133_v62 = vunpack.i.h.bf16 %v13131_v51  ;;  %v13132_v2 = vunpack.i.l.bf16 %v13131_v51 }
 0x4f9   : > { %8338 = vmatpush.msrb.mxu3 %v8171_v16  ;;  %13330 = vrot.lane.b32.xlu0 %v15362_v20, %s13458_s21  ;;  %v6450_v43 = vpop.f32.mrf.mxu2  ;;  %v8376_v3 = vsel %vm16381_vm4, %v8364_v29, %v13118_v1  ;;  %v8377_v53 = vsel %vm16382_vm5, %v13118_v1, %v13122_v7  ;;  %vm16393_vm0 = vcmask 1039360  }
 0x4fa   : > { %13340 = vrot.lane.b32.xlu1 %v15489_v34, %s13458_s21  ;;  %13275 = vrot.lane.b32.xlu2 %v15340_v59, %s16348_s12  ;;  %v6451_v58 = vadd.f32 %v6450_v43, %v6256_v28  ;;  %vm16394_vm2 = vmmov %vm16393_vm0 }
 0x4fb   : > { %v15615_v19 = vpop.f32.mrf.mxu0  ;;  %v15618_v41 = vpop.f32.mrf.mxu1  ;;  %vm16395_vm3 = vmmov %vm16393_vm0 }
 0x4fc   : > { %v13126_v21 = vpop.permute.xlu2 %13125  ;;  %vm16396_vm4 = vmmov %vm16393_vm0 }
 0x4fd   : > { %12174 = vmatmul.msk.f32.vlgmr.msra.gmra.mxu3 %vm358_vm1, %v12170_v14  ;;  %v13127_v56 = vunpack.i.l.bf16 %v13126_v21  ;;  %v13128_v40 = vunpack.i.h.bf16 %v13126_v21  ;;  %vm16397_vm5 = vmmov %vm16393_vm0 }
 0x4fe   : > { %12171 = vmatmul.msk.f32.vlgmr.msra.gmra.mxu0 %vm358_vm1, %v12170_v14  ;;  %12172 = vmatmul.msk.f32.vlgmr.msra.gmra.mxu1 %vm358_vm1, %v12170_v14 }
 0x4ff   : > { %12173 = vmatmul.msk.f32.vlgmr.msra.gmra.mxu2 %vm358_vm1, %v12170_v14  ;;  %8405 = vmatpush.msra.mxu0 %v8371_v10  ;;  %v6586_v28 = vpop.f32.mrf.mxu3  ;;  %v8581_v4 = vsel %vm16387_vm10, %v13128_v40, %v13132_v2  ;;  %v8571_v18 = vpop.permute.xlu1 %8570 }
 0x500   : > { %8425 = vmatpush.msra.mxu1 %v8372_v46  ;;  %8445 = vmatpush.msra.mxu2 %v8373_v52  ;;  %v6672_v61 = vadd.f32 %v6586_v28, %v6391_v39  ;;  %v15646_v39 = vpop.permute.xlu0 %13135 }
 0x501   : > { %8465 = vmatpush.msra.mxu3 %v8374_v17  ;;  %10819 = vrot.lane.b32.xlu0 %v15628_v11, %s13458_s21  ;;  %v13137_v42 = vunpack.i.l.bf16 %v15646_v39  ;;  %v13138_v10 = vunpack.i.h.bf16 %v15646_v39 }
 0x502   : > { %13350 = vrot.lane.b32.xlu1 %v15362_v20, %s16379_s26  ;;  %v6566_v8 = vpop.f32.mrf.mxu2  ;;  %13285 = vrot.lane.b32.xlu2 %v15332_v9, %s16357_s15 }
 0x503   : > { %v6671_v55 = vadd.f32 %v6566_v8, %v6371_v38  ;;  %v15636_v50 = vpop.f32.mrf.mxu0  ;;  %v15638_v45 = vpop.f32.mrf.mxu1  ;;  %v8378_v38 = vsel %vm16383_vm6, %v13122_v7, %v13123_v0  ;;  %vm16398_vm6 = vmmov %vm16393_vm0 }
 0x504   : > { %v13141_v30 = vpop.permute.xlu2 %13140 }
 0x505   : > { %12178 = vmatmul.msk.f32.vlgmr.msrb.gmra.mxu3 %vm358_vm1, %v12170_v14  ;;  %v13143_v52 = vunpack.i.h.bf16 %v13141_v30  ;;  %v13142_v17 = vunpack.i.l.bf16 %v13141_v30 }
 0x506   : > { %12175 = vmatmul.msk.f32.vlgmr.msrb.gmra.mxu0 %vm358_vm1, %v12170_v14  ;;  %12176 = vmatmul.msk.f32.vlgmr.msrb.gmra.mxu1 %vm358_vm1, %v12170_v14 }
 0x507   : > { %12177 = vmatmul.msk.f32.vlgmr.msrb.gmra.mxu2 %vm358_vm1, %v12170_v14  ;;  %8485 = vmatpush.msrb.mxu0 %v8375_v32  ;;  %v8580_v14 = vsel %vm16386_vm9, %v13127_v56, %v13128_v40  ;;  %v8584_v0 = vsel %vm16390_vm13, %v13138_v10, %v13142_v17  ;;  %v8585_v7 = vsel %vm16391_vm14, %v13142_v17, %v13143_v52  ;;  %v13426_v40 = vld [vmem:[#allocation2 + $0x38] sm:$0xff] }
 0x508   : > { %8505 = vmatpush.msrb.mxu1 %v8376_v3  ;;  %8525 = vmatpush.msrb.mxu2 %v8377_v53  ;;  %v6666_v13 = vpop.f32.mrf.mxu3  ;;  %v6351_v32 = vadd.f32 %v15574_v49, %v15533_v44  ;;  %v12188_v44 = vld [vmem:[%s16131_s4 + $0x60] sm:$0xff] }
 0x509   : > { %8545 = vmatpush.msrb.mxu3 %v8378_v38  ;;  %13355 = vrot.lane.b32.xlu0 %v15340_v59, %s16379_s26  ;;  %v6676_v25 = vadd.f32 %v6666_v13, %v6471_v33  ;;  %v8578_v33 = vsel %vm16384_vm7, %v13133_v62, %v13137_v42  ;;  %vm16399_vm7 = vmmov %vm16393_vm0 }
 0x50a   : > { %11026 = vrot.lane.b32.xlu1 %v15628_v11, %s16379_s26  ;;  %v6646_v22 = vpop.f32.mrf.mxu2  ;;  %13300 = vrot.lane.b32.xlu2 %v15489_v34, %s16357_s15  ;;  %v6670_v39 = vadd.f32 %v15618_v41, %v6351_v32  ;;  %v6411_v41 = vadd.f32 %v15591_v63, %v15551_v37 }
 0x50b   : > { %v6675_v15 = vadd.f32 %v6646_v22, %v6451_v58  ;;  %v6751_v16 = vpop.f32.mrf.mxu0  ;;  %v6771_v43 = vpop.f32.mrf.mxu1  ;;  %v8579_v58 = vsel %vm16385_vm8, %v13137_v42, %v13127_v56  ;;  %v13424_v42 = vld [vmem:[#allocation2 + $0x10] sm:$0xff]  ;;  %v13425_v56 = vld [vmem:[#allocation2 + $0x28] sm:$0xff]  ;;  %vm16400_vm8 = vcmask 973824  }
 0x50c   : > { %vm16401_vm9 = vmmov %vm16400_vm8 }
 0x50d   : > { %12183 = vmatmul.msk.f32.vlgmr.msra.gmra.mxu3 %vm358_vm1, %v12179_v5  ;;  %vm16402_vm10 = vmmov %vm16400_vm8 }
 0x50e   : > { %12180 = vmatmul.msk.f32.vlgmr.msra.gmra.mxu0 %vm358_vm1, %v12179_v5  ;;  %12181 = vmatmul.msk.f32.vlgmr.msra.gmra.mxu1 %vm358_vm1, %v12179_v5  ;;  %vm16405_vm13 = vmmov %vm16400_vm8 }
 0x50f   : > { %12182 = vmatmul.msk.f32.vlgmr.msra.gmra.mxu2 %vm358_vm1, %v12179_v5  ;;  %8612 = vmatpush.msra.mxu0 %v8578_v33  ;;  %vm16406_vm14 = vmmov %vm16400_vm8 }
 0x510   : > { %8632 = vmatpush.msra.mxu1 %v8579_v58  ;;  %8652 = vmatpush.msra.mxu2 %v8580_v14  ;;  %v6811_v36 = vpop.f32.mrf.mxu3 }
 0x511   : > { %8672 = vmatpush.msra.mxu3 %v8581_v4  ;;  %13365 = vrot.lane.b32.xlu0 %v15332_v9, %s13460_s24  ;;  %v15672_v29 = vadd.f32 %v6811_v36, %v6672_v61  ;;  %v8582_v9 = vsel %vm16388_vm11, %v13132_v2, %v8571_v18  ;;  %v13422_v61 = vld [vmem:[#allocation2 + $0x20] sm:$0xff]  ;;  %v13151_v36 = vpop.permute.xlu2 %13150  ;;  %vm16403_vm11 = vmmov %vm16400_vm8 }
 0x512   : > { %13375 = vrot.lane.b32.xlu1 %v15340_v59, %s13460_s24  ;;  %v6791_v6 = vpop.f32.mrf.mxu2  ;;  %13310 = vrot.lane.b32.xlu2 %v15362_v20, %s16366_s18  ;;  %v8583_v59 = vsel %vm16389_vm12, %v8571_v18, %v13138_v10  ;;  %v13421_v20 = vld [vmem:[#allocation2 + $0x18] sm:$0xff]  ;;  %v13153_v17 = vunpack.i.h.bf16 %v13151_v36  ;;  %vm16404_vm12 = vmmov %vm16400_vm8 }
 0x513   : > { %v15677_v46 = vadd.f32 %v6791_v6, %v6671_v55  ;;  %v6831_v28 = vpop.f32.mrf.mxu0  ;;  %v6851_v8 = vpop.f32.mrf.mxu1  ;;  %v15685_v1 = vpack.i.bf16 %v13422_v61, %v13421_v20  ;;  %v6331_v55 = vadd.f32 %v15569_v47, %v15526_v24  ;;  %v13427_v6 = vld [vmem:[#allocation2 + $0x40] sm:$0xff] }
 0x515   : > { %12187 = vmatmul.msk.f32.vlgmr.msrb.gmra.mxu3 %vm358_vm1, %v12179_v5  ;;  %v6669_v3 = vadd.f32 %v15615_v19, %v6331_v55  ;;  %v6895_v19 = vadd.f32 %v6771_v43, %v6670_v39  ;;  %v6673_v43 = vadd.f32 %v15636_v50, %v6411_v41 }
 0x516   : > { %12184 = vmatmul.msk.f32.vlgmr.msrb.gmra.mxu0 %vm358_vm1, %v12179_v5  ;;  %12185 = vmatmul.msk.f32.vlgmr.msrb.gmra.mxu1 %vm358_vm1, %v12179_v5 }
 0x517   : > { %12186 = vmatmul.msk.f32.vlgmr.msrb.gmra.mxu2 %vm358_vm1, %v12179_v5  ;;  %8692 = vmatpush.msrb.mxu0 %v8582_v9  ;;  %v6894_v49 = vadd.f32 %v6751_v16, %v6669_v3  ;;  %v6431_v5 = vadd.f32 %v15595_v23, %v15553_v35  ;;  %v15714_v16 = vpack.i.bf16 %v13426_v40, %v13424_v42  ;;  %v13146_v23 = vpop.permute.xlu0 %13145 }
 0x518   : > { %8712 = vmatpush.msrb.mxu1 %v8583_v59  ;;  %8732 = vmatpush.msrb.mxu2 %v8584_v0  ;;  %v6891_v21 = vpop.f32.mrf.mxu3  ;;  %v6898_v33 = vadd.f32 %v6831_v28, %v6673_v43  ;;  %v13147_v18 = vunpack.i.l.bf16 %v13146_v23  ;;  %v13148_v9 = vunpack.i.h.bf16 %v13146_v23  ;;  %v13152_v59 = vunpack.i.l.bf16 %v13151_v36 }
 0x519   : > { %8752 = vmatpush.msrb.mxu3 %v8585_v7  ;;  %13380 = vrot.lane.b32.xlu0 %v15489_v34, %s13460_s24  ;;  %v6901_v47 = vadd.f32 %v6891_v21, %v6676_v25  ;;  %v13423_v25 = vld [vmem:[#allocation2 + $0x8] sm:$0xff]  ;;  %v6674_v2 = vadd.f32 %v15638_v45, %v6431_v5  ;;  %v13156_v45 = vpop.permute.xlu1 %13155 }
 0x51a   : > { %13385 = vrot.lane.b32.xlu1 %v15685_v1, %s16392_s9  ;;  %v6871_v24 = vpop.f32.mrf.mxu2  ;;  %10612 = vrot.lane.b32.xlu2 %v15628_v11, %s16366_s18  ;;  %v13157_v52 = vunpack.i.l.bf16 %v13156_v45  ;;  %v8958_v21 = vsel %vm16395_vm3, %v13147_v18, %v13148_v9  ;;  %v8959_v3 = vsel %vm16396_vm4, %v13148_v9, %v13152_v59 }
 0x51b   : > { %v6900_v53 = vadd.f32 %v6871_v24, %v6675_v15  ;;  %v6958_v38 = vpop.f32.mrf.mxu0  ;;  %v6978_v51 = vpop.f32.mrf.mxu1  ;;  %v15710_v15 = vpack.i.bf16 %v13423_v25, %v13425_v56  ;;  %v6899_v58 = vadd.f32 %v6851_v8, %v6674_v2  ;;  %v12197_v8 = vld [vmem:[%s16131_s4 + $0x68] sm:$0xff] }
 0x51c   : > { %v7101_v13 = vadd.f32 %v6958_v38, %v6894_v49  ;;  %v7102_v22 = vadd.f32 %v6978_v51, %v6895_v19  ;;  %v8957_v32 = vsel %vm16394_vm2, %v13157_v52, %v13147_v18  ;;  %v13166_v19 = vpop.permute.xlu2 %13165  ;;  %v13158_v38 = vunpack.i.h.bf16 %v13156_v45 }
 0x51d   : > { %12192 = vmatmul.msk.f32.vlgmr.msra.gmra.mxu3 %vm358_vm1, %v12188_v44  ;;  %v13168_v23 = vunpack.i.h.bf16 %v13166_v19 }
 0x51e   : > { %12189 = vmatmul.msk.f32.vlgmr.msra.gmra.mxu0 %vm358_vm1, %v12188_v44  ;;  %12190 = vmatmul.msk.f32.vlgmr.msra.gmra.mxu1 %vm358_vm1, %v12188_v44 }
 0x51f   : > { %12191 = vmatmul.msk.f32.vlgmr.msra.gmra.mxu2 %vm358_vm1, %v12188_v44  ;;  %8785 = vmatpush.msra.mxu0 %v13423_v25 }
 0x520   : > { %8805 = vmatpush.msra.mxu1 %v13424_v42  ;;  %8825 = vmatpush.msra.mxu2 %v13421_v20  ;;  %v7018_v62 = vpop.f32.mrf.mxu3 }
 0x521   : > { %8845 = vmatpush.msra.mxu3 %v13422_v61  ;;  %13390 = vrot.lane.b32.xlu0 %v15710_v15, %s16392_s9  ;;  %v7104_v63 = vadd.f32 %v7018_v62, %v15672_v29  ;;  %v13161_v61 = vpop.permute.xlu0 %13160  ;;  %v13171_v42 = vpop.permute.xlu1 %13170 }
 0x522   : > { %13400 = vrot.lane.b32.xlu1 %v15489_v34, %s16392_s9  ;;  %v6998_v37 = vpop.f32.mrf.mxu2  ;;  %13335 = vrot.lane.b32.xlu2 %v15714_v16, %s13458_s21  ;;  %v13162_v49 = vunpack.i.l.bf16 %v13161_v61 }
 0x523   : > { %v7103_v35 = vadd.f32 %v6998_v37, %v15677_v46  ;;  %v7038_v50 = vpop.f32.mrf.mxu0  ;;  %v7058_v4 = vpop.f32.mrf.mxu1 }
 0x524   : > { %v7105_v14 = vadd.f32 %v7038_v50, %v6898_v33  ;;  %v7106_v30 = vadd.f32 %v7058_v4, %v6899_v58  ;;  %v8962_v5 = vsel %vm16399_vm7, %v13158_v38, %v13162_v49  ;;  %v13173_v33 = vunpack.i.h.bf16 %v13171_v42 }
 0x525   : > { %12196 = vmatmul.msk.f32.vlgmr.msrb.gmra.mxu3 %vm358_vm1, %v12188_v44  ;;  %v13172_v50 = vunpack.i.l.bf16 %v13171_v42 }
 0x526   : > { %12193 = vmatmul.msk.f32.vlgmr.msrb.gmra.mxu0 %vm358_vm1, %v12188_v44  ;;  %12194 = vmatmul.msk.f32.vlgmr.msrb.gmra.mxu1 %vm358_vm1, %v12188_v44 }
 0x527   : > { %12195 = vmatmul.msk.f32.vlgmr.msrb.gmra.mxu2 %vm358_vm1, %v12188_v44  ;;  %8865 = vmatpush.msrb.mxu0 %v13425_v56 }
 0x528   : > { %8885 = vmatpush.msrb.mxu1 %v15628_v11  ;;  %8905 = vmatpush.msrb.mxu2 %v13426_v40  ;;  %v7098_v29 = vpop.f32.mrf.mxu3 }
 0x529   : > { %8925 = vmatpush.msrb.mxu3 %v13427_v6  ;;  %11440 = vrot.lane.b32.xlu0 %v15628_v11, %s16392_s9  ;;  %v7108_v46 = vadd.f32 %v7098_v29, %v6901_v47  ;;  %v13176_v56 = vpop.permute.xlu0 %13175  ;;  %v9163_v29 = vsel %vm16403_vm11, %v13168_v23, %v13172_v50 }
 0x52a   : > { %v7078_v10 = vpop.f32.mrf.mxu2  ;;  %13345 = vrot.lane.b32.xlu2 %v15685_v1, %s16379_s26  ;;  %v8956_v1 = vsel %vm16393_vm0, %v13153_v17, %v13157_v52  ;;  %v13177_v37 = vunpack.i.l.bf16 %v13176_v56  ;;  %v13178_v9 = vunpack.i.h.bf16 %v13176_v56  ;;  %vm16407_vm0 = vcmask 965632  }
 0x52b   : > { %v7107_v28 = vadd.f32 %v7078_v10, %v6900_v53  ;;  %v7165_v20 = vpop.f32.mrf.mxu0  ;;  %v7185_v0 = vpop.f32.mrf.mxu1  ;;  %v13163_v53 = vunpack.i.h.bf16 %v13161_v61  ;;  %vm16408_vm2 = vmmov %vm16407_vm0 }
 0x52c   : > { %v7308_v55 = vadd.f32 %v7165_v20, %v7101_v13  ;;  %v7309_v7 = vadd.f32 %v7185_v0, %v7102_v22  ;;  %vm16409_vm3 = vmmov %vm16407_vm0 }
 0x52d   : > { %12201 = vmatmul.msk.f32.vlgmr.msra.gmra.mxu3 %vm358_vm1, %v12197_v8  ;;  %v8960_v25 = vsel %vm16397_vm5, %v13152_v59, %v13163_v53  ;;  %vm16410_vm4 = vmmov %vm16407_vm0 }
 0x52e   : > { %12198 = vmatmul.msk.f32.vlgmr.msra.gmra.mxu0 %vm358_vm1, %v12197_v8  ;;  %12199 = vmatmul.msk.f32.vlgmr.msra.gmra.mxu1 %vm358_vm1, %v12197_v8  ;;  %vm16411_vm5 = vmmov %vm16407_vm0 }
 0x52f   : > { %12200 = vmatmul.msk.f32.vlgmr.msra.gmra.mxu2 %vm358_vm1, %v12197_v8  ;;  %8989 = vmatpush.msra.mxu0 %v8956_v1  ;;  %vm16413_vm7 = vmmov %vm16407_vm0 }
 0x530   : > { %9009 = vmatpush.msra.mxu1 %v8957_v32  ;;  %9029 = vmatpush.msra.mxu2 %v8958_v21  ;;  %v7225_v24 = vpop.f32.mrf.mxu3 }
 0x531   : > { %9049 = vmatpush.msra.mxu3 %v8959_v3  ;;  %v7311_v39 = vadd.f32 %v7225_v24, %v7104_v63  ;;  %v13167_v63 = vunpack.i.l.bf16 %v13166_v19  ;;  %v15770_v20 = vpop.permute.xlu0 %13190 }
 0x532   : > { %v7205_v47 = vpop.f32.mrf.mxu2  ;;  %13360 = vrot.lane.b32.xlu2 %v15489_v34, %s16379_s26  ;;  %v8961_v34 = vsel %vm16398_vm6, %v13163_v53, %v13158_v38  ;;  %v12215_v53 = vld [vmem:[%s16131_s4 + $0x78] sm:$0xff]  ;;  %v13192_v19 = vunpack.i.l.bf16 %v15770_v20  ;;  %vm16412_vm6 = vmmov %vm16407_vm0 }
 0x533   : > { %v7310_v44 = vadd.f32 %v7205_v47, %v7103_v35  ;;  %v7245_v13 = vpop.f32.mrf.mxu0  ;;  %v7265_v22 = vpop.f32.mrf.mxu1  ;;  %v12206_v35 = vld [vmem:[%s16131_s4 + $0x70] sm:$0xff]  ;;  %v9161_v36 = vsel %vm16401_vm9, %v13177_v37, %v13167_v63  ;;  %v9162_v6 = vsel %vm16402_vm10, %v13167_v63, %v13168_v23 }
 0x534   : > { %v7312_v51 = vadd.f32 %v7245_v13, %v7105_v14  ;;  %v7313_v41 = vadd.f32 %v7265_v22, %v7106_v30  ;;  %v13181_v14 = vpop.permute.xlu2 %13180  ;;  %v13193_v13 = vunpack.i.h.bf16 %v15770_v20 }
 0x535   : > { %12205 = vmatmul.msk.f32.vlgmr.msrb.gmra.mxu3 %vm358_vm1, %v12197_v8  ;;  %v13183_v17 = vunpack.i.h.bf16 %v13181_v14 }
 0x536   : > { %12202 = vmatmul.msk.f32.vlgmr.msrb.gmra.mxu0 %vm358_vm1, %v12197_v8  ;;  %12203 = vmatmul.msk.f32.vlgmr.msrb.gmra.mxu1 %vm358_vm1, %v12197_v8 }
 0x537   : > { %12204 = vmatmul.msk.f32.vlgmr.msrb.gmra.mxu2 %vm358_vm1, %v12197_v8  ;;  %9069 = vmatpush.msrb.mxu0 %v8960_v25  ;;  %v13182_v8 = vunpack.i.l.bf16 %v13181_v14 }
 0x538   : > { %9089 = vmatpush.msrb.mxu1 %v8961_v34  ;;  %9109 = vmatpush.msrb.mxu2 %v8962_v5  ;;  %v7305_v40 = vpop.f32.mrf.mxu3 }
 0x539   : > { %9129 = vmatpush.msrb.mxu3 %v13162_v49  ;;  %v7315_v43 = vadd.f32 %v7305_v40, %v7108_v46  ;;  %v13186_v46 = vpop.permute.xlu1 %13185  ;;  %v9166_v32 = vsel %vm16406_vm14, %v13178_v9, %v13182_v8  ;;  %v13206_v42 = vpop.permute.xlu0 %13205 }
 0x53a   : > { %v7285_v62 = vpop.f32.mrf.mxu2  ;;  %13370 = vrot.lane.b32.xlu2 %v15710_v15, %s13460_s24  ;;  %v9160_v15 = vsel %vm16400_vm8, %v13173_v33, %v13177_v37  ;;  %v13187_v49 = vunpack.i.l.bf16 %v13186_v46  ;;  %vm16414_vm8 = vcmask 957440  }
 0x53b   : > { %v7314_v2 = vadd.f32 %v7285_v62, %v7107_v28  ;;  %v7372_v58 = vpop.f32.mrf.mxu0  ;;  %v7392_v30 = vpop.f32.mrf.mxu1  ;;  %vm16415_vm9 = vmmov %vm16414_vm8 }
 0x53c   : > { %v7515_v4 = vadd.f32 %v7372_v58, %v7308_v55  ;;  %v7516_v45 = vadd.f32 %v7392_v30, %v7309_v7  ;;  %v9164_v7 = vsel %vm16404_vm12, %v13172_v50, %v13183_v17  ;;  %v13196_v1 = vpop.permute.xlu2 %13195  ;;  %vm16416_vm10 = vmmov %vm16414_vm8 }
 0x53d   : > { %12210 = vmatmul.msk.f32.vlgmr.msra.gmra.mxu3 %vm358_vm1, %v12206_v35  ;;  %v13197_v47 = vunpack.i.l.bf16 %v13196_v1  ;;  %vm16417_vm11 = vmmov %vm16414_vm8 }
 0x53e   : > { %12207 = vmatmul.msk.f32.vlgmr.msra.gmra.mxu0 %vm358_vm1, %v12206_v35  ;;  %12208 = vmatmul.msk.f32.vlgmr.msra.gmra.mxu1 %vm358_vm1, %v12206_v35  ;;  %vm16418_vm12 = vmmov %vm16414_vm8 }
 0x53f   : > { %12209 = vmatmul.msk.f32.vlgmr.msra.gmra.mxu2 %vm358_vm1, %v12206_v35  ;;  %9193 = vmatpush.msra.mxu0 %v9160_v15  ;;  %v9364_v25 = vsel %vm16407_vm0, %v13193_v13, %v13197_v47  ;;  %v9365_v34 = vsel %vm16408_vm2, %v13197_v47, %v13187_v49  ;;  %vm16420_vm14 = vmmov %vm16414_vm8  ;;  %vm16421_vm0 = vcmask 318464  }
 0x540   : > { %9213 = vmatpush.msra.mxu1 %v9161_v36  ;;  %9233 = vmatpush.msra.mxu2 %v9162_v6  ;;  %v7432_v10 = vpop.f32.mrf.mxu3  ;;  %vm16422_vm2 = vmmov %vm16421_vm0 }
 0x541   : > { %9253 = vmatpush.msra.mxu3 %v9163_v29  ;;  %v7518_v52 = vadd.f32 %v7432_v10, %v7311_v39  ;;  %v13201_v38 = vpop.permute.xlu1 %13200  ;;  %v13221_v6 = vpop.permute.xlu0 %13220 }
 0x542   : > { %v7412_v18 = vpop.f32.mrf.mxu2  ;;  %11233 = vrot.lane.b32.xlu2 %v15628_v11, %s13460_s24  ;;  %v9165_v11 = vsel %vm16405_vm13, %v13183_v17, %v13178_v9  ;;  %v13203_v63 = vunpack.i.h.bf16 %v13201_v38  ;;  %v13202_v33 = vunpack.i.l.bf16 %v13201_v38  ;;  %vm16419_vm13 = vmmov %vm16414_vm8 }
 0x543   : > { %v7517_v28 = vadd.f32 %v7412_v18, %v7310_v44  ;;  %v7452_v59 = vpop.f32.mrf.mxu0  ;;  %v7472_v55 = vpop.f32.mrf.mxu1  ;;  %v13188_v44 = vunpack.i.h.bf16 %v13186_v46  ;;  %v13207_v46 = vunpack.i.l.bf16 %v13206_v42 }
 0x544   : > { %v7519_v61 = vadd.f32 %v7452_v59, %v7312_v51  ;;  %v7520_v0 = vadd.f32 %v7472_v55, %v7313_v41  ;;  %v15794_v62 = vpop.permute.xlu2 %13210  ;;  %v9368_v30 = vsel %vm16411_vm5, %v13192_v19, %v13203_v63  ;;  %vm16425_vm5 = vmmov %vm16421_vm0 }
 0x545   : > { %12214 = vmatmul.msk.f32.vlgmr.msrb.gmra.mxu3 %vm358_vm1, %v12206_v35  ;;  %v9366_v56 = vsel %vm16409_vm3, %v13187_v49, %v13188_v44  ;;  %v9367_v5 = vsel %vm16410_vm4, %v13188_v44, %v13192_v19  ;;  %v13212_v9 = vunpack.i.l.bf16 %v15794_v62  ;;  %v13222_v44 = vunpack.i.l.bf16 %v13221_v6  ;;  %vm16423_vm3 = vmmov %vm16421_vm0 }
 0x546   : > { %12211 = vmatmul.msk.f32.vlgmr.msrb.gmra.mxu0 %vm358_vm1, %v12206_v35  ;;  %12212 = vmatmul.msk.f32.vlgmr.msrb.gmra.mxu1 %vm358_vm1, %v12206_v35  ;;  %vm16424_vm4 = vmmov %vm16421_vm0 }
 0x547   : > { %12213 = vmatmul.msk.f32.vlgmr.msrb.gmra.mxu2 %vm358_vm1, %v12206_v35  ;;  %9273 = vmatpush.msrb.mxu0 %v9164_v7 }
 0x548   : > { %9293 = vmatpush.msrb.mxu1 %v9165_v11  ;;  %9313 = vmatpush.msrb.mxu2 %v9166_v32  ;;  %v7512_v21 = vpop.f32.mrf.mxu3 }
 0x549   : > { %9333 = vmatpush.msrb.mxu3 %v13182_v8  ;;  %v7522_v24 = vadd.f32 %v7512_v21, %v7315_v43  ;;  %v15796_v58 = vpop.permute.xlu1 %13215  ;;  %v13208_v8 = vunpack.i.h.bf16 %v13206_v42  ;;  %v15823_v49 = vpop.permute.xlu0 %13235 }
 0x54a   : > { %v7492_v3 = vpop.f32.mrf.mxu2  ;;  %13395 = vrot.lane.b32.xlu2 %v15714_v16, %s16392_s9  ;;  %v13217_v18 = vunpack.i.l.bf16 %v15796_v58  ;;  %v13218_v19 = vunpack.i.h.bf16 %v15796_v58 }
 0x54b   : > { %v7521_v39 = vadd.f32 %v7492_v3, %v7314_v2  ;;  %v7579_v51 = vpop.f32.mrf.mxu0  ;;  %v7599_v41 = vpop.f32.mrf.mxu1  ;;  %v13198_v2 = vunpack.i.h.bf16 %v13196_v1  ;;  %v9570_v32 = vsel %vm16416_vm10, %v13207_v46, %v13208_v8  ;;  %v9571_v21 = vsel %vm16417_vm11, %v13208_v8, %v13212_v9 }
 0x54c   : > { %v7722_v22 = vadd.f32 %v7579_v51, %v7515_v4  ;;  %v7723_v16 = vadd.f32 %v7599_v41, %v7516_v45  ;;  %v15811_v59 = vpop.permute.xlu2 %13225  ;;  %v9569_v11 = vsel %vm16415_vm9, %v13217_v18, %v13207_v46  ;;  %vm16429_vm9 = vcmask 310272  }
 0x54d   : > { %12219 = vmatmul.msk.f32.vlgmr.msra.gmra.mxu3 %vm358_vm1, %v12215_v53  ;;  %v9369_v45 = vsel %vm16412_vm6, %v13203_v63, %v13198_v2  ;;  %v9370_v15 = vsel %vm16413_vm7, %v13198_v2, %v13202_v33  ;;  %v12233_v63 = vld [vmem:[%s16131_s4 + $0x88] sm:$0xff]  ;;  %v13228_v2 = vunpack.i.h.bf16 %v15811_v59  ;;  %vm16426_vm6 = vmmov %vm16421_vm0 }
 0x54e   : > { %12216 = vmatmul.msk.f32.vlgmr.msra.gmra.mxu0 %vm358_vm1, %v12215_v53  ;;  %12217 = vmatmul.msk.f32.vlgmr.msra.gmra.mxu1 %vm358_vm1, %v12215_v53  ;;  %vm16427_vm7 = vmmov %vm16421_vm0 }
 0x54f   : > { %12218 = vmatmul.msk.f32.vlgmr.msra.gmra.mxu2 %vm358_vm1, %v12215_v53  ;;  %9397 = vmatpush.msra.mxu0 %v9364_v25  ;;  %vm16430_vm10 = vmmov %vm16429_vm9 }
 0x550   : > { %9417 = vmatpush.msra.mxu1 %v9365_v34  ;;  %9437 = vmatpush.msra.mxu2 %v9366_v56  ;;  %v7639_v40 = vpop.f32.mrf.mxu3  ;;  %v9574_v34 = vsel %vm16420_vm14, %v13218_v19, %v13222_v44  ;;  %vm16431_vm11 = vmmov %vm16429_vm9 }
 0x551   : > { %9457 = vmatpush.msra.mxu3 %v9367_v5  ;;  %v7725_v37 = vadd.f32 %v7639_v40, %v7518_v52  ;;  %v13213_v52 = vunpack.i.h.bf16 %v15794_v62  ;;  %v15819_v1 = vpop.permute.xlu1 %13230  ;;  %v13237_v62 = vunpack.i.l.bf16 %v15823_v49  ;;  %v15843_v58 = vpop.permute.xlu0 %13245  ;;  %vm16434_vm14 = vmmov %vm16429_vm9 }
 0x552   : > { %v7619_v43 = vpop.f32.mrf.mxu2 }
 0x553   : > { %v7724_v35 = vadd.f32 %v7619_v43, %v7517_v28  ;;  %v7659_v23 = vpop.f32.mrf.mxu0  ;;  %v7679_v14 = vpop.f32.mrf.mxu1  ;;  %v12224_v28 = vld [vmem:[%s16131_s4 + $0x80] sm:$0xff]  ;;  %v9568_v7 = vsel %vm16414_vm8, %v13213_v52, %v13217_v18  ;;  %v13227_v43 = vunpack.i.l.bf16 %v15811_v59  ;;  %v13238_v18 = vunpack.i.h.bf16 %v15823_v49  ;;  %vm16428_vm8 = vmmov %vm16421_vm0  ;;  %v12242_v49 = vld [vmem:[%s16131_s4 + $0x90] sm:$0xff] }
 0x554   : > { %v7726_v50 = vadd.f32 %v7659_v23, %v7519_v61  ;;  %v7727_v4 = vadd.f32 %v7679_v14, %v7520_v0  ;;  %v15826_v13 = vpop.permute.xlu2 %13240 }
 0x555   : > { %12223 = vmatmul.msk.f32.vlgmr.msrb.gmra.mxu3 %vm358_vm1, %v12215_v53  ;;  %v13242_v8 = vunpack.i.l.bf16 %v15826_v13 }
 0x556   : > { %12220 = vmatmul.msk.f32.vlgmr.msrb.gmra.mxu0 %vm358_vm1, %v12215_v53  ;;  %12221 = vmatmul.msk.f32.vlgmr.msrb.gmra.mxu1 %vm358_vm1, %v12215_v53 }
 0x557   : > { %12222 = vmatmul.msk.f32.vlgmr.msrb.gmra.mxu2 %vm358_vm1, %v12215_v53  ;;  %9477 = vmatpush.msrb.mxu0 %v9368_v30 }
 0x558   : > { %9497 = vmatpush.msrb.mxu1 %v9369_v45  ;;  %9517 = vmatpush.msrb.mxu2 %v9370_v15  ;;  %v7719_v36 = vpop.f32.mrf.mxu3  ;;  %v9793_v45 = vsel %vm16422_vm2, %v13237_v62, %v13227_v43 }
 0x559   : > { %9537 = vmatpush.msrb.mxu3 %v13202_v33  ;;  %v7729_v10 = vadd.f32 %v7719_v36, %v7522_v24  ;;  %v9785_v56 = vpop.permute.xlu1 %9784  ;;  %v13232_v33 = vunpack.i.l.bf16 %v15819_v1  ;;  %v9794_v36 = vsel %vm16423_vm3, %v13227_v43, %v13228_v2  ;;  %vm16437_vm3 = vcmask 302080  }
 0x55a   : > { %v7699_v29 = vpop.f32.mrf.mxu2 }
 0x55b   : > { %v7728_v17 = vadd.f32 %v7699_v29, %v7521_v39  ;;  %v7786_v20 = vpop.f32.mrf.mxu0  ;;  %v7806_v55 = vpop.f32.mrf.mxu1  ;;  %v13223_v39 = vunpack.i.h.bf16 %v13221_v6  ;;  %v9795_v6 = vsel %vm16424_vm4, %v13228_v2, %v13232_v33  ;;  %vm16438_vm4 = vmmov %vm16437_vm3 }
 0x55c   : > { %v7929_v61 = vadd.f32 %v7786_v20, %v7722_v22  ;;  %v7930_v0 = vadd.f32 %v7806_v55, %v7723_v16  ;;  %v15851_v15 = vpop.permute.xlu2 %13250  ;;  %v9797_v55 = vsel %vm16426_vm6, %v9785_v56, %v13238_v18  ;;  %vm16440_vm6 = vmmov %vm16437_vm3 }
 0x55d   : > { %12228 = vmatmul.msk.f32.vlgmr.msra.gmra.mxu3 %vm358_vm1, %v12224_v28  ;;  %v9572_v16 = vsel %vm16418_vm12, %v13212_v9, %v13223_v39  ;;  %v9573_v25 = vsel %vm16419_vm13, %v13223_v39, %v13218_v19  ;;  %v13248_v19 = vunpack.i.h.bf16 %v15843_v58  ;;  %vm16432_vm12 = vmmov %vm16429_vm9 }
 0x55e   : > { %12225 = vmatmul.msk.f32.vlgmr.msra.gmra.mxu0 %vm358_vm1, %v12224_v28  ;;  %12226 = vmatmul.msk.f32.vlgmr.msra.gmra.mxu1 %vm358_vm1, %v12224_v28  ;;  %vm16433_vm13 = vmmov %vm16429_vm9 }
 0x55f   : > { %12227 = vmatmul.msk.f32.vlgmr.msra.gmra.mxu2 %vm358_vm1, %v12224_v28  ;;  %9601 = vmatpush.msra.mxu0 %v9568_v7  ;;  %v13261_v7 = vpop.permute.xlu0 %13260 }
 0x560   : > { %9621 = vmatpush.msra.mxu1 %v9569_v11  ;;  %9641 = vmatpush.msra.mxu2 %v9570_v32  ;;  %v7846_v3 = vpop.f32.mrf.mxu3  ;;  %v9798_v11 = vsel %vm16427_vm7, %v13238_v18, %v13242_v8  ;;  %v13262_v2 = vunpack.i.l.bf16 %v13261_v7  ;;  %vm16441_vm7 = vmmov %vm16437_vm3 }
 0x561   : > { %9661 = vmatpush.msra.mxu3 %v9571_v21  ;;  %v7932_v47 = vadd.f32 %v7846_v3, %v7725_v37 }
 0x562   : > { %v7826_v24 = vpop.f32.mrf.mxu2 }
 0x563   : > { %v7931_v53 = vadd.f32 %v7826_v24, %v7724_v35  ;;  %v7866_v38 = vpop.f32.mrf.mxu0  ;;  %v7886_v22 = vpop.f32.mrf.mxu1  ;;  %v13233_v35 = vunpack.i.h.bf16 %v15819_v1 }
 0x564   : > { %v7933_v51 = vadd.f32 %v7866_v38, %v7726_v50  ;;  %v7934_v41 = vadd.f32 %v7886_v22, %v7727_v4  ;;  %v9992_v21 = vpop.permute.xlu2 %9991  ;;  %v13252_v38 = vunpack.i.l.bf16 %v15851_v15 }
 0x565   : > { %12232 = vmatmul.msk.f32.vlgmr.msrb.gmra.mxu3 %vm358_vm1, %v12224_v28  ;;  %v9792_v30 = vsel %vm16421_vm0, %v13233_v35, %v13237_v62  ;;  %vm16435_vm0 = vmmov %vm16429_vm9 }
 0x566   : > { %12229 = vmatmul.msk.f32.vlgmr.msrb.gmra.mxu0 %vm358_vm1, %v12224_v28  ;;  %12230 = vmatmul.msk.f32.vlgmr.msrb.gmra.mxu1 %vm358_vm1, %v12224_v28  ;;  %vm16436_vm2 = vmmov %vm16435_vm0 }
 0x567   : > { %12231 = vmatmul.msk.f32.vlgmr.msrb.gmra.mxu2 %vm358_vm1, %v12224_v28  ;;  %9681 = vmatpush.msrb.mxu0 %v9572_v16  ;;  %v13243_v28 = vunpack.i.h.bf16 %v15826_v13 }
 0x568   : > { %9701 = vmatpush.msrb.mxu1 %v9573_v25  ;;  %9721 = vmatpush.msrb.mxu2 %v9574_v34  ;;  %v7926_v42 = vpop.f32.mrf.mxu3 }
 0x569   : > { %9741 = vmatpush.msrb.mxu3 %v13222_v44  ;;  %v7936_v40 = vadd.f32 %v7926_v42, %v7729_v10  ;;  %v9799_v1 = vsel %vm16428_vm8, %v13242_v8, %v13243_v28  ;;  %vm16442_vm8 = vmmov %vm16437_vm3 }
 0x56a   : > { %v7906_v5 = vpop.f32.mrf.mxu2 }
 0x56b   : > { %v7935_v37 = vadd.f32 %v7906_v5, %v7728_v17  ;;  %v7993_v23 = vpop.f32.mrf.mxu0  ;;  %v8013_v14 = vpop.f32.mrf.mxu1 }
 0x56c   : > { %v8136_v50 = vadd.f32 %v7993_v23, %v7929_v61  ;;  %v8137_v4 = vadd.f32 %v8013_v14, %v7930_v0  ;;  %v15856_v17 = vpop.permute.xlu1 %13255  ;;  %v9796_v61 = vsel %vm16425_vm5, %v13232_v33, %v9785_v56  ;;  %v10002_v56 = vsel %vm16432_vm12, %v13248_v19, %v13252_v38  ;;  %v15888_v35 = vpop.permute.xlu2 %13275  ;;  %vm16439_vm5 = vmmov %vm16437_vm3 }
 0x56d   : > { %12237 = vmatmul.msk.f32.vlgmr.msra.gmra.mxu3 %vm358_vm1, %v12233_v63  ;;  %v13257_v39 = vunpack.i.l.bf16 %v15856_v17  ;;  %v13258_v23 = vunpack.i.h.bf16 %v15856_v17  ;;  %v10003_v14 = vsel %vm16433_vm13, %v13252_v38, %v9992_v21 }
 0x56e   : > { %12234 = vmatmul.msk.f32.vlgmr.msra.gmra.mxu0 %vm358_vm1, %v12233_v63  ;;  %12235 = vmatmul.msk.f32.vlgmr.msra.gmra.mxu1 %vm358_vm1, %v12233_v63 }
 0x56f   : > { %12236 = vmatmul.msk.f32.vlgmr.msra.gmra.mxu2 %vm358_vm1, %v12233_v63  ;;  %9826 = vmatpush.msra.mxu0 %v9792_v30 }
 0x570   : > { %9846 = vmatpush.msra.mxu1 %v9793_v45  ;;  %9866 = vmatpush.msra.mxu2 %v9794_v36  ;;  %v8053_v29 = vpop.f32.mrf.mxu3 }
 0x571   : > { %9886 = vmatpush.msra.mxu3 %v9795_v6  ;;  %v8139_v46 = vadd.f32 %v8053_v29, %v7932_v47  ;;  %v13247_v47 = vunpack.i.l.bf16 %v15843_v58 }
 0x572   : > { %v8033_v10 = vpop.f32.mrf.mxu2 }
 0x573   : > { %v8138_v52 = vadd.f32 %v8033_v10, %v7931_v53  ;;  %v8073_v9 = vpop.f32.mrf.mxu0  ;;  %v8093_v20 = vpop.f32.mrf.mxu1  ;;  %v13253_v53 = vunpack.i.h.bf16 %v15851_v15  ;;  %v10000_v34 = vsel %vm16430_vm10, %v13257_v39, %v13247_v47  ;;  %v10001_v42 = vsel %vm16431_vm11, %v13247_v47, %v13248_v19  ;;  %vm16444_vm10 = vmmov %vm16437_vm3 }
 0x574   : > { %v8140_v59 = vadd.f32 %v8073_v9, %v7933_v51  ;;  %v8141_v0 = vadd.f32 %v8093_v20, %v7934_v41  ;;  %v15876_v51 = vpop.permute.xlu1 %13265  ;;  %v10005_v15 = vsel %vm16435_vm0, %v13258_v23, %v13262_v2  ;;  %vm16445_vm11 = vcmask 236544  }
 0x575   : > { %12241 = vmatmul.msk.f32.vlgmr.msrb.gmra.mxu3 %vm358_vm1, %v12233_v63  ;;  %v9999_v25 = vsel %vm16429_vm9, %v13253_v53, %v13257_v39  ;;  %v13268_v17 = vunpack.i.h.bf16 %v15876_v51  ;;  %v13267_v28 = vunpack.i.l.bf16 %v15876_v51  ;;  %v13278_v53 = vunpack.i.h.bf16 %v15888_v35  ;;  %vm16443_vm9 = vmmov %vm16437_vm3 }
 0x576   : > { %12238 = vmatmul.msk.f32.vlgmr.msrb.gmra.mxu0 %vm358_vm1, %v12233_v63  ;;  %12239 = vmatmul.msk.f32.vlgmr.msrb.gmra.mxu1 %vm358_vm1, %v12233_v63  ;;  %vm16446_vm12 = vmmov %vm16445_vm11 }
 0x577   : > { %12240 = vmatmul.msk.f32.vlgmr.msrb.gmra.mxu2 %vm358_vm1, %v12233_v63  ;;  %9906 = vmatpush.msrb.mxu0 %v9796_v61  ;;  %v13263_v63 = vunpack.i.h.bf16 %v13261_v7  ;;  %v15907_v61 = vpop.permute.xlu2 %13285  ;;  %vm16447_vm13 = vmmov %vm16445_vm11 }
 0x578   : > { %9926 = vmatpush.msrb.mxu1 %v9797_v55  ;;  %9946 = vmatpush.msrb.mxu2 %v9798_v11  ;;  %v8133_v32 = vpop.f32.mrf.mxu3  ;;  %vm16449_vm0 = vmmov %vm16445_vm11 }
 0x579   : > { %9966 = vmatpush.msrb.mxu3 %v9799_v1  ;;  %v8143_v24 = vadd.f32 %v8133_v32, %v7936_v40  ;;  %v15886_v40 = vpop.permute.xlu0 %13270  ;;  %v10006_v36 = vsel %vm16436_vm2, %v13262_v2, %v13263_v63  ;;  %v10208_v32 = vsel %vm16439_vm5, %v13267_v28, %v13268_v17  ;;  %v12260_v2 = vld [vmem:[%s16131_s4 + $0xa0] sm:$0xff]  ;;  %vm16450_vm2 = vmmov %vm16449_vm0  ;;  %vm16453_vm5 = vcmask 228352  }
 0x57a   : > { %v8113_v3 = vpop.f32.mrf.mxu2  ;;  %v13272_v8 = vunpack.i.l.bf16 %v15886_v40 }
 0x57b   : > { %v8142_v44 = vadd.f32 %v8113_v3, %v7935_v37  ;;  %v8200_v13 = vpop.f32.mrf.mxu0  ;;  %v8220_v41 = vpop.f32.mrf.mxu1 }
 0x57c   : > { %v8343_v22 = vadd.f32 %v8200_v13, %v8136_v50  ;;  %v8344_v16 = vadd.f32 %v8220_v41, %v8137_v4  ;;  %v10004_v4 = vsel %vm16434_vm14, %v9992_v21, %v13258_v23  ;;  %v13281_v45 = vpop.permute.xlu1 %13280  ;;  %v10209_v21 = vsel %vm16440_vm6, %v13268_v17, %v13272_v8  ;;  %vm16448_vm14 = vmmov %vm16445_vm11 }
 0x57d   : > { %12246 = vmatmul.msk.f32.vlgmr.msra.gmra.mxu3 %vm358_vm1, %v12242_v49  ;;  %v13282_v19 = vunpack.i.l.bf16 %v13281_v45  ;;  %v13288_v23 = vunpack.i.h.bf16 %v15907_v61  ;;  %vm16454_vm6 = vmmov %vm16453_vm5 }
 0x57e   : > { %12243 = vmatmul.msk.f32.vlgmr.msra.gmra.mxu0 %vm358_vm1, %v12242_v49  ;;  %12244 = vmatmul.msk.f32.vlgmr.msra.gmra.mxu1 %vm358_vm1, %v12242_v49 }
 0x57f   : > { %12245 = vmatmul.msk.f32.vlgmr.msra.gmra.mxu2 %vm358_vm1, %v12242_v49  ;;  %10033 = vmatpush.msra.mxu0 %v9999_v25 }
 0x580   : > { %10053 = vmatpush.msra.mxu1 %v10000_v34  ;;  %10073 = vmatpush.msra.mxu2 %v10001_v42  ;;  %v8260_v5 = vpop.f32.mrf.mxu3  ;;  %v13301_v34 = vpop.permute.xlu2 %13300  ;;  %v10212_v42 = vsel %vm16443_vm9, %v13278_v53, %v13282_v19  ;;  %vm16457_vm9 = vmmov %vm16453_vm5 }
 0x581   : > { %10093 = vmatpush.msra.mxu3 %v10002_v56  ;;  %v8346_v43 = vadd.f32 %v8260_v5, %v8139_v46  ;;  %v13277_v46 = vunpack.i.l.bf16 %v15888_v35  ;;  %v10199_v9 = vpop.permute.xlu0 %10198 }
 0x582   : > { %v8240_v62 = vpop.f32.mrf.mxu2  ;;  %v10210_v41 = vsel %vm16441_vm7, %v13272_v8, %v10199_v9  ;;  %v10211_v25 = vsel %vm16442_vm8, %v10199_v9, %v13278_v53  ;;  %v13303_v8 = vunpack.i.h.bf16 %v13301_v34  ;;  %v13302_v9 = vunpack.i.l.bf16 %v13301_v34  ;;  %vm16455_vm7 = vmmov %vm16453_vm5 }
 0x583   : > { %v8345_v37 = vadd.f32 %v8240_v62, %v8138_v52  ;;  %v8280_v33 = vpop.f32.mrf.mxu0  ;;  %v8300_v50 = vpop.f32.mrf.mxu1  ;;  %v12251_v52 = vld [vmem:[%s16131_s4 + $0x98] sm:$0xff]  ;;  %v10207_v1 = vsel %vm16438_vm4, %v13277_v46, %v13267_v28  ;;  %vm16452_vm4 = vmmov %vm16449_vm0 }
 0x584   : > { %v8347_v58 = vadd.f32 %v8280_v33, %v8140_v59  ;;  %v8348_v30 = vadd.f32 %v8300_v50, %v8141_v0  ;;  %v13273_v59 = vunpack.i.h.bf16 %v15886_v40  ;;  %vm16456_vm8 = vmmov %vm16453_vm5 }
 0x585   : > { %12250 = vmatmul.msk.f32.vlgmr.msrb.gmra.mxu3 %vm358_vm1, %v12242_v49 }
 0x586   : > { %12247 = vmatmul.msk.f32.vlgmr.msrb.gmra.mxu0 %vm358_vm1, %v12242_v49  ;;  %12248 = vmatmul.msk.f32.vlgmr.msrb.gmra.mxu1 %vm358_vm1, %v12242_v49  ;;  %v10206_v11 = vsel %vm16437_vm3, %v13273_v59, %v13277_v46  ;;  %vm16451_vm3 = vmmov %vm16449_vm0 }
 0x587   : > { %12249 = vmatmul.msk.f32.vlgmr.msrb.gmra.mxu2 %vm358_vm1, %v12242_v49  ;;  %10113 = vmatpush.msrb.mxu0 %v10003_v14  ;;  %v13283_v49 = vunpack.i.h.bf16 %v13281_v45 }
 0x588   : > { %10133 = vmatpush.msrb.mxu1 %v10004_v4  ;;  %10153 = vmatpush.msrb.mxu2 %v10005_v15  ;;  %v8340_v6 = vpop.f32.mrf.mxu3  ;;  %v15946_v46 = vpop.permute.xlu2 %13310 }
 0x589   : > { %10173 = vmatpush.msrb.mxu3 %v10006_v36  ;;  %v8350_v10 = vadd.f32 %v8340_v6, %v8143_v24  ;;  %v15917_v24 = vpop.permute.xlu1 %13290  ;;  %v15920_v13 = vpop.permute.xlu0 %13295  ;;  %v10213_v56 = vsel %vm16444_vm10, %v13282_v19, %v13283_v49  ;;  %v12269_v19 = vld [vmem:[%s16131_s4 + $0xa8] sm:$0xff]  ;;  %vm16458_vm10 = vmmov %vm16453_vm5 }
 0x58a   : > { %v8320_v29 = vpop.f32.mrf.mxu2  ;;  %v13293_v33 = vunpack.i.h.bf16 %v15917_v24  ;;  %v13292_v50 = vunpack.i.l.bf16 %v15917_v24  ;;  %v13298_v17 = vunpack.i.h.bf16 %v15920_v13 }
 0x58b   : > { %v8349_v18 = vadd.f32 %v8320_v29, %v8142_v44  ;;  %v8407_v20 = vpop.f32.mrf.mxu0  ;;  %v8427_v0 = vpop.f32.mrf.mxu1 }
 0x58c   : > { %v8550_v55 = vadd.f32 %v8407_v20, %v8343_v22  ;;  %v8551_v7 = vadd.f32 %v8427_v0, %v8344_v16  ;;  %v10416_v29 = vsel %vm16448_vm14, %v13288_v23, %v13292_v50 }
 0x58d   : > { %12255 = vmatmul.msk.f32.vlgmr.msra.gmra.mxu3 %vm358_vm1, %v12251_v52 }
 0x58e   : > { %12252 = vmatmul.msk.f32.vlgmr.msra.gmra.mxu0 %vm358_vm1, %v12251_v52  ;;  %12253 = vmatmul.msk.f32.vlgmr.msra.gmra.mxu1 %vm358_vm1, %v12251_v52 }
 0x58f   : > { %12254 = vmatmul.msk.f32.vlgmr.msra.gmra.mxu2 %vm358_vm1, %v12251_v52  ;;  %10240 = vmatpush.msra.mxu0 %v10206_v11 }
 0x590   : > { %10260 = vmatpush.msra.mxu1 %v10207_v1  ;;  %10280 = vmatpush.msra.mxu2 %v10208_v32  ;;  %v8467_v3 = vpop.f32.mrf.mxu3  ;;  %v10419_v1 = vsel %vm16451_vm3, %v13298_v17, %v13302_v9  ;;  %v10420_v32 = vsel %vm16452_vm4, %v13302_v9, %v13303_v8 }
 0x591   : > { %10300 = vmatpush.msra.mxu3 %v10209_v21  ;;  %v8553_v39 = vadd.f32 %v8467_v3, %v8346_v43  ;;  %v13297_v43 = vunpack.i.l.bf16 %v15920_v13  ;;  %v10406_v35 = vpop.permute.xlu1 %10405  ;;  %v13306_v36 = vpop.permute.xlu0 %13305  ;;  %v13312_v13 = vunpack.i.l.bf16 %v15946_v46 }
 0x592   : > { %v8447_v47 = vpop.f32.mrf.mxu2  ;;  %v10417_v0 = vsel %vm16449_vm0, %v13292_v50, %v10406_v35 }
 0x593   : > { %v8552_v44 = vadd.f32 %v8447_v47, %v8345_v37  ;;  %v8487_v38 = vpop.f32.mrf.mxu0  ;;  %v8507_v22 = vpop.f32.mrf.mxu1  ;;  %v13287_v37 = vunpack.i.l.bf16 %v15907_v61  ;;  %v10413_v45 = vsel %vm16445_vm11, %v13293_v33, %v13297_v43  ;;  %vm16459_vm11 = vmmov %vm16453_vm5 }
 0x594   : > { %v8554_v51 = vadd.f32 %v8487_v38, %v8347_v58  ;;  %v8555_v16 = vadd.f32 %v8507_v22, %v8348_v30  ;;  %v13308_v38 = vunpack.i.h.bf16 %v13306_v36 }
 0x595   : > { %12259 = vmatmul.msk.f32.vlgmr.msrb.gmra.mxu3 %vm358_vm1, %v12251_v52  ;;  %v10414_v15 = vsel %vm16446_vm12, %v13297_v43, %v13287_v37  ;;  %v10415_v6 = vsel %vm16447_vm13, %v13287_v37, %v13288_v23  ;;  %vm16460_vm12 = vmmov %vm16453_vm5  ;;  %vm16461_vm13 = vcmask 220160  }
 0x596   : > { %12256 = vmatmul.msk.f32.vlgmr.msrb.gmra.mxu0 %vm358_vm1, %v12251_v52  ;;  %12257 = vmatmul.msk.f32.vlgmr.msrb.gmra.mxu1 %vm358_vm1, %v12251_v52  ;;  %vm16462_vm14 = vmmov %vm16461_vm13 }
 0x597   : > { %12258 = vmatmul.msk.f32.vlgmr.msrb.gmra.mxu2 %vm358_vm1, %v12251_v52  ;;  %10320 = vmatpush.msrb.mxu0 %v10210_v41  ;;  %vm16463_vm0 = vmmov %vm16461_vm13 }
 0x598   : > { %10340 = vmatpush.msrb.mxu1 %v10211_v25  ;;  %10360 = vmatpush.msrb.mxu2 %v10212_v42  ;;  %v8547_v5 = vpop.f32.mrf.mxu3  ;;  %vm16465_vm3 = vmmov %vm16463_vm0 }
 0x599   : > { %10380 = vmatpush.msrb.mxu3 %v10213_v56  ;;  %v8557_v62 = vadd.f32 %v8547_v5, %v8350_v10  ;;  %v15949_v20 = vpop.permute.xlu1 %13315  ;;  %v13321_v3 = vpop.permute.xlu0 %13320  ;;  %vm16466_vm4 = vmmov %vm16463_vm0 }
 0x59a   : > { %v8527_v40 = vpop.f32.mrf.mxu2  ;;  %v13317_v53 = vunpack.i.l.bf16 %v15949_v20  ;;  %v13318_v33 = vunpack.i.h.bf16 %v15949_v20 }
 0x59b   : > { %v8556_v63 = vadd.f32 %v8527_v40, %v8349_v18  ;;  %v8614_v58 = vpop.f32.mrf.mxu0  ;;  %v8634_v4 = vpop.f32.mrf.mxu1  ;;  %v10623_v40 = vsel %vm16456_vm8, %v13308_v38, %v13312_v13 }
 0x59c   : > { %v8757_v14 = vadd.f32 %v8614_v58, %v8550_v55  ;;  %v8758_v30 = vadd.f32 %v8634_v4, %v8551_v7  ;;  %v10418_v7 = vsel %vm16450_vm2, %v10406_v35, %v13298_v17  ;;  %v13322_v35 = vunpack.i.l.bf16 %v13321_v3  ;;  %vm16464_vm2 = vmmov %vm16463_vm0 }
 0x59d   : > { %12264 = vmatmul.msk.f32.vlgmr.msra.gmra.mxu3 %vm358_vm1, %v12260_v2 }
 0x59e   : > { %12261 = vmatmul.msk.f32.vlgmr.msra.gmra.mxu0 %vm358_vm1, %v12260_v2  ;;  %12262 = vmatmul.msk.f32.vlgmr.msra.gmra.mxu1 %vm358_vm1, %v12260_v2 }
 0x59f   : > { %12263 = vmatmul.msk.f32.vlgmr.msra.gmra.mxu2 %vm358_vm1, %v12260_v2  ;;  %10447 = vmatpush.msra.mxu0 %v10413_v45 }
 0x5a0   : > { %10467 = vmatpush.msra.mxu1 %v10414_v15  ;;  %10487 = vmatpush.msra.mxu2 %v10415_v6  ;;  %v8674_v10 = vpop.f32.mrf.mxu3 }
 0x5a1   : > { %10507 = vmatpush.msra.mxu3 %v10416_v29  ;;  %v8760_v52 = vadd.f32 %v8674_v10, %v8553_v39  ;;  %v13307_v39 = vunpack.i.l.bf16 %v13306_v36  ;;  %v13326_v56 = vpop.permute.xlu1 %13325  ;;  %v15973_v23 = vpop.permute.xlu0 %13330  ;;  %v10626_v36 = vsel %vm16459_vm11, %v13318_v33, %v13322_v35 }
 0x5a2   : > { %v8654_v18 = vpop.f32.mrf.mxu2  ;;  %v13328_v8 = vunpack.i.h.bf16 %v13326_v56  ;;  %v13327_v9 = vunpack.i.l.bf16 %v13326_v56  ;;  %v13333_v20 = vunpack.i.h.bf16 %v15973_v23 }
 0x5a3   : > { %v8759_v28 = vadd.f32 %v8654_v18, %v8552_v44  ;;  %v8694_v59 = vpop.f32.mrf.mxu0  ;;  %v8714_v55 = vpop.f32.mrf.mxu1  ;;  %v13313_v44 = vunpack.i.h.bf16 %v15946_v46  ;;  %v10621_v42 = vsel %vm16454_vm6, %v13317_v53, %v13307_v39  ;;  %v10622_v5 = vsel %vm16455_vm7, %v13307_v39, %v13308_v38  ;;  %vm16468_vm6 = vmmov %vm16463_vm0 }
 0x5a4   : > { %v8761_v61 = vadd.f32 %v8694_v59, %v8554_v51  ;;  %v8762_v11 = vadd.f32 %v8714_v55, %v8555_v16  ;;  %v10613_v51 = vpop.permute.xlu2 %10612  ;;  %v13332_v59 = vunpack.i.l.bf16 %v15973_v23  ;;  %v12287_v23 = vld [vmem:[%s16131_s4 + $0xb8] sm:$0xff]  ;;  %vm16469_vm7 = vcmask 154624  }
 0x5a5   : > { %12268 = vmatmul.msk.f32.vlgmr.msrb.gmra.mxu3 %vm358_vm1, %v12260_v2  ;;  %v10620_v34 = vsel %vm16453_vm5, %v13313_v44, %v13317_v53  ;;  %v10625_v45 = vsel %vm16458_vm10, %v10613_v51, %v13318_v33  ;;  %vm16467_vm5 = vmmov %vm16463_vm0 }
 0x5a6   : > { %12265 = vmatmul.msk.f32.vlgmr.msrb.gmra.mxu0 %vm358_vm1, %v12260_v2  ;;  %12266 = vmatmul.msk.f32.vlgmr.msrb.gmra.mxu1 %vm358_vm1, %v12260_v2  ;;  %vm16470_vm8 = vmmov %vm16469_vm7 }
 0x5a7   : > { %12267 = vmatmul.msk.f32.vlgmr.msrb.gmra.mxu2 %vm358_vm1, %v12260_v2  ;;  %10527 = vmatpush.msrb.mxu0 %v10417_v0  ;;  %v13323_v2 = vunpack.i.h.bf16 %v13321_v3  ;;  %v10829_v3 = vsel %vm16463_vm0, %v13327_v9, %v13328_v8  ;;  %vm16472_vm10 = vmmov %vm16469_vm7  ;;  %vm16477_vm0 = vcmask 146432  }
 0x5a8   : > { %10547 = vmatpush.msrb.mxu1 %v10418_v7  ;;  %10567 = vmatpush.msrb.mxu2 %v10419_v1  ;;  %v8754_v21 = vpop.f32.mrf.mxu3  ;;  %vm16473_vm11 = vmmov %vm16469_vm7 }
 0x5a9   : > { %10587 = vmatpush.msrb.mxu3 %v10420_v32  ;;  %v8764_v47 = vadd.f32 %v8754_v21, %v8557_v62  ;;  %v10627_v6 = vsel %vm16460_vm12, %v13322_v35, %v13323_v2  ;;  %v13341_v10 = vpop.permute.xlu1 %13340  ;;  %v10820_v55 = vpop.permute.xlu0 %10819  ;;  %vm16474_vm12 = vmmov %vm16469_vm7 }
 0x5aa   : > { %v8734_v24 = vpop.f32.mrf.mxu2  ;;  %v13342_v38 = vunpack.i.l.bf16 %v13341_v10 }
 0x5ab   : > { %v8763_v49 = vadd.f32 %v8734_v24, %v8556_v63  ;;  %v8787_v22 = vpop.f32.mrf.mxu0  ;;  %v8807_v16 = vpop.f32.mrf.mxu1  ;;  %v10830_v24 = vsel %vm16464_vm2, %v13328_v8, %v13332_v59  ;;  %vm16478_vm2 = vmmov %vm16477_vm0 }
 0x5ac   : > { %v8930_v41 = vadd.f32 %v8787_v22, %v8757_v14  ;;  %v8931_v25 = vadd.f32 %v8807_v16, %v8758_v30  ;;  %v15976_v50 = vpop.permute.xlu2 %13335  ;;  %v10624_v30 = vsel %vm16457_vm9, %v13312_v13, %v10613_v51  ;;  %v10831_v16 = vsel %vm16465_vm3, %v13332_v59, %v10820_v55  ;;  %vm16471_vm9 = vmmov %vm16469_vm7 }
 0x5ad   : > { %12273 = vmatmul.msk.f32.vlgmr.msra.gmra.mxu3 %vm358_vm1, %v12269_v19  ;;  %v13338_v44 = vunpack.i.h.bf16 %v15976_v50  ;;  %vm16479_vm3 = vmmov %vm16477_vm0 }
 0x5ae   : > { %12270 = vmatmul.msk.f32.vlgmr.msra.gmra.mxu0 %vm358_vm1, %v12269_v19  ;;  %12271 = vmatmul.msk.f32.vlgmr.msra.gmra.mxu1 %vm358_vm1, %v12269_v19 }
 0x5af   : > { %12272 = vmatmul.msk.f32.vlgmr.msra.gmra.mxu2 %vm358_vm1, %v12269_v19  ;;  %10654 = vmatpush.msra.mxu0 %v10620_v34  ;;  %v10832_v34 = vsel %vm16466_vm4, %v10820_v55, %v13338_v44  ;;  %v10833_v56 = vsel %vm16467_vm5, %v13338_v44, %v13342_v38  ;;  %vm16480_vm4 = vmmov %vm16477_vm0 }
 0x5b0   : > { %10674 = vmatpush.msra.mxu1 %v10621_v42  ;;  %10694 = vmatpush.msra.mxu2 %v10622_v5  ;;  %v8847_v62 = vpop.f32.mrf.mxu3  ;;  %vm16481_vm5 = vmmov %vm16477_vm0 }
 0x5b1   : > { %10714 = vmatpush.msra.mxu3 %v10623_v40  ;;  %v8933_v37 = vadd.f32 %v8847_v62, %v8760_v52  ;;  %v13337_v52 = vunpack.i.l.bf16 %v15976_v50  ;;  %v13351_v13 = vpop.permute.xlu1 %13350  ;;  %v13356_v42 = vpop.permute.xlu0 %13355 }
 0x5b2   : > { %v8827_v43 = vpop.f32.mrf.mxu2 }
 0x5b3   : > { %v8932_v63 = vadd.f32 %v8827_v43, %v8759_v28  ;;  %v8867_v58 = vpop.f32.mrf.mxu0  ;;  %v8887_v4 = vpop.f32.mrf.mxu1  ;;  %v12278_v28 = vld [vmem:[%s16131_s4 + $0xb0] sm:$0xff]  ;;  %v10827_v1 = vsel %vm16461_vm13, %v13333_v20, %v13337_v52  ;;  %v10828_v32 = vsel %vm16462_vm14, %v13337_v52, %v13327_v9  ;;  %vm16475_vm13 = vmmov %vm16469_vm7 }
 0x5b4   : > { %v8934_v14 = vadd.f32 %v8867_v58, %v8761_v61  ;;  %v8935_v15 = vadd.f32 %v8887_v4, %v8762_v11  ;;  %v13346_v21 = vpop.permute.xlu2 %13345  ;;  %v13353_v58 = vunpack.i.h.bf16 %v13351_v13  ;;  %vm16476_vm14 = vmmov %vm16469_vm7 }
 0x5b5   : > { %12277 = vmatmul.msk.f32.vlgmr.msrb.gmra.mxu3 %vm358_vm1, %v12269_v19  ;;  %v13347_v2 = vunpack.i.l.bf16 %v13346_v21  ;;  %v13348_v33 = vunpack.i.h.bf16 %v13346_v21 }
 0x5b6   : > { %12274 = vmatmul.msk.f32.vlgmr.msrb.gmra.mxu0 %vm358_vm1, %v12269_v19  ;;  %12275 = vmatmul.msk.f32.vlgmr.msrb.gmra.mxu1 %vm358_vm1, %v12269_v19 }
 0x5b7   : > { %12276 = vmatmul.msk.f32.vlgmr.msrb.gmra.mxu2 %vm358_vm1, %v12269_v19  ;;  %10734 = vmatpush.msrb.mxu0 %v10624_v30  ;;  %v13343_v19 = vunpack.i.h.bf16 %v13341_v10 }
 0x5b8   : > { %10754 = vmatpush.msrb.mxu1 %v10625_v45  ;;  %10774 = vmatpush.msrb.mxu2 %v10626_v36  ;;  %v8927_v29 = vpop.f32.mrf.mxu3 }
 0x5b9   : > { %10794 = vmatpush.msrb.mxu3 %v10627_v6  ;;  %v8937_v18 = vadd.f32 %v8927_v29, %v8764_v47  ;;  %v10834_v5 = vsel %vm16468_vm6, %v13342_v38, %v13343_v19  ;;  %v11027_v4 = vpop.permute.xlu1 %11026  ;;  %v11036_v29 = vsel %vm16471_vm9, %v13347_v2, %v13348_v33  ;;  %v13366_v20 = vpop.permute.xlu0 %13365  ;;  %v12296_v38 = vld [vmem:[%s16131_s4 + $0xc0] sm:$0xff]  ;;  %vm16482_vm6 = vmmov %vm16477_vm0  ;;  %vm16485_vm9 = vcmask 138240  }
 0x5ba   : > { %v8907_v46 = vpop.f32.mrf.mxu2 }
 0x5bb   : > { %v8936_v17 = vadd.f32 %v8907_v46, %v8763_v49  ;;  %v8991_v61 = vpop.f32.mrf.mxu0  ;;  %v9011_v7 = vpop.f32.mrf.mxu1 }
 0x5bc   : > { %v9134_v0 = vadd.f32 %v8991_v61, %v8930_v41  ;;  %v9135_v11 = vadd.f32 %v9011_v7, %v8931_v25  ;;  %v13361_v62 = vpop.permute.xlu2 %13360 }
 0x5bd   : > { %12282 = vmatmul.msk.f32.vlgmr.msra.gmra.mxu3 %vm358_vm1, %v12278_v28  ;;  %v13363_v8 = vunpack.i.h.bf16 %v13361_v62  ;;  %v13362_v9 = vunpack.i.l.bf16 %v13361_v62 }
 0x5be   : > { %12279 = vmatmul.msk.f32.vlgmr.msra.gmra.mxu0 %vm358_vm1, %v12278_v28  ;;  %12280 = vmatmul.msk.f32.vlgmr.msra.gmra.mxu1 %vm358_vm1, %v12278_v28 }
 0x5bf   : > { %12281 = vmatmul.msk.f32.vlgmr.msra.gmra.mxu2 %vm358_vm1, %v12278_v28  ;;  %10861 = vmatpush.msra.mxu0 %v10827_v1 }
 0x5c0   : > { %10881 = vmatpush.msra.mxu1 %v10828_v32  ;;  %10901 = vmatpush.msra.mxu2 %v10829_v3  ;;  %v9051_v47 = vpop.f32.mrf.mxu3  ;;  %v11041_v3 = vsel %vm16476_vm14, %v13362_v9, %v13363_v8  ;;  %v12305_v8 = vld [vmem:[%s16131_s4 + $0xc8] sm:$0xff]  ;;  %vm16490_vm14 = vmmov %vm16485_vm9 }
 0x5c1   : > { %10921 = vmatpush.msra.mxu3 %v10830_v24  ;;  %v9137_v53 = vadd.f32 %v9051_v47, %v8933_v37  ;;  %v13376_v32 = vpop.permute.xlu1 %13375 }
 0x5c2   : > { %v9031_v39 = vpop.f32.mrf.mxu2  ;;  %v13377_v44 = vunpack.i.l.bf16 %v13376_v32 }
 0x5c3   : > { %v9136_v49 = vadd.f32 %v9031_v39, %v8932_v63  ;;  %v9071_v51 = vpop.f32.mrf.mxu0  ;;  %v9091_v41 = vpop.f32.mrf.mxu1  ;;  %v13357_v63 = vunpack.i.l.bf16 %v13356_v42 }
 0x5c4   : > { %v9138_v22 = vadd.f32 %v9071_v51, %v8934_v14  ;;  %v9139_v25 = vadd.f32 %v9091_v41, %v8935_v15  ;;  %v13352_v14 = vunpack.i.l.bf16 %v13351_v13  ;;  %v13371_v59 = vpop.permute.xlu2 %13370  ;;  %v13368_v13 = vunpack.i.h.bf16 %v13366_v20 }
 0x5c5   : > { %12286 = vmatmul.msk.f32.vlgmr.msrb.gmra.mxu3 %vm358_vm1, %v12278_v28  ;;  %v11034_v36 = vsel %vm16469_vm7, %v13353_v58, %v13357_v63  ;;  %v11035_v6 = vsel %vm16470_vm8, %v13357_v63, %v13347_v2  ;;  %v13372_v51 = vunpack.i.l.bf16 %v13371_v59  ;;  %vm16483_vm7 = vmmov %vm16477_vm0 }
 0x5c6   : > { %12283 = vmatmul.msk.f32.vlgmr.msrb.gmra.mxu0 %vm358_vm1, %v12278_v28  ;;  %12284 = vmatmul.msk.f32.vlgmr.msrb.gmra.mxu1 %vm358_vm1, %v12278_v28  ;;  %v11037_v10 = vsel %vm16472_vm10, %v13348_v33, %v13352_v14  ;;  %v11038_v7 = vsel %vm16473_vm11, %v13352_v14, %v11027_v4  ;;  %v13378_v33 = vunpack.i.h.bf16 %v13376_v32  ;;  %vm16484_vm8 = vmmov %vm16477_vm0 }
 0x5c7   : > { %12285 = vmatmul.msk.f32.vlgmr.msrb.gmra.mxu2 %vm358_vm1, %v12278_v28  ;;  %10941 = vmatpush.msrb.mxu0 %v10831_v16  ;;  %v11244_v62 = vsel %vm16480_vm4, %v13368_v13, %v13372_v51  ;;  %vm16486_vm10 = vmmov %vm16485_vm9 }
 0x5c8   : > { %10961 = vmatpush.msrb.mxu1 %v10832_v34  ;;  %10981 = vmatpush.msrb.mxu2 %v10833_v56  ;;  %v9131_v40 = vpop.f32.mrf.mxu3  ;;  %v13381_v34 = vpop.permute.xlu0 %13380  ;;  %vm16487_vm11 = vmmov %vm16485_vm9 }
 0x5c9   : > { %11001 = vmatpush.msrb.mxu3 %v10834_v5  ;;  %v9141_v37 = vadd.f32 %v9131_v40, %v8937_v18 }
 0x5ca   : > { %v9111_v43 = vpop.f32.mrf.mxu2 }
 0x5cb   : > { %v9140_v35 = vadd.f32 %v9111_v43, %v8936_v17  ;;  %v9195_v50 = vpop.f32.mrf.mxu0  ;;  %v9215_v45 = vpop.f32.mrf.mxu1  ;;  %v13358_v17 = vunpack.i.h.bf16 %v13356_v42 }
 0x5cc   : > { %v9338_v30 = vadd.f32 %v9195_v50, %v9134_v0  ;;  %v9339_v15 = vadd.f32 %v9215_v45, %v9135_v11  ;;  %v11234_v41 = vpop.permute.xlu2 %11233 }
 0x5cd   : > { %12291 = vmatmul.msk.f32.vlgmr.msra.gmra.mxu3 %vm358_vm1, %v12287_v23  ;;  %v11039_v11 = vsel %vm16474_vm12, %v11027_v4, %v13358_v17  ;;  %v11040_v21 = vsel %vm16475_vm13, %v13358_v17, %v13362_v9  ;;  %v13386_v4 = vpop.permute.xlu1 %13385  ;;  %v11246_v45 = vsel %vm16482_vm6, %v11234_v41, %v13378_v33  ;;  %vm16488_vm12 = vmmov %vm16485_vm9 }
 0x5ce   : > { %12288 = vmatmul.msk.f32.vlgmr.msra.gmra.mxu0 %vm358_vm1, %v12287_v23  ;;  %12289 = vmatmul.msk.f32.vlgmr.msra.gmra.mxu1 %vm358_vm1, %v12287_v23  ;;  %v13388_v9 = vunpack.i.h.bf16 %v13386_v4  ;;  %vm16489_vm13 = vmmov %vm16485_vm9 }
 0x5cf   : > { %12290 = vmatmul.msk.f32.vlgmr.msra.gmra.mxu2 %vm358_vm1, %v12287_v23  ;;  %11068 = vmatpush.msra.mxu0 %v11034_v36 }
 0x5d0   : > { %11088 = vmatpush.msra.mxu1 %v11035_v6  ;;  %11108 = vmatpush.msra.mxu2 %v11036_v29  ;;  %v9255_v46 = vpop.f32.mrf.mxu3 }
 0x5d1   : > { %11128 = vmatpush.msra.mxu3 %v11037_v10  ;;  %v9341_v52 = vadd.f32 %v9255_v46, %v9137_v53  ;;  %v13367_v53 = vunpack.i.l.bf16 %v13366_v20  ;;  %v13391_v10 = vpop.permute.xlu0 %13390 }
 0x5d2   : > { %v9235_v18 = vpop.f32.mrf.mxu2  ;;  %v13392_v20 = vunpack.i.l.bf16 %v13391_v10 }
 0x5d3   : > { %v9340_v28 = vadd.f32 %v9235_v18, %v9136_v49  ;;  %v9275_v61 = vpop.f32.mrf.mxu0  ;;  %v9295_v0 = vpop.f32.mrf.mxu1  ;;  %v13373_v49 = vunpack.i.h.bf16 %v13371_v59  ;;  %v11242_v5 = vsel %vm16478_vm2, %v13377_v44, %v13367_v53  ;;  %v11243_v40 = vsel %vm16479_vm3, %v13367_v53, %v13368_v13 }
 0x5d4   : > { %v9342_v55 = vadd.f32 %v9275_v61, %v9138_v22  ;;  %v9343_v1 = vadd.f32 %v9295_v0, %v9139_v25  ;;  %v13396_v36 = vpop.permute.xlu2 %13395  ;;  %v13387_v59 = vunpack.i.l.bf16 %v13386_v4  ;;  %v13393_v61 = vunpack.i.h.bf16 %v13391_v10 }
 0x5d5   : > { %12295 = vmatmul.msk.f32.vlgmr.msrb.gmra.mxu3 %vm358_vm1, %v12287_v23  ;;  %v11241_v56 = vsel %vm16477_vm0, %v13373_v49, %v13377_v44  ;;  %v13397_v17 = vunpack.i.l.bf16 %v13396_v36  ;;  %v13398_v44 = vunpack.i.h.bf16 %v13396_v36  ;;  %vm16491_vm0 = vmmov %vm16485_vm9 }
 0x5d6   : > { %12292 = vmatmul.msk.f32.vlgmr.msrb.gmra.mxu0 %vm358_vm1, %v12287_v23  ;;  %12293 = vmatmul.msk.f32.vlgmr.msrb.gmra.mxu1 %vm358_vm1, %v12287_v23  ;;  %vm16492_vm2 = vmmov %vm16491_vm0 }
 0x5d7   : > { %12294 = vmatmul.msk.f32.vlgmr.msrb.gmra.mxu2 %vm358_vm1, %v12287_v23  ;;  %11148 = vmatpush.msrb.mxu0 %v11038_v7  ;;  %v13382_v23 = vunpack.i.l.bf16 %v13381_v34  ;;  %v11449_v32 = vsel %vm16486_vm10, %v13397_v17, %v13387_v59 }
 0x5d8   : > { %11168 = vmatpush.msrb.mxu1 %v11039_v11  ;;  %11188 = vmatpush.msrb.mxu2 %v11040_v21  ;;  %v9335_v24 = vpop.f32.mrf.mxu3  ;;  %v11450_v21 = vsel %vm16487_vm11, %v13387_v59, %v13388_v9 }
 0x5d9   : > { %11208 = vmatpush.msrb.mxu3 %v11041_v3  ;;  %v9345_v39 = vadd.f32 %v9335_v24, %v9141_v37  ;;  %v11247_v6 = vsel %vm16483_vm7, %v13378_v33, %v13382_v23  ;;  %v11451_v3 = vsel %vm16488_vm12, %v13388_v9, %v13392_v20  ;;  %v13401_v24 = vpop.permute.xlu1 %13400  ;;  %v11441_v13 = vpop.permute.xlu0 %11440 }
 0x5da   : > { %v9315_v47 = vpop.f32.mrf.mxu2 }
 0x5db   : > { %v9344_v19 = vadd.f32 %v9315_v47, %v9140_v35  ;;  %v9399_v22 = vpop.f32.mrf.mxu0  ;;  %v9419_v25 = vpop.f32.mrf.mxu1  ;;  %v13383_v35 = vunpack.i.h.bf16 %v13381_v34  ;;  %v11453_v34 = vsel %vm16490_vm14, %v11441_v13, %v13398_v44 }
 0x5dc   : > { %v9542_v16 = vadd.f32 %v9399_v22, %v9338_v30  ;;  %v9543_v42 = vadd.f32 %v9419_v25, %v9339_v15  ;;  %v11245_v30 = vsel %vm16481_vm5, %v13372_v51, %v11234_v41 }
 0x5dd   : > { %12300 = vmatmul.msk.f32.vlgmr.msra.gmra.mxu3 %vm358_vm1, %v12296_v38  ;;  %v11248_v29 = vsel %vm16484_vm8, %v13382_v23, %v13383_v35 }
 0x5de   : > { %12297 = vmatmul.msk.f32.vlgmr.msra.gmra.mxu0 %vm358_vm1, %v12296_v38  ;;  %12298 = vmatmul.msk.f32.vlgmr.msra.gmra.mxu1 %vm358_vm1, %v12296_v38 }
 0x5df   : > { %12299 = vmatmul.msk.f32.vlgmr.msra.gmra.mxu2 %vm358_vm1, %v12296_v38  ;;  %11275 = vmatpush.msra.mxu0 %v11241_v56 }
 0x5e0   : > { %11295 = vmatpush.msra.mxu1 %v11242_v5  ;;  %11315 = vmatpush.msra.mxu2 %v11243_v40  ;;  %v9459_v43 = vpop.f32.mrf.mxu3 }
 0x5e1   : > { %11335 = vmatpush.msra.mxu3 %v11244_v62  ;;  %v9545_v63 = vadd.f32 %v9459_v43, %v9341_v52 }
 0x5e2   : > { %v9439_v37 = vpop.f32.mrf.mxu2 }
 0x5e3   : > { %v9544_v2 = vadd.f32 %v9439_v37, %v9340_v28  ;;  %v9479_v58 = vpop.f32.mrf.mxu0  ;;  %v9499_v14 = vpop.f32.mrf.mxu1  ;;  %v12314_v37 = vld [vmem:[%s16131_s4 + $0xd0] sm:$0xff] }
 0x5e4   : > { %v9546_v50 = vadd.f32 %v9479_v58, %v9342_v55  ;;  %v9547_v15 = vadd.f32 %v9499_v14, %v9343_v1  ;;  %v11448_v1 = vsel %vm16485_vm9, %v13393_v61, %v13397_v17 }
 0x5e5   : > { %12304 = vmatmul.msk.f32.vlgmr.msrb.gmra.mxu3 %vm358_vm1, %v12296_v38 }
 0x5e6   : > { %12301 = vmatmul.msk.f32.vlgmr.msrb.gmra.mxu0 %vm358_vm1, %v12296_v38  ;;  %12302 = vmatmul.msk.f32.vlgmr.msrb.gmra.mxu1 %vm358_vm1, %v12296_v38 }
 0x5e7   : > { %12303 = vmatmul.msk.f32.vlgmr.msrb.gmra.mxu2 %vm358_vm1, %v12296_v38  ;;  %11355 = vmatpush.msrb.mxu0 %v11245_v30  ;;  %v13402_v38 = vunpack.i.l.bf16 %v13401_v24 }
 0x5e8   : > { %11375 = vmatpush.msrb.mxu1 %v11246_v45  ;;  %11395 = vmatpush.msrb.mxu2 %v11247_v6  ;;  %v9539_v46 = vpop.f32.mrf.mxu3 }
 0x5e9   : > { %11415 = vmatpush.msrb.mxu3 %v11248_v29  ;;  %v9549_v52 = vadd.f32 %v9539_v46, %v9345_v39 }
 0x5ea   : > { %v9519_v18 = vpop.f32.mrf.mxu2 }
 0x5eb   : > { %v9548_v28 = vadd.f32 %v9519_v18, %v9344_v19  ;;  %v9603_v55 = vpop.f32.mrf.mxu0  ;;  %v9623_v7 = vpop.f32.mrf.mxu1  ;;  %v13403_v19 = vunpack.i.h.bf16 %v13401_v24 }
 0x5ec   : > { %v9746_v0 = vadd.f32 %v9603_v55, %v9542_v16  ;;  %v9747_v11 = vadd.f32 %v9623_v7, %v9543_v42  ;;  %v11452_v16 = vsel %vm16489_vm13, %v13392_v20, %v11441_v13  ;;  %v11454_v42 = vsel %vm16491_vm0, %v13398_v44, %v13402_v38 }
 0x5ed   : > { %12309 = vmatmul.msk.f32.vlgmr.msra.gmra.mxu3 %vm358_vm1, %v12305_v8  ;;  %v11455_v56 = vsel %vm16492_vm2, %v13402_v38, %v13403_v19 }
 0x5ee   : > { %12306 = vmatmul.msk.f32.vlgmr.msra.gmra.mxu0 %vm358_vm1, %v12305_v8  ;;  %12307 = vmatmul.msk.f32.vlgmr.msra.gmra.mxu1 %vm358_vm1, %v12305_v8 }
 0x5ef   : > { %12308 = vmatmul.msk.f32.vlgmr.msra.gmra.mxu2 %vm358_vm1, %v12305_v8  ;;  %11482 = vmatpush.msra.mxu0 %v11448_v1 }
 0x5f0   : > { %11502 = vmatpush.msra.mxu1 %v11449_v32  ;;  %11522 = vmatpush.msra.mxu2 %v11450_v21  ;;  %v9663_v47 = vpop.f32.mrf.mxu3 }
 0x5f1   : > { %11542 = vmatpush.msra.mxu3 %v11451_v3  ;;  %v9749_v53 = vadd.f32 %v9663_v47, %v9545_v63 }
 0x5f2   : > { %v9643_v39 = vpop.f32.mrf.mxu2 }
 0x5f3   : > { %v9748_v49 = vadd.f32 %v9643_v39, %v9544_v2  ;;  %v9683_v51 = vpop.f32.mrf.mxu0  ;;  %v9703_v41 = vpop.f32.mrf.mxu1 }
 0x5f4   : > { %v9750_v22 = vadd.f32 %v9683_v51, %v9546_v50  ;;  %v9751_v25 = vadd.f32 %v9703_v41, %v9547_v15 }
 0x5f5   : > { %12313 = vmatmul.msk.f32.vlgmr.msrb.gmra.mxu3 %vm358_vm1, %v12305_v8 }
 0x5f6   : > { %12310 = vmatmul.msk.f32.vlgmr.msrb.gmra.mxu0 %vm358_vm1, %v12305_v8  ;;  %12311 = vmatmul.msk.f32.vlgmr.msrb.gmra.mxu1 %vm358_vm1, %v12305_v8 }
 0x5f7   : > { %12312 = vmatmul.msk.f32.vlgmr.msrb.gmra.mxu2 %vm358_vm1, %v12305_v8  ;;  %11562 = vmatpush.msrb.mxu0 %v11452_v16 }
 0x5f8   : > { %11582 = vmatpush.msrb.mxu1 %v11453_v34  ;;  %11602 = vmatpush.msrb.mxu2 %v11454_v42  ;;  %v9743_v5 = vpop.f32.mrf.mxu3 }
 0x5f9   : > { %11622 = vmatpush.msrb.mxu3 %v11455_v56  ;;  %v9753_v62 = vadd.f32 %v9743_v5, %v9549_v52 }
 0x5fa   : > { %v9723_v40 = vpop.f32.mrf.mxu2 }
 0x5fb   : > { %v9752_v43 = vadd.f32 %v9723_v40, %v9548_v28  ;;  %v9828_v63 = vpop.f32.mrf.mxu0  ;;  %v9848_v35 = vpop.f32.mrf.mxu1 }
 0x5fc   : > { %v9971_v2 = vadd.f32 %v9828_v63, %v9746_v0  ;;  %v9972_v23 = vadd.f32 %v9848_v35, %v9747_v11 }
 0x5fd   : > { %12318 = vmatmul.msk.f32.vlgmr.msra.gmra.mxu3 %vm358_vm1, %v12314_v37 }
 0x5fe   : > { %12315 = vmatmul.msk.f32.vlgmr.msra.gmra.mxu0 %vm358_vm1, %v12314_v37  ;;  %12316 = vmatmul.msk.f32.vlgmr.msra.gmra.mxu1 %vm358_vm1, %v12314_v37 }
 0x5ff   : > { %12317 = vmatmul.msk.f32.vlgmr.msra.gmra.mxu2 %vm358_vm1, %v12314_v37 }
 0x600   : > { %v9888_v33 = vpop.f32.mrf.mxu3 }
 0x601   : > { %v9974_v50 = vadd.f32 %v9888_v33, %v9749_v53 }
 0x602   : > { %v9868_v58 = vpop.f32.mrf.mxu2 }
 0x603   : > { %v9973_v14 = vadd.f32 %v9868_v58, %v9748_v49  ;;  %v9908_v4 = vpop.f32.mrf.mxu0  ;;  %v9928_v45 = vpop.f32.mrf.mxu1 }
 0x604   : > { %v9975_v30 = vadd.f32 %v9908_v4, %v9750_v22  ;;  %v9976_v15 = vadd.f32 %v9928_v45, %v9751_v25 }
 0x605   : > { %12322 = vmatmul.msk.f32.vlgmr.msrb.gmra.mxu3 %vm358_vm1, %v12314_v37 }
 0x606   : > { %12319 = vmatmul.msk.f32.vlgmr.msrb.gmra.mxu0 %vm358_vm1, %v12314_v37  ;;  %12320 = vmatmul.msk.f32.vlgmr.msrb.gmra.mxu1 %vm358_vm1, %v12314_v37 }
 0x607   : > { %12321 = vmatmul.msk.f32.vlgmr.msrb.gmra.mxu2 %vm358_vm1, %v12314_v37 }
 0x608   : > { %v9968_v36 = vpop.f32.mrf.mxu3 }
 0x609   : > { %v9978_v29 = vadd.f32 %v9968_v36, %v9753_v62 }
 0x60a   : > { %v9948_v6 = vpop.f32.mrf.mxu2 }
 0x60b   : > { %v9977_v10 = vadd.f32 %v9948_v6, %v9752_v43  ;;  %v10035_v46 = vpop.f32.mrf.mxu0  ;;  %v10055_v52 = vpop.f32.mrf.mxu1 }
 0x60c   : > { %v10178_v18 = vadd.f32 %v10035_v46, %v9971_v2  ;;  %v10179_v17 = vadd.f32 %v10055_v52, %v9972_v23 }
 0x610   : > { %v10095_v28 = vpop.f32.mrf.mxu3 }
 0x611   : > { %v10181_v9 = vadd.f32 %v10095_v28, %v9974_v50 }
 0x612   : > { %v10075_v8 = vpop.f32.mrf.mxu2 }
 0x613   : > { %v10180_v59 = vadd.f32 %v10075_v8, %v9973_v14  ;;  %v10115_v20 = vpop.f32.mrf.mxu0  ;;  %v10135_v55 = vpop.f32.mrf.mxu1 }
 0x614   : > { %v10182_v61 = vadd.f32 %v10115_v20, %v9975_v30  ;;  %v10183_v0 = vadd.f32 %v10135_v55, %v9976_v15 }
 0x618   : > { %v10175_v7 = vpop.f32.mrf.mxu3 }
 0x619   : > { %v10185_v1 = vadd.f32 %v10175_v7, %v9978_v29 }
 0x61a   : > { %v10155_v11 = vpop.f32.mrf.mxu2 }
 0x61b   : > { %v10184_v32 = vadd.f32 %v10155_v11, %v9977_v10  ;;  %v10242_v21 = vpop.f32.mrf.mxu0  ;;  %v10262_v24 = vpop.f32.mrf.mxu1 }
 0x61c   : > { %v10385_v3 = vadd.f32 %v10242_v21, %v10178_v18  ;;  %v10386_v47 = vadd.f32 %v10262_v24, %v10179_v17 }
 0x620   : > { %v10302_v39 = vpop.f32.mrf.mxu3 }
 0x621   : > { %v10388_v44 = vadd.f32 %v10302_v39, %v10181_v9 }
 0x622   : > { %v10282_v53 = vpop.f32.mrf.mxu2 }
 0x623   : > { %v10387_v49 = vadd.f32 %v10282_v53, %v10180_v59  ;;  %v10322_v19 = vpop.f32.mrf.mxu0  ;;  %v10342_v13 = vpop.f32.mrf.mxu1 }
 0x624   : > { %v10389_v38 = vadd.f32 %v10322_v19, %v10182_v61  ;;  %v10390_v51 = vadd.f32 %v10342_v13, %v10183_v0 }
 0x628   : > { %v10382_v22 = vpop.f32.mrf.mxu3 }
 0x629   : > { %v10392_v16 = vadd.f32 %v10382_v22, %v10185_v1 }
 0x62a   : > { %v10362_v41 = vpop.f32.mrf.mxu2 }
 0x62b   : > { %v10391_v25 = vadd.f32 %v10362_v41, %v10184_v32  ;;  %v10449_v34 = vpop.f32.mrf.mxu0  ;;  %v10469_v56 = vpop.f32.mrf.mxu1 }
 0x62c   : > { %v10592_v42 = vadd.f32 %v10449_v34, %v10385_v3  ;;  %v10593_v5 = vadd.f32 %v10469_v56, %v10386_v47 }
 0x630   : > { %v10509_v40 = vpop.f32.mrf.mxu3 }
 0x631   : > { %v10595_v43 = vadd.f32 %v10509_v40, %v10388_v44 }
 0x632   : > { %v10489_v62 = vpop.f32.mrf.mxu2 }
 0x633   : > { %v10594_v37 = vadd.f32 %v10489_v62, %v10387_v49  ;;  %v10529_v63 = vpop.f32.mrf.mxu0  ;;  %v10549_v35 = vpop.f32.mrf.mxu1 }
 0x634   : > { %v10596_v2 = vadd.f32 %v10529_v63, %v10389_v38  ;;  %v10597_v23 = vadd.f32 %v10549_v35, %v10390_v51 }
 0x638   : > { %v10589_v33 = vpop.f32.mrf.mxu3 }
 0x639   : > { %v10599_v50 = vadd.f32 %v10589_v33, %v10392_v16 }
 0x63a   : > { %v10569_v58 = vpop.f32.mrf.mxu2 }
 0x63b   : > { %v16077_v14 = vadd.f32 %v10569_v58, %v10391_v25  ;;  %v10656_v4 = vpop.f32.mrf.mxu0  ;;  %v10676_v30 = vpop.f32.mrf.mxu1 }
 0x63c   : > { %v10799_v53 = vadd.f32 %v10656_v4, %v10592_v42  ;;  %v10800_v49 = vadd.f32 %v10676_v30, %v10593_v5 }
 0x640   : > { %v10716_v45 = vpop.f32.mrf.mxu3 }
 0x641   : > { %v10802_v16 = vadd.f32 %v10716_v45, %v10595_v43 }
 0x642   : > { %v10696_v15 = vpop.f32.mrf.mxu2 }
 0x643   : > { %v10736_v36 = vpop.f32.mrf.mxu0  ;;  %v10756_v6 = vpop.f32.mrf.mxu1  ;;  %v10801_v41 = vadd.f32 %v10696_v15, %v10594_v37 }
 0x644   : > { %v10803_v35 = vadd.f32 %v10736_v36, %v10596_v2  ;;  %v10804_v33 = vadd.f32 %v10756_v6, %v10597_v23 }
 0x648   : > { %v10796_v29 = vpop.f32.mrf.mxu3 }
 0x649   : > { %v10806_v15 = vadd.f32 %v10796_v29, %v10599_v50 }
 0x64a   : > { %v10776_v10 = vpop.f32.mrf.mxu2 }
 0x64b   : > { %v10863_v46 = vpop.f32.mrf.mxu0  ;;  %v10883_v18 = vpop.f32.mrf.mxu1  ;;  %v10805_v2 = vadd.f32 %v10776_v10, %v16077_v14 }
 0x64c   : > { %v11006_v19 = vadd.f32 %v10863_v46, %v10799_v53  ;;  %v11007_v38 = vadd.f32 %v10883_v18, %v10800_v49 }
 0x650   : > { %v10923_v52 = vpop.f32.mrf.mxu3 }
 0x651   : > { %v11009_v40 = vadd.f32 %v10923_v52, %v10802_v16 }
 0x652   : > { %v10903_v17 = vpop.f32.mrf.mxu2 }
 0x653   : > { %v10943_v28 = vpop.f32.mrf.mxu0  ;;  %v10963_v8 = vpop.f32.mrf.mxu1  ;;  %v11008_v56 = vadd.f32 %v10903_v17, %v10801_v41 }
 0x654   : > { %v11010_v30 = vadd.f32 %v10943_v28, %v10803_v35  ;;  %v11011_v46 = vadd.f32 %v10963_v8, %v10804_v33 }
 0x658   : > { %v11003_v9 = vpop.f32.mrf.mxu3 }
 0x65a   : > { %v10983_v59 = vpop.f32.mrf.mxu2 }
 0x65b   : > { %v11070_v20 = vpop.f32.mrf.mxu0  ;;  %v11090_v61 = vpop.f32.mrf.mxu1 }
 0x65c   : > { %v11213_v51 = vadd.f32 %v11070_v20, %v11006_v19  ;;  %v11214_v25 = vadd.f32 %v11090_v61, %v11007_v38  ;;  %v11013_v61 = vadd.f32 %v11003_v9, %v10806_v15 }
 0x660   : > { %v11130_v55 = vpop.f32.mrf.mxu3 }
 0x661   : > { %v11216_v4 = vadd.f32 %v11130_v55, %v11009_v40 }
 0x662   : > { %v11110_v0 = vpop.f32.mrf.mxu2 }
 0x663   : > { %v11150_v7 = vpop.f32.mrf.mxu0  ;;  %v11170_v11 = vpop.f32.mrf.mxu1  ;;  %v11215_v42 = vadd.f32 %v11110_v0, %v11008_v56 }
 0x664   : > { %v11217_v52 = vadd.f32 %v11150_v7, %v11010_v30  ;;  %v11218_v23 = vadd.f32 %v11170_v11, %v11011_v46 }
 0x668   : > { %v11210_v1 = vpop.f32.mrf.mxu3 }
 0x66a   : > { %v11190_v32 = vpop.f32.mrf.mxu2 }
 0x66b   : > { %v11277_v21 = vpop.f32.mrf.mxu0  ;;  %v11297_v3 = vpop.f32.mrf.mxu1 }
 0x66c   : > { %v11420_v34 = vadd.f32 %v11277_v21, %v11213_v51  ;;  %v11421_v62 = vadd.f32 %v11297_v3, %v11214_v25  ;;  %v11220_v3 = vadd.f32 %v11210_v1, %v11013_v61 }
 0x670   : > { %v11337_v24 = vpop.f32.mrf.mxu3 }
 0x671   : > { %v11423_v20 = vadd.f32 %v11337_v24, %v11216_v4 }
 0x672   : > { %v11317_v47 = vpop.f32.mrf.mxu2 }
 0x673   : > { %v11357_v39 = vpop.f32.mrf.mxu0  ;;  %v11377_v44 = vpop.f32.mrf.mxu1  ;;  %v11422_v18 = vadd.f32 %v11317_v47, %v11215_v42 }
 0x674   : > { %v11424_v55 = vadd.f32 %v11357_v39, %v11217_v52  ;;  %v11425_v28 = vadd.f32 %v11377_v44, %v11218_v23 }
 0x678   : > { %v11417_v13 = vpop.f32.mrf.mxu3 }
 0x679   : > { %v11427_v14 = vadd.f32 %v11417_v13, %v11220_v3 }
 0x67a   : > { %v11397_v22 = vpop.f32.mrf.mxu2 }
 0x67b   : > { %v11484_v63 = vpop.f32.mrf.mxu0  ;;  %v11504_v31 = vpop.f32.mrf.mxu1 }
 0x67c   : > { %v11627_v58 = vadd.f32 %v11484_v63, %v11420_v34  ;;  %v11628_v5 = vadd.f32 %v11504_v31, %v11421_v62  ;;  %v11012_v31 = vadd.f32 %v10983_v59, %v10805_v2  ;;  %v11636_v34 = vld [vmem:[%s16133_s6] sm:$0xff] }
 0x67e   : > { %v11637_v37 = vmul.f32 %v11627_v58, %v15018_v12  ;;  %v11638_v43 = vmul.f32 %v11628_v5, %v15011_v48  ;;  %v11219_v53 = vadd.f32 %v11190_v32, %v11012_v31  ;;  %v16493_v32 = vld [vmem:[#allocation10_spill] sm:$0xff] }
 0x680   : > { %v11544_v45 = vpop.f32.mrf.mxu3  ;;  %v11645_v8 = vadd.f32 %v11638_v43, %v11637_v37  ;;  %v11426_v10 = vadd.f32 %v11397_v22, %v11219_v53  ;;  %v11635_v22 = vld [vmem:[%s16132_s5] sm:$0xff] }
 0x681   : > { %v11630_v6 = vadd.f32 %v11544_v45, %v11423_v20  ;;  %11712 = vperm.xlu0 %13404, %v11635_v22  }
 0x682   : > { %v11524_v17 = vpop.f32.mrf.mxu2 }
 0x683   : > { %v11629_v36 = vadd.f32 %v11524_v17, %v11422_v18  ;;  %v11564_v21 = vpop.f32.mrf.mxu0  ;;  %v11584_v47 = vpop.f32.mrf.mxu1  ;;  %v11640_v29 = vmul.f32 %v11630_v6, %v15045_v60 }
 0x684   : > { %v11631_v24 = vadd.f32 %v11564_v21, %v11424_v55  ;;  %v11632_v7 = vadd.f32 %v11584_v47, %v11425_v28 }
 0x685   : > { %v11639_v0 = vmul.f32 %v11629_v36, %v15032_v57 }
 0x686   : > { %v11641_v9 = vmul.f32 %v11631_v24, %v15050_v27  ;;  %v11642_v19 = vmul.f32 %v11632_v7, %v15057_v54 }
 0x687   : > { %v11646_v50 = vadd.f32 %v11645_v8, %v11639_v0 }
 0x688   : > { %v11624_v39 = vpop.f32.mrf.mxu3 }
 0x689   : > { %v11647_v11 = vadd.f32 %v11646_v50, %v11640_v29  ;;  %v11634_v44 = vadd.f32 %v11624_v39, %v11427_v14  ;;  %11725 = vperm.xlu0 %13404, %v11636_v34  }
 0x68a   : > { %v11604_v59 = vpop.f32.mrf.mxu2 }
 0x68b   : > { %v11648_v49 = vadd.f32 %v11647_v11, %v11641_v9  ;;  %v11633_v38 = vadd.f32 %v11604_v59, %v11426_v10  ;;  %v11644_v1 = vmul.f32 %v11634_v44, %v15067_v26 }
 0x68d   : > { %v11649_v51 = vadd.f32 %v11648_v49, %v11642_v19  ;;  %v11643_v41 = vmul.f32 %v11633_v38, %v16493_v32  ;;  %v11651_v16 = vsel %vm5936_vm15, %v11644_v1, 0.0 }
 0x68f   : > { %v11650_v25 = vadd.f32 %v11649_v51, %v11643_v41 }
 0x691   : > { %v11652_v13 = vadd.f32 %v11651_v16, %v11650_v25 }
 0x693   : > { %11653 = vadd.xlane.f32.xlu2 %v11652_v13 }
 0x6f3   : > { %v11713_v9 = vpop.permute.xlu0 %11712 }
 0x706   : > { %v11654_v56 = vpop.xlane.xlu2 %11653 }
 0x707   : > { %v11655_v40 = vmul.f32 0.001953125, %v11654_v56 }
 0x709   : > { %v11656_v62 = vsub.f32 %v11627_v58, %v11655_v40  ;;  %v11657_v63 = vsub.f32 %v11628_v5, %v11655_v40  ;;  %v11658_v35 = vsub.f32 %v11629_v36, %v11655_v40  ;;  %v11659_v33 = vsub.f32 %v11630_v6, %v11655_v40 }
 0x70a   : > { %v11660_v42 = vsub.f32 %v11631_v24, %v11655_v40  ;;  %v11661_v18 = vsub.f32 %v11632_v7, %v11655_v40  ;;  %v11663_v45 = vsub.f32 %v11634_v44, %v11655_v40  ;;  %v11662_v15 = vsub.f32 %v11633_v38, %v11655_v40  ;;  %v11726_v40 = vpop.permute.xlu0 %11725 }
 0x70b   : > { %v11664_v4 = vmul.f32 %v11656_v62, %v15018_v12  ;;  %v11665_v30 = vmul.f32 %v11657_v63, %v15011_v48  ;;  %v11666_v46 = vmul.f32 %v11658_v35, %v15032_v57  ;;  %v11667_v20 = vmul.f32 %v11659_v33, %v15045_v60 }
 0x70c   : > { %v11668_v52 = vmul.f32 %v11660_v42, %v15050_v27  ;;  %v11669_v17 = vmul.f32 %v11661_v18, %v15057_v54  ;;  %v11671_v36 = vmul.f32 %v11663_v45, %v15067_v26  ;;  %v11670_v6 = vmul.f32 %v11662_v15, %v16493_v32 }
 0x70d   : > { %v11672_v37 = vmul.f32 %v11664_v4, %v11664_v4  ;;  %v11673_v43 = vmul.f32 %v11665_v30, %v11665_v30  ;;  %v11674_v58 = vmul.f32 %v11666_v46, %v11666_v46  ;;  %v11675_v2 = vmul.f32 %v11667_v20, %v11667_v20 }
 0x70e   : > { %v11676_v61 = vmul.f32 %v11668_v52, %v11668_v52  ;;  %v11677_v31 = vmul.f32 %v11669_v17, %v11669_v17  ;;  %v11679_v8 = vmul.f32 %v11671_v36, %v11671_v36  ;;  %v11678_v0 = vmul.f32 %v11670_v6, %v11670_v6 }
 0x70f   : > { %v11680_v5 = vadd.f32 %v11673_v43, %v11672_v37 }
 0x710   : > { %v11686_v24 = vsel %vm5936_vm15, %v11679_v8, 0.0 }
 0x711   : > { %v11681_v23 = vadd.f32 %v11680_v5, %v11674_v58 }
 0x713   : > { %v11682_v55 = vadd.f32 %v11681_v23, %v11675_v2 }
 0x715   : > { %v11683_v28 = vadd.f32 %v11682_v55, %v11676_v61 }
 0x717   : > { %v11684_v21 = vadd.f32 %v11683_v28, %v11677_v31 }
 0x719   : > { %v11685_v3 = vadd.f32 %v11684_v21, %v11678_v0 }
 0x71b   : > { %v11687_v47 = vadd.f32 %v11686_v24, %v11685_v3 }
 0x71d   : > { %11688 = vadd.xlane.f32.xlu1 %v11687_v47 }
 0x790   : > { %v11689_v53 = vpop.xlane.xlu1 %11688 }
 0x791   : > { %v11690_v50 = vmul.f32 0.001953125, %v11689_v53 }
 0x793   : > { %v11691_v29 = vadd.f32 1e-05, %v11690_v50 }
 0x795   : > { %13407 = vrsqrt.f32 %v11691_v29  ;;  %vm11698_vm3 = vweird.f32 %v11691_v29 }
 0x79b   : > { %v13408_v7 = vpop.eup %13407 }
 0x79c   : > { %v11693_v14 = vmul.f32 %v13408_v7, %v11691_v29  ;;  %vm11699_vm1 = vweird.f32 %v13408_v7 }
 0x79d   : > { %vm11700_vm4 = vmor %vm11698_vm3, %vm11699_vm1 }
 0x79e   : > { %v11694_v10 = vmul.f32 %v13408_v7, %v11693_v14 }
 0x7a0   : > { %v11695_v11 = vmul.f32 0.5, %v11694_v10 }
 0x7a2   : > { %v11696_v39 = vsub.f32 1.5, %v11695_v11 }
 0x7a4   : > { %v11697_v59 = vmul.f32 %v13408_v7, %v11696_v39 }
 0x7a6   : > { %v11701_v44 = vsel %vm11700_vm4, %v13408_v7, %v11697_v59 }
 0x7a7   : > { %v11702_v49 = vmul.f32 %v11701_v44, %v11664_v4  ;;  %v11703_v19 = vmul.f32 %v11701_v44, %v11665_v30  ;;  %v11704_v38 = vmul.f32 %v11701_v44, %v11666_v46  ;;  %v11705_v1 = vmul.f32 %v11701_v44, %v11667_v20 }
 0x7a8   : > { %v11706_v51 = vmul.f32 %v11701_v44, %v11668_v52  ;;  %v11707_v41 = vmul.f32 %v11701_v44, %v11669_v17  ;;  %v11708_v16 = vmul.f32 %v11701_v44, %v11670_v6  ;;  %v11709_v25 = vmul.f32 %v11701_v44, %v11671_v36 }
 0x7a9   : > { %v11715_v13 = vmul.f32 %v11713_v9, %v11702_v49  ;;  %v11716_v22 = vmul.f32 %v11713_v9, %v11703_v19  ;;  %v11717_v34 = vmul.f32 %v11713_v9, %v11704_v38  ;;  %v11718_v56 = vmul.f32 %v11713_v9, %v11705_v1 }
 0x7aa   : > { %v11719_v62 = vmul.f32 %v11713_v9, %v11706_v51  ;;  %v11720_v63 = vmul.f32 %v11713_v9, %v11707_v41  ;;  %v11721_v35 = vmul.f32 %v11713_v9, %v11708_v16  ;;  %v11722_v33 = vmul.f32 %v11713_v9, %v11709_v25 }
 0x7ab   : > { %v11728_v42 = vadd.f32 %v11726_v40, %v11715_v13  ;;  %v11729_v18 = vadd.f32 %v11726_v40, %v11716_v22  ;;  %v11730_v4 = vadd.f32 %v11726_v40, %v11717_v34  ;;  %v11731_v30 = vadd.f32 %v11726_v40, %v11718_v56 }
 0x7ac   : > { %v11732_v46 = vadd.f32 %v11726_v40, %v11719_v62  ;;  %v11733_v20 = vadd.f32 %v11726_v40, %v11720_v63  ;;  %v11734_v37 = vadd.f32 %v11726_v40, %v11721_v35  ;;  %v11735_v43 = vadd.f32 %v11726_v40, %v11722_v33 }
 0x7ad   : > { %vm11736_vm5 = vcmp.gt.f32.partialorder %v11728_v42, 0.0  ;;  %vm11737_vm6 = vcmp.gt.f32.partialorder %v11729_v18, 0.0  ;;  %vm11738_vm7 = vcmp.gt.f32.partialorder %v11730_v4, 0.0  ;;  %vm11739_vm8 = vcmp.gt.f32.partialorder %v11731_v30, 0.0 }
 0x7ae   : > { %vm11740_vm9 = vcmp.gt.f32.partialorder %v11732_v46, 0.0  ;;  %vm11741_vm10 = vcmp.gt.f32.partialorder %v11733_v20, 0.0  ;;  %vm11742_vm11 = vcmp.gt.f32.partialorder %v11734_v37, 0.0  ;;  %v11744_v45 = vmul.f32 0.01, %v11728_v42 }
 0x7af   : > { %v11745_v15 = vmul.f32 0.01, %v11729_v18  ;;  %v11746_v52 = vmul.f32 0.01, %v11730_v4  ;;  %v11747_v58 = vmul.f32 0.01, %v11731_v30 }
 0x7b0   : > { %v11748_v5 = vmul.f32 0.01, %v11732_v46  ;;  %v11749_v17 = vmul.f32 0.01, %v11733_v20  ;;  %v11750_v2 = vmul.f32 0.01, %v11734_v37  ;;  %v11752_v36 = vsel %vm11736_vm5, %v11728_v42, %v11744_v45 }
 0x7b1   : > { %v11751_v23 = vmul.f32 0.01, %v11735_v43  ;;  %v11753_v6 = vsel %vm11737_vm6, %v11729_v18, %v11745_v15  ;;  %vm11743_vm12 = vcmp.gt.f32.partialorder %v11735_v43, 0.0  ;;  %v11754_v61 = vsel %vm11738_vm7, %v11730_v4, %v11746_v52 }
 0x7b2   : > { %v11755_v55 = vsel %vm11739_vm8, %v11731_v30, %v11747_v58  ;;  %v11756_v31 = vsel %vm11740_vm9, %v11732_v46, %v11748_v5  ;;  %v11757_v28 = vsel %vm11741_vm10, %v11733_v20, %v11749_v17  ;;  %v11760_v8 = vmul.f32 %v11752_v36, %v15018_v12 }
 0x7b3   : > { %v11761_v0 = vmul.f32 %v11753_v6, %v15011_v48  ;;  %v11758_v21 = vsel %vm11742_vm11, %v11734_v37, %v11750_v2  ;;  %v11762_v3 = vmul.f32 %v11754_v61, %v15032_v57  ;;  %v11763_v24 = vmul.f32 %v11755_v55, %v15045_v60 }
 0x7b4   : > { %v11759_v47 = vsel %vm11743_vm12, %v11735_v43, %v11751_v23  ;;  %v11764_v53 = vmul.f32 %v11756_v31, %v15050_v27  ;;  %11768 = vst [vmem:[%s305_s28] sm:$0xff] %v11760_v8  ;;  %v11765_v50 = vmul.f32 %v11757_v28, %v15057_v54  ;;  %v11766_v29 = vmul.f32 %v11758_v21, %v16493_v32 }
 0x7b5   : > { %11769 = vst [vmem:[%s305_s28 + $0x8] sm:$0xff] %v11761_v0  ;;  %v11767_v12 = vmul.f32 %v11759_v47, %v15067_v26 }
 0x7b6   : > { %11770 = vst [vmem:[%s305_s28 + $0x10] sm:$0xff] %v11762_v3 }
 0x7b7   : > { %11771 = vst [vmem:[%s305_s28 + $0x18] sm:$0xff] %v11763_v24 }
 0x7b8   : > { %11772 = vst [vmem:[%s305_s28 + $0x20] sm:$0xff] %v11764_v53 }
 0x7b9   : > { %11773 = vst [vmem:[%s305_s28 + $0x28] sm:$0xff] %v11765_v50 }
 0x7ba   : > { %11774 = vst [vmem:[%s305_s28 + $0x30] sm:$0xff] %v11766_v29 }
 0x7bb   : > { %11775 = vst.msk [vmem:[%s305_s28 + $0x38] sm:$0xff] %vm5936_vm15, %v11767_v12 }
 0x7bc PF: > { %s18_s27 = sadd.s32 1, %s13434_s27  }
 0x7bd   : > { %p15_p4 = scmp.ge.s32.totalorder %s18_s27, 4  }
 0x7bf   :  { %17 = sbr.rel (!%p15_p4) target bundleno = 1 (0x1), region = 134 }

</bundles_post_ra>
